<compile_context>
chip_gen: v7x
topology: tpu7x:2x2x1
jax: 0.10.0
libtpu: 0.0.40
codegen_flags: <defaults>
</compile_context>

<pallas_src>
import functools

import jax
import jax.numpy as jnp
from jax import lax
from jax.experimental import pallas as pl
from jax.experimental.pallas import tpu as pltpu


# Matmul operand dtype for the conv GEMMs.  jnp.bfloat16 is faster on v6e/v7x MXU and
# halves VMEM traffic; f32 is kept as the default so the numerical check below stays
# tight (accumulation is f32 either way via preferred_element_type).
MXU_INPUT_DTYPE = jnp.float32

# Lane-chunk width for the im2col GEMMs (multiple of 128 keeps chunk stores aligned).
CONV_LANE_CHUNK = 512


# ----------------------------------------------------------------------------
# In-kernel helpers (operate on VMEM refs)
# ----------------------------------------------------------------------------
def _conv3x3_relu_flat(src, w_ref, b_ref, dst, *, row_stride, l_out, chunk):
    """Valid 3x3 conv + bias + ReLU on a lane-flattened image.

    src:   Ref (Cin, L_in)   -- image flattened row-major, row stride `row_stride`
    w_ref: Ref (Cout, 9*Cin) -- weights, K index = (kh*3 + kw)*Cin + ci
    b_ref: Ref (Cout, 1)
    dst:   Ref (Cout, >= l_out) -- output on the same flattened grid (row stride
           `row_stride`).  Positions past each valid row's (W-2) columns hold finite
           garbage that downstream consumers never read.
    """
    # Hoisted out of the chunk loop: one load + cast of the packed weights / bias.
    w = w_ref[...].astype(MXU_INPUT_DTYPE)  # (Cout, 9*Cin)
    b = b_ref[...]                          # (Cout, 1), broadcasts over lanes
    for c0 in range(0, l_out, chunk):
        cw = min(chunk, l_out - c0)
        # im2col: 9 lane-shifted views stacked on the contraction (sublane) dim.
        taps = []
        for kh in range(3):
            for kw in range(3):
                s = c0 + kh * row_stride + kw
                taps.append(src[:, s:s + cw])
        patches = jnp.concatenate(taps, axis=0).astype(MXU_INPUT_DTYPE)  # (9*Cin, cw)
        acc = jnp.dot(w, patches, preferred_element_type=jnp.float32)    # (Cout, cw)
        acc = jnp.maximum(acc + b, 0.0)                                  # bias + ReLU
        dst[:, c0:c0 + cw] = acc.astype(dst.dtype)


def _maxpool2x2_flat(src, dst, *, row_stride, h_valid, w_valid):
    """2x2 stride-2 max pool (floor mode) of the valid window of a flattened image.

    src: Ref (C, L) flattened with row stride `row_stride`; valid data is the
         top-left h_valid x w_valid window.
    dst: Ref (C, (h_valid//2) * (w_valid//2)) -- compact, lane-dense pooled output.
    """
    hp, wp = h_valid // 2, w_valid // 2
    # 0/1 selection matrices: even/odd lane compaction as tiny MXU matmuls
    # (exact for 0/1 weights) instead of strided lane gathers. Built once per kernel.
    rows = lax.broadcasted_iota(jnp.int32, (2 * wp, wp), 0)
    cols = lax.broadcasted_iota(jnp.int32, (2 * wp, wp), 1)
    sel_even = (rows == 2 * cols).astype(jnp.float32)
    sel_odd = (rows == 2 * cols + 1).astype(jnp.float32)
    for i in range(hp):
        r0 = src[:, 2 * i * row_stride:2 * i * row_stride + 2 * wp]
        r1 = src[:, (2 * i + 1) * row_stride:(2 * i + 1) * row_stride + 2 * wp]
        v = jnp.maximum(r0, r1)                                        # (C, 2*wp)
        p_even = jnp.dot(v, sel_even, preferred_element_type=jnp.float32)
        p_odd = jnp.dot(v, sel_odd, preferred_element_type=jnp.float32)
        dst[:, i * wp:(i + 1) * wp] = jnp.maximum(p_even, p_odd).astype(dst.dtype)


# ----------------------------------------------------------------------------
# Fused encoder-block kernel: conv3x3+ReLU -> conv3x3+ReLU -> maxpool2x2
# ----------------------------------------------------------------------------
def _encoder_block_kernel(x_ref, w1_ref, b1_ref, w2_ref, b2_ref,
                          f_ref, p_ref, y1_scr, y2_scr, *, H, W):
    # conv1 + ReLU: x (Cin, H*W) -> y1 (C1, L1), still on the HxW flat grid.
    L1 = H * W - 2 * W - 2
    _conv3x3_relu_flat(x_ref, w1_ref, b1_ref, y1_scr,
                       row_stride=W, l_out=L1, chunk=CONV_LANE_CHUNK)
    # conv2 + ReLU: y1 -> y2 (C2, L2), same row stride W.
    L2 = L1 - 2 * W - 2
    _conv3x3_relu_flat(y1_scr, w2_ref, b2_ref, y2_scr,
                       row_stride=W, l_out=L2, chunk=CONV_LANE_CHUNK)
    # Block feature output: compact NCHW rows -> (C2, (H-4)*(W-4)), lane-dense store.
    Ho, Wo = H - 4, W - 4
    for h in range(Ho):
        f_ref[:, h * Wo:(h + 1) * Wo] = y2_scr[:, h * W:h * W + Wo]
    # 2x2 stride-2 max pool of the valid window -> next block's input.
    _maxpool2x2_flat(y2_scr, p_ref, row_stride=W, h_valid=Ho, w_valid=Wo)


def encoder_block(x_flat, w1m, b1, w2m, b2, *, H, W):
    """One fused UNet encoder block.

    x_flat: (N, Cin, H*W) NCHW image flattened over spatial dims.
    w1m: (C1, 9*Cin), b1: (C1, 1), w2m: (C2, 9*C1), b2: (C2, 1)
    Returns (features (N, C2, (H-4)*(W-4)), pooled (N, C2, ((H-4)//2)*((W-4)//2))).
    """
    N, Cin, HW = x_flat.shape
    assert HW == H * W
    C1, C2 = w1m.shape[0], w2m.shape[0]
    Ho, Wo = H - 4, W - 4
    Hp, Wp = Ho // 2, Wo // 2
    L1 = H * W - 2 * W - 2
    L2 = L1 - 2 * W - 2

    kernel = functools.partial(_encoder_block_kernel, H=H, W=W)
    return pl.pallas_call(
        kernel,
        out_shape=(
            jax.ShapeDtypeStruct((N, C2, Ho * Wo), x_flat.dtype),
            jax.ShapeDtypeStruct((N, C2, Hp * Wp), x_flat.dtype),
        ),
        grid=(N,),
        in_specs=[
            pl.BlockSpec((None, Cin, HW), lambda n: (n, 0, 0)),
            pl.BlockSpec((C1, 9 * Cin), lambda n: (0, 0)),
            pl.BlockSpec((C1, 1), lambda n: (0, 0)),
            pl.BlockSpec((C2, 9 * C1), lambda n: (0, 0)),
            pl.BlockSpec((C2, 1), lambda n: (0, 0)),
        ],
        out_specs=(
            pl.BlockSpec((None, C2, Ho * Wo), lambda n: (n, 0, 0)),
            pl.BlockSpec((None, C2, Hp * Wp), lambda n: (n, 0, 0)),
        ),
        scratch_shapes=[
            pltpu.VMEM((C1, L1), jnp.float32),   # conv1 activations (VMEM-resident)
            pltpu.VMEM((C2, L2), jnp.float32),   # conv2 activations (VMEM-resident)
        ],
        compiler_params=pltpu.CompilerParams(dimension_semantics=("parallel",)),
    )(x_flat, w1m, b1, w2m, b2)


# ----------------------------------------------------------------------------
# Encoder (parameters + forward)
# ----------------------------------------------------------------------------
def init_encoder_params(key, chs):
    """Deterministic synthetic weights. Each block: (w1, b1, w2, b2), HWIO layout."""
    params = []
    for i in range(len(chs) - 1):
        cin, cout = chs[i], chs[i + 1]
        key, k1, k2, k3, k4 = jax.random.split(key, 5)
        s1 = 1.0 / (3 * 3 * cin) ** 0.5
        s2 = 1.0 / (3 * 3 * cout) ** 0.5
        w1 = jax.random.normal(k1, (3, 3, cin, cout), jnp.float32) * s1
        b1 = jax.random.uniform(k2, (cout,), jnp.float32, -0.1, 0.1)
        w2 = jax.random.normal(k3, (3, 3, cout, cout), jnp.float32) * s2
        b2 = jax.random.uniform(k4, (cout,), jnp.float32, -0.1, 0.1)
        params.append((w1, b1, w2, b2))
    return params


def _pack_block_params(w1, b1, w2, b2):
    """HWIO (3,3,Cin,Cout) -> (Cout, 9*Cin) with K index (kh*3 + kw)*Cin + ci."""
    c1, c2 = w1.shape[-1], w2.shape[-1]
    w1m = jnp.transpose(w1, (3, 0, 1, 2)).reshape(c1, -1)
    w2m = jnp.transpose(w2, (3, 0, 1, 2)).reshape(c2, -1)
    return w1m, b1.reshape(c1, 1), w2m, b2.reshape(c2, 1)


@jax.jit
def encoder_forward(x_nchw, params):
    """Pallas implementation of Encoder.forward. Returns list of NCHW feature maps.

    No transposes anywhere: inputs/outputs stay NCHW; only free row-major reshapes.
    """
    N, C, H, W = x_nchw.shape
    x = x_nchw.reshape(N, C, H * W)            # free metadata reshape
    ftrs = []
    for (w1, b1, w2, b2) in params:
        w1m, b1c, w2m, b2c = _pack_block_params(w1, b1, w2, b2)
        f, x = encoder_block(x, w1m, b1c, w2m, b2c, H=H, W=W)
        Ho, Wo = H - 4, W - 4
        ftrs.append(f.reshape(N, w2.shape[-1], Ho, Wo))   # free reshape -> NCHW
        H, W = Ho // 2, Wo // 2                # pooled spatial dims feed next block
    return ftrs


def encoder_reference(x_nchw, params):
    """Pure-JAX (XLA) reference used only for the correctness check."""
    x = x_nchw
    ftrs = []
    for (w1, b1, w2, b2) in params:
        for (w, b) in ((w1, b1), (w2, b2)):
            x = lax.conv_general_dilated(
                x, w, window_strides=(1, 1), padding="VALID",
                dimension_numbers=("NCHW", "HWIO", "NCHW"))
            x = jnp.maximum(x + b[None, :, None, None], 0.0)
        ftrs.append(x)
        x = lax.reduce_window(x, -jnp.inf, lax.max,
                              (1, 1, 2, 2), (1, 1, 2, 2), "VALID")
    return ftrs


if __name__ == "__main__":
    # Small, UNet-like channel progression and input size (3 blocks: 36->16->6->1).
    chs = (3, 8, 16, 32)
    N, H, W = 2, 36, 36

    key = jax.random.PRNGKey(0)
    kx, kp = jax.random.split(key)
    x = jax.random.normal(kx, (N, chs[0], H, W), jnp.float32)   # NCHW input
    params = init_encoder_params(kp, chs)

    ftrs = encoder_forward(x, params)
    ftrs = [jax.block_until_ready(f) for f in ftrs]

    # Sanity check against the XLA reference.
    ref = encoder_reference(x, params)
    for got, exp in zip(ftrs, ref):
        assert got.shape == exp.shape, (got.shape, exp.shape)
        assert jnp.allclose(got, exp, rtol=1e-4, atol=1e-4), "mismatch vs reference"

    print("KERNEL_OK")
</pallas_src>

<mosaic_0001>
module attributes {stable_mosaic.version = 11 : i64} {
  func.func @_encoder_block_kernel(%arg0: i32, %arg1: memref<1x8x256xf32, #tpu.memory_space<vmem>>, %arg2: memref<16x72xf32, #tpu.memory_space<vmem>>, %arg3: memref<16x1xf32, #tpu.memory_space<vmem>>, %arg4: memref<16x144xf32, #tpu.memory_space<vmem>>, %arg5: memref<16x1xf32, #tpu.memory_space<vmem>>, %arg6: memref<1x16x144xf32, #tpu.memory_space<vmem>>, %arg7: memref<1x16x36xf32, #tpu.memory_space<vmem>>, %arg8: memref<16x222xf32, #tpu.memory_space<vmem>>, %arg9: memref<16x188xf32, #tpu.memory_space<vmem>>) attributes {dimension_semantics = [#tpu.dimension_semantics<parallel>], iteration_bounds = array<i64: 2>, scalar_prefetch = 0 : i64, scratch_operands = 2 : i64, tpu.core_type = #tpu.core_type<tc>, window_params = [{transform_indices = @transform_0, window_bounds = array<i64: 1, 8, 256>}, {pipeline_mode = #tpu.pipeline_mode<synchronous>, transform_indices = @transform_1, window_bounds = array<i64: 16, 72>}, {pipeline_mode = #tpu.pipeline_mode<synchronous>, transform_indices = @transform_2, window_bounds = array<i64: 16, 1>}, {pipeline_mode = #tpu.pipeline_mode<synchronous>, transform_indices = @transform_3, window_bounds = array<i64: 16, 144>}, {pipeline_mode = #tpu.pipeline_mode<synchronous>, transform_indices = @transform_4, window_bounds = array<i64: 16, 1>}, {transform_indices = @transform_5, window_bounds = array<i64: 1, 16, 144>}, {transform_indices = @transform_6, window_bounds = array<i64: 1, 16, 36>}]} {
    %c0 = arith.constant 0 : index
    %c0_0 = arith.constant 0 : index
    %0 = vector.load %arg2[%c0, %c0_0] : memref<16x72xf32, #tpu.memory_space<vmem>>, vector<16x72xf32>
    %c0_1 = arith.constant 0 : index
    %c0_2 = arith.constant 0 : index
    %1 = vector.load %arg3[%c0_1, %c0_2] : memref<16x1xf32, #tpu.memory_space<vmem>>, vector<16x1xf32>
    %c0_3 = arith.constant 0 : index
    %c0_4 = arith.constant 0 : index
    %c0_5 = arith.constant 0 : index
    %2 = vector.load %arg1[%c0_3, %c0_4, %c0_5] : memref<1x8x256xf32, #tpu.memory_space<vmem>>, vector<1x8x222xf32>
    %3 = vector.shape_cast %2 : vector<1x8x222xf32> to vector<8x222xf32>
    %c0_6 = arith.constant 0 : index
    %c0_7 = arith.constant 0 : index
    %c1 = arith.constant 1 : index
    %4 = vector.load %arg1[%c0_6, %c0_7, %c1] : memref<1x8x256xf32, #tpu.memory_space<vmem>>, vector<1x8x222xf32>
    %5 = vector.shape_cast %4 : vector<1x8x222xf32> to vector<8x222xf32>
    %c0_8 = arith.constant 0 : index
    %c0_9 = arith.constant 0 : index
    %c2 = arith.constant 2 : index
    %6 = vector.load %arg1[%c0_8, %c0_9, %c2] : memref<1x8x256xf32, #tpu.memory_space<vmem>>, vector<1x8x222xf32>
    %7 = vector.shape_cast %6 : vector<1x8x222xf32> to vector<8x222xf32>
    %c0_10 = arith.constant 0 : index
    %c0_11 = arith.constant 0 : index
    %c16 = arith.constant 16 : index
    %8 = vector.load %arg1[%c0_10, %c0_11, %c16] : memref<1x8x256xf32, #tpu.memory_space<vmem>>, vector<1x8x222xf32>
    %9 = vector.shape_cast %8 : vector<1x8x222xf32> to vector<8x222xf32>
    %c0_12 = arith.constant 0 : index
    %c0_13 = arith.constant 0 : index
    %c17 = arith.constant 17 : index
    %10 = vector.load %arg1[%c0_12, %c0_13, %c17] : memref<1x8x256xf32, #tpu.memory_space<vmem>>, vector<1x8x222xf32>
    %11 = vector.shape_cast %10 : vector<1x8x222xf32> to vector<8x222xf32>
    %c0_14 = arith.constant 0 : index
    %c0_15 = arith.constant 0 : index
    %c18 = arith.constant 18 : index
    %12 = vector.load %arg1[%c0_14, %c0_15, %c18] : memref<1x8x256xf32, #tpu.memory_space<vmem>>, vector<1x8x222xf32>
    %13 = vector.shape_cast %12 : vector<1x8x222xf32> to vector<8x222xf32>
    %c0_16 = arith.constant 0 : index
    %c0_17 = arith.constant 0 : index
    %c32 = arith.constant 32 : index
    %14 = vector.load %arg1[%c0_16, %c0_17, %c32] : memref<1x8x256xf32, #tpu.memory_space<vmem>>, vector<1x8x222xf32>
    %15 = vector.shape_cast %14 : vector<1x8x222xf32> to vector<8x222xf32>
    %c0_18 = arith.constant 0 : index
    %c0_19 = arith.constant 0 : index
    %c33 = arith.constant 33 : index
    %16 = vector.load %arg1[%c0_18, %c0_19, %c33] : memref<1x8x256xf32, #tpu.memory_space<vmem>>, vector<1x8x222xf32>
    %17 = vector.shape_cast %16 : vector<1x8x222xf32> to vector<8x222xf32>
    %c0_20 = arith.constant 0 : index
    %c0_21 = arith.constant 0 : index
    %c34 = arith.constant 34 : index
    %18 = vector.load %arg1[%c0_20, %c0_21, %c34] : memref<1x8x256xf32, #tpu.memory_space<vmem>>, vector<1x8x222xf32>
    %19 = vector.shape_cast %18 : vector<1x8x222xf32> to vector<8x222xf32>
    %20 = tpu.concatenate %3, %5, %7, %9, %11, %13, %15, %17, %19 in 0 : vector<8x222xf32>, vector<8x222xf32>, vector<8x222xf32>, vector<8x222xf32>, vector<8x222xf32>, vector<8x222xf32>, vector<8x222xf32>, vector<8x222xf32>, vector<8x222xf32> -> vector<72x222xf32>
    %cst = arith.constant dense<0.000000e+00> : vector<16x222xf32>
    %21 = tpu.matmul %0, %20, %cst {dimension_numbers = #tpu.dot_dimension_numbers<[1], [0], [0], [1], [0, 0, 1, 1], [], []>} : vector<16x72xf32>, vector<72x222xf32>, vector<16x222xf32> -> vector<16x222xf32>
    %22 = vector.broadcast %1 : vector<16x1xf32> to vector<16x222xf32>
    %23 = arith.addf %21, %22 : vector<16x222xf32>
    %cst_22 = arith.constant 0.000000e+00 : f32
    %24 = vector.broadcast %cst_22 : f32 to vector<16x222xf32>
    %25 = arith.maximumf %23, %24 : vector<16x222xf32>
    %c0_23 = arith.constant 0 : index
    %c0_24 = arith.constant 0 : index
    %26 = vector.load %arg8[%c0_23, %c0_24] : memref<16x222xf32, #tpu.memory_space<vmem>>, vector<16x222xf32>
    tpu.vector_store %arg8[%c0_23, %c0_24], %25 {strides = array<i32>} : memref<16x222xf32, #tpu.memory_space<vmem>>, vector<16x222xf32>,
    %c0_25 = arith.constant 0 : index
    %c0_26 = arith.constant 0 : index
    %27 = vector.load %arg4[%c0_25, %c0_26] : memref<16x144xf32, #tpu.memory_space<vmem>>, vector<16x144xf32>
    %c0_27 = arith.constant 0 : index
    %c0_28 = arith.constant 0 : index
    %28 = vector.load %arg5[%c0_27, %c0_28] : memref<16x1xf32, #tpu.memory_space<vmem>>, vector<16x1xf32>
    %c0_29 = arith.constant 0 : index
    %c0_30 = arith.constant 0 : index
    %29 = vector.load %arg8[%c0_29, %c0_30] : memref<16x222xf32, #tpu.memory_space<vmem>>, vector<16x188xf32>
    %c0_31 = arith.constant 0 : index
    %c1_32 = arith.constant 1 : index
    %30 = vector.load %arg8[%c0_31, %c1_32] : memref<16x222xf32, #tpu.memory_space<vmem>>, vector<16x188xf32>
    %c0_33 = arith.constant 0 : index
    %c2_34 = arith.constant 2 : index
    %31 = vector.load %arg8[%c0_33, %c2_34] : memref<16x222xf32, #tpu.memory_space<vmem>>, vector<16x188xf32>
    %c0_35 = arith.constant 0 : index
    %c16_36 = arith.constant 16 : index
    %32 = vector.load %arg8[%c0_35, %c16_36] : memref<16x222xf32, #tpu.memory_space<vmem>>, vector<16x188xf32>
    %c0_37 = arith.constant 0 : index
    %c17_38 = arith.constant 17 : index
    %33 = vector.load %arg8[%c0_37, %c17_38] : memref<16x222xf32, #tpu.memory_space<vmem>>, vector<16x188xf32>
    %c0_39 = arith.constant 0 : index
    %c18_40 = arith.constant 18 : index
    %34 = vector.load %arg8[%c0_39, %c18_40] : memref<16x222xf32, #tpu.memory_space<vmem>>, vector<16x188xf32>
    %c0_41 = arith.constant 0 : index
    %c32_42 = arith.constant 32 : index
    %35 = vector.load %arg8[%c0_41, %c32_42] : memref<16x222xf32, #tpu.memory_space<vmem>>, vector<16x188xf32>
    %c0_43 = arith.constant 0 : index
    %c33_44 = arith.constant 33 : index
    %36 = vector.load %arg8[%c0_43, %c33_44] : memref<16x222xf32, #tpu.memory_space<vmem>>, vector<16x188xf32>
    %c0_45 = arith.constant 0 : index
    %c34_46 = arith.constant 34 : index
    %37 = vector.load %arg8[%c0_45, %c34_46] : memref<16x222xf32, #tpu.memory_space<vmem>>, vector<16x188xf32>
    %38 = tpu.concatenate %29, %30, %31, %32, %33, %34, %35, %36, %37 in 0 : vector<16x188xf32>, vector<16x188xf32>, vector<16x188xf32>, vector<16x188xf32>, vector<16x188xf32>, vector<16x188xf32>, vector<16x188xf32>, vector<16x188xf32>, vector<16x188xf32> -> vector<144x188xf32>
    %cst_47 = arith.constant dense<0.000000e+00> : vector<16x188xf32>
    %39 = tpu.matmul %27, %38, %cst_47 {dimension_numbers = #tpu.dot_dimension_numbers<[1], [0], [0], [1], [0, 0, 1, 1], [], []>} : vector<16x144xf32>, vector<144x188xf32>, vector<16x188xf32> -> vector<16x188xf32>
    %40 = vector.broadcast %28 : vector<16x1xf32> to vector<16x188xf32>
    %41 = arith.addf %39, %40 : vector<16x188xf32>
    %cst_48 = arith.constant 0.000000e+00 : f32
    %42 = vector.broadcast %cst_48 : f32 to vector<16x188xf32>
    %43 = arith.maximumf %41, %42 : vector<16x188xf32>
    %c0_49 = arith.constant 0 : index
    %c0_50 = arith.constant 0 : index
    %44 = vector.load %arg9[%c0_49, %c0_50] : memref<16x188xf32, #tpu.memory_space<vmem>>, vector<16x188xf32>
    tpu.vector_store %arg9[%c0_49, %c0_50], %43 {strides = array<i32>} : memref<16x188xf32, #tpu.memory_space<vmem>>, vector<16x188xf32>,
    %c0_51 = arith.constant 0 : index
    %c0_52 = arith.constant 0 : index
    %45 = vector.load %arg9[%c0_51, %c0_52] : memref<16x188xf32, #tpu.memory_space<vmem>>, vector<16x12xf32>
    %c0_53 = arith.constant 0 : index
    %c0_54 = arith.constant 0 : index
    %c0_55 = arith.constant 0 : index
    %46 = vector.load %arg6[%c0_53, %c0_54, %c0_55] : memref<1x16x144xf32, #tpu.memory_space<vmem>>, vector<1x16x12xf32>
    %47 = vector.shape_cast %46 : vector<1x16x12xf32> to vector<16x12xf32>
    %48 = vector.shape_cast %45 : vector<16x12xf32> to vector<1x16x12xf32>
    tpu.vector_store %arg6[%c0_53, %c0_54, %c0_55], %48 {strides = array<i32>} : memref<1x16x144xf32, #tpu.memory_space<vmem>>, vector<1x16x12xf32>,
    %c0_56 = arith.constant 0 : index
    %c16_57 = arith.constant 16 : index
    %49 = vector.load %arg9[%c0_56, %c16_57] : memref<16x188xf32, #tpu.memory_space<vmem>>, vector<16x12xf32>
    %c0_58 = arith.constant 0 : index
    %c0_59 = arith.constant 0 : index
    %c12 = arith.constant 12 : index
    %50 = vector.load %arg6[%c0_58, %c0_59, %c12] : memref<1x16x144xf32, #tpu.memory_space<vmem>>, vector<1x16x12xf32>
    %51 = vector.shape_cast %50 : vector<1x16x12xf32> to vector<16x12xf32>
    %52 = vector.shape_cast %49 : vector<16x12xf32> to vector<1x16x12xf32>
    tpu.vector_store %arg6[%c0_58, %c0_59, %c12], %52 {strides = array<i32>} : memref<1x16x144xf32, #tpu.memory_space<vmem>>, vector<1x16x12xf32>,
    %c0_60 = arith.constant 0 : index
    %c32_61 = arith.constant 32 : index
    %53 = vector.load %arg9[%c0_60, %c32_61] : memref<16x188xf32, #tpu.memory_space<vmem>>, vector<16x12xf32>
    %c0_62 = arith.constant 0 : index
    %c0_63 = arith.constant 0 : index
    %c24 = arith.constant 24 : index
    %54 = vector.load %arg6[%c0_62, %c0_63, %c24] : memref<1x16x144xf32, #tpu.memory_space<vmem>>, vector<1x16x12xf32>
    %55 = vector.shape_cast %54 : vector<1x16x12xf32> to vector<16x12xf32>
    %56 = vector.shape_cast %53 : vector<16x12xf32> to vector<1x16x12xf32>
    tpu.vector_store %arg6[%c0_62, %c0_63, %c24], %56 {strides = array<i32>} : memref<1x16x144xf32, #tpu.memory_space<vmem>>, vector<1x16x12xf32>,
    %c0_64 = arith.constant 0 : index
    %c48 = arith.constant 48 : index
    %57 = vector.load %arg9[%c0_64, %c48] : memref<16x188xf32, #tpu.memory_space<vmem>>, vector<16x12xf32>
    %c0_65 = arith.constant 0 : index
    %c0_66 = arith.constant 0 : index
    %c36 = arith.constant 36 : index
    %58 = vector.load %arg6[%c0_65, %c0_66, %c36] : memref<1x16x144xf32, #tpu.memory_space<vmem>>, vector<1x16x12xf32>
    %59 = vector.shape_cast %58 : vector<1x16x12xf32> to vector<16x12xf32>
    %60 = vector.shape_cast %57 : vector<16x12xf32> to vector<1x16x12xf32>
    tpu.vector_store %arg6[%c0_65, %c0_66, %c36], %60 {strides = array<i32>} : memref<1x16x144xf32, #tpu.memory_space<vmem>>, vector<1x16x12xf32>,
    %c0_67 = arith.constant 0 : index
    %c64 = arith.constant 64 : index
    %61 = vector.load %arg9[%c0_67, %c64] : memref<16x188xf32, #tpu.memory_space<vmem>>, vector<16x12xf32>
    %c0_68 = arith.constant 0 : index
    %c0_69 = arith.constant 0 : index
    %c48_70 = arith.constant 48 : index
    %62 = vector.load %arg6[%c0_68, %c0_69, %c48_70] : memref<1x16x144xf32, #tpu.memory_space<vmem>>, vector<1x16x12xf32>
    %63 = vector.shape_cast %62 : vector<1x16x12xf32> to vector<16x12xf32>
    %64 = vector.shape_cast %61 : vector<16x12xf32> to vector<1x16x12xf32>
    tpu.vector_store %arg6[%c0_68, %c0_69, %c48_70], %64 {strides = array<i32>} : memref<1x16x144xf32, #tpu.memory_space<vmem>>, vector<1x16x12xf32>,
    %c0_71 = arith.constant 0 : index
    %c80 = arith.constant 80 : index
    %65 = vector.load %arg9[%c0_71, %c80] : memref<16x188xf32, #tpu.memory_space<vmem>>, vector<16x12xf32>
    %c0_72 = arith.constant 0 : index
    %c0_73 = arith.constant 0 : index
    %c60 = arith.constant 60 : index
    %66 = vector.load %arg6[%c0_72, %c0_73, %c60] : memref<1x16x144xf32, #tpu.memory_space<vmem>>, vector<1x16x12xf32>
    %67 = vector.shape_cast %66 : vector<1x16x12xf32> to vector<16x12xf32>
    %68 = vector.shape_cast %65 : vector<16x12xf32> to vector<1x16x12xf32>
    tpu.vector_store %arg6[%c0_72, %c0_73, %c60], %68 {strides = array<i32>} : memref<1x16x144xf32, #tpu.memory_space<vmem>>, vector<1x16x12xf32>,
    %c0_74 = arith.constant 0 : index
    %c96 = arith.constant 96 : index
    %69 = vector.load %arg9[%c0_74, %c96] : memref<16x188xf32, #tpu.memory_space<vmem>>, vector<16x12xf32>
    %c0_75 = arith.constant 0 : index
    %c0_76 = arith.constant 0 : index
    %c72 = arith.constant 72 : index
    %70 = vector.load %arg6[%c0_75, %c0_76, %c72] : memref<1x16x144xf32, #tpu.memory_space<vmem>>, vector<1x16x12xf32>
    %71 = vector.shape_cast %70 : vector<1x16x12xf32> to vector<16x12xf32>
    %72 = vector.shape_cast %69 : vector<16x12xf32> to vector<1x16x12xf32>
    tpu.vector_store %arg6[%c0_75, %c0_76, %c72], %72 {strides = array<i32>} : memref<1x16x144xf32, #tpu.memory_space<vmem>>, vector<1x16x12xf32>,
    %c0_77 = arith.constant 0 : index
    %c112 = arith.constant 112 : index
    %73 = vector.load %arg9[%c0_77, %c112] : memref<16x188xf32, #tpu.memory_space<vmem>>, vector<16x12xf32>
    %c0_78 = arith.constant 0 : index
    %c0_79 = arith.constant 0 : index
    %c84 = arith.constant 84 : index
    %74 = vector.load %arg6[%c0_78, %c0_79, %c84] : memref<1x16x144xf32, #tpu.memory_space<vmem>>, vector<1x16x12xf32>
    %75 = vector.shape_cast %74 : vector<1x16x12xf32> to vector<16x12xf32>
    %76 = vector.shape_cast %73 : vector<16x12xf32> to vector<1x16x12xf32>
    tpu.vector_store %arg6[%c0_78, %c0_79, %c84], %76 {strides = array<i32>} : memref<1x16x144xf32, #tpu.memory_space<vmem>>, vector<1x16x12xf32>,
    %c0_80 = arith.constant 0 : index
    %c128 = arith.constant 128 : index
    %77 = vector.load %arg9[%c0_80, %c128] : memref<16x188xf32, #tpu.memory_space<vmem>>, vector<16x12xf32>
    %c0_81 = arith.constant 0 : index
    %c0_82 = arith.constant 0 : index
    %c96_83 = arith.constant 96 : index
    %78 = vector.load %arg6[%c0_81, %c0_82, %c96_83] : memref<1x16x144xf32, #tpu.memory_space<vmem>>, vector<1x16x12xf32>
    %79 = vector.shape_cast %78 : vector<1x16x12xf32> to vector<16x12xf32>
    %80 = vector.shape_cast %77 : vector<16x12xf32> to vector<1x16x12xf32>
    tpu.vector_store %arg6[%c0_81, %c0_82, %c96_83], %80 {strides = array<i32>} : memref<1x16x144xf32, #tpu.memory_space<vmem>>, vector<1x16x12xf32>,
    %c0_84 = arith.constant 0 : index
    %c144 = arith.constant 144 : index
    %81 = vector.load %arg9[%c0_84, %c144] : memref<16x188xf32, #tpu.memory_space<vmem>>, vector<16x12xf32>
    %c0_85 = arith.constant 0 : index
    %c0_86 = arith.constant 0 : index
    %c108 = arith.constant 108 : index
    %82 = vector.load %arg6[%c0_85, %c0_86, %c108] : memref<1x16x144xf32, #tpu.memory_space<vmem>>, vector<1x16x12xf32>
    %83 = vector.shape_cast %82 : vector<1x16x12xf32> to vector<16x12xf32>
    %84 = vector.shape_cast %81 : vector<16x12xf32> to vector<1x16x12xf32>
    tpu.vector_store %arg6[%c0_85, %c0_86, %c108], %84 {strides = array<i32>} : memref<1x16x144xf32, #tpu.memory_space<vmem>>, vector<1x16x12xf32>,
    %c0_87 = arith.constant 0 : index
    %c160 = arith.constant 160 : index
    %85 = vector.load %arg9[%c0_87, %c160] : memref<16x188xf32, #tpu.memory_space<vmem>>, vector<16x12xf32>
    %c0_88 = arith.constant 0 : index
    %c0_89 = arith.constant 0 : index
    %c120 = arith.constant 120 : index
    %86 = vector.load %arg6[%c0_88, %c0_89, %c120] : memref<1x16x144xf32, #tpu.memory_space<vmem>>, vector<1x16x12xf32>
    %87 = vector.shape_cast %86 : vector<1x16x12xf32> to vector<16x12xf32>
    %88 = vector.shape_cast %85 : vector<16x12xf32> to vector<1x16x12xf32>
    tpu.vector_store %arg6[%c0_88, %c0_89, %c120], %88 {strides = array<i32>} : memref<1x16x144xf32, #tpu.memory_space<vmem>>, vector<1x16x12xf32>,
    %c0_90 = arith.constant 0 : index
    %c176 = arith.constant 176 : index
    %89 = vector.load %arg9[%c0_90, %c176] : memref<16x188xf32, #tpu.memory_space<vmem>>, vector<16x12xf32>
    %c0_91 = arith.constant 0 : index
    %c0_92 = arith.constant 0 : index
    %c132 = arith.constant 132 : index
    %90 = vector.load %arg6[%c0_91, %c0_92, %c132] : memref<1x16x144xf32, #tpu.memory_space<vmem>>, vector<1x16x12xf32>
    %91 = vector.shape_cast %90 : vector<1x16x12xf32> to vector<16x12xf32>
    %92 = vector.shape_cast %89 : vector<16x12xf32> to vector<1x16x12xf32>
    tpu.vector_store %arg6[%c0_91, %c0_92, %c132], %92 {strides = array<i32>} : memref<1x16x144xf32, #tpu.memory_space<vmem>>, vector<1x16x12xf32>,
    %93 = tpu.iota {dimensions = array<i32: 0>} : vector<12x6xi32>
    %94 = tpu.iota {dimensions = array<i32: 1>} : vector<12x6xi32>
    %c2_i32 = arith.constant 2 : i32
    %95 = vector.broadcast %c2_i32 : i32 to vector<12x6xi32>
    %96 = arith.muli %95, %94 : vector<12x6xi32>
    %97 = arith.cmpi eq, %93, %96 : vector<12x6xi32>
    %98 = arith.extui %97 : vector<12x6xi1> to vector<12x6xi32>
    %99 = arith.sitofp %98 : vector<12x6xi32> to vector<12x6xf32>
    %c2_i32_93 = arith.constant 2 : i32
    %100 = vector.broadcast %c2_i32_93 : i32 to vector<12x6xi32>
    %101 = arith.muli %100, %94 : vector<12x6xi32>
    %c1_i32 = arith.constant 1 : i32
    %102 = vector.broadcast %c1_i32 : i32 to vector<12x6xi32>
    %103 = arith.addi %101, %102 : vector<12x6xi32>
    %104 = arith.cmpi eq, %93, %103 : vector<12x6xi32>
    %105 = arith.extui %104 : vector<12x6xi1> to vector<12x6xi32>
    %106 = arith.sitofp %105 : vector<12x6xi32> to vector<12x6xf32>
    %c0_94 = arith.constant 0 : index
    %c0_95 = arith.constant 0 : index
    %107 = vector.load %arg9[%c0_94, %c0_95] : memref<16x188xf32, #tpu.memory_space<vmem>>, vector<16x12xf32>
    %c0_96 = arith.constant 0 : index
    %c16_97 = arith.constant 16 : index
    %108 = vector.load %arg9[%c0_96, %c16_97] : memref<16x188xf32, #tpu.memory_space<vmem>>, vector<16x12xf32>
    %109 = arith.maximumf %107, %108 : vector<16x12xf32>
    %cst_98 = arith.constant dense<0.000000e+00> : vector<16x6xf32>
    %110 = tpu.matmul %109, %99, %cst_98 {dimension_numbers = #tpu.dot_dimension_numbers<[1], [0], [0], [1], [0, 0, 1, 1], [], []>} : vector<16x12xf32>, vector<12x6xf32>, vector<16x6xf32> -> vector<16x6xf32>
    %cst_99 = arith.constant dense<0.000000e+00> : vector<16x6xf32>
    %111 = tpu.matmul %109, %106, %cst_99 {dimension_numbers = #tpu.dot_dimension_numbers<[1], [0], [0], [1], [0, 0, 1, 1], [], []>} : vector<16x12xf32>, vector<12x6xf32>, vector<16x6xf32> -> vector<16x6xf32>
    %112 = arith.maximumf %110, %111 : vector<16x6xf32>
    %c0_100 = arith.constant 0 : index
    %c0_101 = arith.constant 0 : index
    %c0_102 = arith.constant 0 : index
    %113 = vector.load %arg7[%c0_100, %c0_101, %c0_102] : memref<1x16x36xf32, #tpu.memory_space<vmem>>, vector<1x16x6xf32>
    %114 = vector.shape_cast %113 : vector<1x16x6xf32> to vector<16x6xf32>
    %115 = vector.shape_cast %112 : vector<16x6xf32> to vector<1x16x6xf32>
    tpu.vector_store %arg7[%c0_100, %c0_101, %c0_102], %115 {strides = array<i32>} : memref<1x16x36xf32, #tpu.memory_space<vmem>>, vector<1x16x6xf32>,
    %c0_103 = arith.constant 0 : index
    %c32_104 = arith.constant 32 : index
    %116 = vector.load %arg9[%c0_103, %c32_104] : memref<16x188xf32, #tpu.memory_space<vmem>>, vector<16x12xf32>
    %c0_105 = arith.constant 0 : index
    %c48_106 = arith.constant 48 : index
    %117 = vector.load %arg9[%c0_105, %c48_106] : memref<16x188xf32, #tpu.memory_space<vmem>>, vector<16x12xf32>
    %118 = arith.maximumf %116, %117 : vector<16x12xf32>
    %cst_107 = arith.constant dense<0.000000e+00> : vector<16x6xf32>
    %119 = tpu.matmul %118, %99, %cst_107 {dimension_numbers = #tpu.dot_dimension_numbers<[1], [0], [0], [1], [0, 0, 1, 1], [], []>} : vector<16x12xf32>, vector<12x6xf32>, vector<16x6xf32> -> vector<16x6xf32>
    %cst_108 = arith.constant dense<0.000000e+00> : vector<16x6xf32>
    %120 = tpu.matmul %118, %106, %cst_108 {dimension_numbers = #tpu.dot_dimension_numbers<[1], [0], [0], [1], [0, 0, 1, 1], [], []>} : vector<16x12xf32>, vector<12x6xf32>, vector<16x6xf32> -> vector<16x6xf32>
    %121 = arith.maximumf %119, %120 : vector<16x6xf32>
    %c0_109 = arith.constant 0 : index
    %c0_110 = arith.constant 0 : index
    %c6 = arith.constant 6 : index
    %122 = vector.load %arg7[%c0_109, %c0_110, %c6] : memref<1x16x36xf32, #tpu.memory_space<vmem>>, vector<1x16x6xf32>
    %123 = vector.shape_cast %122 : vector<1x16x6xf32> to vector<16x6xf32>
    %124 = vector.shape_cast %121 : vector<16x6xf32> to vector<1x16x6xf32>
    tpu.vector_store %arg7[%c0_109, %c0_110, %c6], %124 {strides = array<i32>} : memref<1x16x36xf32, #tpu.memory_space<vmem>>, vector<1x16x6xf32>,
    %c0_111 = arith.constant 0 : index
    %c64_112 = arith.constant 64 : index
    %125 = vector.load %arg9[%c0_111, %c64_112] : memref<16x188xf32, #tpu.memory_space<vmem>>, vector<16x12xf32>
    %c0_113 = arith.constant 0 : index
    %c80_114 = arith.constant 80 : index
    %126 = vector.load %arg9[%c0_113, %c80_114] : memref<16x188xf32, #tpu.memory_space<vmem>>, vector<16x12xf32>
    %127 = arith.maximumf %125, %126 : vector<16x12xf32>
    %cst_115 = arith.constant dense<0.000000e+00> : vector<16x6xf32>
    %128 = tpu.matmul %127, %99, %cst_115 {dimension_numbers = #tpu.dot_dimension_numbers<[1], [0], [0], [1], [0, 0, 1, 1], [], []>} : vector<16x12xf32>, vector<12x6xf32>, vector<16x6xf32> -> vector<16x6xf32>
    %cst_116 = arith.constant dense<0.000000e+00> : vector<16x6xf32>
    %129 = tpu.matmul %127, %106, %cst_116 {dimension_numbers = #tpu.dot_dimension_numbers<[1], [0], [0], [1], [0, 0, 1, 1], [], []>} : vector<16x12xf32>, vector<12x6xf32>, vector<16x6xf32> -> vector<16x6xf32>
    %130 = arith.maximumf %128, %129 : vector<16x6xf32>
    %c0_117 = arith.constant 0 : index
    %c0_118 = arith.constant 0 : index
    %c12_119 = arith.constant 12 : index
    %131 = vector.load %arg7[%c0_117, %c0_118, %c12_119] : memref<1x16x36xf32, #tpu.memory_space<vmem>>, vector<1x16x6xf32>
    %132 = vector.shape_cast %131 : vector<1x16x6xf32> to vector<16x6xf32>
    %133 = vector.shape_cast %130 : vector<16x6xf32> to vector<1x16x6xf32>
    tpu.vector_store %arg7[%c0_117, %c0_118, %c12_119], %133 {strides = array<i32>} : memref<1x16x36xf32, #tpu.memory_space<vmem>>, vector<1x16x6xf32>,
    %c0_120 = arith.constant 0 : index
    %c96_121 = arith.constant 96 : index
    %134 = vector.load %arg9[%c0_120, %c96_121] : memref<16x188xf32, #tpu.memory_space<vmem>>, vector<16x12xf32>
    %c0_122 = arith.constant 0 : index
    %c112_123 = arith.constant 112 : index
    %135 = vector.load %arg9[%c0_122, %c112_123] : memref<16x188xf32, #tpu.memory_space<vmem>>, vector<16x12xf32>
    %136 = arith.maximumf %134, %135 : vector<16x12xf32>
    %cst_124 = arith.constant dense<0.000000e+00> : vector<16x6xf32>
    %137 = tpu.matmul %136, %99, %cst_124 {dimension_numbers = #tpu.dot_dimension_numbers<[1], [0], [0], [1], [0, 0, 1, 1], [], []>} : vector<16x12xf32>, vector<12x6xf32>, vector<16x6xf32> -> vector<16x6xf32>
    %cst_125 = arith.constant dense<0.000000e+00> : vector<16x6xf32>
    %138 = tpu.matmul %136, %106, %cst_125 {dimension_numbers = #tpu.dot_dimension_numbers<[1], [0], [0], [1], [0, 0, 1, 1], [], []>} : vector<16x12xf32>, vector<12x6xf32>, vector<16x6xf32> -> vector<16x6xf32>
    %139 = arith.maximumf %137, %138 : vector<16x6xf32>
    %c0_126 = arith.constant 0 : index
    %c0_127 = arith.constant 0 : index
    %c18_128 = arith.constant 18 : index
    %140 = vector.load %arg7[%c0_126, %c0_127, %c18_128] : memref<1x16x36xf32, #tpu.memory_space<vmem>>, vector<1x16x6xf32>
    %141 = vector.shape_cast %140 : vector<1x16x6xf32> to vector<16x6xf32>
    %142 = vector.shape_cast %139 : vector<16x6xf32> to vector<1x16x6xf32>
    tpu.vector_store %arg7[%c0_126, %c0_127, %c18_128], %142 {strides = array<i32>} : memref<1x16x36xf32, #tpu.memory_space<vmem>>, vector<1x16x6xf32>,
    %c0_129 = arith.constant 0 : index
    %c128_130 = arith.constant 128 : index
    %143 = vector.load %arg9[%c0_129, %c128_130] : memref<16x188xf32, #tpu.memory_space<vmem>>, vector<16x12xf32>
    %c0_131 = arith.constant 0 : index
    %c144_132 = arith.constant 144 : index
    %144 = vector.load %arg9[%c0_131, %c144_132] : memref<16x188xf32, #tpu.memory_space<vmem>>, vector<16x12xf32>
    %145 = arith.maximumf %143, %144 : vector<16x12xf32>
    %cst_133 = arith.constant dense<0.000000e+00> : vector<16x6xf32>
    %146 = tpu.matmul %145, %99, %cst_133 {dimension_numbers = #tpu.dot_dimension_numbers<[1], [0], [0], [1], [0, 0, 1, 1], [], []>} : vector<16x12xf32>, vector<12x6xf32>, vector<16x6xf32> -> vector<16x6xf32>
    %cst_134 = arith.constant dense<0.000000e+00> : vector<16x6xf32>
    %147 = tpu.matmul %145, %106, %cst_134 {dimension_numbers = #tpu.dot_dimension_numbers<[1], [0], [0], [1], [0, 0, 1, 1], [], []>} : vector<16x12xf32>, vector<12x6xf32>, vector<16x6xf32> -> vector<16x6xf32>
    %148 = arith.maximumf %146, %147 : vector<16x6xf32>
    %c0_135 = arith.constant 0 : index
    %c0_136 = arith.constant 0 : index
    %c24_137 = arith.constant 24 : index
    %149 = vector.load %arg7[%c0_135, %c0_136, %c24_137] : memref<1x16x36xf32, #tpu.memory_space<vmem>>, vector<1x16x6xf32>
    %150 = vector.shape_cast %149 : vector<1x16x6xf32> to vector<16x6xf32>
    %151 = vector.shape_cast %148 : vector<16x6xf32> to vector<1x16x6xf32>
    tpu.vector_store %arg7[%c0_135, %c0_136, %c24_137], %151 {strides = array<i32>} : memref<1x16x36xf32, #tpu.memory_space<vmem>>, vector<1x16x6xf32>,
    %c0_138 = arith.constant 0 : index
    %c160_139 = arith.constant 160 : index
    %152 = vector.load %arg9[%c0_138, %c160_139] : memref<16x188xf32, #tpu.memory_space<vmem>>, vector<16x12xf32>
    %c0_140 = arith.constant 0 : index
    %c176_141 = arith.constant 176 : index
    %153 = vector.load %arg9[%c0_140, %c176_141] : memref<16x188xf32, #tpu.memory_space<vmem>>, vector<16x12xf32>
    %154 = arith.maximumf %152, %153 : vector<16x12xf32>
    %cst_142 = arith.constant dense<0.000000e+00> : vector<16x6xf32>
    %155 = tpu.matmul %154, %99, %cst_142 {dimension_numbers = #tpu.dot_dimension_numbers<[1], [0], [0], [1], [0, 0, 1, 1], [], []>} : vector<16x12xf32>, vector<12x6xf32>, vector<16x6xf32> -> vector<16x6xf32>
    %cst_143 = arith.constant dense<0.000000e+00> : vector<16x6xf32>
    %156 = tpu.matmul %154, %106, %cst_143 {dimension_numbers = #tpu.dot_dimension_numbers<[1], [0], [0], [1], [0, 0, 1, 1], [], []>} : vector<16x12xf32>, vector<12x6xf32>, vector<16x6xf32> -> vector<16x6xf32>
    %157 = arith.maximumf %155, %156 : vector<16x6xf32>
    %c0_144 = arith.constant 0 : index
    %c0_145 = arith.constant 0 : index
    %c30 = arith.constant 30 : index
    %158 = vector.load %arg7[%c0_144, %c0_145, %c30] : memref<1x16x36xf32, #tpu.memory_space<vmem>>, vector<1x16x6xf32>
    %159 = vector.shape_cast %158 : vector<1x16x6xf32> to vector<16x6xf32>
    %160 = vector.shape_cast %157 : vector<16x6xf32> to vector<1x16x6xf32>
    tpu.vector_store %arg7[%c0_144, %c0_145, %c30], %160 {strides = array<i32>} : memref<1x16x36xf32, #tpu.memory_space<vmem>>, vector<1x16x6xf32>,
    return
  }
  func.func @transform_0(%arg0: i32) -> (i32, i32, i32) {
    %c0_i32 = arith.constant 0 : i32
    %c0_i32_0 = arith.constant 0 : i32
    %c0_i32_1 = arith.constant 0 : i32
    return %arg0, %c0_i32, %c0_i32_0 : i32, i32, i32
  }
  func.func @transform_1(%arg0: i32) -> (i32, i32) {
    %c0_i32 = arith.constant 0 : i32
    %c0_i32_0 = arith.constant 0 : i32
    %c0_i32_1 = arith.constant 0 : i32
    return %c0_i32, %c0_i32_0 : i32, i32
  }
  func.func @transform_2(%arg0: i32) -> (i32, i32) {
    %c0_i32 = arith.constant 0 : i32
    %c0_i32_0 = arith.constant 0 : i32
    %c0_i32_1 = arith.constant 0 : i32
    return %c0_i32, %c0_i32_0 : i32, i32
  }
  func.func @transform_3(%arg0: i32) -> (i32, i32) {
    %c0_i32 = arith.constant 0 : i32
    %c0_i32_0 = arith.constant 0 : i32
    %c0_i32_1 = arith.constant 0 : i32
    return %c0_i32, %c0_i32_0 : i32, i32
  }
  func.func @transform_4(%arg0: i32) -> (i32, i32) {
    %c0_i32 = arith.constant 0 : i32
    %c0_i32_0 = arith.constant 0 : i32
    %c0_i32_1 = arith.constant 0 : i32
    return %c0_i32, %c0_i32_0 : i32, i32
  }
  func.func @transform_5(%arg0: i32) -> (i32, i32, i32) {
    %c0_i32 = arith.constant 0 : i32
    %c0_i32_0 = arith.constant 0 : i32
    %c0_i32_1 = arith.constant 0 : i32
    return %arg0, %c0_i32, %c0_i32_0 : i32, i32, i32
  }
  func.func @transform_6(%arg0: i32) -> (i32, i32, i32) {
    %c0_i32 = arith.constant 0 : i32
    %c0_i32_0 = arith.constant 0 : i32
    %c0_i32_1 = arith.constant 0 : i32
    return %arg0, %c0_i32, %c0_i32_0 : i32, i32, i32
  }
}

module attributes {stable_mosaic.version = 11 : i64} {
  func.func @_encoder_block_kernel(%arg0: i32, %arg1: memref<1x16x36xf32, #tpu.memory_space<vmem>>, %arg2: memref<32x144xf32, #tpu.memory_space<vmem>>, %arg3: memref<32x1xf32, #tpu.memory_space<vmem>>, %arg4: memref<32x288xf32, #tpu.memory_space<vmem>>, %arg5: memref<32x1xf32, #tpu.memory_space<vmem>>, %arg6: memref<1x32x4xf32, #tpu.memory_space<vmem>>, %arg7: memref<1x32x1xf32, #tpu.memory_space<vmem>>, %arg8: memref<32x22xf32, #tpu.memory_space<vmem>>, %arg9: memref<32x8xf32, #tpu.memory_space<vmem>>) attributes {dimension_semantics = [#tpu.dimension_semantics<parallel>], iteration_bounds = array<i64: 2>, scalar_prefetch = 0 : i64, scratch_operands = 2 : i64, tpu.core_type = #tpu.core_type<tc>, window_params = [{transform_indices = @transform_0, window_bounds = array<i64: 1, 16, 36>}, {pipeline_mode = #tpu.pipeline_mode<synchronous>, transform_indices = @transform_1, window_bounds = array<i64: 32, 144>}, {pipeline_mode = #tpu.pipeline_mode<synchronous>, transform_indices = @transform_2, window_bounds = array<i64: 32, 1>}, {pipeline_mode = #tpu.pipeline_mode<synchronous>, transform_indices = @transform_3, window_bounds = array<i64: 32, 288>}, {pipeline_mode = #tpu.pipeline_mode<synchronous>, transform_indices = @transform_4, window_bounds = array<i64: 32, 1>}, {transform_indices = @transform_5, window_bounds = array<i64: 1, 32, 4>}, {transform_indices = @transform_6, window_bounds = array<i64: 1, 32, 1>}]} {
    %c0 = arith.constant 0 : index
    %c0_0 = arith.constant 0 : index
    %0 = vector.load %arg2[%c0, %c0_0] : memref<32x144xf32, #tpu.memory_space<vmem>>, vector<32x144xf32>
    %c0_1 = arith.constant 0 : index
    %c0_2 = arith.constant 0 : index
    %1 = vector.load %arg3[%c0_1, %c0_2] : memref<32x1xf32, #tpu.memory_space<vmem>>, vector<32x1xf32>
    %c0_3 = arith.constant 0 : index
    %c0_4 = arith.constant 0 : index
    %c0_5 = arith.constant 0 : index
    %2 = vector.load %arg1[%c0_3, %c0_4, %c0_5] : memref<1x16x36xf32, #tpu.memory_space<vmem>>, vector<1x16x22xf32>
    %3 = vector.shape_cast %2 : vector<1x16x22xf32> to vector<16x22xf32>
    %c0_6 = arith.constant 0 : index
    %c0_7 = arith.constant 0 : index
    %c1 = arith.constant 1 : index
    %4 = vector.load %arg1[%c0_6, %c0_7, %c1] : memref<1x16x36xf32, #tpu.memory_space<vmem>>, vector<1x16x22xf32>
    %5 = vector.shape_cast %4 : vector<1x16x22xf32> to vector<16x22xf32>
    %c0_8 = arith.constant 0 : index
    %c0_9 = arith.constant 0 : index
    %c2 = arith.constant 2 : index
    %6 = vector.load %arg1[%c0_8, %c0_9, %c2] : memref<1x16x36xf32, #tpu.memory_space<vmem>>, vector<1x16x22xf32>
    %7 = vector.shape_cast %6 : vector<1x16x22xf32> to vector<16x22xf32>
    %c0_10 = arith.constant 0 : index
    %c0_11 = arith.constant 0 : index
    %c6 = arith.constant 6 : index
    %8 = vector.load %arg1[%c0_10, %c0_11, %c6] : memref<1x16x36xf32, #tpu.memory_space<vmem>>, vector<1x16x22xf32>
    %9 = vector.shape_cast %8 : vector<1x16x22xf32> to vector<16x22xf32>
    %c0_12 = arith.constant 0 : index
    %c0_13 = arith.constant 0 : index
    %c7 = arith.constant 7 : index
    %10 = vector.load %arg1[%c0_12, %c0_13, %c7] : memref<1x16x36xf32, #tpu.memory_space<vmem>>, vector<1x16x22xf32>
    %11 = vector.shape_cast %10 : vector<1x16x22xf32> to vector<16x22xf32>
    %c0_14 = arith.constant 0 : index
    %c0_15 = arith.constant 0 : index
    %c8 = arith.constant 8 : index
    %12 = vector.load %arg1[%c0_14, %c0_15, %c8] : memref<1x16x36xf32, #tpu.memory_space<vmem>>, vector<1x16x22xf32>
    %13 = vector.shape_cast %12 : vector<1x16x22xf32> to vector<16x22xf32>
    %c0_16 = arith.constant 0 : index
    %c0_17 = arith.constant 0 : index
    %c12 = arith.constant 12 : index
    %14 = vector.load %arg1[%c0_16, %c0_17, %c12] : memref<1x16x36xf32, #tpu.memory_space<vmem>>, vector<1x16x22xf32>
    %15 = vector.shape_cast %14 : vector<1x16x22xf32> to vector<16x22xf32>
    %c0_18 = arith.constant 0 : index
    %c0_19 = arith.constant 0 : index
    %c13 = arith.constant 13 : index
    %16 = vector.load %arg1[%c0_18, %c0_19, %c13] : memref<1x16x36xf32, #tpu.memory_space<vmem>>, vector<1x16x22xf32>
    %17 = vector.shape_cast %16 : vector<1x16x22xf32> to vector<16x22xf32>
    %c0_20 = arith.constant 0 : index
    %c0_21 = arith.constant 0 : index
    %c14 = arith.constant 14 : index
    %18 = vector.load %arg1[%c0_20, %c0_21, %c14] : memref<1x16x36xf32, #tpu.memory_space<vmem>>, vector<1x16x22xf32>
    %19 = vector.shape_cast %18 : vector<1x16x22xf32> to vector<16x22xf32>
    %20 = tpu.concatenate %3, %5, %7, %9, %11, %13, %15, %17, %19 in 0 : vector<16x22xf32>, vector<16x22xf32>, vector<16x22xf32>, vector<16x22xf32>, vector<16x22xf32>, vector<16x22xf32>, vector<16x22xf32>, vector<16x22xf32>, vector<16x22xf32> -> vector<144x22xf32>
    %cst = arith.constant dense<0.000000e+00> : vector<32x22xf32>
    %21 = tpu.matmul %0, %20, %cst {dimension_numbers = #tpu.dot_dimension_numbers<[1], [0], [0], [1], [0, 0, 1, 1], [], []>} : vector<32x144xf32>, vector<144x22xf32>, vector<32x22xf32> -> vector<32x22xf32>
    %22 = vector.broadcast %1 : vector<32x1xf32> to vector<32x22xf32>
    %23 = arith.addf %21, %22 : vector<32x22xf32>
    %cst_22 = arith.constant 0.000000e+00 : f32
    %24 = vector.broadcast %cst_22 : f32 to vector<32x22xf32>
    %25 = arith.maximumf %23, %24 : vector<32x22xf32>
    %c0_23 = arith.constant 0 : index
    %c0_24 = arith.constant 0 : index
    %26 = vector.load %arg8[%c0_23, %c0_24] : memref<32x22xf32, #tpu.memory_space<vmem>>, vector<32x22xf32>
    tpu.vector_store %arg8[%c0_23, %c0_24], %25 {strides = array<i32>} : memref<32x22xf32, #tpu.memory_space<vmem>>, vector<32x22xf32>,
    %c0_25 = arith.constant 0 : index
    %c0_26 = arith.constant 0 : index
    %27 = vector.load %arg4[%c0_25, %c0_26] : memref<32x288xf32, #tpu.memory_space<vmem>>, vector<32x288xf32>
    %c0_27 = arith.constant 0 : index
    %c0_28 = arith.constant 0 : index
    %28 = vector.load %arg5[%c0_27, %c0_28] : memref<32x1xf32, #tpu.memory_space<vmem>>, vector<32x1xf32>
    %c0_29 = arith.constant 0 : index
    %c0_30 = arith.constant 0 : index
    %29 = vector.load %arg8[%c0_29, %c0_30] : memref<32x22xf32, #tpu.memory_space<vmem>>, vector<32x8xf32>
    %c0_31 = arith.constant 0 : index
    %c1_32 = arith.constant 1 : index
    %30 = vector.load %arg8[%c0_31, %c1_32] : memref<32x22xf32, #tpu.memory_space<vmem>>, vector<32x8xf32>
    %c0_33 = arith.constant 0 : index
    %c2_34 = arith.constant 2 : index
    %31 = vector.load %arg8[%c0_33, %c2_34] : memref<32x22xf32, #tpu.memory_space<vmem>>, vector<32x8xf32>
    %c0_35 = arith.constant 0 : index
    %c6_36 = arith.constant 6 : index
    %32 = vector.load %arg8[%c0_35, %c6_36] : memref<32x22xf32, #tpu.memory_space<vmem>>, vector<32x8xf32>
    %c0_37 = arith.constant 0 : index
    %c7_38 = arith.constant 7 : index
    %33 = vector.load %arg8[%c0_37, %c7_38] : memref<32x22xf32, #tpu.memory_space<vmem>>, vector<32x8xf32>
    %c0_39 = arith.constant 0 : index
    %c8_40 = arith.constant 8 : index
    %34 = vector.load %arg8[%c0_39, %c8_40] : memref<32x22xf32, #tpu.memory_space<vmem>>, vector<32x8xf32>
    %c0_41 = arith.constant 0 : index
    %c12_42 = arith.constant 12 : index
    %35 = vector.load %arg8[%c0_41, %c12_42] : memref<32x22xf32, #tpu.memory_space<vmem>>, vector<32x8xf32>
    %c0_43 = arith.constant 0 : index
    %c13_44 = arith.constant 13 : index
    %36 = vector.load %arg8[%c0_43, %c13_44] : memref<32x22xf32, #tpu.memory_space<vmem>>, vector<32x8xf32>
    %c0_45 = arith.constant 0 : index
    %c14_46 = arith.constant 14 : index
    %37 = vector.load %arg8[%c0_45, %c14_46] : memref<32x22xf32, #tpu.memory_space<vmem>>, vector<32x8xf32>
    %38 = tpu.concatenate %29, %30, %31, %32, %33, %34, %35, %36, %37 in 0 : vector<32x8xf32>, vector<32x8xf32>, vector<32x8xf32>, vector<32x8xf32>, vector<32x8xf32>, vector<32x8xf32>, vector<32x8xf32>, vector<32x8xf32>, vector<32x8xf32> -> vector<288x8xf32>
    %cst_47 = arith.constant dense<0.000000e+00> : vector<32x8xf32>
    %39 = tpu.matmul %27, %38, %cst_47 {dimension_numbers = #tpu.dot_dimension_numbers<[1], [0], [0], [1], [0, 0, 1, 1], [], []>} : vector<32x288xf32>, vector<288x8xf32>, vector<32x8xf32> -> vector<32x8xf32>
    %40 = vector.broadcast %28 : vector<32x1xf32> to vector<32x8xf32>
    %41 = arith.addf %39, %40 : vector<32x8xf32>
    %cst_48 = arith.constant 0.000000e+00 : f32
    %42 = vector.broadcast %cst_48 : f32 to vector<32x8xf32>
    %43 = arith.maximumf %41, %42 : vector<32x8xf32>
    %c0_49 = arith.constant 0 : index
    %c0_50 = arith.constant 0 : index
    %44 = vector.load %arg9[%c0_49, %c0_50] : memref<32x8xf32, #tpu.memory_space<vmem>>, vector<32x8xf32>
    tpu.vector_store %arg9[%c0_49, %c0_50], %43 {strides = array<i32>} : memref<32x8xf32, #tpu.memory_space<vmem>>, vector<32x8xf32>,
    %c0_51 = arith.constant 0 : index
    %c0_52 = arith.constant 0 : index
    %45 = vector.load %arg9[%c0_51, %c0_52] : memref<32x8xf32, #tpu.memory_space<vmem>>, vector<32x2xf32>
    %c0_53 = arith.constant 0 : index
    %c0_54 = arith.constant 0 : index
    %c0_55 = arith.constant 0 : index
    %46 = vector.load %arg6[%c0_53, %c0_54, %c0_55] : memref<1x32x4xf32, #tpu.memory_space<vmem>>, vector<1x32x2xf32>
    %47 = vector.shape_cast %46 : vector<1x32x2xf32> to vector<32x2xf32>
    %48 = vector.shape_cast %45 : vector<32x2xf32> to vector<1x32x2xf32>
    tpu.vector_store %arg6[%c0_53, %c0_54, %c0_55], %48 {strides = array<i32>} : memref<1x32x4xf32, #tpu.memory_space<vmem>>, vector<1x32x2xf32>,
    %c0_56 = arith.constant 0 : index
    %c6_57 = arith.constant 6 : index
    %49 = vector.load %arg9[%c0_56, %c6_57] : memref<32x8xf32, #tpu.memory_space<vmem>>, vector<32x2xf32>
    %c0_58 = arith.constant 0 : index
    %c0_59 = arith.constant 0 : index
    %c2_60 = arith.constant 2 : index
    %50 = vector.load %arg6[%c0_58, %c0_59, %c2_60] : memref<1x32x4xf32, #tpu.memory_space<vmem>>, vector<1x32x2xf32>
    %51 = vector.shape_cast %50 : vector<1x32x2xf32> to vector<32x2xf32>
    %52 = vector.shape_cast %49 : vector<32x2xf32> to vector<1x32x2xf32>
    tpu.vector_store %arg6[%c0_58, %c0_59, %c2_60], %52 {strides = array<i32>} : memref<1x32x4xf32, #tpu.memory_space<vmem>>, vector<1x32x2xf32>,
    %53 = tpu.iota {dimensions = array<i32: 0>} : vector<2x1xi32>
    %54 = tpu.iota {dimensions = array<i32: 1>} : vector<2x1xi32>
    %c2_i32 = arith.constant 2 : i32
    %55 = vector.broadcast %c2_i32 : i32 to vector<2x1xi32>
    %56 = arith.muli %55, %54 : vector<2x1xi32>
    %57 = arith.cmpi eq, %53, %56 : vector<2x1xi32>
    %58 = arith.extui %57 : vector<2x1xi1> to vector<2x1xi32>
    %59 = arith.sitofp %58 : vector<2x1xi32> to vector<2x1xf32>
    %c2_i32_61 = arith.constant 2 : i32
    %60 = vector.broadcast %c2_i32_61 : i32 to vector<2x1xi32>
    %61 = arith.muli %60, %54 : vector<2x1xi32>
    %c1_i32 = arith.constant 1 : i32
    %62 = vector.broadcast %c1_i32 : i32 to vector<2x1xi32>
    %63 = arith.addi %61, %62 : vector<2x1xi32>
    %64 = arith.cmpi eq, %53, %63 : vector<2x1xi32>
    %65 = arith.extui %64 : vector<2x1xi1> to vector<2x1xi32>
    %66 = arith.sitofp %65 : vector<2x1xi32> to vector<2x1xf32>
    %c0_62 = arith.constant 0 : index
    %c0_63 = arith.constant 0 : index
    %67 = vector.load %arg9[%c0_62, %c0_63] : memref<32x8xf32, #tpu.memory_space<vmem>>, vector<32x2xf32>
    %c0_64 = arith.constant 0 : index
    %c6_65 = arith.constant 6 : index
    %68 = vector.load %arg9[%c0_64, %c6_65] : memref<32x8xf32, #tpu.memory_space<vmem>>, vector<32x2xf32>
    %69 = arith.maximumf %67, %68 : vector<32x2xf32>
    %cst_66 = arith.constant dense<0.000000e+00> : vector<32x1xf32>
    %70 = tpu.matmul %69, %59, %cst_66 {dimension_numbers = #tpu.dot_dimension_numbers<[1], [0], [0], [1], [0, 0, 1, 1], [], []>} : vector<32x2xf32>, vector<2x1xf32>, vector<32x1xf32> -> vector<32x1xf32>
    %cst_67 = arith.constant dense<0.000000e+00> : vector<32x1xf32>
    %71 = tpu.matmul %69, %66, %cst_67 {dimension_numbers = #tpu.dot_dimension_numbers<[1], [0], [0], [1], [0, 0, 1, 1], [], []>} : vector<32x2xf32>, vector<2x1xf32>, vector<32x1xf32> -> vector<32x1xf32>
    %72 = arith.maximumf %70, %71 : vector<32x1xf32>
    %c0_68 = arith.constant 0 : index
    %c0_69 = arith.constant 0 : index
    %c0_70 = arith.constant 0 : index
    %73 = vector.load %arg7[%c0_68, %c0_69, %c0_70] : memref<1x32x1xf32, #tpu.memory_space<vmem>>, vector<1x32x1xf32>
    %74 = vector.shape_cast %73 : vector<1x32x1xf32> to vector<32x1xf32>
    %75 = vector.shape_cast %72 : vector<32x1xf32> to vector<1x32x1xf32>
    tpu.vector_store %arg7[%c0_68, %c0_69, %c0_70], %75 {strides = array<i32>} : memref<1x32x1xf32, #tpu.memory_space<vmem>>, vector<1x32x1xf32>,
    return
  }
  func.func @transform_0(%arg0: i32) -> (i32, i32, i32) {
    %c0_i32 = arith.constant 0 : i32
    %c0_i32_0 = arith.constant 0 : i32
    %c0_i32_1 = arith.constant 0 : i32
    return %arg0, %c0_i32, %c0_i32_0 : i32, i32, i32
  }
  func.func @transform_1(%arg0: i32) -> (i32, i32) {
    %c0_i32 = arith.constant 0 : i32
    %c0_i32_0 = arith.constant 0 : i32
    %c0_i32_1 = arith.constant 0 : i32
    return %c0_i32, %c0_i32_0 : i32, i32
  }
  func.func @transform_2(%arg0: i32) -> (i32, i32) {
    %c0_i32 = arith.constant 0 : i32
    %c0_i32_0 = arith.constant 0 : i32
    %c0_i32_1 = arith.constant 0 : i32
    return %c0_i32, %c0_i32_0 : i32, i32
  }
  func.func @transform_3(%arg0: i32) -> (i32, i32) {
    %c0_i32 = arith.constant 0 : i32
    %c0_i32_0 = arith.constant 0 : i32
    %c0_i32_1 = arith.constant 0 : i32
    return %c0_i32, %c0_i32_0 : i32, i32
  }
  func.func @transform_4(%arg0: i32) -> (i32, i32) {
    %c0_i32 = arith.constant 0 : i32
    %c0_i32_0 = arith.constant 0 : i32
    %c0_i32_1 = arith.constant 0 : i32
    return %c0_i32, %c0_i32_0 : i32, i32
  }
  func.func @transform_5(%arg0: i32) -> (i32, i32, i32) {
    %c0_i32 = arith.constant 0 : i32
    %c0_i32_0 = arith.constant 0 : i32
    %c0_i32_1 = arith.constant 0 : i32
    return %arg0, %c0_i32, %c0_i32_0 : i32, i32, i32
  }
  func.func @transform_6(%arg0: i32) -> (i32, i32, i32) {
    %c0_i32 = arith.constant 0 : i32
    %c0_i32_0 = arith.constant 0 : i32
    %c0_i32_1 = arith.constant 0 : i32
    return %arg0, %c0_i32, %c0_i32_0 : i32, i32, i32
  }
}

module attributes {stable_mosaic.version = 11 : i64} {
  func.func @_encoder_block_kernel(%arg0: i32, %arg1: memref<1x3x1296xf32, #tpu.memory_space<vmem>>, %arg2: memref<8x27xf32, #tpu.memory_space<vmem>>, %arg3: memref<8x1xf32, #tpu.memory_space<vmem>>, %arg4: memref<8x72xf32, #tpu.memory_space<vmem>>, %arg5: memref<8x1xf32, #tpu.memory_space<vmem>>, %arg6: memref<1x8x1024xf32, #tpu.memory_space<vmem>>, %arg7: memref<1x8x256xf32, #tpu.memory_space<vmem>>, %arg8: memref<8x1222xf32, #tpu.memory_space<vmem>>, %arg9: memref<8x1148xf32, #tpu.memory_space<vmem>>) attributes {dimension_semantics = [#tpu.dimension_semantics<parallel>], iteration_bounds = array<i64: 2>, scalar_prefetch = 0 : i64, scratch_operands = 2 : i64, tpu.core_type = #tpu.core_type<tc>, window_params = [{transform_indices = @transform_0, window_bounds = array<i64: 1, 3, 1296>}, {pipeline_mode = #tpu.pipeline_mode<synchronous>, transform_indices = @transform_1, window_bounds = array<i64: 8, 27>}, {pipeline_mode = #tpu.pipeline_mode<synchronous>, transform_indices = @transform_2, window_bounds = array<i64: 8, 1>}, {pipeline_mode = #tpu.pipeline_mode<synchronous>, transform_indices = @transform_3, window_bounds = array<i64: 8, 72>}, {pipeline_mode = #tpu.pipeline_mode<synchronous>, transform_indices = @transform_4, window_bounds = array<i64: 8, 1>}, {transform_indices = @transform_5, window_bounds = array<i64: 1, 8, 1024>}, {transform_indices = @transform_6, window_bounds = array<i64: 1, 8, 256>}]} {
    %c0 = arith.constant 0 : index
    %c0_0 = arith.constant 0 : index
    %0 = vector.load %arg2[%c0, %c0_0] : memref<8x27xf32, #tpu.memory_space<vmem>>, vector<8x27xf32>
    %c0_1 = arith.constant 0 : index
    %c0_2 = arith.constant 0 : index
    %1 = vector.load %arg3[%c0_1, %c0_2] : memref<8x1xf32, #tpu.memory_space<vmem>>, vector<8x1xf32>
    %c0_3 = arith.constant 0 : index
    %c0_4 = arith.constant 0 : index
    %c0_5 = arith.constant 0 : index
    %2 = vector.load %arg1[%c0_3, %c0_4, %c0_5] : memref<1x3x1296xf32, #tpu.memory_space<vmem>>, vector<1x3x512xf32>
    %3 = vector.shape_cast %2 : vector<1x3x512xf32> to vector<3x512xf32>
    %c0_6 = arith.constant 0 : index
    %c0_7 = arith.constant 0 : index
    %c1 = arith.constant 1 : index
    %4 = vector.load %arg1[%c0_6, %c0_7, %c1] : memref<1x3x1296xf32, #tpu.memory_space<vmem>>, vector<1x3x512xf32>
    %5 = vector.shape_cast %4 : vector<1x3x512xf32> to vector<3x512xf32>
    %c0_8 = arith.constant 0 : index
    %c0_9 = arith.constant 0 : index
    %c2 = arith.constant 2 : index
    %6 = vector.load %arg1[%c0_8, %c0_9, %c2] : memref<1x3x1296xf32, #tpu.memory_space<vmem>>, vector<1x3x512xf32>
    %7 = vector.shape_cast %6 : vector<1x3x512xf32> to vector<3x512xf32>
    %c0_10 = arith.constant 0 : index
    %c0_11 = arith.constant 0 : index
    %c36 = arith.constant 36 : index
    %8 = vector.load %arg1[%c0_10, %c0_11, %c36] : memref<1x3x1296xf32, #tpu.memory_space<vmem>>, vector<1x3x512xf32>
    %9 = vector.shape_cast %8 : vector<1x3x512xf32> to vector<3x512xf32>
    %c0_12 = arith.constant 0 : index
    %c0_13 = arith.constant 0 : index
    %c37 = arith.constant 37 : index
    %10 = vector.load %arg1[%c0_12, %c0_13, %c37] : memref<1x3x1296xf32, #tpu.memory_space<vmem>>, vector<1x3x512xf32>
    %11 = vector.shape_cast %10 : vector<1x3x512xf32> to vector<3x512xf32>
    %c0_14 = arith.constant 0 : index
    %c0_15 = arith.constant 0 : index
    %c38 = arith.constant 38 : index
    %12 = vector.load %arg1[%c0_14, %c0_15, %c38] : memref<1x3x1296xf32, #tpu.memory_space<vmem>>, vector<1x3x512xf32>
    %13 = vector.shape_cast %12 : vector<1x3x512xf32> to vector<3x512xf32>
    %c0_16 = arith.constant 0 : index
    %c0_17 = arith.constant 0 : index
    %c72 = arith.constant 72 : index
    %14 = vector.load %arg1[%c0_16, %c0_17, %c72] : memref<1x3x1296xf32, #tpu.memory_space<vmem>>, vector<1x3x512xf32>
    %15 = vector.shape_cast %14 : vector<1x3x512xf32> to vector<3x512xf32>
    %c0_18 = arith.constant 0 : index
    %c0_19 = arith.constant 0 : index
    %c73 = arith.constant 73 : index
    %16 = vector.load %arg1[%c0_18, %c0_19, %c73] : memref<1x3x1296xf32, #tpu.memory_space<vmem>>, vector<1x3x512xf32>
    %17 = vector.shape_cast %16 : vector<1x3x512xf32> to vector<3x512xf32>
    %c0_20 = arith.constant 0 : index
    %c0_21 = arith.constant 0 : index
    %c74 = arith.constant 74 : index
    %18 = vector.load %arg1[%c0_20, %c0_21, %c74] : memref<1x3x1296xf32, #tpu.memory_space<vmem>>, vector<1x3x512xf32>
    %19 = vector.shape_cast %18 : vector<1x3x512xf32> to vector<3x512xf32>
    %20 = tpu.concatenate %3, %5, %7, %9, %11, %13, %15, %17, %19 in 0 : vector<3x512xf32>, vector<3x512xf32>, vector<3x512xf32>, vector<3x512xf32>, vector<3x512xf32>, vector<3x512xf32>, vector<3x512xf32>, vector<3x512xf32>, vector<3x512xf32> -> vector<27x512xf32>
    %cst = arith.constant dense<0.000000e+00> : vector<8x512xf32>
    %21 = tpu.matmul %0, %20, %cst {dimension_numbers = #tpu.dot_dimension_numbers<[1], [0], [0], [1], [0, 0, 1, 1], [], []>} : vector<8x27xf32>, vector<27x512xf32>, vector<8x512xf32> -> vector<8x512xf32>
    %22 = vector.broadcast %1 : vector<8x1xf32> to vector<8x512xf32>
    %23 = arith.addf %21, %22 : vector<8x512xf32>
    %cst_22 = arith.constant 0.000000e+00 : f32
    %24 = vector.broadcast %cst_22 : f32 to vector<8x512xf32>
    %25 = arith.maximumf %23, %24 : vector<8x512xf32>
    %c0_23 = arith.constant 0 : index
    %c0_24 = arith.constant 0 : index
    %26 = vector.load %arg8[%c0_23, %c0_24] : memref<8x1222xf32, #tpu.memory_space<vmem>>, vector<8x512xf32>
    tpu.vector_store %arg8[%c0_23, %c0_24], %25 {strides = array<i32>} : memref<8x1222xf32, #tpu.memory_space<vmem>>, vector<8x512xf32>,
    %c0_25 = arith.constant 0 : index
    %c0_26 = arith.constant 0 : index
    %c512 = arith.constant 512 : index
    %27 = vector.load %arg1[%c0_25, %c0_26, %c512] : memref<1x3x1296xf32, #tpu.memory_space<vmem>>, vector<1x3x512xf32>
    %28 = vector.shape_cast %27 : vector<1x3x512xf32> to vector<3x512xf32>
    %c0_27 = arith.constant 0 : index
    %c0_28 = arith.constant 0 : index
    %c513 = arith.constant 513 : index
    %29 = vector.load %arg1[%c0_27, %c0_28, %c513] : memref<1x3x1296xf32, #tpu.memory_space<vmem>>, vector<1x3x512xf32>
    %30 = vector.shape_cast %29 : vector<1x3x512xf32> to vector<3x512xf32>
    %c0_29 = arith.constant 0 : index
    %c0_30 = arith.constant 0 : index
    %c514 = arith.constant 514 : index
    %31 = vector.load %arg1[%c0_29, %c0_30, %c514] : memref<1x3x1296xf32, #tpu.memory_space<vmem>>, vector<1x3x512xf32>
    %32 = vector.shape_cast %31 : vector<1x3x512xf32> to vector<3x512xf32>
    %c0_31 = arith.constant 0 : index
    %c0_32 = arith.constant 0 : index
    %c548 = arith.constant 548 : index
    %33 = vector.load %arg1[%c0_31, %c0_32, %c548] : memref<1x3x1296xf32, #tpu.memory_space<vmem>>, vector<1x3x512xf32>
    %34 = vector.shape_cast %33 : vector<1x3x512xf32> to vector<3x512xf32>
    %c0_33 = arith.constant 0 : index
    %c0_34 = arith.constant 0 : index
    %c549 = arith.constant 549 : index
    %35 = vector.load %arg1[%c0_33, %c0_34, %c549] : memref<1x3x1296xf32, #tpu.memory_space<vmem>>, vector<1x3x512xf32>
    %36 = vector.shape_cast %35 : vector<1x3x512xf32> to vector<3x512xf32>
    %c0_35 = arith.constant 0 : index
    %c0_36 = arith.constant 0 : index
    %c550 = arith.constant 550 : index
    %37 = vector.load %arg1[%c0_35, %c0_36, %c550] : memref<1x3x1296xf32, #tpu.memory_space<vmem>>, vector<1x3x512xf32>
    %38 = vector.shape_cast %37 : vector<1x3x512xf32> to vector<3x512xf32>
    %c0_37 = arith.constant 0 : index
    %c0_38 = arith.constant 0 : index
    %c584 = arith.constant 584 : index
    %39 = vector.load %arg1[%c0_37, %c0_38, %c584] : memref<1x3x1296xf32, #tpu.memory_space<vmem>>, vector<1x3x512xf32>
    %40 = vector.shape_cast %39 : vector<1x3x512xf32> to vector<3x512xf32>
    %c0_39 = arith.constant 0 : index
    %c0_40 = arith.constant 0 : index
    %c585 = arith.constant 585 : index
    %41 = vector.load %arg1[%c0_39, %c0_40, %c585] : memref<1x3x1296xf32, #tpu.memory_space<vmem>>, vector<1x3x512xf32>
    %42 = vector.shape_cast %41 : vector<1x3x512xf32> to vector<3x512xf32>
    %c0_41 = arith.constant 0 : index
    %c0_42 = arith.constant 0 : index
    %c586 = arith.constant 586 : index
    %43 = vector.load %arg1[%c0_41, %c0_42, %c586] : memref<1x3x1296xf32, #tpu.memory_space<vmem>>, vector<1x3x512xf32>
    %44 = vector.shape_cast %43 : vector<1x3x512xf32> to vector<3x512xf32>
    %45 = tpu.concatenate %28, %30, %32, %34, %36, %38, %40, %42, %44 in 0 : vector<3x512xf32>, vector<3x512xf32>, vector<3x512xf32>, vector<3x512xf32>, vector<3x512xf32>, vector<3x512xf32>, vector<3x512xf32>, vector<3x512xf32>, vector<3x512xf32> -> vector<27x512xf32>
    %cst_43 = arith.constant dense<0.000000e+00> : vector<8x512xf32>
    %46 = tpu.matmul %0, %45, %cst_43 {dimension_numbers = #tpu.dot_dimension_numbers<[1], [0], [0], [1], [0, 0, 1, 1], [], []>} : vector<8x27xf32>, vector<27x512xf32>, vector<8x512xf32> -> vector<8x512xf32>
    %47 = vector.broadcast %1 : vector<8x1xf32> to vector<8x512xf32>
    %48 = arith.addf %46, %47 : vector<8x512xf32>
    %cst_44 = arith.constant 0.000000e+00 : f32
    %49 = vector.broadcast %cst_44 : f32 to vector<8x512xf32>
    %50 = arith.maximumf %48, %49 : vector<8x512xf32>
    %c0_45 = arith.constant 0 : index
    %c512_46 = arith.constant 512 : index
    %51 = vector.load %arg8[%c0_45, %c512_46] : memref<8x1222xf32, #tpu.memory_space<vmem>>, vector<8x512xf32>
    tpu.vector_store %arg8[%c0_45, %c512_46], %50 {strides = array<i32>} : memref<8x1222xf32, #tpu.memory_space<vmem>>, vector<8x512xf32>,
    %c0_47 = arith.constant 0 : index
    %c0_48 = arith.constant 0 : index
    %c1024 = arith.constant 1024 : index
    %52 = vector.load %arg1[%c0_47, %c0_48, %c1024] : memref<1x3x1296xf32, #tpu.memory_space<vmem>>, vector<1x3x198xf32>
    %53 = vector.shape_cast %52 : vector<1x3x198xf32> to vector<3x198xf32>
    %c0_49 = arith.constant 0 : index
    %c0_50 = arith.constant 0 : index
    %c1025 = arith.constant 1025 : index
    %54 = vector.load %arg1[%c0_49, %c0_50, %c1025] : memref<1x3x1296xf32, #tpu.memory_space<vmem>>, vector<1x3x198xf32>
    %55 = vector.shape_cast %54 : vector<1x3x198xf32> to vector<3x198xf32>
    %c0_51 = arith.constant 0 : index
    %c0_52 = arith.constant 0 : index
    %c1026 = arith.constant 1026 : index
    %56 = vector.load %arg1[%c0_51, %c0_52, %c1026] : memref<1x3x1296xf32, #tpu.memory_space<vmem>>, vector<1x3x198xf32>
    %57 = vector.shape_cast %56 : vector<1x3x198xf32> to vector<3x198xf32>
    %c0_53 = arith.constant 0 : index
    %c0_54 = arith.constant 0 : index
    %c1060 = arith.constant 1060 : index
    %58 = vector.load %arg1[%c0_53, %c0_54, %c1060] : memref<1x3x1296xf32, #tpu.memory_space<vmem>>, vector<1x3x198xf32>
    %59 = vector.shape_cast %58 : vector<1x3x198xf32> to vector<3x198xf32>
    %c0_55 = arith.constant 0 : index
    %c0_56 = arith.constant 0 : index
    %c1061 = arith.constant 1061 : index
    %60 = vector.load %arg1[%c0_55, %c0_56, %c1061] : memref<1x3x1296xf32, #tpu.memory_space<vmem>>, vector<1x3x198xf32>
    %61 = vector.shape_cast %60 : vector<1x3x198xf32> to vector<3x198xf32>
    %c0_57 = arith.constant 0 : index
    %c0_58 = arith.constant 0 : index
    %c1062 = arith.constant 1062 : index
    %62 = vector.load %arg1[%c0_57, %c0_58, %c1062] : memref<1x3x1296xf32, #tpu.memory_space<vmem>>, vector<1x3x198xf32>
    %63 = vector.shape_cast %62 : vector<1x3x198xf32> to vector<3x198xf32>
    %c0_59 = arith.constant 0 : index
    %c0_60 = arith.constant 0 : index
    %c1096 = arith.constant 1096 : index
    %64 = vector.load %arg1[%c0_59, %c0_60, %c1096] : memref<1x3x1296xf32, #tpu.memory_space<vmem>>, vector<1x3x198xf32>
    %65 = vector.shape_cast %64 : vector<1x3x198xf32> to vector<3x198xf32>
    %c0_61 = arith.constant 0 : index
    %c0_62 = arith.constant 0 : index
    %c1097 = arith.constant 1097 : index
    %66 = vector.load %arg1[%c0_61, %c0_62, %c1097] : memref<1x3x1296xf32, #tpu.memory_space<vmem>>, vector<1x3x198xf32>
    %67 = vector.shape_cast %66 : vector<1x3x198xf32> to vector<3x198xf32>
    %c0_63 = arith.constant 0 : index
    %c0_64 = arith.constant 0 : index
    %c1098 = arith.constant 1098 : index
    %68 = vector.load %arg1[%c0_63, %c0_64, %c1098] : memref<1x3x1296xf32, #tpu.memory_space<vmem>>, vector<1x3x198xf32>
    %69 = vector.shape_cast %68 : vector<1x3x198xf32> to vector<3x198xf32>
    %70 = tpu.concatenate %53, %55, %57, %59, %61, %63, %65, %67, %69 in 0 : vector<3x198xf32>, vector<3x198xf32>, vector<3x198xf32>, vector<3x198xf32>, vector<3x198xf32>, vector<3x198xf32>, vector<3x198xf32>, vector<3x198xf32>, vector<3x198xf32> -> vector<27x198xf32>
    %cst_65 = arith.constant dense<0.000000e+00> : vector<8x198xf32>
    %71 = tpu.matmul %0, %70, %cst_65 {dimension_numbers = #tpu.dot_dimension_numbers<[1], [0], [0], [1], [0, 0, 1, 1], [], []>} : vector<8x27xf32>, vector<27x198xf32>, vector<8x198xf32> -> vector<8x198xf32>
    %72 = vector.broadcast %1 : vector<8x1xf32> to vector<8x198xf32>
    %73 = arith.addf %71, %72 : vector<8x198xf32>
    %cst_66 = arith.constant 0.000000e+00 : f32
    %74 = vector.broadcast %cst_66 : f32 to vector<8x198xf32>
    %75 = arith.maximumf %73, %74 : vector<8x198xf32>
    %c0_67 = arith.constant 0 : index
    %c1024_68 = arith.constant 1024 : index
    %76 = vector.load %arg8[%c0_67, %c1024_68] : memref<8x1222xf32, #tpu.memory_space<vmem>>, vector<8x198xf32>
    tpu.vector_store %arg8[%c0_67, %c1024_68], %75 {strides = array<i32>} : memref<8x1222xf32, #tpu.memory_space<vmem>>, vector<8x198xf32>,
    %c0_69 = arith.constant 0 : index
    %c0_70 = arith.constant 0 : index
    %77 = vector.load %arg4[%c0_69, %c0_70] : memref<8x72xf32, #tpu.memory_space<vmem>>, vector<8x72xf32>
    %c0_71 = arith.constant 0 : index
    %c0_72 = arith.constant 0 : index
    %78 = vector.load %arg5[%c0_71, %c0_72] : memref<8x1xf32, #tpu.memory_space<vmem>>, vector<8x1xf32>
    %c0_73 = arith.constant 0 : index
    %c0_74 = arith.constant 0 : index
    %79 = vector.load %arg8[%c0_73, %c0_74] : memref<8x1222xf32, #tpu.memory_space<vmem>>, vector<8x512xf32>
    %c0_75 = arith.constant 0 : index
    %c1_76 = arith.constant 1 : index
    %80 = vector.load %arg8[%c0_75, %c1_76] : memref<8x1222xf32, #tpu.memory_space<vmem>>, vector<8x512xf32>
    %c0_77 = arith.constant 0 : index
    %c2_78 = arith.constant 2 : index
    %81 = vector.load %arg8[%c0_77, %c2_78] : memref<8x1222xf32, #tpu.memory_space<vmem>>, vector<8x512xf32>
    %c0_79 = arith.constant 0 : index
    %c36_80 = arith.constant 36 : index
    %82 = vector.load %arg8[%c0_79, %c36_80] : memref<8x1222xf32, #tpu.memory_space<vmem>>, vector<8x512xf32>
    %c0_81 = arith.constant 0 : index
    %c37_82 = arith.constant 37 : index
    %83 = vector.load %arg8[%c0_81, %c37_82] : memref<8x1222xf32, #tpu.memory_space<vmem>>, vector<8x512xf32>
    %c0_83 = arith.constant 0 : index
    %c38_84 = arith.constant 38 : index
    %84 = vector.load %arg8[%c0_83, %c38_84] : memref<8x1222xf32, #tpu.memory_space<vmem>>, vector<8x512xf32>
    %c0_85 = arith.constant 0 : index
    %c72_86 = arith.constant 72 : index
    %85 = vector.load %arg8[%c0_85, %c72_86] : memref<8x1222xf32, #tpu.memory_space<vmem>>, vector<8x512xf32>
    %c0_87 = arith.constant 0 : index
    %c73_88 = arith.constant 73 : index
    %86 = vector.load %arg8[%c0_87, %c73_88] : memref<8x1222xf32, #tpu.memory_space<vmem>>, vector<8x512xf32>
    %c0_89 = arith.constant 0 : index
    %c74_90 = arith.constant 74 : index
    %87 = vector.load %arg8[%c0_89, %c74_90] : memref<8x1222xf32, #tpu.memory_space<vmem>>, vector<8x512xf32>
    %88 = tpu.concatenate %79, %80, %81, %82, %83, %84, %85, %86, %87 in 0 : vector<8x512xf32>, vector<8x512xf32>, vector<8x512xf32>, vector<8x512xf32>, vector<8x512xf32>, vector<8x512xf32>, vector<8x512xf32>, vector<8x512xf32>, vector<8x512xf32> -> vector<72x512xf32>
    %cst_91 = arith.constant dense<0.000000e+00> : vector<8x512xf32>
    %89 = tpu.matmul %77, %88, %cst_91 {dimension_numbers = #tpu.dot_dimension_numbers<[1], [0], [0], [1], [0, 0, 1, 1], [], []>} : vector<8x72xf32>, vector<72x512xf32>, vector<8x512xf32> -> vector<8x512xf32>
    %90 = vector.broadcast %78 : vector<8x1xf32> to vector<8x512xf32>
    %91 = arith.addf %89, %90 : vector<8x512xf32>
    %cst_92 = arith.constant 0.000000e+00 : f32
    %92 = vector.broadcast %cst_92 : f32 to vector<8x512xf32>
    %93 = arith.maximumf %91, %92 : vector<8x512xf32>
    %c0_93 = arith.constant 0 : index
    %c0_94 = arith.constant 0 : index
    %94 = vector.load %arg9[%c0_93, %c0_94] : memref<8x1148xf32, #tpu.memory_space<vmem>>, vector<8x512xf32>
    tpu.vector_store %arg9[%c0_93, %c0_94], %93 {strides = array<i32>} : memref<8x1148xf32, #tpu.memory_space<vmem>>, vector<8x512xf32>,
    %c0_95 = arith.constant 0 : index
    %c512_96 = arith.constant 512 : index
    %95 = vector.load %arg8[%c0_95, %c512_96] : memref<8x1222xf32, #tpu.memory_space<vmem>>, vector<8x512xf32>
    %c0_97 = arith.constant 0 : index
    %c513_98 = arith.constant 513 : index
    %96 = vector.load %arg8[%c0_97, %c513_98] : memref<8x1222xf32, #tpu.memory_space<vmem>>, vector<8x512xf32>
    %c0_99 = arith.constant 0 : index
    %c514_100 = arith.constant 514 : index
    %97 = vector.load %arg8[%c0_99, %c514_100] : memref<8x1222xf32, #tpu.memory_space<vmem>>, vector<8x512xf32>
    %c0_101 = arith.constant 0 : index
    %c548_102 = arith.constant 548 : index
    %98 = vector.load %arg8[%c0_101, %c548_102] : memref<8x1222xf32, #tpu.memory_space<vmem>>, vector<8x512xf32>
    %c0_103 = arith.constant 0 : index
    %c549_104 = arith.constant 549 : index
    %99 = vector.load %arg8[%c0_103, %c549_104] : memref<8x1222xf32, #tpu.memory_space<vmem>>, vector<8x512xf32>
    %c0_105 = arith.constant 0 : index
    %c550_106 = arith.constant 550 : index
    %100 = vector.load %arg8[%c0_105, %c550_106] : memref<8x1222xf32, #tpu.memory_space<vmem>>, vector<8x512xf32>
    %c0_107 = arith.constant 0 : index
    %c584_108 = arith.constant 584 : index
    %101 = vector.load %arg8[%c0_107, %c584_108] : memref<8x1222xf32, #tpu.memory_space<vmem>>, vector<8x512xf32>
    %c0_109 = arith.constant 0 : index
    %c585_110 = arith.constant 585 : index
    %102 = vector.load %arg8[%c0_109, %c585_110] : memref<8x1222xf32, #tpu.memory_space<vmem>>, vector<8x512xf32>
    %c0_111 = arith.constant 0 : index
    %c586_112 = arith.constant 586 : index
    %103 = vector.load %arg8[%c0_111, %c586_112] : memref<8x1222xf32, #tpu.memory_space<vmem>>, vector<8x512xf32>
    %104 = tpu.concatenate %95, %96, %97, %98, %99, %100, %101, %102, %103 in 0 : vector<8x512xf32>, vector<8x512xf32>, vector<8x512xf32>, vector<8x512xf32>, vector<8x512xf32>, vector<8x512xf32>, vector<8x512xf32>, vector<8x512xf32>, vector<8x512xf32> -> vector<72x512xf32>
    %cst_113 = arith.constant dense<0.000000e+00> : vector<8x512xf32>
    %105 = tpu.matmul %77, %104, %cst_113 {dimension_numbers = #tpu.dot_dimension_numbers<[1], [0], [0], [1], [0, 0, 1, 1], [], []>} : vector<8x72xf32>, vector<72x512xf32>, vector<8x512xf32> -> vector<8x512xf32>
    %106 = vector.broadcast %78 : vector<8x1xf32> to vector<8x512xf32>
    %107 = arith.addf %105, %106 : vector<8x512xf32>
    %cst_114 = arith.constant 0.000000e+00 : f32
    %108 = vector.broadcast %cst_114 : f32 to vector<8x512xf32>
    %109 = arith.maximumf %107, %108 : vector<8x512xf32>
    %c0_115 = arith.constant 0 : index
    %c512_116 = arith.constant 512 : index
    %110 = vector.load %arg9[%c0_115, %c512_116] : memref<8x1148xf32, #tpu.memory_space<vmem>>, vector<8x512xf32>
    tpu.vector_store %arg9[%c0_115, %c512_116], %109 {strides = array<i32>} : memref<8x1148xf32, #tpu.memory_space<vmem>>, vector<8x512xf32>,
    %c0_117 = arith.constant 0 : index
    %c1024_118 = arith.constant 1024 : index
    %111 = vector.load %arg8[%c0_117, %c1024_118] : memref<8x1222xf32, #tpu.memory_space<vmem>>, vector<8x124xf32>
    %c0_119 = arith.constant 0 : index
    %c1025_120 = arith.constant 1025 : index
    %112 = vector.load %arg8[%c0_119, %c1025_120] : memref<8x1222xf32, #tpu.memory_space<vmem>>, vector<8x124xf32>
    %c0_121 = arith.constant 0 : index
    %c1026_122 = arith.constant 1026 : index
    %113 = vector.load %arg8[%c0_121, %c1026_122] : memref<8x1222xf32, #tpu.memory_space<vmem>>, vector<8x124xf32>
    %c0_123 = arith.constant 0 : index
    %c1060_124 = arith.constant 1060 : index
    %114 = vector.load %arg8[%c0_123, %c1060_124] : memref<8x1222xf32, #tpu.memory_space<vmem>>, vector<8x124xf32>
    %c0_125 = arith.constant 0 : index
    %c1061_126 = arith.constant 1061 : index
    %115 = vector.load %arg8[%c0_125, %c1061_126] : memref<8x1222xf32, #tpu.memory_space<vmem>>, vector<8x124xf32>
    %c0_127 = arith.constant 0 : index
    %c1062_128 = arith.constant 1062 : index
    %116 = vector.load %arg8[%c0_127, %c1062_128] : memref<8x1222xf32, #tpu.memory_space<vmem>>, vector<8x124xf32>
    %c0_129 = arith.constant 0 : index
    %c1096_130 = arith.constant 1096 : index
    %117 = vector.load %arg8[%c0_129, %c1096_130] : memref<8x1222xf32, #tpu.memory_space<vmem>>, vector<8x124xf32>
    %c0_131 = arith.constant 0 : index
    %c1097_132 = arith.constant 1097 : index
    %118 = vector.load %arg8[%c0_131, %c1097_132] : memref<8x1222xf32, #tpu.memory_space<vmem>>, vector<8x124xf32>
    %c0_133 = arith.constant 0 : index
    %c1098_134 = arith.constant 1098 : index
    %119 = vector.load %arg8[%c0_133, %c1098_134] : memref<8x1222xf32, #tpu.memory_space<vmem>>, vector<8x124xf32>
    %120 = tpu.concatenate %111, %112, %113, %114, %115, %116, %117, %118, %119 in 0 : vector<8x124xf32>, vector<8x124xf32>, vector<8x124xf32>, vector<8x124xf32>, vector<8x124xf32>, vector<8x124xf32>, vector<8x124xf32>, vector<8x124xf32>, vector<8x124xf32> -> vector<72x124xf32>
    %cst_135 = arith.constant dense<0.000000e+00> : vector<8x124xf32>
    %121 = tpu.matmul %77, %120, %cst_135 {dimension_numbers = #tpu.dot_dimension_numbers<[1], [0], [0], [1], [0, 0, 1, 1], [], []>} : vector<8x72xf32>, vector<72x124xf32>, vector<8x124xf32> -> vector<8x124xf32>
    %122 = vector.broadcast %78 : vector<8x1xf32> to vector<8x124xf32>
    %123 = arith.addf %121, %122 : vector<8x124xf32>
    %cst_136 = arith.constant 0.000000e+00 : f32
    %124 = vector.broadcast %cst_136 : f32 to vector<8x124xf32>
    %125 = arith.maximumf %123, %124 : vector<8x124xf32>
    %c0_137 = arith.constant 0 : index
    %c1024_138 = arith.constant 1024 : index
    %126 = vector.load %arg9[%c0_137, %c1024_138] : memref<8x1148xf32, #tpu.memory_space<vmem>>, vector<8x124xf32>
    tpu.vector_store %arg9[%c0_137, %c1024_138], %125 {strides = array<i32>} : memref<8x1148xf32, #tpu.memory_space<vmem>>, vector<8x124xf32>,
    %c0_139 = arith.constant 0 : index
    %c0_140 = arith.constant 0 : index
    %127 = vector.load %arg9[%c0_139, %c0_140] : memref<8x1148xf32, #tpu.memory_space<vmem>>, vector<8x32xf32>
    %c0_141 = arith.constant 0 : index
    %c0_142 = arith.constant 0 : index
    %c0_143 = arith.constant 0 : index
    %128 = vector.load %arg6[%c0_141, %c0_142, %c0_143] : memref<1x8x1024xf32, #tpu.memory_space<vmem>>, vector<1x8x32xf32>
    %129 = vector.shape_cast %128 : vector<1x8x32xf32> to vector<8x32xf32>
    %130 = vector.shape_cast %127 : vector<8x32xf32> to vector<1x8x32xf32>
    tpu.vector_store %arg6[%c0_141, %c0_142, %c0_143], %130 {strides = array<i32>} : memref<1x8x1024xf32, #tpu.memory_space<vmem>>, vector<1x8x32xf32>,
    %c0_144 = arith.constant 0 : index
    %c36_145 = arith.constant 36 : index
    %131 = vector.load %arg9[%c0_144, %c36_145] : memref<8x1148xf32, #tpu.memory_space<vmem>>, vector<8x32xf32>
    %c0_146 = arith.constant 0 : index
    %c0_147 = arith.constant 0 : index
    %c32 = arith.constant 32 : index
    %132 = vector.load %arg6[%c0_146, %c0_147, %c32] : memref<1x8x1024xf32, #tpu.memory_space<vmem>>, vector<1x8x32xf32>
    %133 = vector.shape_cast %132 : vector<1x8x32xf32> to vector<8x32xf32>
    %134 = vector.shape_cast %131 : vector<8x32xf32> to vector<1x8x32xf32>
    tpu.vector_store %arg6[%c0_146, %c0_147, %c32], %134 {strides = array<i32>} : memref<1x8x1024xf32, #tpu.memory_space<vmem>>, vector<1x8x32xf32>,
    %c0_148 = arith.constant 0 : index
    %c72_149 = arith.constant 72 : index
    %135 = vector.load %arg9[%c0_148, %c72_149] : memref<8x1148xf32, #tpu.memory_space<vmem>>, vector<8x32xf32>
    %c0_150 = arith.constant 0 : index
    %c0_151 = arith.constant 0 : index
    %c64 = arith.constant 64 : index
    %136 = vector.load %arg6[%c0_150, %c0_151, %c64] : memref<1x8x1024xf32, #tpu.memory_space<vmem>>, vector<1x8x32xf32>
    %137 = vector.shape_cast %136 : vector<1x8x32xf32> to vector<8x32xf32>
    %138 = vector.shape_cast %135 : vector<8x32xf32> to vector<1x8x32xf32>
    tpu.vector_store %arg6[%c0_150, %c0_151, %c64], %138 {strides = array<i32>} : memref<1x8x1024xf32, #tpu.memory_space<vmem>>, vector<1x8x32xf32>,
    %c0_152 = arith.constant 0 : index
    %c108 = arith.constant 108 : index
    %139 = vector.load %arg9[%c0_152, %c108] : memref<8x1148xf32, #tpu.memory_space<vmem>>, vector<8x32xf32>
    %c0_153 = arith.constant 0 : index
    %c0_154 = arith.constant 0 : index
    %c96 = arith.constant 96 : index
    %140 = vector.load %arg6[%c0_153, %c0_154, %c96] : memref<1x8x1024xf32, #tpu.memory_space<vmem>>, vector<1x8x32xf32>
    %141 = vector.shape_cast %140 : vector<1x8x32xf32> to vector<8x32xf32>
    %142 = vector.shape_cast %139 : vector<8x32xf32> to vector<1x8x32xf32>
    tpu.vector_store %arg6[%c0_153, %c0_154, %c96], %142 {strides = array<i32>} : memref<1x8x1024xf32, #tpu.memory_space<vmem>>, vector<1x8x32xf32>,
    %c0_155 = arith.constant 0 : index
    %c144 = arith.constant 144 : index
    %143 = vector.load %arg9[%c0_155, %c144] : memref<8x1148xf32, #tpu.memory_space<vmem>>, vector<8x32xf32>
    %c0_156 = arith.constant 0 : index
    %c0_157 = arith.constant 0 : index
    %c128 = arith.constant 128 : index
    %144 = vector.load %arg6[%c0_156, %c0_157, %c128] : memref<1x8x1024xf32, #tpu.memory_space<vmem>>, vector<1x8x32xf32>
    %145 = vector.shape_cast %144 : vector<1x8x32xf32> to vector<8x32xf32>
    %146 = vector.shape_cast %143 : vector<8x32xf32> to vector<1x8x32xf32>
    tpu.vector_store %arg6[%c0_156, %c0_157, %c128], %146 {strides = array<i32>} : memref<1x8x1024xf32, #tpu.memory_space<vmem>>, vector<1x8x32xf32>,
    %c0_158 = arith.constant 0 : index
    %c180 = arith.constant 180 : index
    %147 = vector.load %arg9[%c0_158, %c180] : memref<8x1148xf32, #tpu.memory_space<vmem>>, vector<8x32xf32>
    %c0_159 = arith.constant 0 : index
    %c0_160 = arith.constant 0 : index
    %c160 = arith.constant 160 : index
    %148 = vector.load %arg6[%c0_159, %c0_160, %c160] : memref<1x8x1024xf32, #tpu.memory_space<vmem>>, vector<1x8x32xf32>
    %149 = vector.shape_cast %148 : vector<1x8x32xf32> to vector<8x32xf32>
    %150 = vector.shape_cast %147 : vector<8x32xf32> to vector<1x8x32xf32>
    tpu.vector_store %arg6[%c0_159, %c0_160, %c160], %150 {strides = array<i32>} : memref<1x8x1024xf32, #tpu.memory_space<vmem>>, vector<1x8x32xf32>,
    %c0_161 = arith.constant 0 : index
    %c216 = arith.constant 216 : index
    %151 = vector.load %arg9[%c0_161, %c216] : memref<8x1148xf32, #tpu.memory_space<vmem>>, vector<8x32xf32>
    %c0_162 = arith.constant 0 : index
    %c0_163 = arith.constant 0 : index
    %c192 = arith.constant 192 : index
    %152 = vector.load %arg6[%c0_162, %c0_163, %c192] : memref<1x8x1024xf32, #tpu.memory_space<vmem>>, vector<1x8x32xf32>
    %153 = vector.shape_cast %152 : vector<1x8x32xf32> to vector<8x32xf32>
    %154 = vector.shape_cast %151 : vector<8x32xf32> to vector<1x8x32xf32>
    tpu.vector_store %arg6[%c0_162, %c0_163, %c192], %154 {strides = array<i32>} : memref<1x8x1024xf32, #tpu.memory_space<vmem>>, vector<1x8x32xf32>,
    %c0_164 = arith.constant 0 : index
    %c252 = arith.constant 252 : index
    %155 = vector.load %arg9[%c0_164, %c252] : memref<8x1148xf32, #tpu.memory_space<vmem>>, vector<8x32xf32>
    %c0_165 = arith.constant 0 : index
    %c0_166 = arith.constant 0 : index
    %c224 = arith.constant 224 : index
    %156 = vector.load %arg6[%c0_165, %c0_166, %c224] : memref<1x8x1024xf32, #tpu.memory_space<vmem>>, vector<1x8x32xf32>
    %157 = vector.shape_cast %156 : vector<1x8x32xf32> to vector<8x32xf32>
    %158 = vector.shape_cast %155 : vector<8x32xf32> to vector<1x8x32xf32>
    tpu.vector_store %arg6[%c0_165, %c0_166, %c224], %158 {strides = array<i32>} : memref<1x8x1024xf32, #tpu.memory_space<vmem>>, vector<1x8x32xf32>,
    %c0_167 = arith.constant 0 : index
    %c288 = arith.constant 288 : index
    %159 = vector.load %arg9[%c0_167, %c288] : memref<8x1148xf32, #tpu.memory_space<vmem>>, vector<8x32xf32>
    %c0_168 = arith.constant 0 : index
    %c0_169 = arith.constant 0 : index
    %c256 = arith.constant 256 : index
    %160 = vector.load %arg6[%c0_168, %c0_169, %c256] : memref<1x8x1024xf32, #tpu.memory_space<vmem>>, vector<1x8x32xf32>
    %161 = vector.shape_cast %160 : vector<1x8x32xf32> to vector<8x32xf32>
    %162 = vector.shape_cast %159 : vector<8x32xf32> to vector<1x8x32xf32>
    tpu.vector_store %arg6[%c0_168, %c0_169, %c256], %162 {strides = array<i32>} : memref<1x8x1024xf32, #tpu.memory_space<vmem>>, vector<1x8x32xf32>,
    %c0_170 = arith.constant 0 : index
    %c324 = arith.constant 324 : index
    %163 = vector.load %arg9[%c0_170, %c324] : memref<8x1148xf32, #tpu.memory_space<vmem>>, vector<8x32xf32>
    %c0_171 = arith.constant 0 : index
    %c0_172 = arith.constant 0 : index
    %c288_173 = arith.constant 288 : index
    %164 = vector.load %arg6[%c0_171, %c0_172, %c288_173] : memref<1x8x1024xf32, #tpu.memory_space<vmem>>, vector<1x8x32xf32>
    %165 = vector.shape_cast %164 : vector<1x8x32xf32> to vector<8x32xf32>
    %166 = vector.shape_cast %163 : vector<8x32xf32> to vector<1x8x32xf32>
    tpu.vector_store %arg6[%c0_171, %c0_172, %c288_173], %166 {strides = array<i32>} : memref<1x8x1024xf32, #tpu.memory_space<vmem>>, vector<1x8x32xf32>,
    %c0_174 = arith.constant 0 : index
    %c360 = arith.constant 360 : index
    %167 = vector.load %arg9[%c0_174, %c360] : memref<8x1148xf32, #tpu.memory_space<vmem>>, vector<8x32xf32>
    %c0_175 = arith.constant 0 : index
    %c0_176 = arith.constant 0 : index
    %c320 = arith.constant 320 : index
    %168 = vector.load %arg6[%c0_175, %c0_176, %c320] : memref<1x8x1024xf32, #tpu.memory_space<vmem>>, vector<1x8x32xf32>
    %169 = vector.shape_cast %168 : vector<1x8x32xf32> to vector<8x32xf32>
    %170 = vector.shape_cast %167 : vector<8x32xf32> to vector<1x8x32xf32>
    tpu.vector_store %arg6[%c0_175, %c0_176, %c320], %170 {strides = array<i32>} : memref<1x8x1024xf32, #tpu.memory_space<vmem>>, vector<1x8x32xf32>,
    %c0_177 = arith.constant 0 : index
    %c396 = arith.constant 396 : index
    %171 = vector.load %arg9[%c0_177, %c396] : memref<8x1148xf32, #tpu.memory_space<vmem>>, vector<8x32xf32>
    %c0_178 = arith.constant 0 : index
    %c0_179 = arith.constant 0 : index
    %c352 = arith.constant 352 : index
    %172 = vector.load %arg6[%c0_178, %c0_179, %c352] : memref<1x8x1024xf32, #tpu.memory_space<vmem>>, vector<1x8x32xf32>
    %173 = vector.shape_cast %172 : vector<1x8x32xf32> to vector<8x32xf32>
    %174 = vector.shape_cast %171 : vector<8x32xf32> to vector<1x8x32xf32>
    tpu.vector_store %arg6[%c0_178, %c0_179, %c352], %174 {strides = array<i32>} : memref<1x8x1024xf32, #tpu.memory_space<vmem>>, vector<1x8x32xf32>,
    %c0_180 = arith.constant 0 : index
    %c432 = arith.constant 432 : index
    %175 = vector.load %arg9[%c0_180, %c432] : memref<8x1148xf32, #tpu.memory_space<vmem>>, vector<8x32xf32>
    %c0_181 = arith.constant 0 : index
    %c0_182 = arith.constant 0 : index
    %c384 = arith.constant 384 : index
    %176 = vector.load %arg6[%c0_181, %c0_182, %c384] : memref<1x8x1024xf32, #tpu.memory_space<vmem>>, vector<1x8x32xf32>
    %177 = vector.shape_cast %176 : vector<1x8x32xf32> to vector<8x32xf32>
    %178 = vector.shape_cast %175 : vector<8x32xf32> to vector<1x8x32xf32>
    tpu.vector_store %arg6[%c0_181, %c0_182, %c384], %178 {strides = array<i32>} : memref<1x8x1024xf32, #tpu.memory_space<vmem>>, vector<1x8x32xf32>,
    %c0_183 = arith.constant 0 : index
    %c468 = arith.constant 468 : index
    %179 = vector.load %arg9[%c0_183, %c468] : memref<8x1148xf32, #tpu.memory_space<vmem>>, vector<8x32xf32>
    %c0_184 = arith.constant 0 : index
    %c0_185 = arith.constant 0 : index
    %c416 = arith.constant 416 : index
    %180 = vector.load %arg6[%c0_184, %c0_185, %c416] : memref<1x8x1024xf32, #tpu.memory_space<vmem>>, vector<1x8x32xf32>
    %181 = vector.shape_cast %180 : vector<1x8x32xf32> to vector<8x32xf32>
    %182 = vector.shape_cast %179 : vector<8x32xf32> to vector<1x8x32xf32>
    tpu.vector_store %arg6[%c0_184, %c0_185, %c416], %182 {strides = array<i32>} : memref<1x8x1024xf32, #tpu.memory_space<vmem>>, vector<1x8x32xf32>,
    %c0_186 = arith.constant 0 : index
    %c504 = arith.constant 504 : index
    %183 = vector.load %arg9[%c0_186, %c504] : memref<8x1148xf32, #tpu.memory_space<vmem>>, vector<8x32xf32>
    %c0_187 = arith.constant 0 : index
    %c0_188 = arith.constant 0 : index
    %c448 = arith.constant 448 : index
    %184 = vector.load %arg6[%c0_187, %c0_188, %c448] : memref<1x8x1024xf32, #tpu.memory_space<vmem>>, vector<1x8x32xf32>
    %185 = vector.shape_cast %184 : vector<1x8x32xf32> to vector<8x32xf32>
    %186 = vector.shape_cast %183 : vector<8x32xf32> to vector<1x8x32xf32>
    tpu.vector_store %arg6[%c0_187, %c0_188, %c448], %186 {strides = array<i32>} : memref<1x8x1024xf32, #tpu.memory_space<vmem>>, vector<1x8x32xf32>,
    %c0_189 = arith.constant 0 : index
    %c540 = arith.constant 540 : index
    %187 = vector.load %arg9[%c0_189, %c540] : memref<8x1148xf32, #tpu.memory_space<vmem>>, vector<8x32xf32>
    %c0_190 = arith.constant 0 : index
    %c0_191 = arith.constant 0 : index
    %c480 = arith.constant 480 : index
    %188 = vector.load %arg6[%c0_190, %c0_191, %c480] : memref<1x8x1024xf32, #tpu.memory_space<vmem>>, vector<1x8x32xf32>
    %189 = vector.shape_cast %188 : vector<1x8x32xf32> to vector<8x32xf32>
    %190 = vector.shape_cast %187 : vector<8x32xf32> to vector<1x8x32xf32>
    tpu.vector_store %arg6[%c0_190, %c0_191, %c480], %190 {strides = array<i32>} : memref<1x8x1024xf32, #tpu.memory_space<vmem>>, vector<1x8x32xf32>,
    %c0_192 = arith.constant 0 : index
    %c576 = arith.constant 576 : index
    %191 = vector.load %arg9[%c0_192, %c576] : memref<8x1148xf32, #tpu.memory_space<vmem>>, vector<8x32xf32>
    %c0_193 = arith.constant 0 : index
    %c0_194 = arith.constant 0 : index
    %c512_195 = arith.constant 512 : index
    %192 = vector.load %arg6[%c0_193, %c0_194, %c512_195] : memref<1x8x1024xf32, #tpu.memory_space<vmem>>, vector<1x8x32xf32>
    %193 = vector.shape_cast %192 : vector<1x8x32xf32> to vector<8x32xf32>
    %194 = vector.shape_cast %191 : vector<8x32xf32> to vector<1x8x32xf32>
    tpu.vector_store %arg6[%c0_193, %c0_194, %c512_195], %194 {strides = array<i32>} : memref<1x8x1024xf32, #tpu.memory_space<vmem>>, vector<1x8x32xf32>,
    %c0_196 = arith.constant 0 : index
    %c612 = arith.constant 612 : index
    %195 = vector.load %arg9[%c0_196, %c612] : memref<8x1148xf32, #tpu.memory_space<vmem>>, vector<8x32xf32>
    %c0_197 = arith.constant 0 : index
    %c0_198 = arith.constant 0 : index
    %c544 = arith.constant 544 : index
    %196 = vector.load %arg6[%c0_197, %c0_198, %c544] : memref<1x8x1024xf32, #tpu.memory_space<vmem>>, vector<1x8x32xf32>
    %197 = vector.shape_cast %196 : vector<1x8x32xf32> to vector<8x32xf32>
    %198 = vector.shape_cast %195 : vector<8x32xf32> to vector<1x8x32xf32>
    tpu.vector_store %arg6[%c0_197, %c0_198, %c544], %198 {strides = array<i32>} : memref<1x8x1024xf32, #tpu.memory_space<vmem>>, vector<1x8x32xf32>,
    %c0_199 = arith.constant 0 : index
    %c648 = arith.constant 648 : index
    %199 = vector.load %arg9[%c0_199, %c648] : memref<8x1148xf32, #tpu.memory_space<vmem>>, vector<8x32xf32>
    %c0_200 = arith.constant 0 : index
    %c0_201 = arith.constant 0 : index
    %c576_202 = arith.constant 576 : index
    %200 = vector.load %arg6[%c0_200, %c0_201, %c576_202] : memref<1x8x1024xf32, #tpu.memory_space<vmem>>, vector<1x8x32xf32>
    %201 = vector.shape_cast %200 : vector<1x8x32xf32> to vector<8x32xf32>
    %202 = vector.shape_cast %199 : vector<8x32xf32> to vector<1x8x32xf32>
    tpu.vector_store %arg6[%c0_200, %c0_201, %c576_202], %202 {strides = array<i32>} : memref<1x8x1024xf32, #tpu.memory_space<vmem>>, vector<1x8x32xf32>,
    %c0_203 = arith.constant 0 : index
    %c684 = arith.constant 684 : index
    %203 = vector.load %arg9[%c0_203, %c684] : memref<8x1148xf32, #tpu.memory_space<vmem>>, vector<8x32xf32>
    %c0_204 = arith.constant 0 : index
    %c0_205 = arith.constant 0 : index
    %c608 = arith.constant 608 : index
    %204 = vector.load %arg6[%c0_204, %c0_205, %c608] : memref<1x8x1024xf32, #tpu.memory_space<vmem>>, vector<1x8x32xf32>
    %205 = vector.shape_cast %204 : vector<1x8x32xf32> to vector<8x32xf32>
    %206 = vector.shape_cast %203 : vector<8x32xf32> to vector<1x8x32xf32>
    tpu.vector_store %arg6[%c0_204, %c0_205, %c608], %206 {strides = array<i32>} : memref<1x8x1024xf32, #tpu.memory_space<vmem>>, vector<1x8x32xf32>,
    %c0_206 = arith.constant 0 : index
    %c720 = arith.constant 720 : index
    %207 = vector.load %arg9[%c0_206, %c720] : memref<8x1148xf32, #tpu.memory_space<vmem>>, vector<8x32xf32>
    %c0_207 = arith.constant 0 : index
    %c0_208 = arith.constant 0 : index
    %c640 = arith.constant 640 : index
    %208 = vector.load %arg6[%c0_207, %c0_208, %c640] : memref<1x8x1024xf32, #tpu.memory_space<vmem>>, vector<1x8x32xf32>
    %209 = vector.shape_cast %208 : vector<1x8x32xf32> to vector<8x32xf32>
    %210 = vector.shape_cast %207 : vector<8x32xf32> to vector<1x8x32xf32>
    tpu.vector_store %arg6[%c0_207, %c0_208, %c640], %210 {strides = array<i32>} : memref<1x8x1024xf32, #tpu.memory_space<vmem>>, vector<1x8x32xf32>,
    %c0_209 = arith.constant 0 : index
    %c756 = arith.constant 756 : index
    %211 = vector.load %arg9[%c0_209, %c756] : memref<8x1148xf32, #tpu.memory_space<vmem>>, vector<8x32xf32>
    %c0_210 = arith.constant 0 : index
    %c0_211 = arith.constant 0 : index
    %c672 = arith.constant 672 : index
    %212 = vector.load %arg6[%c0_210, %c0_211, %c672] : memref<1x8x1024xf32, #tpu.memory_space<vmem>>, vector<1x8x32xf32>
    %213 = vector.shape_cast %212 : vector<1x8x32xf32> to vector<8x32xf32>
    %214 = vector.shape_cast %211 : vector<8x32xf32> to vector<1x8x32xf32>
    tpu.vector_store %arg6[%c0_210, %c0_211, %c672], %214 {strides = array<i32>} : memref<1x8x1024xf32, #tpu.memory_space<vmem>>, vector<1x8x32xf32>,
    %c0_212 = arith.constant 0 : index
    %c792 = arith.constant 792 : index
    %215 = vector.load %arg9[%c0_212, %c792] : memref<8x1148xf32, #tpu.memory_space<vmem>>, vector<8x32xf32>
    %c0_213 = arith.constant 0 : index
    %c0_214 = arith.constant 0 : index
    %c704 = arith.constant 704 : index
    %216 = vector.load %arg6[%c0_213, %c0_214, %c704] : memref<1x8x1024xf32, #tpu.memory_space<vmem>>, vector<1x8x32xf32>
    %217 = vector.shape_cast %216 : vector<1x8x32xf32> to vector<8x32xf32>
    %218 = vector.shape_cast %215 : vector<8x32xf32> to vector<1x8x32xf32>
    tpu.vector_store %arg6[%c0_213, %c0_214, %c704], %218 {strides = array<i32>} : memref<1x8x1024xf32, #tpu.memory_space<vmem>>, vector<1x8x32xf32>,
    %c0_215 = arith.constant 0 : index
    %c828 = arith.constant 828 : index
    %219 = vector.load %arg9[%c0_215, %c828] : memref<8x1148xf32, #tpu.memory_space<vmem>>, vector<8x32xf32>
    %c0_216 = arith.constant 0 : index
    %c0_217 = arith.constant 0 : index
    %c736 = arith.constant 736 : index
    %220 = vector.load %arg6[%c0_216, %c0_217, %c736] : memref<1x8x1024xf32, #tpu.memory_space<vmem>>, vector<1x8x32xf32>
    %221 = vector.shape_cast %220 : vector<1x8x32xf32> to vector<8x32xf32>
    %222 = vector.shape_cast %219 : vector<8x32xf32> to vector<1x8x32xf32>
    tpu.vector_store %arg6[%c0_216, %c0_217, %c736], %222 {strides = array<i32>} : memref<1x8x1024xf32, #tpu.memory_space<vmem>>, vector<1x8x32xf32>,
    %c0_218 = arith.constant 0 : index
    %c864 = arith.constant 864 : index
    %223 = vector.load %arg9[%c0_218, %c864] : memref<8x1148xf32, #tpu.memory_space<vmem>>, vector<8x32xf32>
    %c0_219 = arith.constant 0 : index
    %c0_220 = arith.constant 0 : index
    %c768 = arith.constant 768 : index
    %224 = vector.load %arg6[%c0_219, %c0_220, %c768] : memref<1x8x1024xf32, #tpu.memory_space<vmem>>, vector<1x8x32xf32>
    %225 = vector.shape_cast %224 : vector<1x8x32xf32> to vector<8x32xf32>
    %226 = vector.shape_cast %223 : vector<8x32xf32> to vector<1x8x32xf32>
    tpu.vector_store %arg6[%c0_219, %c0_220, %c768], %226 {strides = array<i32>} : memref<1x8x1024xf32, #tpu.memory_space<vmem>>, vector<1x8x32xf32>,
    %c0_221 = arith.constant 0 : index
    %c900 = arith.constant 900 : index
    %227 = vector.load %arg9[%c0_221, %c900] : memref<8x1148xf32, #tpu.memory_space<vmem>>, vector<8x32xf32>
    %c0_222 = arith.constant 0 : index
    %c0_223 = arith.constant 0 : index
    %c800 = arith.constant 800 : index
    %228 = vector.load %arg6[%c0_222, %c0_223, %c800] : memref<1x8x1024xf32, #tpu.memory_space<vmem>>, vector<1x8x32xf32>
    %229 = vector.shape_cast %228 : vector<1x8x32xf32> to vector<8x32xf32>
    %230 = vector.shape_cast %227 : vector<8x32xf32> to vector<1x8x32xf32>
    tpu.vector_store %arg6[%c0_222, %c0_223, %c800], %230 {strides = array<i32>} : memref<1x8x1024xf32, #tpu.memory_space<vmem>>, vector<1x8x32xf32>,
    %c0_224 = arith.constant 0 : index
    %c936 = arith.constant 936 : index
    %231 = vector.load %arg9[%c0_224, %c936] : memref<8x1148xf32, #tpu.memory_space<vmem>>, vector<8x32xf32>
    %c0_225 = arith.constant 0 : index
    %c0_226 = arith.constant 0 : index
    %c832 = arith.constant 832 : index
    %232 = vector.load %arg6[%c0_225, %c0_226, %c832] : memref<1x8x1024xf32, #tpu.memory_space<vmem>>, vector<1x8x32xf32>
    %233 = vector.shape_cast %232 : vector<1x8x32xf32> to vector<8x32xf32>
    %234 = vector.shape_cast %231 : vector<8x32xf32> to vector<1x8x32xf32>
    tpu.vector_store %arg6[%c0_225, %c0_226, %c832], %234 {strides = array<i32>} : memref<1x8x1024xf32, #tpu.memory_space<vmem>>, vector<1x8x32xf32>,
    %c0_227 = arith.constant 0 : index
    %c972 = arith.constant 972 : index
    %235 = vector.load %arg9[%c0_227, %c972] : memref<8x1148xf32, #tpu.memory_space<vmem>>, vector<8x32xf32>
    %c0_228 = arith.constant 0 : index
    %c0_229 = arith.constant 0 : index
    %c864_230 = arith.constant 864 : index
    %236 = vector.load %arg6[%c0_228, %c0_229, %c864_230] : memref<1x8x1024xf32, #tpu.memory_space<vmem>>, vector<1x8x32xf32>
    %237 = vector.shape_cast %236 : vector<1x8x32xf32> to vector<8x32xf32>
    %238 = vector.shape_cast %235 : vector<8x32xf32> to vector<1x8x32xf32>
    tpu.vector_store %arg6[%c0_228, %c0_229, %c864_230], %238 {strides = array<i32>} : memref<1x8x1024xf32, #tpu.memory_space<vmem>>, vector<1x8x32xf32>,
    %c0_231 = arith.constant 0 : index
    %c1008 = arith.constant 1008 : index
    %239 = vector.load %arg9[%c0_231, %c1008] : memref<8x1148xf32, #tpu.memory_space<vmem>>, vector<8x32xf32>
    %c0_232 = arith.constant 0 : index
    %c0_233 = arith.constant 0 : index
    %c896 = arith.constant 896 : index
    %240 = vector.load %arg6[%c0_232, %c0_233, %c896] : memref<1x8x1024xf32, #tpu.memory_space<vmem>>, vector<1x8x32xf32>
    %241 = vector.shape_cast %240 : vector<1x8x32xf32> to vector<8x32xf32>
    %242 = vector.shape_cast %239 : vector<8x32xf32> to vector<1x8x32xf32>
    tpu.vector_store %arg6[%c0_232, %c0_233, %c896], %242 {strides = array<i32>} : memref<1x8x1024xf32, #tpu.memory_space<vmem>>, vector<1x8x32xf32>,
    %c0_234 = arith.constant 0 : index
    %c1044 = arith.constant 1044 : index
    %243 = vector.load %arg9[%c0_234, %c1044] : memref<8x1148xf32, #tpu.memory_space<vmem>>, vector<8x32xf32>
    %c0_235 = arith.constant 0 : index
    %c0_236 = arith.constant 0 : index
    %c928 = arith.constant 928 : index
    %244 = vector.load %arg6[%c0_235, %c0_236, %c928] : memref<1x8x1024xf32, #tpu.memory_space<vmem>>, vector<1x8x32xf32>
    %245 = vector.shape_cast %244 : vector<1x8x32xf32> to vector<8x32xf32>
    %246 = vector.shape_cast %243 : vector<8x32xf32> to vector<1x8x32xf32>
    tpu.vector_store %arg6[%c0_235, %c0_236, %c928], %246 {strides = array<i32>} : memref<1x8x1024xf32, #tpu.memory_space<vmem>>, vector<1x8x32xf32>,
    %c0_237 = arith.constant 0 : index
    %c1080 = arith.constant 1080 : index
    %247 = vector.load %arg9[%c0_237, %c1080] : memref<8x1148xf32, #tpu.memory_space<vmem>>, vector<8x32xf32>
    %c0_238 = arith.constant 0 : index
    %c0_239 = arith.constant 0 : index
    %c960 = arith.constant 960 : index
    %248 = vector.load %arg6[%c0_238, %c0_239, %c960] : memref<1x8x1024xf32, #tpu.memory_space<vmem>>, vector<1x8x32xf32>
    %249 = vector.shape_cast %248 : vector<1x8x32xf32> to vector<8x32xf32>
    %250 = vector.shape_cast %247 : vector<8x32xf32> to vector<1x8x32xf32>
    tpu.vector_store %arg6[%c0_238, %c0_239, %c960], %250 {strides = array<i32>} : memref<1x8x1024xf32, #tpu.memory_space<vmem>>, vector<1x8x32xf32>,
    %c0_240 = arith.constant 0 : index
    %c1116 = arith.constant 1116 : index
    %251 = vector.load %arg9[%c0_240, %c1116] : memref<8x1148xf32, #tpu.memory_space<vmem>>, vector<8x32xf32>
    %c0_241 = arith.constant 0 : index
    %c0_242 = arith.constant 0 : index
    %c992 = arith.constant 992 : index
    %252 = vector.load %arg6[%c0_241, %c0_242, %c992] : memref<1x8x1024xf32, #tpu.memory_space<vmem>>, vector<1x8x32xf32>
    %253 = vector.shape_cast %252 : vector<1x8x32xf32> to vector<8x32xf32>
    %254 = vector.shape_cast %251 : vector<8x32xf32> to vector<1x8x32xf32>
    tpu.vector_store %arg6[%c0_241, %c0_242, %c992], %254 {strides = array<i32>} : memref<1x8x1024xf32, #tpu.memory_space<vmem>>, vector<1x8x32xf32>,
    %255 = tpu.iota {dimensions = array<i32: 0>} : vector<32x16xi32>
    %256 = tpu.iota {dimensions = array<i32: 1>} : vector<32x16xi32>
    %c2_i32 = arith.constant 2 : i32
    %257 = vector.broadcast %c2_i32 : i32 to vector<32x16xi32>
    %258 = arith.muli %257, %256 : vector<32x16xi32>
    %259 = arith.cmpi eq, %255, %258 : vector<32x16xi32>
    %260 = arith.extui %259 : vector<32x16xi1> to vector<32x16xi32>
    %261 = arith.sitofp %260 : vector<32x16xi32> to vector<32x16xf32>
    %c2_i32_243 = arith.constant 2 : i32
    %262 = vector.broadcast %c2_i32_243 : i32 to vector<32x16xi32>
    %263 = arith.muli %262, %256 : vector<32x16xi32>
    %c1_i32 = arith.constant 1 : i32
    %264 = vector.broadcast %c1_i32 : i32 to vector<32x16xi32>
    %265 = arith.addi %263, %264 : vector<32x16xi32>
    %266 = arith.cmpi eq, %255, %265 : vector<32x16xi32>
    %267 = arith.extui %266 : vector<32x16xi1> to vector<32x16xi32>
    %268 = arith.sitofp %267 : vector<32x16xi32> to vector<32x16xf32>
    %c0_244 = arith.constant 0 : index
    %c0_245 = arith.constant 0 : index
    %269 = vector.load %arg9[%c0_244, %c0_245] : memref<8x1148xf32, #tpu.memory_space<vmem>>, vector<8x32xf32>
    %c0_246 = arith.constant 0 : index
    %c36_247 = arith.constant 36 : index
    %270 = vector.load %arg9[%c0_246, %c36_247] : memref<8x1148xf32, #tpu.memory_space<vmem>>, vector<8x32xf32>
    %271 = arith.maximumf %269, %270 : vector<8x32xf32>
    %cst_248 = arith.constant dense<0.000000e+00> : vector<8x16xf32>
    %272 = tpu.matmul %271, %261, %cst_248 {dimension_numbers = #tpu.dot_dimension_numbers<[1], [0], [0], [1], [0, 0, 1, 1], [], []>} : vector<8x32xf32>, vector<32x16xf32>, vector<8x16xf32> -> vector<8x16xf32>
    %cst_249 = arith.constant dense<0.000000e+00> : vector<8x16xf32>
    %273 = tpu.matmul %271, %268, %cst_249 {dimension_numbers = #tpu.dot_dimension_numbers<[1], [0], [0], [1], [0, 0, 1, 1], [], []>} : vector<8x32xf32>, vector<32x16xf32>, vector<8x16xf32> -> vector<8x16xf32>
    %274 = arith.maximumf %272, %273 : vector<8x16xf32>
    %c0_250 = arith.constant 0 : index
    %c0_251 = arith.constant 0 : index
    %c0_252 = arith.constant 0 : index
    %275 = vector.load %arg7[%c0_250, %c0_251, %c0_252] : memref<1x8x256xf32, #tpu.memory_space<vmem>>, vector<1x8x16xf32>
    %276 = vector.shape_cast %275 : vector<1x8x16xf32> to vector<8x16xf32>
    %277 = vector.shape_cast %274 : vector<8x16xf32> to vector<1x8x16xf32>
    tpu.vector_store %arg7[%c0_250, %c0_251, %c0_252], %277 {strides = array<i32>} : memref<1x8x256xf32, #tpu.memory_space<vmem>>, vector<1x8x16xf32>,
    %c0_253 = arith.constant 0 : index
    %c72_254 = arith.constant 72 : index
    %278 = vector.load %arg9[%c0_253, %c72_254] : memref<8x1148xf32, #tpu.memory_space<vmem>>, vector<8x32xf32>
    %c0_255 = arith.constant 0 : index
    %c108_256 = arith.constant 108 : index
    %279 = vector.load %arg9[%c0_255, %c108_256] : memref<8x1148xf32, #tpu.memory_space<vmem>>, vector<8x32xf32>
    %280 = arith.maximumf %278, %279 : vector<8x32xf32>
    %cst_257 = arith.constant dense<0.000000e+00> : vector<8x16xf32>
    %281 = tpu.matmul %280, %261, %cst_257 {dimension_numbers = #tpu.dot_dimension_numbers<[1], [0], [0], [1], [0, 0, 1, 1], [], []>} : vector<8x32xf32>, vector<32x16xf32>, vector<8x16xf32> -> vector<8x16xf32>
    %cst_258 = arith.constant dense<0.000000e+00> : vector<8x16xf32>
    %282 = tpu.matmul %280, %268, %cst_258 {dimension_numbers = #tpu.dot_dimension_numbers<[1], [0], [0], [1], [0, 0, 1, 1], [], []>} : vector<8x32xf32>, vector<32x16xf32>, vector<8x16xf32> -> vector<8x16xf32>
    %283 = arith.maximumf %281, %282 : vector<8x16xf32>
    %c0_259 = arith.constant 0 : index
    %c0_260 = arith.constant 0 : index
    %c16 = arith.constant 16 : index
    %284 = vector.load %arg7[%c0_259, %c0_260, %c16] : memref<1x8x256xf32, #tpu.memory_space<vmem>>, vector<1x8x16xf32>
    %285 = vector.shape_cast %284 : vector<1x8x16xf32> to vector<8x16xf32>
    %286 = vector.shape_cast %283 : vector<8x16xf32> to vector<1x8x16xf32>
    tpu.vector_store %arg7[%c0_259, %c0_260, %c16], %286 {strides = array<i32>} : memref<1x8x256xf32, #tpu.memory_space<vmem>>, vector<1x8x16xf32>,
    %c0_261 = arith.constant 0 : index
    %c144_262 = arith.constant 144 : index
    %287 = vector.load %arg9[%c0_261, %c144_262] : memref<8x1148xf32, #tpu.memory_space<vmem>>, vector<8x32xf32>
    %c0_263 = arith.constant 0 : index
    %c180_264 = arith.constant 180 : index
    %288 = vector.load %arg9[%c0_263, %c180_264] : memref<8x1148xf32, #tpu.memory_space<vmem>>, vector<8x32xf32>
    %289 = arith.maximumf %287, %288 : vector<8x32xf32>
    %cst_265 = arith.constant dense<0.000000e+00> : vector<8x16xf32>
    %290 = tpu.matmul %289, %261, %cst_265 {dimension_numbers = #tpu.dot_dimension_numbers<[1], [0], [0], [1], [0, 0, 1, 1], [], []>} : vector<8x32xf32>, vector<32x16xf32>, vector<8x16xf32> -> vector<8x16xf32>
    %cst_266 = arith.constant dense<0.000000e+00> : vector<8x16xf32>
    %291 = tpu.matmul %289, %268, %cst_266 {dimension_numbers = #tpu.dot_dimension_numbers<[1], [0], [0], [1], [0, 0, 1, 1], [], []>} : vector<8x32xf32>, vector<32x16xf32>, vector<8x16xf32> -> vector<8x16xf32>
    %292 = arith.maximumf %290, %291 : vector<8x16xf32>
    %c0_267 = arith.constant 0 : index
    %c0_268 = arith.constant 0 : index
    %c32_269 = arith.constant 32 : index
    %293 = vector.load %arg7[%c0_267, %c0_268, %c32_269] : memref<1x8x256xf32, #tpu.memory_space<vmem>>, vector<1x8x16xf32>
    %294 = vector.shape_cast %293 : vector<1x8x16xf32> to vector<8x16xf32>
    %295 = vector.shape_cast %292 : vector<8x16xf32> to vector<1x8x16xf32>
    tpu.vector_store %arg7[%c0_267, %c0_268, %c32_269], %295 {strides = array<i32>} : memref<1x8x256xf32, #tpu.memory_space<vmem>>, vector<1x8x16xf32>,
    %c0_270 = arith.constant 0 : index
    %c216_271 = arith.constant 216 : index
    %296 = vector.load %arg9[%c0_270, %c216_271] : memref<8x1148xf32, #tpu.memory_space<vmem>>, vector<8x32xf32>
    %c0_272 = arith.constant 0 : index
    %c252_273 = arith.constant 252 : index
    %297 = vector.load %arg9[%c0_272, %c252_273] : memref<8x1148xf32, #tpu.memory_space<vmem>>, vector<8x32xf32>
    %298 = arith.maximumf %296, %297 : vector<8x32xf32>
    %cst_274 = arith.constant dense<0.000000e+00> : vector<8x16xf32>
    %299 = tpu.matmul %298, %261, %cst_274 {dimension_numbers = #tpu.dot_dimension_numbers<[1], [0], [0], [1], [0, 0, 1, 1], [], []>} : vector<8x32xf32>, vector<32x16xf32>, vector<8x16xf32> -> vector<8x16xf32>
    %cst_275 = arith.constant dense<0.000000e+00> : vector<8x16xf32>
    %300 = tpu.matmul %298, %268, %cst_275 {dimension_numbers = #tpu.dot_dimension_numbers<[1], [0], [0], [1], [0, 0, 1, 1], [], []>} : vector<8x32xf32>, vector<32x16xf32>, vector<8x16xf32> -> vector<8x16xf32>
    %301 = arith.maximumf %299, %300 : vector<8x16xf32>
    %c0_276 = arith.constant 0 : index
    %c0_277 = arith.constant 0 : index
    %c48 = arith.constant 48 : index
    %302 = vector.load %arg7[%c0_276, %c0_277, %c48] : memref<1x8x256xf32, #tpu.memory_space<vmem>>, vector<1x8x16xf32>
    %303 = vector.shape_cast %302 : vector<1x8x16xf32> to vector<8x16xf32>
    %304 = vector.shape_cast %301 : vector<8x16xf32> to vector<1x8x16xf32>
    tpu.vector_store %arg7[%c0_276, %c0_277, %c48], %304 {strides = array<i32>} : memref<1x8x256xf32, #tpu.memory_space<vmem>>, vector<1x8x16xf32>,
    %c0_278 = arith.constant 0 : index
    %c288_279 = arith.constant 288 : index
    %305 = vector.load %arg9[%c0_278, %c288_279] : memref<8x1148xf32, #tpu.memory_space<vmem>>, vector<8x32xf32>
    %c0_280 = arith.constant 0 : index
    %c324_281 = arith.constant 324 : index
    %306 = vector.load %arg9[%c0_280, %c324_281] : memref<8x1148xf32, #tpu.memory_space<vmem>>, vector<8x32xf32>
    %307 = arith.maximumf %305, %306 : vector<8x32xf32>
    %cst_282 = arith.constant dense<0.000000e+00> : vector<8x16xf32>
    %308 = tpu.matmul %307, %261, %cst_282 {dimension_numbers = #tpu.dot_dimension_numbers<[1], [0], [0], [1], [0, 0, 1, 1], [], []>} : vector<8x32xf32>, vector<32x16xf32>, vector<8x16xf32> -> vector<8x16xf32>
    %cst_283 = arith.constant dense<0.000000e+00> : vector<8x16xf32>
    %309 = tpu.matmul %307, %268, %cst_283 {dimension_numbers = #tpu.dot_dimension_numbers<[1], [0], [0], [1], [0, 0, 1, 1], [], []>} : vector<8x32xf32>, vector<32x16xf32>, vector<8x16xf32> -> vector<8x16xf32>
    %310 = arith.maximumf %308, %309 : vector<8x16xf32>
    %c0_284 = arith.constant 0 : index
    %c0_285 = arith.constant 0 : index
    %c64_286 = arith.constant 64 : index
    %311 = vector.load %arg7[%c0_284, %c0_285, %c64_286] : memref<1x8x256xf32, #tpu.memory_space<vmem>>, vector<1x8x16xf32>
    %312 = vector.shape_cast %311 : vector<1x8x16xf32> to vector<8x16xf32>
    %313 = vector.shape_cast %310 : vector<8x16xf32> to vector<1x8x16xf32>
    tpu.vector_store %arg7[%c0_284, %c0_285, %c64_286], %313 {strides = array<i32>} : memref<1x8x256xf32, #tpu.memory_space<vmem>>, vector<1x8x16xf32>,
    %c0_287 = arith.constant 0 : index
    %c360_288 = arith.constant 360 : index
    %314 = vector.load %arg9[%c0_287, %c360_288] : memref<8x1148xf32, #tpu.memory_space<vmem>>, vector<8x32xf32>
    %c0_289 = arith.constant 0 : index
    %c396_290 = arith.constant 396 : index
    %315 = vector.load %arg9[%c0_289, %c396_290] : memref<8x1148xf32, #tpu.memory_space<vmem>>, vector<8x32xf32>
    %316 = arith.maximumf %314, %315 : vector<8x32xf32>
    %cst_291 = arith.constant dense<0.000000e+00> : vector<8x16xf32>
    %317 = tpu.matmul %316, %261, %cst_291 {dimension_numbers = #tpu.dot_dimension_numbers<[1], [0], [0], [1], [0, 0, 1, 1], [], []>} : vector<8x32xf32>, vector<32x16xf32>, vector<8x16xf32> -> vector<8x16xf32>
    %cst_292 = arith.constant dense<0.000000e+00> : vector<8x16xf32>
    %318 = tpu.matmul %316, %268, %cst_292 {dimension_numbers = #tpu.dot_dimension_numbers<[1], [0], [0], [1], [0, 0, 1, 1], [], []>} : vector<8x32xf32>, vector<32x16xf32>, vector<8x16xf32> -> vector<8x16xf32>
    %319 = arith.maximumf %317, %318 : vector<8x16xf32>
    %c0_293 = arith.constant 0 : index
    %c0_294 = arith.constant 0 : index
    %c80 = arith.constant 80 : index
    %320 = vector.load %arg7[%c0_293, %c0_294, %c80] : memref<1x8x256xf32, #tpu.memory_space<vmem>>, vector<1x8x16xf32>
    %321 = vector.shape_cast %320 : vector<1x8x16xf32> to vector<8x16xf32>
    %322 = vector.shape_cast %319 : vector<8x16xf32> to vector<1x8x16xf32>
    tpu.vector_store %arg7[%c0_293, %c0_294, %c80], %322 {strides = array<i32>} : memref<1x8x256xf32, #tpu.memory_space<vmem>>, vector<1x8x16xf32>,
    %c0_295 = arith.constant 0 : index
    %c432_296 = arith.constant 432 : index
    %323 = vector.load %arg9[%c0_295, %c432_296] : memref<8x1148xf32, #tpu.memory_space<vmem>>, vector<8x32xf32>
    %c0_297 = arith.constant 0 : index
    %c468_298 = arith.constant 468 : index
    %324 = vector.load %arg9[%c0_297, %c468_298] : memref<8x1148xf32, #tpu.memory_space<vmem>>, vector<8x32xf32>
    %325 = arith.maximumf %323, %324 : vector<8x32xf32>
    %cst_299 = arith.constant dense<0.000000e+00> : vector<8x16xf32>
    %326 = tpu.matmul %325, %261, %cst_299 {dimension_numbers = #tpu.dot_dimension_numbers<[1], [0], [0], [1], [0, 0, 1, 1], [], []>} : vector<8x32xf32>, vector<32x16xf32>, vector<8x16xf32> -> vector<8x16xf32>
    %cst_300 = arith.constant dense<0.000000e+00> : vector<8x16xf32>
    %327 = tpu.matmul %325, %268, %cst_300 {dimension_numbers = #tpu.dot_dimension_numbers<[1], [0], [0], [1], [0, 0, 1, 1], [], []>} : vector<8x32xf32>, vector<32x16xf32>, vector<8x16xf32> -> vector<8x16xf32>
    %328 = arith.maximumf %326, %327 : vector<8x16xf32>
    %c0_301 = arith.constant 0 : index
    %c0_302 = arith.constant 0 : index
    %c96_303 = arith.constant 96 : index
    %329 = vector.load %arg7[%c0_301, %c0_302, %c96_303] : memref<1x8x256xf32, #tpu.memory_space<vmem>>, vector<1x8x16xf32>
    %330 = vector.shape_cast %329 : vector<1x8x16xf32> to vector<8x16xf32>
    %331 = vector.shape_cast %328 : vector<8x16xf32> to vector<1x8x16xf32>
    tpu.vector_store %arg7[%c0_301, %c0_302, %c96_303], %331 {strides = array<i32>} : memref<1x8x256xf32, #tpu.memory_space<vmem>>, vector<1x8x16xf32>,
    %c0_304 = arith.constant 0 : index
    %c504_305 = arith.constant 504 : index
    %332 = vector.load %arg9[%c0_304, %c504_305] : memref<8x1148xf32, #tpu.memory_space<vmem>>, vector<8x32xf32>
    %c0_306 = arith.constant 0 : index
    %c540_307 = arith.constant 540 : index
    %333 = vector.load %arg9[%c0_306, %c540_307] : memref<8x1148xf32, #tpu.memory_space<vmem>>, vector<8x32xf32>
    %334 = arith.maximumf %332, %333 : vector<8x32xf32>
    %cst_308 = arith.constant dense<0.000000e+00> : vector<8x16xf32>
    %335 = tpu.matmul %334, %261, %cst_308 {dimension_numbers = #tpu.dot_dimension_numbers<[1], [0], [0], [1], [0, 0, 1, 1], [], []>} : vector<8x32xf32>, vector<32x16xf32>, vector<8x16xf32> -> vector<8x16xf32>
    %cst_309 = arith.constant dense<0.000000e+00> : vector<8x16xf32>
    %336 = tpu.matmul %334, %268, %cst_309 {dimension_numbers = #tpu.dot_dimension_numbers<[1], [0], [0], [1], [0, 0, 1, 1], [], []>} : vector<8x32xf32>, vector<32x16xf32>, vector<8x16xf32> -> vector<8x16xf32>
    %337 = arith.maximumf %335, %336 : vector<8x16xf32>
    %c0_310 = arith.constant 0 : index
    %c0_311 = arith.constant 0 : index
    %c112 = arith.constant 112 : index
    %338 = vector.load %arg7[%c0_310, %c0_311, %c112] : memref<1x8x256xf32, #tpu.memory_space<vmem>>, vector<1x8x16xf32>
    %339 = vector.shape_cast %338 : vector<1x8x16xf32> to vector<8x16xf32>
    %340 = vector.shape_cast %337 : vector<8x16xf32> to vector<1x8x16xf32>
    tpu.vector_store %arg7[%c0_310, %c0_311, %c112], %340 {strides = array<i32>} : memref<1x8x256xf32, #tpu.memory_space<vmem>>, vector<1x8x16xf32>,
    %c0_312 = arith.constant 0 : index
    %c576_313 = arith.constant 576 : index
    %341 = vector.load %arg9[%c0_312, %c576_313] : memref<8x1148xf32, #tpu.memory_space<vmem>>, vector<8x32xf32>
    %c0_314 = arith.constant 0 : index
    %c612_315 = arith.constant 612 : index
    %342 = vector.load %arg9[%c0_314, %c612_315] : memref<8x1148xf32, #tpu.memory_space<vmem>>, vector<8x32xf32>
    %343 = arith.maximumf %341, %342 : vector<8x32xf32>
    %cst_316 = arith.constant dense<0.000000e+00> : vector<8x16xf32>
    %344 = tpu.matmul %343, %261, %cst_316 {dimension_numbers = #tpu.dot_dimension_numbers<[1], [0], [0], [1], [0, 0, 1, 1], [], []>} : vector<8x32xf32>, vector<32x16xf32>, vector<8x16xf32> -> vector<8x16xf32>
    %cst_317 = arith.constant dense<0.000000e+00> : vector<8x16xf32>
    %345 = tpu.matmul %343, %268, %cst_317 {dimension_numbers = #tpu.dot_dimension_numbers<[1], [0], [0], [1], [0, 0, 1, 1], [], []>} : vector<8x32xf32>, vector<32x16xf32>, vector<8x16xf32> -> vector<8x16xf32>
    %346 = arith.maximumf %344, %345 : vector<8x16xf32>
    %c0_318 = arith.constant 0 : index
    %c0_319 = arith.constant 0 : index
    %c128_320 = arith.constant 128 : index
    %347 = vector.load %arg7[%c0_318, %c0_319, %c128_320] : memref<1x8x256xf32, #tpu.memory_space<vmem>>, vector<1x8x16xf32>
    %348 = vector.shape_cast %347 : vector<1x8x16xf32> to vector<8x16xf32>
    %349 = vector.shape_cast %346 : vector<8x16xf32> to vector<1x8x16xf32>
    tpu.vector_store %arg7[%c0_318, %c0_319, %c128_320], %349 {strides = array<i32>} : memref<1x8x256xf32, #tpu.memory_space<vmem>>, vector<1x8x16xf32>,
    %c0_321 = arith.constant 0 : index
    %c648_322 = arith.constant 648 : index
    %350 = vector.load %arg9[%c0_321, %c648_322] : memref<8x1148xf32, #tpu.memory_space<vmem>>, vector<8x32xf32>
    %c0_323 = arith.constant 0 : index
    %c684_324 = arith.constant 684 : index
    %351 = vector.load %arg9[%c0_323, %c684_324] : memref<8x1148xf32, #tpu.memory_space<vmem>>, vector<8x32xf32>
    %352 = arith.maximumf %350, %351 : vector<8x32xf32>
    %cst_325 = arith.constant dense<0.000000e+00> : vector<8x16xf32>
    %353 = tpu.matmul %352, %261, %cst_325 {dimension_numbers = #tpu.dot_dimension_numbers<[1], [0], [0], [1], [0, 0, 1, 1], [], []>} : vector<8x32xf32>, vector<32x16xf32>, vector<8x16xf32> -> vector<8x16xf32>
    %cst_326 = arith.constant dense<0.000000e+00> : vector<8x16xf32>
    %354 = tpu.matmul %352, %268, %cst_326 {dimension_numbers = #tpu.dot_dimension_numbers<[1], [0], [0], [1], [0, 0, 1, 1], [], []>} : vector<8x32xf32>, vector<32x16xf32>, vector<8x16xf32> -> vector<8x16xf32>
    %355 = arith.maximumf %353, %354 : vector<8x16xf32>
    %c0_327 = arith.constant 0 : index
    %c0_328 = arith.constant 0 : index
    %c144_329 = arith.constant 144 : index
    %356 = vector.load %arg7[%c0_327, %c0_328, %c144_329] : memref<1x8x256xf32, #tpu.memory_space<vmem>>, vector<1x8x16xf32>
    %357 = vector.shape_cast %356 : vector<1x8x16xf32> to vector<8x16xf32>
    %358 = vector.shape_cast %355 : vector<8x16xf32> to vector<1x8x16xf32>
    tpu.vector_store %arg7[%c0_327, %c0_328, %c144_329], %358 {strides = array<i32>} : memref<1x8x256xf32, #tpu.memory_space<vmem>>, vector<1x8x16xf32>,
    %c0_330 = arith.constant 0 : index
    %c720_331 = arith.constant 720 : index
    %359 = vector.load %arg9[%c0_330, %c720_331] : memref<8x1148xf32, #tpu.memory_space<vmem>>, vector<8x32xf32>
    %c0_332 = arith.constant 0 : index
    %c756_333 = arith.constant 756 : index
    %360 = vector.load %arg9[%c0_332, %c756_333] : memref<8x1148xf32, #tpu.memory_space<vmem>>, vector<8x32xf32>
    %361 = arith.maximumf %359, %360 : vector<8x32xf32>
    %cst_334 = arith.constant dense<0.000000e+00> : vector<8x16xf32>
    %362 = tpu.matmul %361, %261, %cst_334 {dimension_numbers = #tpu.dot_dimension_numbers<[1], [0], [0], [1], [0, 0, 1, 1], [], []>} : vector<8x32xf32>, vector<32x16xf32>, vector<8x16xf32> -> vector<8x16xf32>
    %cst_335 = arith.constant dense<0.000000e+00> : vector<8x16xf32>
    %363 = tpu.matmul %361, %268, %cst_335 {dimension_numbers = #tpu.dot_dimension_numbers<[1], [0], [0], [1], [0, 0, 1, 1], [], []>} : vector<8x32xf32>, vector<32x16xf32>, vector<8x16xf32> -> vector<8x16xf32>
    %364 = arith.maximumf %362, %363 : vector<8x16xf32>
    %c0_336 = arith.constant 0 : index
    %c0_337 = arith.constant 0 : index
    %c160_338 = arith.constant 160 : index
    %365 = vector.load %arg7[%c0_336, %c0_337, %c160_338] : memref<1x8x256xf32, #tpu.memory_space<vmem>>, vector<1x8x16xf32>
    %366 = vector.shape_cast %365 : vector<1x8x16xf32> to vector<8x16xf32>
    %367 = vector.shape_cast %364 : vector<8x16xf32> to vector<1x8x16xf32>
    tpu.vector_store %arg7[%c0_336, %c0_337, %c160_338], %367 {strides = array<i32>} : memref<1x8x256xf32, #tpu.memory_space<vmem>>, vector<1x8x16xf32>,
    %c0_339 = arith.constant 0 : index
    %c792_340 = arith.constant 792 : index
    %368 = vector.load %arg9[%c0_339, %c792_340] : memref<8x1148xf32, #tpu.memory_space<vmem>>, vector<8x32xf32>
    %c0_341 = arith.constant 0 : index
    %c828_342 = arith.constant 828 : index
    %369 = vector.load %arg9[%c0_341, %c828_342] : memref<8x1148xf32, #tpu.memory_space<vmem>>, vector<8x32xf32>
    %370 = arith.maximumf %368, %369 : vector<8x32xf32>
    %cst_343 = arith.constant dense<0.000000e+00> : vector<8x16xf32>
    %371 = tpu.matmul %370, %261, %cst_343 {dimension_numbers = #tpu.dot_dimension_numbers<[1], [0], [0], [1], [0, 0, 1, 1], [], []>} : vector<8x32xf32>, vector<32x16xf32>, vector<8x16xf32> -> vector<8x16xf32>
    %cst_344 = arith.constant dense<0.000000e+00> : vector<8x16xf32>
    %372 = tpu.matmul %370, %268, %cst_344 {dimension_numbers = #tpu.dot_dimension_numbers<[1], [0], [0], [1], [0, 0, 1, 1], [], []>} : vector<8x32xf32>, vector<32x16xf32>, vector<8x16xf32> -> vector<8x16xf32>
    %373 = arith.maximumf %371, %372 : vector<8x16xf32>
    %c0_345 = arith.constant 0 : index
    %c0_346 = arith.constant 0 : index
    %c176 = arith.constant 176 : index
    %374 = vector.load %arg7[%c0_345, %c0_346, %c176] : memref<1x8x256xf32, #tpu.memory_space<vmem>>, vector<1x8x16xf32>
    %375 = vector.shape_cast %374 : vector<1x8x16xf32> to vector<8x16xf32>
    %376 = vector.shape_cast %373 : vector<8x16xf32> to vector<1x8x16xf32>
    tpu.vector_store %arg7[%c0_345, %c0_346, %c176], %376 {strides = array<i32>} : memref<1x8x256xf32, #tpu.memory_space<vmem>>, vector<1x8x16xf32>,
    %c0_347 = arith.constant 0 : index
    %c864_348 = arith.constant 864 : index
    %377 = vector.load %arg9[%c0_347, %c864_348] : memref<8x1148xf32, #tpu.memory_space<vmem>>, vector<8x32xf32>
    %c0_349 = arith.constant 0 : index
    %c900_350 = arith.constant 900 : index
    %378 = vector.load %arg9[%c0_349, %c900_350] : memref<8x1148xf32, #tpu.memory_space<vmem>>, vector<8x32xf32>
    %379 = arith.maximumf %377, %378 : vector<8x32xf32>
    %cst_351 = arith.constant dense<0.000000e+00> : vector<8x16xf32>
    %380 = tpu.matmul %379, %261, %cst_351 {dimension_numbers = #tpu.dot_dimension_numbers<[1], [0], [0], [1], [0, 0, 1, 1], [], []>} : vector<8x32xf32>, vector<32x16xf32>, vector<8x16xf32> -> vector<8x16xf32>
    %cst_352 = arith.constant dense<0.000000e+00> : vector<8x16xf32>
    %381 = tpu.matmul %379, %268, %cst_352 {dimension_numbers = #tpu.dot_dimension_numbers<[1], [0], [0], [1], [0, 0, 1, 1], [], []>} : vector<8x32xf32>, vector<32x16xf32>, vector<8x16xf32> -> vector<8x16xf32>
    %382 = arith.maximumf %380, %381 : vector<8x16xf32>
    %c0_353 = arith.constant 0 : index
    %c0_354 = arith.constant 0 : index
    %c192_355 = arith.constant 192 : index
    %383 = vector.load %arg7[%c0_353, %c0_354, %c192_355] : memref<1x8x256xf32, #tpu.memory_space<vmem>>, vector<1x8x16xf32>
    %384 = vector.shape_cast %383 : vector<1x8x16xf32> to vector<8x16xf32>
    %385 = vector.shape_cast %382 : vector<8x16xf32> to vector<1x8x16xf32>
    tpu.vector_store %arg7[%c0_353, %c0_354, %c192_355], %385 {strides = array<i32>} : memref<1x8x256xf32, #tpu.memory_space<vmem>>, vector<1x8x16xf32>,
    %c0_356 = arith.constant 0 : index
    %c936_357 = arith.constant 936 : index
    %386 = vector.load %arg9[%c0_356, %c936_357] : memref<8x1148xf32, #tpu.memory_space<vmem>>, vector<8x32xf32>
    %c0_358 = arith.constant 0 : index
    %c972_359 = arith.constant 972 : index
    %387 = vector.load %arg9[%c0_358, %c972_359] : memref<8x1148xf32, #tpu.memory_space<vmem>>, vector<8x32xf32>
    %388 = arith.maximumf %386, %387 : vector<8x32xf32>
    %cst_360 = arith.constant dense<0.000000e+00> : vector<8x16xf32>
    %389 = tpu.matmul %388, %261, %cst_360 {dimension_numbers = #tpu.dot_dimension_numbers<[1], [0], [0], [1], [0, 0, 1, 1], [], []>} : vector<8x32xf32>, vector<32x16xf32>, vector<8x16xf32> -> vector<8x16xf32>
    %cst_361 = arith.constant dense<0.000000e+00> : vector<8x16xf32>
    %390 = tpu.matmul %388, %268, %cst_361 {dimension_numbers = #tpu.dot_dimension_numbers<[1], [0], [0], [1], [0, 0, 1, 1], [], []>} : vector<8x32xf32>, vector<32x16xf32>, vector<8x16xf32> -> vector<8x16xf32>
    %391 = arith.maximumf %389, %390 : vector<8x16xf32>
    %c0_362 = arith.constant 0 : index
    %c0_363 = arith.constant 0 : index
    %c208 = arith.constant 208 : index
    %392 = vector.load %arg7[%c0_362, %c0_363, %c208] : memref<1x8x256xf32, #tpu.memory_space<vmem>>, vector<1x8x16xf32>
    %393 = vector.shape_cast %392 : vector<1x8x16xf32> to vector<8x16xf32>
    %394 = vector.shape_cast %391 : vector<8x16xf32> to vector<1x8x16xf32>
    tpu.vector_store %arg7[%c0_362, %c0_363, %c208], %394 {strides = array<i32>} : memref<1x8x256xf32, #tpu.memory_space<vmem>>, vector<1x8x16xf32>,
    %c0_364 = arith.constant 0 : index
    %c1008_365 = arith.constant 1008 : index
    %395 = vector.load %arg9[%c0_364, %c1008_365] : memref<8x1148xf32, #tpu.memory_space<vmem>>, vector<8x32xf32>
    %c0_366 = arith.constant 0 : index
    %c1044_367 = arith.constant 1044 : index
    %396 = vector.load %arg9[%c0_366, %c1044_367] : memref<8x1148xf32, #tpu.memory_space<vmem>>, vector<8x32xf32>
    %397 = arith.maximumf %395, %396 : vector<8x32xf32>
    %cst_368 = arith.constant dense<0.000000e+00> : vector<8x16xf32>
    %398 = tpu.matmul %397, %261, %cst_368 {dimension_numbers = #tpu.dot_dimension_numbers<[1], [0], [0], [1], [0, 0, 1, 1], [], []>} : vector<8x32xf32>, vector<32x16xf32>, vector<8x16xf32> -> vector<8x16xf32>
    %cst_369 = arith.constant dense<0.000000e+00> : vector<8x16xf32>
    %399 = tpu.matmul %397, %268, %cst_369 {dimension_numbers = #tpu.dot_dimension_numbers<[1], [0], [0], [1], [0, 0, 1, 1], [], []>} : vector<8x32xf32>, vector<32x16xf32>, vector<8x16xf32> -> vector<8x16xf32>
    %400 = arith.maximumf %398, %399 : vector<8x16xf32>
    %c0_370 = arith.constant 0 : index
    %c0_371 = arith.constant 0 : index
    %c224_372 = arith.constant 224 : index
    %401 = vector.load %arg7[%c0_370, %c0_371, %c224_372] : memref<1x8x256xf32, #tpu.memory_space<vmem>>, vector<1x8x16xf32>
    %402 = vector.shape_cast %401 : vector<1x8x16xf32> to vector<8x16xf32>
    %403 = vector.shape_cast %400 : vector<8x16xf32> to vector<1x8x16xf32>
    tpu.vector_store %arg7[%c0_370, %c0_371, %c224_372], %403 {strides = array<i32>} : memref<1x8x256xf32, #tpu.memory_space<vmem>>, vector<1x8x16xf32>,
    %c0_373 = arith.constant 0 : index
    %c1080_374 = arith.constant 1080 : index
    %404 = vector.load %arg9[%c0_373, %c1080_374] : memref<8x1148xf32, #tpu.memory_space<vmem>>, vector<8x32xf32>
    %c0_375 = arith.constant 0 : index
    %c1116_376 = arith.constant 1116 : index
    %405 = vector.load %arg9[%c0_375, %c1116_376] : memref<8x1148xf32, #tpu.memory_space<vmem>>, vector<8x32xf32>
    %406 = arith.maximumf %404, %405 : vector<8x32xf32>
    %cst_377 = arith.constant dense<0.000000e+00> : vector<8x16xf32>
    %407 = tpu.matmul %406, %261, %cst_377 {dimension_numbers = #tpu.dot_dimension_numbers<[1], [0], [0], [1], [0, 0, 1, 1], [], []>} : vector<8x32xf32>, vector<32x16xf32>, vector<8x16xf32> -> vector<8x16xf32>
    %cst_378 = arith.constant dense<0.000000e+00> : vector<8x16xf32>
    %408 = tpu.matmul %406, %268, %cst_378 {dimension_numbers = #tpu.dot_dimension_numbers<[1], [0], [0], [1], [0, 0, 1, 1], [], []>} : vector<8x32xf32>, vector<32x16xf32>, vector<8x16xf32> -> vector<8x16xf32>
    %409 = arith.maximumf %407, %408 : vector<8x16xf32>
    %c0_379 = arith.constant 0 : index
    %c0_380 = arith.constant 0 : index
    %c240 = arith.constant 240 : index
    %410 = vector.load %arg7[%c0_379, %c0_380, %c240] : memref<1x8x256xf32, #tpu.memory_space<vmem>>, vector<1x8x16xf32>
    %411 = vector.shape_cast %410 : vector<1x8x16xf32> to vector<8x16xf32>
    %412 = vector.shape_cast %409 : vector<8x16xf32> to vector<1x8x16xf32>
    tpu.vector_store %arg7[%c0_379, %c0_380, %c240], %412 {strides = array<i32>} : memref<1x8x256xf32, #tpu.memory_space<vmem>>, vector<1x8x16xf32>,
    return
  }
  func.func @transform_0(%arg0: i32) -> (i32, i32, i32) {
    %c0_i32 = arith.constant 0 : i32
    %c0_i32_0 = arith.constant 0 : i32
    %c0_i32_1 = arith.constant 0 : i32
    return %arg0, %c0_i32, %c0_i32_0 : i32, i32, i32
  }
  func.func @transform_1(%arg0: i32) -> (i32, i32) {
    %c0_i32 = arith.constant 0 : i32
    %c0_i32_0 = arith.constant 0 : i32
    %c0_i32_1 = arith.constant 0 : i32
    return %c0_i32, %c0_i32_0 : i32, i32
  }
  func.func @transform_2(%arg0: i32) -> (i32, i32) {
    %c0_i32 = arith.constant 0 : i32
    %c0_i32_0 = arith.constant 0 : i32
    %c0_i32_1 = arith.constant 0 : i32
    return %c0_i32, %c0_i32_0 : i32, i32
  }
  func.func @transform_3(%arg0: i32) -> (i32, i32) {
    %c0_i32 = arith.constant 0 : i32
    %c0_i32_0 = arith.constant 0 : i32
    %c0_i32_1 = arith.constant 0 : i32
    return %c0_i32, %c0_i32_0 : i32, i32
  }
  func.func @transform_4(%arg0: i32) -> (i32, i32) {
    %c0_i32 = arith.constant 0 : i32
    %c0_i32_0 = arith.constant 0 : i32
    %c0_i32_1 = arith.constant 0 : i32
    return %c0_i32, %c0_i32_0 : i32, i32
  }
  func.func @transform_5(%arg0: i32) -> (i32, i32, i32) {
    %c0_i32 = arith.constant 0 : i32
    %c0_i32_0 = arith.constant 0 : i32
    %c0_i32_1 = arith.constant 0 : i32
    return %arg0, %c0_i32, %c0_i32_0 : i32, i32, i32
  }
  func.func @transform_6(%arg0: i32) -> (i32, i32, i32) {
    %c0_i32 = arith.constant 0 : i32
    %c0_i32_0 = arith.constant 0 : i32
    %c0_i32_1 = arith.constant 0 : i32
    return %arg0, %c0_i32, %c0_i32_0 : i32, i32, i32
  }
}

</mosaic_0001>

<bundles_post_ra>
// kernel: encoder_forward.5
= control target key start
LH: loop header
LB: loop body
LE: loop exit
PB: predicated region body
PF: predicated region fallthrough
CT: control target
= control target key end

     0   :  { %12 = vsyncpa [#allocation5], 0  ;;  %s1917_s0 = inlined_call_operand.vmem [shape: f32[2,16,36], index: 0, kind: input, shape index: {}]   ;;  %s1918_s1 = inlined_call_operand.vmem [shape: f32[32,144], index: 1, kind: input, shape index: {}]   ;;  %s1919_s2 = inlined_call_operand.vmem [shape: f32[32,1], index: 2, kind: input, shape index: {}]   ;;  %s1920_s3 = inlined_call_operand.vmem [shape: f32[32,288], index: 3, kind: input, shape index: {}]   ;;  %s1921_s4 = inlined_call_operand.vmem [shape: f32[32,1], index: 4, kind: input, shape index: {}]   ;;  %s1922_s5 = inlined_call_operand.vmem [shape: f32[2,32,4], index: 5, kind: output, shape index: {0}]   ;;  %s1923_s6 = inlined_call_operand.hbm [shape: f32[2,32,1], index: 6, kind: output, shape index: {1}]  }
   0x1   :  { %14 = vsyncpa [#allocation5 + $0x1], 0  ;;  %s1648_s21 = smov 0   ;;  %s1650_s22 = smov 0  }
   0x2   :  { %s1652_s23 = smov 0   ;;  %s1654_s24 = smov 0  }
   0x3 LB: > { %s1669_s25 = sadd.s32 4294967295, %s1596_s24   ;;  %s1163_s26 = sadd.s32 4294967294, %s1596_s24   ;;  %s1596_s24 = sphi %s1654_s24, %s1935_s24   ;;  %s1592_s23 = sphi %s1652_s23, %s1934_s23   ;;  %s1588_s22 = sphi %s1650_s22, %s1933_s22   ;;  %s1584_s21 = sphi %s1648_s21, %s1932_s21  }
   0x4   : > { %s1673_s27 = sadd.s32 1, %s1596_s24   ;;  %s163_s28 = sadd.s32 1, %s1592_s23 }
   0x5   : > { %s160_s29 = ssub.s32 %s1596_s24, %s1673_s27  ;;  %p173_p0 = scmp.ne.s32.totalorder %s1592_s23, %s1588_s22 }
   0x6   : > { %p161_p1 = scmp.eq.s32.totalorder %s160_s29, 0  ;;  %p174_p2 = scmp.eq.s32.totalorder %s1669_s25, 1 }
   0x7   : > { %p179_p3 = scmp.ne.s32.totalorder %s1588_s22, %s1584_s21  ;;  %p180_p4 = scmp.eq.s32.totalorder %s1163_s26, 1 }
   0x8   : > { %s1684_s30 = scalar_select %p161_p1, %s1592_s23, %s163_s28  }
   0x9   : > { %p1686_p5 = por %p174_p2, %p173_p0  ;;  %p1690_p6 = por %p180_p4, %p179_p3 }
   0xa   : > { %p1166_p7 = scmp.ge.s32.totalorder %s1596_s24, 1  ;;  %p218_p8 = scmp.lt.s32.totalorder %s1596_s24, 3 }
   0xc   : > { %p219_p9 = pnand %p1166_p7, %p218_p8 }
   0xd   : > { %p253_p10 = scmp.lt.s32.totalorder (!%p219_p9), %s1669_s25, 1  ;;  %v1598_v0 = vmov (!%p219_p9), 0.0|0.0   ;;  %s1599_s14 = smov (!%p219_p9), 127   ;;  %v264_v5 = vld [vmem:[%s1918_s1 + $0x8] sm:$0xff] (!%p219_p9)  ;;  %vm347_vm0 = vcmask (!%p219_p9), 130048   ;;  %v271_v6 = vld [vmem:[%s1919_s2] sm:$0xff] (!%p219_p9) }
   0xe   : > { %222 = sbr.rel (%p219_p9) target bundleno = 1156 (0x484), region = 40  ;;  %1292 = vmatprep.subr.bf16.mxu0 (!%p219_p9), %v1598_v0  ;;  %s1926_s15 = smov (!%p219_p9), 122   ;;  %1172 = vmatprep.mubr.msk.f32.mxu0 (!%p219_p9), %vm347_vm0, %v264_v5  ;;  %v272_v7 = vld [vmem:[%s1919_s2 + $0x8] sm:$0xff] (!%p219_p9)  ;;  %v1607_v8 = vmov (!%p219_p9), 0   ;;  %v273_v9 = vld [vmem:[%s1919_s2 + $0x10] sm:$0xff] (!%p219_p9)  ;;  %v274_v10 = vld [vmem:[%s1919_s2 + $0x18] sm:$0xff] (!%p219_p9) }
   0xf   : > { %s1601_s16 = smov (!%p219_p9), 126   ;;  %s1602_s17 = smov (!%p219_p9), 121   ;;  %1452 = vset.pattern.permute.xlu0 (!%p219_p9), %v1607_v8  ;;  %1453 = vset.pattern.permute.xlu1 (!%p219_p9), %v1607_v8  ;;  %v263_v43 = vld [vmem:[%s1918_s1] sm:$0xff] (!%p219_p9)  ;;  %v266_v44 = vld [vmem:[%s1918_s1 + $0x18] sm:$0xff] (!%p219_p9)  ;;  %v265_v45 = vld [vmem:[%s1918_s1 + $0x10] sm:$0xff] (!%p219_p9)  ;;  %vm449_vm1 = vcmask (!%p219_p9), 179200  }
  0x10   : > { %s1603_s18 = smov (!%p219_p9), 120   ;;  %s1604_s19 = smov (!%p219_p9), 116   ;;  %v268_v46 = vld [vmem:[%s1918_s1 + $0x28] sm:$0xff] (!%p219_p9)  ;;  %v267_v47 = vld [vmem:[%s1918_s1 + $0x20] sm:$0xff] (!%p219_p9)  ;;  %v270_v48 = vld [vmem:[%s1918_s1 + $0x38] sm:$0xff] (!%p219_p9)  ;;  %vm594_vm2 = vcmask (!%p219_p9), 261120  }
  0x11   : > { %s1605_s20 = smov (!%p219_p9), 115   ;;  %s1924_s26 = smov (!%p219_p9), 114   ;;  %v269_v49 = vld [vmem:[%s1918_s1 + $0x30] sm:$0xff] (!%p219_p9)  ;;  %vm868_vm3 = vcmask (!%p219_p9), 1041408   ;;  %vm781_vm6 = vcmask (!%p219_p9), 64512   ;;  %vm790_vm7 = vcmask (!%p219_p9), 15360  }
  0x12   : > { %s1931_s29 = smov (!%p219_p9), 114   ;;  %vm815_vm8 = vcmask (!%p219_p9), 31760   ;;  %vm1049_vm9 = vcmask (!%p219_p9), 7168   ;;  %s1199_s28 = sshll.u32 (!%p219_p9), %s1669_s25, 9 }
  0x15   : > { %s1699_s9 = scalar_select %p253_p10, %s1669_s25, 1 }
  0x17   : > { %s1197_s10 = sshll.u32 %s1699_s9, 4 }
  0x18   : > { %s257_s13 = scalar_lea.vmem %s1917_s0, %s1197_s10 }
  0x19   : > { %v275_v1 = vld [vmem:[%s257_s13] sm:$0xff]  ;;  %v276_v2 = vld [vmem:[%s257_s13 + $0x8] sm:$0xff] }
  0x1a   : > { %v1412_v3 = vpack.i.bf16 %v276_v2, %v275_v1  ;;  %v1293_v4 = vpack.c.bf16 %v276_v2, %v275_v1 }
  0x1c   : > { %1413 = vrot.lane.b32.xlu0 %v1412_v3, %s1599_s14  ;;  %1423 = vrot.lane.b32.xlu1 %v1412_v3, %s1926_s15  ;;  %s1872_s15 = scalar_lea.hbm %s1923_s6, %s1199_s28 }
  0x1d   : > { %1294 = vmatpush1.bf16.msra.mxu0 %v1293_v4 }
  0x1e   : > { %1295 = vmatprep.subr.bf16.mxu0 %v1598_v0 }
  0x20   : > { %1418 = vrot.lane.b32.xlu0 %v1412_v3, %s1601_s16  ;;  %1428 = vrot.lane.b32.xlu1 %v1412_v3, %s1602_s17 }
  0x24   : > { %1433 = vrot.lane.b32.xlu0 %v1412_v3, %s1603_s18  ;;  %1438 = vrot.lane.b32.xlu1 %v1412_v3, %s1604_s19 }
  0x28   : > { %1443 = vrot.lane.b32.xlu0 %v1412_v3, %s1605_s20  ;;  %1448 = vrot.lane.b32.xlu1 %v1412_v3, %s1924_s26 }
  0x2c   : > { %329 = vperm.xlu0 %1452, %v271_v6   ;;  %334 = vperm.xlu1 %1453, %v272_v7  }
  0x30   : > { %339 = vperm.xlu1 %1453, %v273_v9   ;;  %344 = vperm.xlu0 %1452, %v274_v10  }
  0x8e   : > { %v1414_v11 = vpop.permute.xlu0 %1413  ;;  %v1424_v12 = vpop.permute.xlu1 %1423 }
  0x8f   : > { %v1416_v13 = vunpack.i.h.bf16 %v1414_v11  ;;  %v1415_v14 = vunpack.i.l.bf16 %v1414_v11  ;;  %v1426_v19 = vunpack.i.h.bf16 %v1424_v12  ;;  %v1425_v20 = vunpack.i.l.bf16 %v1424_v12 }
  0x91   : > { %v1296_v15 = vpack.c.bf16 %v1416_v13, %v1415_v14  ;;  %v1302_v23 = vpack.c.bf16 %v1426_v19, %v1425_v20  ;;  %v455_v14 = vld [vmem:[%s1920_s3 + $0x8] sm:$0xff] }
  0x92   : > { %v1419_v16 = vpop.permute.xlu0 %1418  ;;  %v1429_v21 = vpop.permute.xlu1 %1428  ;;  %671 = vmatprep.mubr.f32.mxu1 %v455_v14 }
  0x93   : > { %v1421_v17 = vunpack.i.h.bf16 %v1419_v16  ;;  %v1420_v18 = vunpack.i.l.bf16 %v1419_v16  ;;  %1297 = vmatpush1.bf16.msra.mxu0 %v1296_v15  ;;  %v1431_v24 = vunpack.i.h.bf16 %v1429_v21  ;;  %v1430_v25 = vunpack.i.l.bf16 %v1429_v21  ;;  %v466_v15 = vld [vmem:[%s1921_s4] sm:$0xff]  ;;  %v468_v16 = vld [vmem:[%s1921_s4 + $0x10] sm:$0xff] }
  0x94   : > { %1298 = vmatprep.subr.bf16.mxu0 %v1598_v0 }
  0x95   : > { %v1299_v22 = vpack.c.bf16 %v1421_v17, %v1420_v18  ;;  %v1305_v27 = vpack.c.bf16 %v1431_v24, %v1430_v25  ;;  %v467_v17 = vld [vmem:[%s1921_s4 + $0x8] sm:$0xff]  ;;  %v469_v18 = vld [vmem:[%s1921_s4 + $0x18] sm:$0xff] }
  0x96   : > { %v1434_v26 = vpop.permute.xlu0 %1433  ;;  %v1439_v30 = vpop.permute.xlu1 %1438 }
  0x97   : > { %1300 = vmatpush1.bf16.msra.mxu0 %v1299_v22  ;;  %v1436_v28 = vunpack.i.h.bf16 %v1434_v26  ;;  %v1435_v29 = vunpack.i.l.bf16 %v1434_v26  ;;  %v1441_v32 = vunpack.i.h.bf16 %v1439_v30  ;;  %v1440_v33 = vunpack.i.l.bf16 %v1439_v30 }
  0x98   : > { %1301 = vmatprep.subr.bf16.mxu0 %v1598_v0 }
  0x99   : > { %v1308_v31 = vpack.c.bf16 %v1436_v28, %v1435_v29  ;;  %v1311_v35 = vpack.c.bf16 %v1441_v32, %v1440_v33 }
  0x9a   : > { %v1444_v34 = vpop.permute.xlu0 %1443  ;;  %v1449_v38 = vpop.permute.xlu1 %1448 }
  0x9b   : > { %1303 = vmatpush1.bf16.msra.mxu0 %v1302_v23  ;;  %v1446_v36 = vunpack.i.h.bf16 %v1444_v34  ;;  %v1445_v37 = vunpack.i.l.bf16 %v1444_v34  ;;  %v1451_v40 = vunpack.i.h.bf16 %v1449_v38  ;;  %v1450_v41 = vunpack.i.l.bf16 %v1449_v38 }
  0x9c   : > { %1304 = vmatprep.subr.bf16.mxu0 %v1598_v0 }
  0x9d   : > { %v1314_v39 = vpack.c.bf16 %v1446_v36, %v1445_v37  ;;  %v1317_v42 = vpack.c.bf16 %v1451_v40, %v1450_v41 }
  0x9f   : > { %1306 = vmatpush1.bf16.msra.mxu0 %v1305_v27 }
  0xa0   : > { %1307 = vmatprep.subr.bf16.mxu0 %v1598_v0 }
  0xa3   : > { %1309 = vmatpush1.bf16.msra.mxu0 %v1308_v31 }
  0xa4   : > { %1310 = vmatprep.subr.bf16.mxu0 %v1598_v0 }
  0xa7   : > { %1312 = vmatpush1.bf16.msra.mxu0 %v1311_v35 }
  0xa8   : > { %1313 = vmatprep.subr.bf16.mxu0 %v1598_v0 }
  0xab   : > { %1315 = vmatpush1.bf16.msra.mxu0 %v1314_v39  ;;  %v330_v50 = vpop.permute.xlu0 %329  ;;  %v335_v52 = vpop.permute.xlu1 %334 }
  0xac   : > { %1316 = vmatprep.subr.bf16.mxu0 %v1598_v0 }
  0xaf   : > { %1318 = vmatpush1.bf16.msra.mxu0 %v1317_v42  ;;  %v340_v59 = vpop.permute.xlu1 %339  ;;  %v345_v1 = vpop.permute.xlu0 %344 }
  0xb2   : > { %425 = vmatmul.mubr.f32.vlgmr.msra.gmra.mrb[0].mxu0 %v263_v43 }
  0xb3   : > { %1173 = vmatprep.mubr.msk.f32.mxu0 %vm347_vm0, %v266_v44 }
  0xb6   : > { %430 = vmatmul.mubr.f32.gmra.mrb[2].mxu0 %v265_v45 }
  0xb7   : > { %1174 = vmatprep.mubr.msk.f32.mxu0 %vm347_vm0, %v268_v46 }
  0xba   : > { %435 = vmatmul.mubr.f32.gmra.mrb[4].mxu0 %v267_v47 }
  0xbb   : > { %1175 = vmatprep.mubr.msk.f32.mxu0 %vm347_vm0, %v270_v48 }
  0xbe   : > { %440 = vmatmul.mubr.f32.gmra.mrb[6].mxu0 %v269_v49 }
 0x185   : > { %v426_v51 = vpop.f32.mrb[0].mxu0 }
 0x186   : > { %v427_v53 = vadd.f32 %v426_v51, %v330_v50  ;;  %v428_v54 = vpop.f32.mrb[1].mxu0 }
 0x188   : > { %v445_v55 = vmax.f32 %v427_v53, 0.0 }
 0x189   : > { %v431_v56 = vpop.f32.mrb[2].mxu0 }
 0x18a   : > { %450 = vst.msk [vmem:[#allocation2] sm:$0xff] %vm449_vm1, %v445_v55  ;;  %v432_v57 = vadd.f32 %v431_v56, %v335_v52  ;;  %v433_v58 = vpop.f32.mrb[3].mxu0 }
 0x18c   : > { %v446_v60 = vmax.f32 %v432_v57, 0.0 }
 0x18d   : > { %v436_v61 = vpop.f32.mrb[4].mxu0 }
 0x18e   : > { %451 = vst.msk [vmem:[#allocation2 + $0x8] sm:$0xff] %vm449_vm1, %v446_v60  ;;  %v437_v62 = vadd.f32 %v436_v61, %v340_v59  ;;  %v438_v63 = vpop.f32.mrb[5].mxu0 }
 0x190   : > { %v447_v0 = vmax.f32 %v437_v62, 0.0 }
 0x191   : > { %v441_v2 = vpop.f32.mrb[6].mxu0  ;;  %v470_v6 = vld [vmem:[#allocation2] sm:$0xff] }
 0x192   : > { %452 = vst.msk [vmem:[#allocation2 + $0x10] sm:$0xff] %vm449_vm1, %v447_v0  ;;  %v442_v3 = vadd.f32 %v441_v2, %v345_v1  ;;  %v443_v4 = vpop.f32.mrb[7].mxu0 }
 0x194   : > { %v448_v5 = vmax.f32 %v442_v3, 0.0 }
 0x195   : > { %v471_v7 = vld [vmem:[#allocation2 + $0x8] sm:$0xff] }
 0x196   : > { %453 = vst.msk [vmem:[#allocation2 + $0x18] sm:$0xff] %vm449_vm1, %v448_v5  ;;  %v1454_v8 = vpack.i.bf16 %v471_v7, %v470_v6  ;;  %v1321_v9 = vpack.c.bf16 %v471_v7, %v470_v6 }
 0x198   : > { %1455 = vrot.lane.b32.xlu1 %v1454_v8, %s1602_s17 }
 0x199   : > { %v472_v10 = vld [vmem:[#allocation2 + $0x10] sm:$0xff] }
 0x19c   : > { %1465 = vrot.lane.b32.xlu1 %v1454_v8, %s1603_s18 }
 0x19d   : > { %v473_v11 = vld [vmem:[#allocation2 + $0x18] sm:$0xff] }
 0x19e   : > { %v1459_v12 = vpack.i.bf16 %v473_v11, %v472_v10  ;;  %v1325_v13 = vpack.c.bf16 %v473_v11, %v472_v10 }
 0x1a0   : > { %1460 = vrot.lane.b32.xlu0 %v1459_v12, %s1602_s17  ;;  %1475 = vrot.lane.b32.xlu1 %v1459_v12, %s1603_s18  ;;  %s1930_s18 = smov 122  }
 0x1a4   : > { %1470 = vrot.lane.b32.xlu0 %v1454_v8, %s1599_s14  ;;  %1480 = vrot.lane.b32.xlu1 %v1454_v8, %s1604_s19 }
 0x1a8   : > { %1485 = vrot.lane.b32.xlu0 %v1459_v12, %s1599_s14  ;;  %1495 = vrot.lane.b32.xlu1 %v1459_v12, %s1604_s19 }
 0x1ac   : > { %1490 = vrot.lane.b32.xlu0 %v1454_v8, %s1601_s16  ;;  %1500 = vrot.lane.b32.xlu1 %v1454_v8, %s1605_s20 }
 0x1b0   : > { %1505 = vrot.lane.b32.xlu0 %v1459_v12, %s1601_s16  ;;  %1515 = vrot.lane.b32.xlu1 %v1459_v12, %s1605_s20  ;;  %s1198_s20 = sshll.u32 %s1699_s9, 5  ;;  %s1609_s9 = smov 124  }
 0x1b1   : > { %s1837_s11 = scalar_lea.vmem %s1922_s5, %s1198_s20  ;;  %s1610_s16 = smov [#allocation4]  }
 0x1b2   : > { %s1538_s20 = sshll.u32 %s1610_s16, 4  ;;  %s1539_s20 = int_to_ptr.vmem [resolvable:$false] %s1538_s20 }
 0x1b3   : > { %s1540_s26 = scalar_lea.vmem %s1539_s20, 1024 }
 0x1b4   : > { %1510 = vrot.lane.b32.xlu0 %v1454_v8, %s1930_s18  ;;  %1525 = vrot.lane.b32.xlu1 %v1454_v8, %s1931_s29 }
 0x1b8   : > { %1520 = vrot.lane.b32.xlu0 %v1459_v12, %s1930_s18  ;;  %576 = vperm.xlu1 %1453, %v466_v15  }
 0x1bc   : > { %1530 = vrot.lane.b32.xlu0 %v1459_v12, %s1931_s29  ;;  %586 = vperm.xlu1 %1453, %v468_v16  }
 0x1c0   : > { %581 = vperm.xlu0 %1452, %v467_v17  }
 0x1c4   : > { %591 = vperm.xlu0 %1452, %v469_v18   ;;  %v454_v18 = vld [vmem:[%s1920_s3] sm:$0xff] }
 0x20a   : > { %v1456_v19 = vpop.permute.xlu1 %1455 }
 0x20b   : > { %v1458_v20 = vunpack.i.h.bf16 %v1456_v19  ;;  %v1457_v21 = vunpack.i.l.bf16 %v1456_v19  ;;  %v458_v19 = vld [vmem:[%s1920_s3 + $0x20] sm:$0xff] }
 0x20d   : > { %v1319_v22 = vpack.c.bf16 %v1458_v20, %v1457_v21  ;;  %v457_v21 = vld [vmem:[%s1920_s3 + $0x18] sm:$0xff] }
 0x20e   : > { %v1466_v23 = vpop.permute.xlu1 %1465 }
 0x20f   : > { %1320 = vmatprep.subr.bf16.mxu1 %v1319_v22  ;;  %v1468_v26 = vunpack.i.h.bf16 %v1466_v23  ;;  %v1467_v27 = vunpack.i.l.bf16 %v1466_v23  ;;  %v461_v22 = vld [vmem:[%s1920_s3 + $0x38] sm:$0xff]  ;;  %v460_v23 = vld [vmem:[%s1920_s3 + $0x30] sm:$0xff] }
 0x210   : > { %1322 = vmatpush3.bf16.msra.mxu1 %v1321_v9 }
 0x211   : > { %v1327_v35 = vpack.c.bf16 %v1468_v26, %v1467_v27  ;;  %v456_v26 = vld [vmem:[%s1920_s3 + $0x10] sm:$0xff]  ;;  %v459_v27 = vld [vmem:[%s1920_s3 + $0x28] sm:$0xff] }
 0x212   : > { %v1461_v24 = vpop.permute.xlu0 %1460  ;;  %v1476_v25 = vpop.permute.xlu1 %1475 }
 0x213   : > { %v1463_v28 = vunpack.i.h.bf16 %v1461_v24  ;;  %v1462_v29 = vunpack.i.l.bf16 %v1461_v24  ;;  %v1478_v31 = vunpack.i.h.bf16 %v1476_v25  ;;  %v1477_v32 = vunpack.i.l.bf16 %v1476_v25  ;;  %v464_v24 = vld [vmem:[%s1920_s3 + $0x50] sm:$0xff]  ;;  %v463_v25 = vld [vmem:[%s1920_s3 + $0x48] sm:$0xff] }
 0x215   : > { %v1323_v30 = vpack.c.bf16 %v1463_v28, %v1462_v29  ;;  %v1331_v39 = vpack.c.bf16 %v1478_v31, %v1477_v32  ;;  %v462_v28 = vld [vmem:[%s1920_s3 + $0x40] sm:$0xff]  ;;  %v465_v29 = vld [vmem:[%s1920_s3 + $0x58] sm:$0xff] }
 0x216   : > { %v1471_v33 = vpop.permute.xlu0 %1470  ;;  %v1481_v34 = vpop.permute.xlu1 %1480 }
 0x217   : > { %v1473_v36 = vunpack.i.h.bf16 %v1471_v33  ;;  %v1472_v37 = vunpack.i.l.bf16 %v1471_v33  ;;  %1324 = vmatprep.subr.bf16.mxu1 %v1323_v30  ;;  %v1483_v42 = vunpack.i.h.bf16 %v1481_v34  ;;  %v1482_v43 = vunpack.i.l.bf16 %v1481_v34 }
 0x218   : > { %1326 = vmatpush3.bf16.msra.mxu1 %v1325_v13  ;;  %v820_v30 = vlaneseq }
 0x219   : > { %v1329_v38 = vpack.c.bf16 %v1473_v36, %v1472_v37  ;;  %1328 = vmatprep.subr.bf16.mxu1 %v1327_v35  ;;  %v1335_v51 = vpack.c.bf16 %v1483_v42, %v1482_v43  ;;  %v1608_v35 = vmov 0.0  }
 0x21a   : > { %v1486_v40 = vpop.permute.xlu0 %1485  ;;  %v1496_v41 = vpop.permute.xlu1 %1495  ;;  %v821_v31 = vshrl.u32 %v820_v30, 7  ;;  %v823_v32 = vand.u32 127, %v820_v30 }
 0x21b   : > { %v1488_v44 = vunpack.i.h.bf16 %v1486_v40  ;;  %v1487_v45 = vunpack.i.l.bf16 %v1486_v40  ;;  %v1498_v47 = vunpack.i.h.bf16 %v1496_v41  ;;  %v1497_v48 = vunpack.i.l.bf16 %v1496_v41 }
 0x21c   : > { %1330 = vmatpush3.bf16.msra.mxu1 %v1329_v38  ;;  %v824_v33 = vmul.u32 2, %v823_v32 }
 0x21d   : > { %v1333_v46 = vpack.c.bf16 %v1488_v44, %v1487_v45  ;;  %1332 = vmatprep.subr.bf16.mxu1 %v1331_v39  ;;  %v1339_v55 = vpack.c.bf16 %v1498_v47, %v1497_v48 }
 0x21e   : > { %v1491_v49 = vpop.permute.xlu0 %1490  ;;  %v1501_v50 = vpop.permute.xlu1 %1500  ;;  %vm825_vm4 = vcmp.eq.s32.totalorder %v821_v31, %v824_v33  ;;  %v828_v34 = vadd.s32 1, %v824_v33 }
 0x21f   : > { %v1493_v52 = vunpack.i.h.bf16 %v1491_v49  ;;  %v1492_v53 = vunpack.i.l.bf16 %v1491_v49  ;;  %v1503_v58 = vunpack.i.h.bf16 %v1501_v50  ;;  %v1502_v59 = vunpack.i.l.bf16 %v1501_v50 }
 0x220   : > { %1334 = vmatpush3.bf16.msra.mxu1 %v1333_v46  ;;  %v1180_v36 = vsel %vm825_vm4, 1.0, %v1608_v35  ;;  %vm829_vm5 = vcmp.eq.s32.totalorder %v821_v31, %v828_v34 }
 0x221   : > { %v1337_v54 = vpack.c.bf16 %v1493_v52, %v1492_v53  ;;  %1336 = vmatprep.subr.bf16.mxu1 %v1335_v51  ;;  %v1343_v2 = vpack.c.bf16 %v1503_v58, %v1502_v59  ;;  %1276 = vmatprep.subr.msk.mxu0 %vm868_vm3, %v1180_v36  ;;  %v1181_v37 = vsel %vm829_vm5, 1.0, %v1608_v35 }
 0x222   : > { %v1506_v56 = vpop.permute.xlu0 %1505  ;;  %v1516_v57 = vpop.permute.xlu1 %1515  ;;  %1277 = vmatpush3.msk.msra.mxu0 %vm868_vm3, %v1180_v36 }
 0x223   : > { %v1508_v60 = vunpack.i.h.bf16 %v1506_v56  ;;  %v1507_v61 = vunpack.i.l.bf16 %v1506_v56  ;;  %v1518_v63 = vunpack.i.h.bf16 %v1516_v57  ;;  %v1517_v0 = vunpack.i.l.bf16 %v1516_v57 }
 0x224   : > { %1338 = vmatpush3.bf16.msra.mxu1 %v1337_v54 }
 0x225   : > { %v1341_v62 = vpack.c.bf16 %v1508_v60, %v1507_v61  ;;  %1340 = vmatprep.subr.bf16.mxu1 %v1339_v55  ;;  %v1347_v7 = vpack.c.bf16 %v1518_v63, %v1517_v0 }
 0x226   : > { %v1511_v1 = vpop.permute.xlu0 %1510  ;;  %v1526_v5 = vpop.permute.xlu1 %1525 }
 0x227   : > { %v1513_v3 = vunpack.i.h.bf16 %v1511_v1  ;;  %v1512_v4 = vunpack.i.l.bf16 %v1511_v1  ;;  %v1528_v9 = vunpack.i.h.bf16 %v1526_v5  ;;  %v1527_v10 = vunpack.i.l.bf16 %v1526_v5 }
 0x228   : > { %1342 = vmatpush3.bf16.msra.mxu1 %v1341_v62 }
 0x229   : > { %v1345_v6 = vpack.c.bf16 %v1513_v3, %v1512_v4  ;;  %1344 = vmatprep.subr.bf16.mxu1 %v1343_v2  ;;  %v1351_v15 = vpack.c.bf16 %v1528_v9, %v1527_v10 }
 0x22a   : > { %v1521_v8 = vpop.permute.xlu0 %1520 }
 0x22b   : > { %v1523_v11 = vunpack.i.h.bf16 %v1521_v8  ;;  %v1522_v12 = vunpack.i.l.bf16 %v1521_v8 }
 0x22c   : > { %1346 = vmatpush3.bf16.msra.mxu1 %v1345_v6 }
 0x22d   : > { %v1349_v13 = vpack.c.bf16 %v1523_v11, %v1522_v12  ;;  %1348 = vmatprep.subr.bf16.mxu1 %v1347_v7 }
 0x22e   : > { %v1531_v14 = vpop.permute.xlu0 %1530 }
 0x22f   : > { %v1533_v16 = vunpack.i.h.bf16 %v1531_v14  ;;  %v1532_v17 = vunpack.i.l.bf16 %v1531_v14 }
 0x230   : > { %1350 = vmatpush3.bf16.msra.mxu1 %v1349_v13 }
 0x231   : > { %1352 = vmatprep.subr.bf16.mxu1 %v1351_v15  ;;  %v1355_v20 = vpack.c.bf16 %v1533_v16, %v1532_v17 }
 0x233   : > { %672 = vmatmul.mubr.f32.vlgmr.msra.gmra.mrb[0].mxu1 %v454_v18 }
 0x234   : > { %1354 = vmatpush3.bf16.msra.mxu1 %v1351_v15  ;;  %676 = vmatprep.mubr.f32.mxu1 %v458_v19 }
 0x235   : > { %1356 = vmatprep.subr.bf16.mxu1 %v1355_v20 }
 0x237   : > { %677 = vmatmul.mubr.f32.gmra.mrb[2].mxu1 %v457_v21  ;;  %v577_v49 = vpop.permute.xlu1 %576 }
 0x238   : > { %1358 = vmatpush3.bf16.msra.mxu1 %v1355_v20  ;;  %681 = vmatprep.mubr.f32.mxu1 %v461_v22 }
 0x239   : > { %1284 = vmatprep.subr.msk.mxu1 %vm868_vm3, %v1181_v37 }
 0x23b   : > { %682 = vmatmul.mubr.f32.gmra.mrb[4].mxu1 %v460_v23  ;;  %v587_v59 = vpop.permute.xlu1 %586 }
 0x23c   : > { %686 = vmatprep.mubr.f32.mxu1 %v464_v24 }
 0x23f   : > { %687 = vmatmul.mubr.f32.gmra.mrb[6].mxu1 %v463_v25  ;;  %v582_v47 = vpop.permute.xlu0 %581 }
 0x240   : > { %1270 = vmatprep.mubr.msk.f32.mxu1 %vm594_vm2, %v456_v26 }
 0x243   : > { %1271 = vmatmul.mubr.msk.f32.vlgmr.msra.gmra.mrb[8].mxu1 %vm594_vm2, %v459_v27  ;;  %v592_v57 = vpop.permute.xlu0 %591 }
 0x244   : > { %1273 = vmatprep.mubr.msk.f32.mxu1 %vm594_vm2, %v462_v28  ;;  %1285 = vmatpush3.msk.msra.mxu1 %vm868_vm3, %v1181_v37 }
 0x247   : > { %1274 = vmatmul.mubr.msk.f32.gmra.mrb[10].mxu1 %vm594_vm2, %v465_v29 }
 0x306   : > { %v1232_v38 = vpop.f32.mrb[0].mxu1 }
 0x307   : > { %v1233_v39 = vpop.f32.mrb[1].mxu1 }
 0x308   : > { %v1234_v40 = vadd.f32 %v1233_v39, %v1232_v38 }
 0x30a   : > { %v1235_v41 = vpop.f32.mrb[2].mxu1  ;;  %v674_v54 = vadd.f32 %v1234_v40, %v577_v49 }
 0x30b   : > { %v1236_v42 = vpop.f32.mrb[3].mxu1 }
 0x30c   : > { %v1237_v43 = vadd.f32 %v1236_v42, %v1235_v41 }
 0x30e   : > { %v1238_v44 = vpop.f32.mrb[4].mxu1  ;;  %v679_v52 = vadd.f32 %v1237_v43, %v582_v47 }
 0x30f   : > { %v1239_v45 = vpop.f32.mrb[5].mxu1 }
 0x310   : > { %v1240_v46 = vadd.f32 %v1239_v45, %v1238_v44 }
 0x312   : > { %v1241_v48 = vpop.f32.mrb[6].mxu1  ;;  %v684_v0 = vadd.f32 %v1240_v46, %v587_v59 }
 0x313   : > { %v1242_v50 = vpop.f32.mrb[7].mxu1 }
 0x314   : > { %v1243_v51 = vadd.f32 %v1242_v50, %v1241_v48 }
 0x316   : > { %v1272_v53 = vpop.f32.mrb[8].mxu1  ;;  %v689_v61 = vadd.f32 %v1243_v51, %v592_v57 }
 0x317   : > { %v764_v55 = vadd.f32 %v1272_v53, %v679_v52  ;;  %v758_v56 = vpop.f32.mrb[9].mxu1 }
 0x318   : > { %v759_v58 = vadd.f32 %v758_v56, %v674_v54 }
 0x319   : > { %v778_v60 = vmax.f32 %v764_v55, 0.0 }
 0x31a   : > { %v777_v62 = vmax.f32 %v759_v58, 0.0  ;;  %v1275_v63 = vpop.f32.mrb[10].mxu1 }
 0x31b   : > { %783 = vst.msk [vmem:[#allocation3 + $0x8] sm:$0xff] %vm781_vm6, %v778_v60  ;;  %v774_v1 = vadd.f32 %v1275_v63, %v689_v61  ;;  %v768_v2 = vpop.f32.mrb[11].mxu1 }
 0x31c   : > { %782 = vst.msk [vmem:[#allocation3] sm:$0xff] %vm781_vm6, %v777_v62  ;;  %v769_v3 = vadd.f32 %v768_v2, %v684_v0 }
 0x31d   : > { %v780_v4 = vmax.f32 %v774_v1, 0.0 }
 0x31e   : > { %v779_v5 = vmax.f32 %v769_v3, 0.0 }
 0x31f   : > { %785 = vst.msk [vmem:[#allocation3 + $0x18] sm:$0xff] %vm781_vm6, %v780_v4 }
 0x320   : > { %784 = vst.msk [vmem:[#allocation3 + $0x10] sm:$0xff] %vm781_vm6, %v779_v5 }
 0x322   : > { %v833_v6 = vld [vmem:[#allocation3 + $0x8] sm:$0xff] }
 0x323   : > { %842 = vrot.lane.b32.xlu0 %v833_v6, %s1930_s18  ;;  %v832_v7 = vld [vmem:[#allocation3] sm:$0xff]  ;;  %792 = vst.msk [vmem:[%s1837_s11 + $0x8] sm:$0xff] %vm790_vm7, %v833_v6 }
 0x324   : > { %840 = vrot.lane.b32.xlu1 %v832_v7, %s1930_s18  ;;  %791 = vst.msk [vmem:[%s1837_s11] sm:$0xff] %vm790_vm7, %v832_v7 }
 0x326   : > { %v835_v8 = vld [vmem:[#allocation3 + $0x18] sm:$0xff] }
 0x327   : > { %846 = vrot.lane.b32.xlu0 %v835_v8, %s1930_s18  ;;  %v834_v9 = vld [vmem:[#allocation3 + $0x10] sm:$0xff]  ;;  %794 = vst.msk [vmem:[%s1837_s11 + $0x18] sm:$0xff] %vm790_vm7, %v835_v8 }
 0x328   : > { %844 = vrot.lane.b32.xlu1 %v834_v9, %s1930_s18  ;;  %793 = vst.msk [vmem:[%s1837_s11 + $0x10] sm:$0xff] %vm790_vm7, %v834_v9  ;;  %s250_s18 = sand.u32 1, %s1588_s22  }
 0x329   : > { %s1167_s12 = sshll.u32 %s250_s18, 5  ;;  %s1876_s25 = scalar_lea.sflag [#allocation5], %s250_s18 }
 0x32a   : > { %s252_s13 = scalar_lea.vmem [#allocation4], %s1167_s12 }
 0x32b   : > { %805 = vrot.lane.b32.xlu0 %v833_v6, %s1609_s9  ;;  %s1076_s17 = sshll.u32 %s252_s13, 4  ;;  %s1867_s17 = int_to_ptr.vmem [resolvable:$true] %s1076_s17 }
 0x32c   : > { %803 = vrot.lane.b32.xlu1 %v832_v7, %s1609_s9  ;;  %s1534_s19 = scalar_lea.vmem %s1867_s17, 512  ;;  %p1541_p0 = scmp.lt.s32.totalorder %s1867_s17, %s1539_s20 }
 0x32d   : > { %p1535_p11 = scmp.ne.s32.totalorder %s1867_s17, %s1534_s19  ;;  %p1542_p1 = scmp.lt.s32.totalorder %s1540_s26, %s1534_s19 }
 0x32f   : > { %809 = vrot.lane.b32.xlu0 %v835_v8, %s1609_s9  ;;  %p1536_p12 = pnand %p1535_p11, %p1686_p5  ;;  %p1543_p2 = por %p1542_p1, %p1541_p0 }
 0x330   : > { %807 = vrot.lane.b32.xlu1 %v834_v9, %s1609_s9 }
 0x331   : > { %p1537_p13 = pneg %p1536_p12 }
 0x333   : > { %p1544_p3 = pnand %p1543_p2, %p1537_p13 }
 0x395   : > { %v843_v10 = vpop.permute.xlu0 %842 }
 0x396   : > { %v841_v11 = vpop.permute.xlu1 %840  ;;  %v853_v13 = vmax.f32 %v833_v6, %v843_v10 }
 0x397   : > { %v852_v12 = vmax.f32 %v832_v7, %v841_v11 }
 0x399   : > { %v847_v14 = vpop.permute.xlu0 %846  ;;  %1278 = vmatprep.mubr.msk.f32.mxu0 %vm790_vm7, %v852_v12  ;;  %1286 = vmatprep.mubr.msk.f32.mxu1 %vm790_vm7, %v852_v12 }
 0x39a   : > { %1279 = vmatmul.mubr.msk.f32.vlgmr.msra.gmra.mrb[8].mxu0 %vm790_vm7, %v853_v13  ;;  %1287 = vmatmul.mubr.msk.f32.vlgmr.msra.gmra.mrb[12].mxu1 %vm790_vm7, %v853_v13  ;;  %v845_v15 = vpop.permute.xlu1 %844  ;;  %v855_v17 = vmax.f32 %v835_v8, %v847_v14 }
 0x39b   : > { %v854_v16 = vmax.f32 %v834_v9, %v845_v15 }
 0x39d   : > { %v806_v18 = vpop.permute.xlu0 %805  ;;  %1281 = vmatprep.mubr.msk.f32.mxu0 %vm790_vm7, %v854_v16  ;;  %1289 = vmatprep.mubr.msk.f32.mxu1 %vm790_vm7, %v854_v16 }
 0x39e   : > { %817 = vst.msk [vmem:[%s1837_s11 + $0x8] sm:$0xff] %vm815_vm8, %v806_v18  ;;  %1282 = vmatmul.mubr.msk.f32.gmra.mrb[10].mxu0 %vm790_vm7, %v855_v17  ;;  %1290 = vmatmul.mubr.msk.f32.gmra.mrb[14].mxu1 %vm790_vm7, %v855_v17  ;;  %v804_v19 = vpop.permute.xlu1 %803 }
 0x39f   : > { %816 = vst.msk [vmem:[%s1837_s11] sm:$0xff] %vm815_vm8, %v804_v19 }
 0x3a1   : > { %v810_v20 = vpop.permute.xlu0 %809 }
 0x3a2   : > { %819 = vst.msk [vmem:[%s1837_s11 + $0x18] sm:$0xff] %vm815_vm8, %v810_v20  ;;  %v808_v21 = vpop.permute.xlu1 %807 }
 0x3a3   : > { %818 = vst.msk [vmem:[%s1837_s11 + $0x10] sm:$0xff] %vm815_vm8, %v808_v21 }
 0x46d   : > { %v1280_v22 = vpop.f32.mrb[8].mxu0  ;;  %v1288_v23 = vpop.f32.mrb[12].mxu1 }
 0x46e   : > { %v1046_v24 = vmax.f32 %v1280_v22, %v1288_v23  ;;  %v938_v25 = vpop.f32.mrb[9].mxu0  ;;  %v1026_v26 = vpop.f32.mrb[13].mxu1 }
 0x46f   : > { %v1045_v27 = vmax.f32 %v938_v25, %v1026_v26 }
 0x470   : > { %1051 = vst.msk [vmem:[%s252_s13 + $0x8] sm:$0xff] %vm1049_vm9, %v1046_v24 }
 0x471   : > { %1050 = vst.msk [vmem:[%s252_s13] sm:$0xff] %vm1049_vm9, %v1045_v27  ;;  %v1283_v28 = vpop.f32.mrb[10].mxu0  ;;  %v1291_v29 = vpop.f32.mrb[14].mxu1 }
 0x472   : > { %v1048_v30 = vmax.f32 %v1283_v28, %v1291_v29  ;;  %v948_v31 = vpop.f32.mrb[11].mxu0  ;;  %v1036_v32 = vpop.f32.mrb[15].mxu1 }
 0x473   : > { %v1047_v33 = vmax.f32 %v948_v31, %v1036_v32 }
 0x474   : > { %1053 = vst.msk [vmem:[%s252_s13 + $0x18] sm:$0xff] %vm1049_vm9, %v1048_v30 }
 0x475   : > { %1052 = vst.msk [vmem:[%s252_s13 + $0x10] sm:$0xff] %vm1049_vm9, %v1047_v33 }
 0x476   : > { %1547 = shalt.err (!%p1544_p3)
}
 0x477   : > { %s1548_s10 = scalar_lea.hbm %s1872_s15, 512  ;;  %s1552_s18 = scalar_lea.hbm %s1923_s6, 1024 }
 0x478   : > { %p1549_p4 = scmp.ne.s32.totalorder %s1872_s15, %s1548_s10  ;;  %p1553_p9 = scmp.lt.u32.totalorder %s1872_s15, %s1923_s6 }
 0x479   : > { %p1554_p10 = scmp.lt.u32.totalorder %s1552_s18, %s1548_s10  ;;  %p1556_p12 = scmp.lt.u32.totalorder %s1548_s10, %s1872_s15 }
 0x47a   : > { %p1550_p7 = pnand %p1549_p4, %p1686_p5 }
 0x47b   : > { %p1555_p11 = por %p1554_p10, %p1553_p9 }
 0x47c   : > { %p1551_p8 = pneg %p1550_p7 }
 0x47d   : > { %p1557_p13 = por %p1556_p12, %p1555_p11 }
 0x47f   : > { %p1558_p0 = pnand %p1557_p13, %p1551_p8 }
 0x481   : > { %1561 = shalt.err (!%p1558_p0)
}
 0x482   : > { %s1611_s28 = smov 128   ;;  %s1612_s29 = smov 8  }
 0x483   : > { %1359 = dma.vmem_to_hbm [thread:$0]  (%p1686_p5), %s1867_s17, 512, %s1872_s15, %s1876_s25, %s1611_s28, %s1611_s28, %s1612_s29  }
 0x484 PF: > { %p1365_p1 = scmp.ge.s32.totalorder %s1596_s24, 2  ;;  %s1099_s14 = sand.u32 1, %s1584_s21  }
 0x485   : > { %s1100_s19 = scalar_lea.sflag [#allocation5], %s1099_s14 }
 0x486   : > { %p1362_p2 = pnand %p1365_p1, %p1690_p6 }
 0x488   : > { %1579 = dma.done.wait (!%p1362_p2), %s1100_s19, 512  }
 0x489   : > { %1581 = vsyncadd (!%p1362_p2), %s1100_s19, 4294966784  ;;  %p17_p3 = scmp.ge.s32.totalorder %s1673_s27, 4   ;;  %s1932_s21 = smov %s1588_s22 }
 0x48a   : > { %s1933_s22 = smov %s1592_s23  ;;  %s1934_s23 = smov %s1684_s30 }
 0x48b   : > { %s1935_s24 = smov %s1673_s27  ;;  %19 = sbr.rel (!%p17_p3) target bundleno = 3 (0x3), region = 87 }
 0x492   :  { %1105 = vsyncpa [#allocation5], 1 }
 0x493   :  { %1107 = vsyncpa [#allocation5 + $0x1], 1 }

// kernel: encoder_forward.4
= control target key start
LH: loop header
LB: loop body
LE: loop exit
PB: predicated region body
PF: predicated region fallthrough
CT: control target
= control target key end

     0   :  { %s2577_s21 = smov 0   ;;  %s2920_s0 = inlined_call_operand.vmem [shape: f32[2,8,256], index: 0, kind: input, shape index: {}]   ;;  %s2921_s1 = inlined_call_operand.vmem [shape: f32[16,72], index: 1, kind: input, shape index: {}]   ;;  %s2922_s2 = inlined_call_operand.vmem [shape: f32[16,1], index: 2, kind: input, shape index: {}]   ;;  %s2923_s3 = inlined_call_operand.vmem [shape: f32[16,144], index: 3, kind: input, shape index: {}]   ;;  %s2924_s4 = inlined_call_operand.vmem [shape: f32[16,1], index: 4, kind: input, shape index: {}]   ;;  %s2925_s5 = inlined_call_operand.vmem [shape: f32[2,16,144], index: 5, kind: output, shape index: {0}]   ;;  %s2926_s6 = inlined_call_operand.vmem [shape: f32[2,16,36], index: 6, kind: output, shape index: {1}]  }
   0x1 LB: > { %s2027_s22 = sadd.s32 4294967295, %s2513_s21   ;;  %p2031_p0 = scmp.ge.s32.totalorder %s2513_s21, 1  ;;  %s2513_s21 = sphi %s2577_s21, %s17_s21  }
   0x2   : > { %p215_p1 = scmp.lt.s32.totalorder %s2513_s21, 3 }
   0x4   : > { %p216_p2 = pnand %p2031_p0, %p215_p1 }
   0x5   : > { %p250_p3 = scmp.lt.s32.totalorder (!%p216_p2), %s2027_s22, 1  ;;  %s2515_s27 = smov (!%p216_p2), 127   ;;  %v2521_v3 = vmov (!%p216_p2), 0.0   ;;  %v267_v4 = vld [vmem:[%s2922_s2] sm:$0xff] (!%p216_p2)  ;;  %v2524_v5 = vmov (!%p216_p2), 0   ;;  %v268_v6 = vld [vmem:[%s2922_s2 + $0x8] sm:$0xff] (!%p216_p2)  ;;  %v819_v9 = vlaneseq (!%p216_p2) }
   0x6   : > { %219 = sbr.rel (%p216_p2) target bundleno = 1342 (0x53e), region = 40  ;;  %s2516_s28 = smov (!%p216_p2), 112   ;;  %418 = vmatprep.mubr.f32.mxu0 (!%p216_p2), %v2521_v3  ;;  %2425 = vset.pattern.permute.xlu1 (!%p216_p2), %v2524_v5  ;;  %vm277_vm0 = vcmask (!%p216_p2), 1039360   ;;  %vm293_vm1 = vcmask (!%p216_p2), 916480   ;;  %vm285_vm2 = vcmask (!%p216_p2), 1031168   ;;  %vm301_vm3 = vcmask (!%p216_p2), 908288  }
   0x7   : > { %s2517_s29 = smov (!%p216_p2), 126   ;;  %s2518_s30 = smov (!%p216_p2), 111   ;;  %2426 = vset.pattern.permute.xlu0 (!%p216_p2), %v2524_v5  ;;  %v820_v20 = vshrl.u32 (!%p216_p2), %v819_v9, 7  ;;  %v823_v21 = vand.u32 (!%p216_p2), 127, %v819_v9  ;;  %vm309_vm4 = vcmask (!%p216_p2), 900096   ;;  %vm317_vm5 = vcmask (!%p216_p2), 785408  }
   0x8   : > { %s2519_s7 = smov (!%p216_p2), 110   ;;  %s2520_s8 = smov (!%p216_p2), 96   ;;  %vm325_vm6 = vcmask (!%p216_p2), 777216   ;;  %vm333_vm9 = vcmask (!%p216_p2), 769024   ;;  %vm856_vm11 = vcmask (!%p216_p2), 1043456   ;;  %v2525_v54 = vmov (!%p216_p2), 1.0  }
   0x9   : > { %s2522_s9 = smov (!%p216_p2), 95   ;;  %s2523_s10 = smov (!%p216_p2), 94   ;;  %v821_v32 = vadd.s32 (!%p216_p2), 8, %v820_v20  ;;  %v824_v33 = vmul.u32 (!%p216_p2), 2, %v823_v21  ;;  %v265_v57 = vld [vmem:[%s2921_s1] sm:$0xff] (!%p216_p2)  ;;  %vm347_vm14 = vcmask (!%p216_p2), 588800  }
   0xa   : > { %v266_v60 = vld [vmem:[%s2921_s1 + $0x8] sm:$0xff] (!%p216_p2)  ;;  %s2526_s16 = smov (!%p216_p2), 64   ;;  %s2527_s17 = smov (!%p216_p2), 32  }
   0xb   : > { %v831_v40 = vadd.s32 (!%p216_p2), 1, %v824_v33  ;;  %vm826_vm7 = vcmp.eq.s32.totalorder (!%p216_p2), %v821_v32, %v824_v33  ;;  %vm825_vm10 = vcmp.eq.s32.totalorder (!%p216_p2), %v820_v20, %v824_v33  ;;  %s2528_s18 = smov (!%p216_p2), 124   ;;  %s2529_s19 = smov (!%p216_p2), 120  }
   0xc   : > { %v2043_v51 = vsel (!%p216_p2), %vm826_vm7, 1.0, %v2521_v3  ;;  %vm2621_vm13 = vmpackc.low (!%p216_p2), %vm856_vm11, %vm825_vm10  ;;  %vm575_vm7 = vcmask (!%p216_p2), 130048   ;;  %s2530_s20 = smov (!%p216_p2), 116   ;;  %s2531_s24 = smov (!%p216_p2), 108   ;;  %vm774_vm10 = vcmask (!%p216_p2), 884480  }
   0xd   : > { %s2932_s22 = smov (!%p250_p3, %s2027_s22), 1  ;;  %vm833_vm8 = vcmp.eq.s32.totalorder %v821_v32, %v831_v40  ;;  %vm832_vm12 = vcmp.eq.s32.totalorder %v820_v20, %v831_v40  ;;  %v2619_v55 = vpack.c.bf16 %v2043_v51, %v2525_v54  ;;  %s2532_s25 = smov 104  }
   0xe   : > { %s2096_s23 = sshll.u32 %s2932_s22, 4  ;;  %v2045_v52 = vsel %vm833_vm8, 1.0, %v2521_v3  ;;  %vm2630_vm15 = vmpackc.low %vm856_vm11, %vm832_vm12  ;;  %s2097_s12 = sshll.u32 %s2932_s22, 5  ;;  %vm748_vm8 = vcmask 687680   ;;  %vm787_vm11 = vcmask 982880   ;;  %vm800_vm12 = vcmask 1048512  }
   0xf   : > { %s254_s26 = scalar_lea.vmem %s2920_s0, %s2096_s23  ;;  %v2628_v58 = vpack.c.bf16 %v2045_v52, %v2525_v54  ;;  %s2714_s15 = scalar_lea.vmem %s2925_s5, %s2097_s12 }
  0x10   : > { %v269_v0 = vld [vmem:[%s254_s26] sm:$0xff]  ;;  %v270_v1 = vld [vmem:[%s254_s26 + $0x8] sm:$0xff]  ;;  %s2533_s26 = smov 100   ;;  %s2537_s22 = smov 6  }
  0x11   : > { %v2390_v2 = vpack.i.bf16 %v270_v1, %v269_v0  ;;  %s2541_s11 = smov 30  }
  0x13   : > { %2391 = vrot.lane.b32.xlu0 %v2390_v2, %s2515_s27  ;;  %2401 = vrot.lane.b32.xlu1 %v2390_v2, %s2516_s28 }
  0x17   : > { %2396 = vrot.lane.b32.xlu0 %v2390_v2, %s2517_s29  ;;  %2406 = vrot.lane.b32.xlu1 %v2390_v2, %s2518_s30 }
  0x1b   : > { %2411 = vrot.lane.b32.xlu0 %v2390_v2, %s2519_s7  ;;  %2416 = vrot.lane.b32.xlu1 %v2390_v2, %s2520_s8 }
  0x1f   : > { %2421 = vrot.lane.b32.xlu0 %v2390_v2, %s2522_s9  ;;  %329 = vrot.lane.b32.xlu1 %v269_v0, %s2523_s10 }
  0x23   : > { %331 = vrot.lane.b32.xlu0 %v270_v1, %s2523_s10  ;;  %339 = vperm.xlu1 %2425, %v267_v4  }
  0x27   : > { %344 = vperm.xlu0 %2426, %v268_v6  }
  0x85   : > { %v2392_v7 = vpop.permute.xlu0 %2391  ;;  %v2402_v8 = vpop.permute.xlu1 %2401 }
  0x86   : > { %v2394_v10 = vunpack.i.h.bf16 %v2392_v7  ;;  %v2393_v11 = vunpack.i.l.bf16 %v2392_v7  ;;  %v2404_v12 = vunpack.i.h.bf16 %v2402_v8  ;;  %v2403_v13 = vunpack.i.l.bf16 %v2402_v8 }
  0x88   : > { %v2231_v14 = vpack.c.bf16 %v2394_v10, %v270_v1  ;;  %v278_v15 = vsel %vm277_vm0, %v2393_v11, %v2394_v10  ;;  %v294_v19 = vsel %vm293_vm1, %v2403_v13, %v2404_v12 }
  0x89   : > { %v2397_v16 = vpop.permute.xlu0 %2396  ;;  %v2233_v17 = vpack.c.bf16 %v278_v15, %v269_v0  ;;  %v2407_v18 = vpop.permute.xlu1 %2406 }
  0x8a   : > { %v2399_v22 = vunpack.i.h.bf16 %v2397_v16  ;;  %v2398_v23 = vunpack.i.l.bf16 %v2397_v16  ;;  %2232 = vmatprep.subr.bf16.mxu0 %v2231_v14  ;;  %v2409_v24 = vunpack.i.h.bf16 %v2407_v18  ;;  %v2408_v25 = vunpack.i.l.bf16 %v2407_v18  ;;  %v440_v18 = vld [vmem:[%s2923_s3 + $0x8] sm:$0xff] }
  0x8b   : > { %2234 = vmatpush1.bf16.msra.mxu0 %v2233_v17  ;;  %v443_v17 = vld [vmem:[%s2924_s4] sm:$0xff]  ;;  %2040 = vmatprep.mubr.msk.f32.mxu1 %vm575_vm7, %v440_v18 }
  0x8c   : > { %v2235_v26 = vpack.c.bf16 %v2404_v12, %v2399_v22  ;;  %v286_v27 = vsel %vm285_vm2, %v2398_v23, %v2399_v22  ;;  %v302_v31 = vsel %vm301_vm3, %v2408_v25, %v2409_v24 }
  0x8d   : > { %v2412_v28 = vpop.permute.xlu0 %2411  ;;  %v2237_v29 = vpack.c.bf16 %v294_v19, %v286_v27  ;;  %v2417_v30 = vpop.permute.xlu1 %2416  ;;  %v444_v19 = vld [vmem:[%s2924_s4 + $0x8] sm:$0xff] }
  0x8e   : > { %v2414_v34 = vunpack.i.h.bf16 %v2412_v28  ;;  %v2413_v35 = vunpack.i.l.bf16 %v2412_v28  ;;  %2236 = vmatprep.subr.bf16.mxu0 %v2235_v26  ;;  %v2419_v36 = vunpack.i.h.bf16 %v2417_v30  ;;  %v2418_v37 = vunpack.i.l.bf16 %v2417_v30 }
  0x8f   : > { %2238 = vmatpush1.bf16.msra.mxu0 %v2237_v29 }
  0x90   : > { %v2239_v38 = vpack.c.bf16 %v2414_v34, %v2409_v24  ;;  %v310_v39 = vsel %vm309_vm4, %v2413_v35, %v2414_v34  ;;  %v318_v45 = vsel %vm317_vm5, %v2418_v37, %v2419_v36 }
  0x91   : > { %v2422_v41 = vpop.permute.xlu0 %2421  ;;  %v2241_v42 = vpack.c.bf16 %v310_v39, %v302_v31  ;;  %v330_v49 = vpop.permute.xlu1 %329 }
  0x92   : > { %v2424_v43 = vunpack.i.h.bf16 %v2422_v41  ;;  %v2423_v44 = vunpack.i.l.bf16 %v2422_v41  ;;  %2240 = vmatprep.subr.bf16.mxu0 %v2239_v38 }
  0x93   : > { %2242 = vmatpush1.bf16.msra.mxu0 %v2241_v42 }
  0x94   : > { %v2243_v46 = vpack.c.bf16 %v2424_v43, %v2419_v36  ;;  %v326_v47 = vsel %vm325_vm6, %v2423_v44, %v2424_v43 }
  0x95   : > { %v2245_v48 = vpack.c.bf16 %v326_v47, %v318_v45  ;;  %v332_v50 = vpop.permute.xlu0 %331 }
  0x96   : > { %2244 = vmatprep.subr.bf16.mxu0 %v2243_v46  ;;  %v334_v53 = vsel %vm333_vm9, %v330_v49, %v332_v50 }
  0x97   : > { %2246 = vmatpush1.bf16.msra.mxu0 %v2245_v48 }
  0x98   : > { %370 = vmatprep.subr.mxu0 %v332_v50 }
  0x9b   : > { %371 = vmatpush1.msra.mxu0 %v334_v53 }
  0x9c   : > { %2038 = vmatmul.mubr.msk.f32.vlgmr.msra.gmra.mrb[0].mxu0 %vm347_vm14, %v265_v57  ;;  %2285 = vmatprep.subr.msk.bf16.mxu0 %vm2621_vm13, %v2619_v55 }
  0x9d   : > { %424 = vmatprep.mubr.f32.mxu0 %v2521_v3  ;;  %2288 = vmatpush3.bf16.msk.msra.mxu0 %vm2621_vm13, %v2619_v55 }
  0x9e   : > { %2291 = vmatprep.subr.msk.bf16.mxu0 %vm2630_vm15, %v2628_v58 }
  0xa0   : > { %2039 = vmatmul.mubr.msk.f32.gmra.mrb[2].mxu0 %vm347_vm14, %v266_v60  ;;  %vm816_vm14 = vcmask 130080  }
  0xa2   : > { %v340_v61 = vpop.permute.xlu1 %339 }
  0xa6   : > { %v345_v2 = vpop.permute.xlu0 %344 }
 0x16f   : > { %v420_v62 = vpop.f32.mrb[0].mxu0 }
 0x170   : > { %v421_v63 = vadd.f32 %v420_v62, %v340_v61  ;;  %v422_v0 = vpop.f32.mrb[1].mxu0 }
 0x171   : > { %v423_v1 = vadd.f32 %v422_v0, %v340_v61 }
 0x172   : > { %v431_v3 = vmax.f32 %v421_v63, 0.0 }
 0x173   : > { %v432_v4 = vmax.f32 %v423_v1, 0.0  ;;  %v426_v5 = vpop.f32.mrb[2].mxu0 }
 0x174   : > { %v427_v6 = vadd.f32 %v426_v5, %v345_v2  ;;  %v428_v7 = vpop.f32.mrb[3].mxu0 }
 0x175   : > { %436 = vst.msk [vmem:[#allocation2 + $0x8] sm:$0xff] %vm333_vm9, %v432_v4  ;;  %v429_v8 = vadd.f32 %v428_v7, %v345_v2 }
 0x176   : > { %v433_v9 = vmax.f32 %v427_v6, 0.0 }
 0x177   : > { %v434_v10 = vmax.f32 %v429_v8, 0.0 }
 0x178   : > { %v2249_v11 = vpack.c.bf16 %v433_v9, %v431_v3 }
 0x179   : > { %438 = vst.msk [vmem:[#allocation2 + $0x18] sm:$0xff] %vm333_vm9, %v434_v10 }
 0x17c   : > { %v446_v12 = vld [vmem:[#allocation2 + $0x8] sm:$0xff] }
 0x17d   : > { %v2432_v13 = vpack.i.bf16 %v446_v12, %v431_v3 }
 0x17f   : > { %2433 = vrot.lane.b32.xlu0 %v2432_v13, %s2517_s29  ;;  %2428 = vrot.lane.b32.xlu1 %v2432_v13, %s2515_s27 }
 0x180   : > { %v448_v14 = vld [vmem:[#allocation2 + $0x18] sm:$0xff] }
 0x181   : > { %v2247_v15 = vpack.c.bf16 %v448_v14, %v446_v12  ;;  %v2467_v16 = vpack.i.bf16 %v448_v14, %v433_v9 }
 0x183   : > { %2248 = vmatprep.subr.bf16.mxu1 %v2247_v15  ;;  %2438 = vrot.lane.b32.xlu0 %v2432_v13, %s2516_s28 }
 0x184   : > { %2468 = vrot.lane.b32.xlu1 %v2467_v16, %s2515_s27  ;;  %2250 = vmatpush1.bf16.msra.mxu1 %v2249_v11  ;;  %s2535_s27 = smov 88  }
 0x187   : > { %2443 = vrot.lane.b32.xlu0 %v2432_v13, %s2518_s30 }
 0x188   : > { %2473 = vrot.lane.b32.xlu1 %v2467_v16, %s2517_s29  ;;  %s2536_s29 = smov 84  }
 0x18b   : > { %2448 = vrot.lane.b32.xlu0 %v2432_v13, %s2519_s7 }
 0x18c   : > { %2478 = vrot.lane.b32.xlu1 %v2467_v16, %s2516_s28 }
 0x18f   : > { %2453 = vrot.lane.b32.xlu0 %v2432_v13, %s2520_s8 }
 0x190   : > { %2483 = vrot.lane.b32.xlu1 %v2467_v16, %s2518_s30 }
 0x193   : > { %2458 = vrot.lane.b32.xlu0 %v2432_v13, %s2522_s9 }
 0x194   : > { %2488 = vrot.lane.b32.xlu1 %v2467_v16, %s2519_s7  ;;  %s2903_s7 = scalar_lea.vmem %s2926_s6, %s2096_s23  ;;  %s2538_s23 = smov 12  }
 0x197   : > { %2463 = vrot.lane.b32.xlu0 %v2432_v13, %s2523_s10 }
 0x198   : > { %2493 = vrot.lane.b32.xlu1 %v2467_v16, %s2520_s8 }
 0x19b   : > { %567 = vperm.xlu0 %2426, %v443_v17  }
 0x19c   : > { %2498 = vrot.lane.b32.xlu1 %v2467_v16, %s2522_s9  ;;  %s2539_s9 = smov 18  }
 0x1a0   : > { %2503 = vrot.lane.b32.xlu1 %v2467_v16, %s2523_s10  ;;  %s2540_s10 = smov 24  }
 0x1a4   : > { %572 = vperm.xlu1 %2425, %v444_v19  }
 0x1f1   : > { %v2434_v20 = vpop.permute.xlu0 %2433  ;;  %v2429_v21 = vpop.permute.xlu1 %2428 }
 0x1f2   : > { %v2431_v22 = vunpack.i.h.bf16 %v2429_v21  ;;  %v2430_v23 = vunpack.i.l.bf16 %v2429_v21  ;;  %v2436_v28 = vunpack.i.h.bf16 %v2434_v20  ;;  %v2435_v29 = vunpack.i.l.bf16 %v2434_v20 }
 0x1f4   : > { %v461_v32 = vsel %vm277_vm0, %v2430_v23, %v2431_v22  ;;  %v475_v42 = vsel %vm285_vm2, %v2435_v29, %v2436_v28 }
 0x1f5   : > { %v2439_v24 = vpop.permute.xlu0 %2438 }
 0x1f6   : > { %v2469_v25 = vpop.permute.xlu1 %2468  ;;  %v2441_v38 = vunpack.i.h.bf16 %v2439_v24  ;;  %v2440_v39 = vunpack.i.l.bf16 %v2439_v24 }
 0x1f7   : > { %v2471_v26 = vunpack.i.h.bf16 %v2469_v25  ;;  %v2470_v27 = vunpack.i.l.bf16 %v2469_v25 }
 0x1f8   : > { %v489_v48 = vsel %vm293_vm1, %v2440_v39, %v2441_v38 }
 0x1f9   : > { %v2251_v30 = vpack.c.bf16 %v2471_v26, %v2431_v22  ;;  %v2444_v31 = vpop.permute.xlu0 %2443  ;;  %v462_v33 = vsel %vm277_vm0, %v2470_v27, %v2471_v26  ;;  %vm670_vm0 = vcmask 97280  }
 0x1fa   : > { %v2474_v34 = vpop.permute.xlu1 %2473  ;;  %v2253_v35 = vpack.c.bf16 %v462_v33, %v461_v32  ;;  %v2446_v49 = vunpack.i.h.bf16 %v2444_v31  ;;  %v2445_v50 = vunpack.i.l.bf16 %v2444_v31 }
 0x1fb   : > { %v2476_v36 = vunpack.i.h.bf16 %v2474_v34  ;;  %v2475_v37 = vunpack.i.l.bf16 %v2474_v34  ;;  %2252 = vmatprep.subr.bf16.mxu1 %v2251_v30 }
 0x1fc   : > { %2254 = vmatpush1.bf16.msra.mxu1 %v2253_v35  ;;  %v503_v1 = vsel %vm301_vm3, %v2445_v50, %v2446_v49 }
 0x1fd   : > { %v2255_v40 = vpack.c.bf16 %v2476_v36, %v2436_v28  ;;  %v2449_v41 = vpop.permute.xlu0 %2448  ;;  %v476_v43 = vsel %vm285_vm2, %v2475_v37, %v2476_v36  ;;  %vm683_vm2 = vcmask 195680  }
 0x1fe   : > { %v2479_v44 = vpop.permute.xlu1 %2478  ;;  %v2257_v45 = vpack.c.bf16 %v476_v43, %v475_v42  ;;  %v2451_v62 = vunpack.i.h.bf16 %v2449_v41  ;;  %v2450_v63 = vunpack.i.l.bf16 %v2449_v41  ;;  %v442_v41 = vld [vmem:[%s2923_s3 + $0x18] sm:$0xff]  ;;  %v441_v42 = vld [vmem:[%s2923_s3 + $0x10] sm:$0xff] }
 0x1ff   : > { %v2481_v46 = vunpack.i.h.bf16 %v2479_v44  ;;  %v2480_v47 = vunpack.i.l.bf16 %v2479_v44  ;;  %2256 = vmatprep.subr.bf16.mxu1 %v2255_v40  ;;  %v439_v40 = vld [vmem:[%s2923_s3] sm:$0xff] }
 0x200   : > { %2258 = vmatpush1.bf16.msra.mxu1 %v2257_v45  ;;  %v517_v8 = vsel %vm309_vm4, %v2450_v63, %v2451_v62 }
 0x201   : > { %v2259_v51 = vpack.c.bf16 %v2481_v46, %v2441_v38  ;;  %v490_v52 = vsel %vm293_vm1, %v2480_v47, %v2481_v46  ;;  %v2454_v53 = vpop.permute.xlu0 %2453  ;;  %vm664_vm1 = vcmask 490496  }
 0x202   : > { %v2484_v54 = vpop.permute.xlu1 %2483  ;;  %v2261_v57 = vpack.c.bf16 %v490_v52, %v489_v48  ;;  %v2456_v9 = vunpack.i.h.bf16 %v2454_v53  ;;  %v2455_v10 = vunpack.i.l.bf16 %v2454_v53 }
 0x203   : > { %v2486_v60 = vunpack.i.h.bf16 %v2484_v54  ;;  %v2485_v61 = vunpack.i.l.bf16 %v2484_v54  ;;  %2260 = vmatprep.subr.bf16.mxu1 %v2259_v51 }
 0x204   : > { %2262 = vmatpush1.bf16.msra.mxu1 %v2261_v57  ;;  %v531_v20 = vsel %vm317_vm5, %v2455_v10, %v2456_v9 }
 0x205   : > { %v2263_v0 = vpack.c.bf16 %v2486_v60, %v2446_v49  ;;  %v504_v2 = vsel %vm301_vm3, %v2485_v61, %v2486_v60  ;;  %v2459_v7 = vpop.permute.xlu0 %2458  ;;  %vm696_vm3 = vcmask 294080  }
 0x206   : > { %v2489_v3 = vpop.permute.xlu1 %2488  ;;  %v2265_v4 = vpack.c.bf16 %v504_v2, %v503_v1  ;;  %v2461_v17 = vunpack.i.h.bf16 %v2459_v7  ;;  %v2460_v18 = vunpack.i.l.bf16 %v2459_v7 }
 0x207   : > { %v2491_v5 = vunpack.i.h.bf16 %v2489_v3  ;;  %v2490_v6 = vunpack.i.l.bf16 %v2489_v3  ;;  %2264 = vmatprep.subr.bf16.mxu1 %v2263_v0 }
 0x208   : > { %2266 = vmatpush1.bf16.msra.mxu1 %v2265_v4  ;;  %v545_v27 = vsel %vm325_vm6, %v2460_v18, %v2461_v17 }
 0x209   : > { %v2267_v11 = vpack.c.bf16 %v2491_v5, %v2451_v62  ;;  %v518_v12 = vsel %vm309_vm4, %v2490_v6, %v2491_v5  ;;  %v2464_v22 = vpop.permute.xlu0 %2463  ;;  %vm709_vm4 = vcmask 392480  }
 0x20a   : > { %v2494_v13 = vpop.permute.xlu1 %2493  ;;  %v2269_v14 = vpack.c.bf16 %v518_v12, %v517_v8  ;;  %v2466_v28 = vunpack.i.h.bf16 %v2464_v22  ;;  %v2465_v29 = vunpack.i.l.bf16 %v2464_v22 }
 0x20b   : > { %v2496_v15 = vunpack.i.h.bf16 %v2494_v13  ;;  %v2495_v16 = vunpack.i.l.bf16 %v2494_v13  ;;  %2268 = vmatprep.subr.bf16.mxu1 %v2267_v11 }
 0x20c   : > { %2270 = vmatpush1.bf16.msra.mxu1 %v2269_v14  ;;  %v559_v37 = vsel %vm333_vm9, %v2465_v29, %v2466_v28 }
 0x20d   : > { %v2271_v19 = vpack.c.bf16 %v2496_v15, %v2456_v9  ;;  %v532_v21 = vsel %vm317_vm5, %v2495_v16, %v2496_v15  ;;  %vm722_vm5 = vcmask 490880  }
 0x20e   : > { %v2499_v23 = vpop.permute.xlu1 %2498  ;;  %v2273_v24 = vpack.c.bf16 %v532_v21, %v531_v20 }
 0x20f   : > { %v2501_v25 = vunpack.i.h.bf16 %v2499_v23  ;;  %v2500_v26 = vunpack.i.l.bf16 %v2499_v23  ;;  %2272 = vmatprep.subr.bf16.mxu1 %v2271_v19 }
 0x210   : > { %2274 = vmatpush1.bf16.msra.mxu1 %v2273_v24 }
 0x211   : > { %v2275_v30 = vpack.c.bf16 %v2501_v25, %v2461_v17  ;;  %v546_v31 = vsel %vm325_vm6, %v2500_v26, %v2501_v25  ;;  %vm735_vm6 = vcmask 589280  }
 0x212   : > { %v2504_v32 = vpop.permute.xlu1 %2503  ;;  %v2277_v33 = vpack.c.bf16 %v546_v31, %v545_v27 }
 0x213   : > { %v2506_v34 = vunpack.i.h.bf16 %v2504_v32  ;;  %v2505_v35 = vunpack.i.l.bf16 %v2504_v32  ;;  %2276 = vmatprep.subr.bf16.mxu1 %v2275_v30 }
 0x214   : > { %2278 = vmatpush1.bf16.msra.mxu1 %v2277_v33 }
 0x215   : > { %v2279_v36 = vpack.c.bf16 %v2506_v34, %v2466_v28  ;;  %v560_v38 = vsel %vm333_vm9, %v2505_v35, %v2506_v34  ;;  %vm761_vm9 = vcmask 786080  }
 0x216   : > { %v2281_v39 = vpack.c.bf16 %v560_v38, %v559_v37 }
 0x217   : > { %2280 = vmatprep.subr.bf16.mxu1 %v2279_v36 }
 0x218   : > { %2282 = vmatpush1.bf16.msra.mxu1 %v2281_v39 }
 0x219   : > { %2315 = vmatprep.subr.msk.bf16.mxu1 %vm2630_vm15, %v2628_v58 }
 0x21a   : > { %v568_v43 = vpop.permute.xlu0 %567 }
 0x21b   : > { %647 = vmatmul.mubr.f32.vlgmr.msra.gmra.mrb[0].mxu1 %v439_v40 }
 0x21c   : > { %2041 = vmatprep.mubr.msk.f32.mxu1 %vm575_vm7, %v442_v41  ;;  %2318 = vmatpush3.bf16.msk.msra.mxu1 %vm2630_vm15, %v2628_v58  ;;  %vm1200_vm7 = vcmask 97328  }
 0x21d   : > { %2327 = vmatprep.subr.msk.bf16.mxu1 %vm2630_vm15, %v2628_v58 }
 0x21f   : > { %653 = vmatmul.mubr.f32.gmra.mrb[2].mxu1 %v441_v42 }
 0x223   : > { %v573_v49 = vpop.permute.xlu1 %572 }
 0x2ee   : > { %v648_v44 = vpop.f32.mrb[0].mxu1 }
 0x2ef   : > { %v649_v45 = vadd.f32 %v648_v44, %v568_v43  ;;  %v650_v46 = vpop.f32.mrb[1].mxu1 }
 0x2f0   : > { %v651_v47 = vadd.f32 %v650_v46, %v568_v43 }
 0x2f1   : > { %v2716_v48 = vmax.f32 %v649_v45, 0.0 }
 0x2f2   : > { %v660_v50 = vmax.f32 %v651_v47, 0.0  ;;  %v654_v51 = vpop.f32.mrb[2].mxu1 }
 0x2f3   : > { %v655_v52 = vadd.f32 %v654_v51, %v573_v49  ;;  %v656_v53 = vpop.f32.mrb[3].mxu1  ;;  %1022 = vrot.lane.b32.xlu0 %v2716_v48, %s2516_s28  ;;  %671 = vst.msk [vmem:[%s2714_s15] sm:$0xff] %vm670_vm0, %v2716_v48 }
 0x2f4   : > { %665 = vst.msk [vmem:[#allocation3 + $0x8] sm:$0xff] %vm664_vm1, %v660_v50  ;;  %v657_v54 = vadd.f32 %v656_v53, %v573_v49 }
 0x2f5   : > { %v2723_v57 = vmax.f32 %v655_v52, 0.0 }
 0x2f6   : > { %v662_v60 = vmax.f32 %v657_v54, 0.0 }
 0x2f7   : > { %1024 = vrot.lane.b32.xlu1 %v2723_v57, %s2516_s28  ;;  %1207 = vrot.lane.b32.xlu0 %v2716_v48, %s2516_s28  ;;  %672 = vst.msk [vmem:[%s2714_s15 + $0x10] sm:$0xff] %vm670_vm0, %v2723_v57 }
 0x2f8   : > { %667 = vst.msk [vmem:[#allocation3 + $0x18] sm:$0xff] %vm664_vm1, %v662_v60  ;;  %vm1570_vm1 = vcmask 195728  }
 0x2fb   : > { %1209 = vrot.lane.b32.xlu1 %v2723_v57, %s2516_s28  ;;  %1392 = vrot.lane.b32.xlu0 %v2716_v48, %s2516_s28  ;;  %v2736_v61 = vld [vmem:[#allocation3 + $0x8] sm:$0xff] }
 0x2ff   : > { %1394 = vrot.lane.b32.xlu1 %v2723_v57, %s2516_s28  ;;  %1758 = vrot.lane.b32.xlu0 %v2736_v61, %s2516_s28  ;;  %v2742_v62 = vld [vmem:[#allocation3 + $0x18] sm:$0xff] }
 0x303   : > { %1760 = vrot.lane.b32.xlu1 %v2742_v62, %s2516_s28  ;;  %842 = vrot.lane.b32.xlu0 %v2716_v48, %s2516_s28 }
 0x307   : > { %844 = vrot.lane.b32.xlu1 %v2723_v57, %s2516_s28 }
 0x365   : > { %v1023_v63 = vpop.permute.xlu0 %1022 }
 0x366   : > { %v1028_v0 = vmax.f32 %v2716_v48, %v1023_v63 }
 0x368   : > { %1032 = vrot.lane.b32.xlu0 %v1028_v0, %s2520_s8 }
 0x369   : > { %v1025_v1 = vpop.permute.xlu1 %1024  ;;  %v1208_v2 = vpop.permute.xlu0 %1207 }
 0x36a   : > { %v1029_v3 = vmax.f32 %v2723_v57, %v1025_v1  ;;  %v1213_v4 = vmax.f32 %v2716_v48, %v1208_v2 }
 0x36c   : > { %1034 = vrot.lane.b32.xlu1 %v1029_v3, %s2520_s8  ;;  %1217 = vrot.lane.b32.xlu0 %v1213_v4, %s2526_s16 }
 0x36d   : > { %v1210_v5 = vpop.permute.xlu1 %1209  ;;  %v1393_v6 = vpop.permute.xlu0 %1392 }
 0x36e   : > { %v1214_v7 = vmax.f32 %v2723_v57, %v1210_v5  ;;  %v1398_v8 = vmax.f32 %v2716_v48, %v1393_v6 }
 0x370   : > { %1219 = vrot.lane.b32.xlu1 %v1214_v7, %s2526_s16  ;;  %1402 = vrot.lane.b32.xlu0 %v1398_v8, %s2527_s17 }
 0x371   : > { %v1395_v9 = vpop.permute.xlu1 %1394  ;;  %v1759_v10 = vpop.permute.xlu0 %1758 }
 0x372   : > { %v1399_v11 = vmax.f32 %v2723_v57, %v1395_v9  ;;  %v1764_v14 = vmax.f32 %v2736_v61, %v1759_v10 }
 0x374   : > { %1404 = vrot.lane.b32.xlu1 %v1399_v11, %s2527_s17  ;;  %1577 = vrot.lane.b32.xlu0 %v2736_v61, %s2516_s28 }
 0x375   : > { %v1761_v12 = vpop.permute.xlu1 %1760  ;;  %v843_v13 = vpop.permute.xlu0 %842 }
 0x376   : > { %v848_v15 = vmax.f32 %v2716_v48, %v843_v13  ;;  %v1765_v17 = vmax.f32 %v2742_v62, %v1761_v12 }
 0x378   : > { %1579 = vrot.lane.b32.xlu1 %v2742_v62, %s2516_s28  ;;  %1768 = vrot.lane.b32.xlu0 %v1764_v14, %s2520_s8 }
 0x379   : > { %2151 = vmatprep.mubr.msk.f32.mxu0 %vm670_vm0, %v848_v15  ;;  %v845_v16 = vpop.permute.xlu1 %844 }
 0x37a   : > { %v849_v18 = vmax.f32 %v2723_v57, %v845_v16 }
 0x37c   : > { %1770 = vrot.lane.b32.xlu1 %v1765_v17, %s2520_s8  ;;  %2152 = vmatmul.mubr.msk.f32.vlgmr.msra.gmra.mrb[4].mxu0 %vm670_vm0, %v849_v18 }
 0x37d   : > { %677 = vrot.lane.b32.xlu0 %v2716_v48, %s2528_s18  ;;  %2294 = vmatpush3.bf16.msk.msra.mxu0 %vm2630_vm15, %v2628_v58 }
 0x37e   : > { %2158 = vmatprep.mubr.msk.f32.mxu0 %vm670_vm0, %v848_v15  ;;  %2297 = vmatprep.subr.msk.bf16.mxu0 %vm2621_vm13, %v2619_v55 }
 0x380   : > { %679 = vrot.lane.b32.xlu1 %v2723_v57, %s2528_s18  ;;  %2159 = vmatmul.mubr.msk.f32.vlgmr.msra.gmra.mrb[6].mxu0 %vm670_vm0, %v849_v18 }
 0x381   : > { %690 = vrot.lane.b32.xlu0 %v2716_v48, %s2529_s19  ;;  %2300 = vmatpush3.bf16.msk.msra.mxu0 %vm2621_vm13, %v2619_v55 }
 0x382   : > { %2303 = vmatprep.subr.msk.bf16.mxu0 %vm2630_vm15, %v2628_v58 }
 0x384   : > { %692 = vrot.lane.b32.xlu1 %v2723_v57, %s2529_s19 }
 0x385   : > { %703 = vrot.lane.b32.xlu0 %v2716_v48, %s2530_s20 }
 0x388   : > { %705 = vrot.lane.b32.xlu1 %v2723_v57, %s2530_s20 }
 0x389   : > { %716 = vrot.lane.b32.xlu0 %v2716_v48, %s2516_s28 }
 0x38c   : > { %718 = vrot.lane.b32.xlu1 %v2723_v57, %s2516_s28  ;;  %s2534_s28 = smov 92  }
 0x38d   : > { %729 = vrot.lane.b32.xlu0 %v2716_v48, %s2531_s24 }
 0x390   : > { %731 = vrot.lane.b32.xlu1 %v2723_v57, %s2531_s24 }
 0x391   : > { %742 = vrot.lane.b32.xlu0 %v2716_v48, %s2532_s25 }
 0x394   : > { %744 = vrot.lane.b32.xlu1 %v2723_v57, %s2532_s25 }
 0x395   : > { %755 = vrot.lane.b32.xlu0 %v2716_v48, %s2533_s26 }
 0x398   : > { %757 = vrot.lane.b32.xlu1 %v2723_v57, %s2533_s26 }
 0x399   : > { %768 = vrot.lane.b32.xlu0 %v2736_v61, %s2520_s8 }
 0x39c   : > { %770 = vrot.lane.b32.xlu1 %v2742_v62, %s2520_s8 }
 0x39d   : > { %781 = vrot.lane.b32.xlu0 %v2736_v61, %s2534_s28 }
 0x3a0   : > { %783 = vrot.lane.b32.xlu1 %v2742_v62, %s2534_s28 }
 0x3a1   : > { %794 = vrot.lane.b32.xlu0 %v2736_v61, %s2535_s27 }
 0x3a4   : > { %796 = vrot.lane.b32.xlu1 %v2742_v62, %s2535_s27 }
 0x3a5   : > { %810 = vrot.lane.b32.xlu0 %v2736_v61, %s2536_s29 }
 0x3a8   : > { %812 = vrot.lane.b32.xlu1 %v2742_v62, %s2536_s29 }
 0x3da   : > { %v1033_v19 = vpop.permute.xlu0 %1032 }
 0x3db   : > { %2165 = vmatprep.mubr.msk.f32.mxu0 %vm670_vm0, %v1033_v19 }
 0x3de   : > { %v1035_v20 = vpop.permute.xlu1 %1034  ;;  %v1218_v21 = vpop.permute.xlu0 %1217 }
 0x3df   : > { %2166 = vmatmul.mubr.msk.f32.vlgmr.msra.gmra.mrb[8].mxu0 %vm670_vm0, %v1035_v20  ;;  %2186 = vmatprep.mubr.msk.f32.mxu1 %vm670_vm0, %v1218_v21 }
 0x3e0   : > { %2306 = vmatpush3.bf16.msk.msra.mxu0 %vm2630_vm15, %v2628_v58  ;;  %2172 = vmatprep.mubr.msk.f32.mxu0 %vm670_vm0, %v1033_v19 }
 0x3e1   : > { %2309 = vmatprep.subr.msk.bf16.mxu0 %vm2621_vm13, %v2619_v55 }
 0x3e2   : > { %v1220_v22 = vpop.permute.xlu1 %1219  ;;  %v1403_v23 = vpop.permute.xlu0 %1402 }
 0x3e3   : > { %2173 = vmatmul.mubr.msk.f32.vlgmr.msra.gmra.mrb[10].mxu0 %vm670_vm0, %v1035_v20  ;;  %2187 = vmatmul.mubr.msk.f32.vlgmr.msra.gmra.mrb[4].mxu1 %vm670_vm0, %v1220_v22 }
 0x3e4   : > { %2312 = vmatpush3.bf16.msk.msra.mxu0 %vm2621_vm13, %v2619_v55  ;;  %2179 = vmatprep.mubr.msk.f32.mxu0 %vm670_vm0, %v1218_v21 }
 0x3e5   : > { %2330 = vmatpush3.bf16.msk.msra.mxu1 %vm2630_vm15, %v2628_v58  ;;  %2200 = vmatprep.mubr.msk.f32.mxu1 %vm670_vm0, %v1403_v23 }
 0x3e6   : > { %v1405_v24 = vpop.permute.xlu1 %1404  ;;  %2321 = vmatprep.subr.msk.bf16.mxu0 %vm2621_vm13, %v2619_v55  ;;  %v1578_v25 = vpop.permute.xlu0 %1577  ;;  %2339 = vmatprep.subr.msk.bf16.mxu1 %vm2630_vm15, %v2628_v58 }
 0x3e7   : > { %v1583_v26 = vmax.f32 %v2736_v61, %v1578_v25  ;;  %2180 = vmatmul.mubr.msk.f32.vlgmr.msra.gmra.mrb[12].mxu0 %vm670_vm0, %v1220_v22 }
 0x3e8   : > { %2324 = vmatpush3.bf16.msk.msra.mxu0 %vm2621_vm13, %v2619_v55  ;;  %2201 = vmatmul.mubr.msk.f32.vlgmr.msra.gmra.mrb[6].mxu1 %vm670_vm0, %v1405_v24 }
 0x3e9   : > { %2193 = vmatprep.mubr.msk.f32.mxu0 %vm670_vm0, %v1403_v23  ;;  %2214 = vmatprep.mubr.msk.f32.mxu1 %vm670_vm0, %v1583_v26 }
 0x3ea   : > { %v1580_v27 = vpop.permute.xlu1 %1579  ;;  %2333 = vmatprep.subr.msk.bf16.mxu0 %vm2621_vm13, %v2619_v55  ;;  %2342 = vmatpush3.bf16.msk.msra.mxu1 %vm2630_vm15, %v2628_v58  ;;  %v1769_v28 = vpop.permute.xlu0 %1768 }
 0x3eb   : > { %v1584_v29 = vmax.f32 %v2742_v62, %v1580_v27  ;;  %2194 = vmatmul.mubr.msk.f32.vlgmr.msra.gmra.mrb[14].mxu0 %vm670_vm0, %v1405_v24  ;;  %2351 = vmatprep.subr.msk.bf16.mxu1 %vm2630_vm15, %v2628_v58 }
 0x3ec   : > { %2336 = vmatpush3.bf16.msk.msra.mxu0 %vm2621_vm13, %v2619_v55  ;;  %2207 = vmatprep.mubr.msk.f32.mxu0 %vm670_vm0, %v1583_v26 }
 0x3ed   : > { %2215 = vmatmul.mubr.msk.f32.vlgmr.msra.gmra.mrb[8].mxu1 %vm670_vm0, %v1584_v29  ;;  %2345 = vmatprep.subr.msk.bf16.mxu0 %vm2621_vm13, %v2619_v55 }
 0x3ee   : > { %v1771_v30 = vpop.permute.xlu1 %1770  ;;  %2354 = vmatpush3.bf16.msk.msra.mxu1 %vm2630_vm15, %v2628_v58  ;;  %2228 = vmatprep.mubr.msk.f32.mxu1 %vm670_vm0, %v1769_v28  ;;  %vm1015_vm15 = vcmask 48128  }
 0x3ef   : > { %v678_v31 = vpop.permute.xlu0 %677  ;;  %2208 = vmatmul.mubr.msk.f32.vlgmr.msra.gmra.mrb[16].mxu0 %vm670_vm0, %v1584_v29 }
 0x3f0   : > { %684 = vst.msk [vmem:[%s2714_s15] sm:$0xff] %vm683_vm2, %v678_v31  ;;  %2348 = vmatpush3.bf16.msk.msra.mxu0 %vm2621_vm13, %v2619_v55  ;;  %2221 = vmatprep.mubr.msk.f32.mxu0 %vm670_vm0, %v1769_v28  ;;  %vm802_vm13 = vcmask 31744  }
 0x3f1   : > { %2229 = vmatmul.mubr.msk.f32.vlgmr.msra.gmra.mrb[10].mxu1 %vm670_vm0, %v1771_v30 }
 0x3f2   : > { %v680_v58 = vpop.permute.xlu1 %679 }
 0x3f3   : > { %685 = vst.msk [vmem:[%s2714_s15 + $0x10] sm:$0xff] %vm683_vm2, %v680_v58  ;;  %v691_v59 = vpop.permute.xlu0 %690  ;;  %2222 = vmatmul.mubr.msk.f32.vlgmr.msra.gmra.mrb[18].mxu0 %vm670_vm0, %v1771_v30  ;;  %vm1385_vm0 = vcmask 146528   ;;  %vm1751_vm2 = vcmask 244928  }
 0x3f4   : > { %697 = vst.msk [vmem:[%s2714_s15] sm:$0xff] %vm696_vm3, %v691_v59 }
 0x3f6   : > { %v693_v32 = vpop.permute.xlu1 %692 }
 0x3f7   : > { %698 = vst.msk [vmem:[%s2714_s15 + $0x10] sm:$0xff] %vm696_vm3, %v693_v32  ;;  %v704_v55 = vpop.permute.xlu0 %703  ;;  %vm1936_vm3 = vcmask 294128  }
 0x3f8   : > { %710 = vst.msk [vmem:[%s2714_s15] sm:$0xff] %vm709_vm4, %v704_v55 }
 0x3fa   : > { %v706_v56 = vpop.permute.xlu1 %705 }
 0x3fb   : > { %711 = vst.msk [vmem:[%s2714_s15 + $0x10] sm:$0xff] %vm709_vm4, %v706_v56  ;;  %v717_v33 = vpop.permute.xlu0 %716 }
 0x3fc   : > { %723 = vst.msk [vmem:[%s2714_s15] sm:$0xff] %vm722_vm5, %v717_v33 }
 0x3fe   : > { %v719_v34 = vpop.permute.xlu1 %718 }
 0x3ff   : > { %724 = vst.msk [vmem:[%s2714_s15 + $0x10] sm:$0xff] %vm722_vm5, %v719_v34  ;;  %v730_v35 = vpop.permute.xlu0 %729 }
 0x400   : > { %736 = vst.msk [vmem:[%s2714_s15] sm:$0xff] %vm735_vm6, %v730_v35 }
 0x402   : > { %v732_v36 = vpop.permute.xlu1 %731 }
 0x403   : > { %737 = vst.msk [vmem:[%s2714_s15 + $0x10] sm:$0xff] %vm735_vm6, %v732_v36  ;;  %v743_v37 = vpop.permute.xlu0 %742 }
 0x404   : > { %749 = vst.msk [vmem:[%s2714_s15] sm:$0xff] %vm748_vm8, %v743_v37 }
 0x406   : > { %v745_v38 = vpop.permute.xlu1 %744 }
 0x407   : > { %750 = vst.msk [vmem:[%s2714_s15 + $0x10] sm:$0xff] %vm748_vm8, %v745_v38  ;;  %v756_v39 = vpop.permute.xlu0 %755 }
 0x408   : > { %762 = vst.msk [vmem:[%s2714_s15] sm:$0xff] %vm761_vm9, %v756_v39 }
 0x40a   : > { %v758_v40 = vpop.permute.xlu1 %757 }
 0x40b   : > { %763 = vst.msk [vmem:[%s2714_s15 + $0x10] sm:$0xff] %vm761_vm9, %v758_v40  ;;  %v769_v41 = vpop.permute.xlu0 %768 }
 0x40c   : > { %775 = vst.msk [vmem:[%s2714_s15] sm:$0xff] %vm774_vm10, %v769_v41 }
 0x40e   : > { %v771_v42 = vpop.permute.xlu1 %770 }
 0x40f   : > { %776 = vst.msk [vmem:[%s2714_s15 + $0x10] sm:$0xff] %vm774_vm10, %v771_v42  ;;  %v782_v43 = vpop.permute.xlu0 %781 }
 0x410   : > { %788 = vst.msk [vmem:[%s2714_s15] sm:$0xff] %vm787_vm11, %v782_v43 }
 0x412   : > { %v784_v44 = vpop.permute.xlu1 %783 }
 0x413   : > { %789 = vst.msk [vmem:[%s2714_s15 + $0x10] sm:$0xff] %vm787_vm11, %v784_v44  ;;  %v795_v45 = vpop.permute.xlu0 %794 }
 0x414   : > { %801 = vst.msk [vmem:[%s2714_s15] sm:$0xff] %vm800_vm12, %v795_v45 }
 0x415   : > { %803 = vst.msk [vmem:[%s2714_s15 + $0x8] sm:$0xff] %vm802_vm13, %v795_v45 }
 0x416   : > { %v797_v46 = vpop.permute.xlu1 %796 }
 0x417   : > { %804 = vst.msk [vmem:[%s2714_s15 + $0x10] sm:$0xff] %vm800_vm12, %v797_v46  ;;  %v811_v47 = vpop.permute.xlu0 %810 }
 0x418   : > { %805 = vst.msk [vmem:[%s2714_s15 + $0x18] sm:$0xff] %vm802_vm13, %v797_v46 }
 0x419   : > { %817 = vst.msk [vmem:[%s2714_s15 + $0x8] sm:$0xff] %vm816_vm14, %v811_v47 }
 0x41a   : > { %v813_v48 = vpop.permute.xlu1 %812 }
 0x41b   : > { %818 = vst.msk [vmem:[%s2714_s15 + $0x18] sm:$0xff] %vm816_vm14, %v813_v48 }
 0x44f   : > { %v2153_v49 = vpop.f32.mrb[4].mxu0 }
 0x450   : > { %v926_v50 = vpop.f32.mrb[5].mxu0 }
 0x453   : > { %v2160_v51 = vpop.f32.mrb[6].mxu0 }
 0x454   : > { %v1014_v52 = vmax.f32 %v2153_v49, %v2160_v51  ;;  %v1004_v53 = vpop.f32.mrb[7].mxu0 }
 0x455   : > { %v1013_v54 = vmax.f32 %v926_v50, %v1004_v53 }
 0x456   : > { %1017 = vst.msk [vmem:[%s2903_s7 + $0x8] sm:$0xff] %vm1015_vm15, %v1014_v52 }
 0x457   : > { %1016 = vst.msk [vmem:[%s2903_s7] sm:$0xff] %vm1015_vm15, %v1013_v54 }
 0x4b2   : > { %v2167_v57 = vpop.f32.mrb[8].mxu0 }
 0x4b3   : > { %v1106_v60 = vpop.f32.mrb[9].mxu0 }
 0x4b6   : > { %v2174_v61 = vpop.f32.mrb[10].mxu0  ;;  %v2188_v62 = vpop.f32.mrb[4].mxu1 }
 0x4b7   : > { %v1191_v63 = vmax.f32 %v2167_v57, %v2174_v61  ;;  %v1181_v0 = vpop.f32.mrb[11].mxu0  ;;  %v1366_v1 = vpop.f32.mrb[5].mxu1 }
 0x4b8   : > { %v1190_v2 = vmax.f32 %v1106_v60, %v1181_v0 }
 0x4b9   : > { %1196 = vrot.lane.b32.xlu1 %v1191_v63, %s2537_s22 }
 0x4ba   : > { %v2181_v3 = vpop.f32.mrb[12].mxu0  ;;  %1194 = vrot.lane.b32.xlu0 %v1190_v2, %s2537_s22 }
 0x4bb   : > { %v1376_v4 = vmax.f32 %v2181_v3, %v2188_v62  ;;  %v2202_v5 = vpop.f32.mrb[6].mxu1  ;;  %v1291_v6 = vpop.f32.mrb[13].mxu0 }
 0x4bc   : > { %v1375_v7 = vmax.f32 %v1291_v6, %v1366_v1  ;;  %v1551_v8 = vpop.f32.mrb[7].mxu1 }
 0x4bd   : > { %1381 = vrot.lane.b32.xlu1 %v1376_v4, %s2538_s23 }
 0x4be   : > { %v2195_v9 = vpop.f32.mrb[14].mxu0  ;;  %1379 = vrot.lane.b32.xlu0 %v1375_v7, %s2538_s23 }
 0x4bf   : > { %v1561_v10 = vmax.f32 %v2195_v9, %v2202_v5  ;;  %v1476_v11 = vpop.f32.mrb[15].mxu0 }
 0x4c0   : > { %v1560_v12 = vmax.f32 %v1476_v11, %v1551_v8  ;;  %v2216_v13 = vpop.f32.mrb[8].mxu1 }
 0x4c1   : > { %1566 = vrot.lane.b32.xlu1 %v1561_v10, %s2539_s9  ;;  %v1732_v14 = vpop.f32.mrb[9].mxu1 }
 0x4c2   : > { %v2209_v15 = vpop.f32.mrb[16].mxu0  ;;  %1564 = vrot.lane.b32.xlu0 %v1560_v12, %s2539_s9 }
 0x4c3   : > { %v1742_v16 = vmax.f32 %v2209_v15, %v2216_v13  ;;  %v1657_v17 = vpop.f32.mrb[17].mxu0 }
 0x4c4   : > { %v1741_v18 = vmax.f32 %v1657_v17, %v1732_v14  ;;  %v2230_v19 = vpop.f32.mrb[10].mxu1 }
 0x4c5   : > { %1747 = vrot.lane.b32.xlu1 %v1742_v16, %s2540_s10  ;;  %v1917_v20 = vpop.f32.mrb[11].mxu1 }
 0x4c6   : > { %v2223_v21 = vpop.f32.mrb[18].mxu0  ;;  %1745 = vrot.lane.b32.xlu0 %v1741_v18, %s2540_s10 }
 0x4c7   : > { %v1927_v22 = vmax.f32 %v2223_v21, %v2230_v19  ;;  %v1842_v23 = vpop.f32.mrb[19].mxu0 }
 0x4c8   : > { %v1926_v24 = vmax.f32 %v1842_v23, %v1917_v20 }
 0x4c9   : > { %1932 = vrot.lane.b32.xlu1 %v1927_v22, %s2541_s11 }
 0x4ca   : > { %1930 = vrot.lane.b32.xlu0 %v1926_v24, %s2541_s11 }
 0x52b   : > { %v1197_v25 = vpop.permute.xlu1 %1196 }
 0x52c   : > { %1202 = vst.msk [vmem:[%s2903_s7 + $0x8] sm:$0xff] %vm1200_vm7, %v1197_v25  ;;  %v1195_v26 = vpop.permute.xlu0 %1194 }
 0x52d   : > { %1201 = vst.msk [vmem:[%s2903_s7] sm:$0xff] %vm1200_vm7, %v1195_v26 }
 0x52f   : > { %v1382_v27 = vpop.permute.xlu1 %1381 }
 0x530   : > { %1387 = vst.msk [vmem:[%s2903_s7 + $0x8] sm:$0xff] %vm1385_vm0, %v1382_v27  ;;  %v1380_v28 = vpop.permute.xlu0 %1379 }
 0x531   : > { %1386 = vst.msk [vmem:[%s2903_s7] sm:$0xff] %vm1385_vm0, %v1380_v28 }
 0x533   : > { %v1567_v29 = vpop.permute.xlu1 %1566 }
 0x534   : > { %1572 = vst.msk [vmem:[%s2903_s7 + $0x8] sm:$0xff] %vm1570_vm1, %v1567_v29  ;;  %v1565_v30 = vpop.permute.xlu0 %1564 }
 0x535   : > { %1571 = vst.msk [vmem:[%s2903_s7] sm:$0xff] %vm1570_vm1, %v1565_v30 }
 0x537   : > { %v1748_v31 = vpop.permute.xlu1 %1747 }
 0x538   : > { %1753 = vst.msk [vmem:[%s2903_s7 + $0x8] sm:$0xff] %vm1751_vm2, %v1748_v31  ;;  %v1746_v58 = vpop.permute.xlu0 %1745 }
 0x539   : > { %1752 = vst.msk [vmem:[%s2903_s7] sm:$0xff] %vm1751_vm2, %v1746_v58 }
 0x53b   : > { %v1933_v59 = vpop.permute.xlu1 %1932 }
 0x53c   : > { %1938 = vst.msk [vmem:[%s2903_s7 + $0x8] sm:$0xff] %vm1936_vm3, %v1933_v59  ;;  %v1931_v32 = vpop.permute.xlu0 %1930 }
 0x53d   : > { %1937 = vst.msk [vmem:[%s2903_s7] sm:$0xff] %vm1936_vm3, %v1931_v32 }
 0x53e PF: > { %s17_s21 = sadd.s32 1, %s2513_s21  }
 0x53f   : > { %p14_p4 = scmp.ge.s32.totalorder %s17_s21, 4  }
 0x541   :  { %16 = sbr.rel (!%p14_p4) target bundleno = 1 (0x1), region = 82 }

// kernel: encoder_forward.3
= control target key start
LH: loop header
LB: loop body
LE: loop exit
PB: predicated region body
PF: predicated region fallthrough
CT: control target
= control target key end

     0   :  { %s6484_s21 = smov 0   ;;  %s8041_s0 = inlined_call_operand.vmem [shape: f32[2,3,1296], index: 0, kind: input, shape index: {}]   ;;  %s8042_s1 = inlined_call_operand.vmem [shape: f32[8,27], index: 1, kind: input, shape index: {}]   ;;  %s8043_s2 = inlined_call_operand.vmem [shape: f32[8,1], index: 2, kind: input, shape index: {}]   ;;  %s8044_s3 = inlined_call_operand.vmem [shape: f32[8,72], index: 3, kind: input, shape index: {}]   ;;  %s8045_s4 = inlined_call_operand.vmem [shape: f32[8,1], index: 4, kind: input, shape index: {}]   ;;  %s8046_s5 = inlined_call_operand.vmem [shape: f32[2,8,1024], index: 5, kind: output, shape index: {0}]   ;;  %s8047_s6 = inlined_call_operand.vmem [shape: f32[2,8,256], index: 6, kind: output, shape index: {1}]  }
   0x1 LB: > { %s4849_s22 = sadd.s32 4294967295, %s6404_s21   ;;  %p4853_p0 = scmp.ge.s32.totalorder %s6404_s21, 1  ;;  %s6404_s21 = sphi %s6484_s21, %s17_s21  }
   0x2   : > { %p215_p1 = scmp.lt.s32.totalorder %s6404_s21, 3 }
   0x4   : > { %p216_p2 = pnand %p4853_p0, %p215_p1 }
   0x5   : > { %p250_p3 = scmp.lt.s32.totalorder (!%p216_p2), %s4849_s22, 1  ;;  %s6406_s27 = smov (!%p216_p2), 91   ;;  %vm340_vm0 = vcmask (!%p216_p2), 752640   ;;  %vm292_vm1 = vcmask (!%p216_p2), 1039360   ;;  %vm8053_vm2 = vcmask (!%p216_p2), 1031168   ;;  %vm8049_vm3 = vcmask (!%p216_p2), 1042432  }
   0x6   : > { %219 = sbr.rel (%p216_p2) target bundleno = 1510 (0x5e6), region = 40  ;;  %s6407_s28 = smov (!%p216_p2), 126   ;;  %vm8052_vm4 = vcmask (!%p216_p2), 1040384   ;;  %vm8051_vm5 = vcmask (!%p216_p2), 744448   ;;  %vm463_vm6 = vcmask (!%p216_p2), 1045504   ;;  %vm8050_vm7 = vcmask (!%p216_p2), 1043456  }
   0x7   : > { %s6408_s29 = smov (!%p216_p2), 127   ;;  %s6409_s30 = smov (!%p216_p2), 92   ;;  %vm386_vm8 = vcmask (!%p216_p2), 736256   ;;  %vm8048_vm9 = vcmask (!%p216_p2), 1046528   ;;  %vm410_vm10 = vcmask (!%p216_p2), 457728   ;;  %vm483_vm11 = vcmask (!%p216_p2), 1041408  }
   0x8   : > { %s6410_s7 = smov (!%p216_p2), 90   ;;  %s6411_s8 = smov (!%p216_p2), 56   ;;  %vm434_vm12 = vcmask (!%p216_p2), 449536   ;;  %vm453_vm13 = vcmask (!%p216_p2), 441344   ;;  %vm488_vm14 = vcmask (!%p216_p2), 1044480   ;;  %vm6416_vm15 = vmmov (!%p216_p2), 1  }
   0x9   : > { %s6412_s9 = smov (!%p216_p2), 55   ;;  %s6413_s10 = smov (!%p216_p2), 54  }
   0xa   : > { %s6420_s25 = smov (!%p216_p2), 112   ;;  %s6428_s11 = smov (!%p216_p2), 48  }
   0xb   : > { %s6429_s12 = smov (!%p216_p2), 104   ;;  %s6430_s13 = smov (!%p216_p2), 32  }
   0xc   : > { %s6431_s14 = smov (!%p216_p2), 88   ;;  %s6432_s15 = smov (!%p216_p2), 16  }
   0xd   : > { %s8097_s22 = smov (!%p250_p3, %s4849_s22), 1  ;;  %s6433_s16 = smov 124  }
   0xe   : > { %s5912_s23 = smul.u32 44, %s8097_s22  ;;  %s5049_s19 = sshll.u32 %s8097_s22, 6 }
   0xf   : > { %s7390_s24 = scalar_lea.vmem %s8046_s5, %s5049_s19  ;;  %s6434_s17 = smov 116  }
  0x10   : > { %s6498_s26 = scalar_lea.vmem %s8041_s0, %s5912_s23  ;;  %s6435_s18 = smov 72  }
  0x11   : > { %v6501_v0 = vld [vmem:[%s6498_s26] sm:$0x77]  ;;  %v6504_v1 = vld [vmem:[%s6498_s26 + $0x8] sm:$0x77]  ;;  %v6509_v3 = vld [vmem:[%s6498_s26 + $0x10] sm:$0x77] }
  0x12   : > { %v350_v2 = vcombine.low %v6504_v1, %v6504_v1  ;;  %v6513_v4 = vcombine.high %v6501_v0, %v6501_v0  ;;  %v303_v5 = vrot.slane %v6504_v1, 2  ;;  %v279_v6 = vrot.slane %v6504_v1, 5  ;;  %v6527_v13 = vld [vmem:[%s6498_s26 + $0x10] sm:$0x7]  ;;  %s6436_s19 = smov 100   ;;  %s6437_s20 = smov 108  }
  0x13   : > { %v327_v7 = vrot.slane %v6504_v1, 7  ;;  %v6520_v8 = vcombine.high %v6504_v1, %v6504_v1  ;;  %v6531_v14 = vcombine.high %v6509_v3, %v6509_v3  ;;  %v301_v17 = vrot.slane %v6501_v0, 2  ;;  %s6439_s23 = smov 68  }
  0x14   : > { %v5964_v9 = vpack.i.bf16 %v350_v2, %v6501_v0  ;;  %v302_v10 = vrot.slane %v6513_v4, 2  ;;  %v278_v11 = vrot.slane %v6513_v4, 5  ;;  %v326_v12 = vrot.slane %v6513_v4, 7 }
  0x15   : > { %v304_v18 = vrot.slane %v6520_v8, 2  ;;  %v305_v20 = vrot.slane %v6527_v13, 2  ;;  %v694_v21 = vrot.slane %v6531_v14, 2  ;;  %v325_v23 = vrot.slane %v6501_v0, 7 }
  0x16   : > { %5965 = vrot.lane.b32.xlu1 %v5964_v9, %s6406_s27  ;;  %v5969_v15 = vpack.i.bf16 %v303_v5, %v302_v10  ;;  %v5979_v16 = vpack.i.bf16 %v279_v6, %v278_v11  ;;  %v5974_v19 = vpack.i.bf16 %v327_v7, %v326_v12  ;;  %v328_v24 = vrot.slane %v6520_v8, 7  ;;  %v6591_v7 = vld [vmem:[%s6498_s26 + $0x18] sm:$0x77] }
  0x17   : > { %v5984_v22 = vpack.i.bf16 %v304_v18, %v301_v17  ;;  %v5989_v25 = vpack.i.bf16 %v694_v21, %v305_v20  ;;  %v329_v26 = vrot.slane %v6527_v13, 7  ;;  %v717_v27 = vrot.slane %v6531_v14, 7 }
  0x18   : > { %5970 = vrot.lane.b32.xlu0 %v5969_v15, %s6407_s28  ;;  %v5994_v28 = vpack.i.bf16 %v328_v24, %v325_v23  ;;  %v281_v29 = vrot.slane %v6527_v13, 5  ;;  %v671_v30 = vrot.slane %v6531_v14, 5  ;;  %v277_v32 = vrot.slane %v6501_v0, 5 }
  0x19   : > { %v5999_v31 = vpack.i.bf16 %v717_v27, %v329_v26  ;;  %v280_v33 = vrot.slane %v6520_v8, 5  ;;  %v351_v35 = vcombine.low %v6527_v13, %v6527_v13  ;;  %v349_v37 = vcombine.low %v6501_v0, %v6501_v0 }
  0x1a   : > { %5980 = vrot.lane.b32.xlu1 %v5979_v16, %s6408_s29  ;;  %v6009_v34 = vpack.i.bf16 %v671_v30, %v281_v29  ;;  %v371_v39 = vrot.slane %v6501_v0, 1  ;;  %v374_v40 = vrot.slane %v6520_v8, 1  ;;  %v372_v42 = vrot.slane %v6513_v4, 1 }
  0x1b   : > { %v6004_v36 = vpack.i.bf16 %v280_v33, %v277_v32  ;;  %v6019_v38 = vpack.i.bf16 %v6509_v3, %v351_v35  ;;  %v6014_v41 = vpack.i.bf16 %v6504_v1, %v349_v37  ;;  %v373_v43 = vrot.slane %v6504_v1, 1  ;;  %v662_v32 = vld [vmem:[%s6498_s26 + $0x20] sm:$0x7] }
  0x1c   : > { %5975 = vrot.lane.b32.xlu0 %v5974_v19, %s6409_s30  ;;  %v6029_v44 = vpack.i.bf16 %v374_v40, %v371_v39  ;;  %v396_v45 = vrot.slane %v6513_v4, 6  ;;  %v397_v46 = vrot.slane %v6504_v1, 6  ;;  %v375_v48 = vrot.slane %v6527_v13, 1 }
  0x1d   : > { %v6024_v47 = vpack.i.bf16 %v373_v43, %v372_v42  ;;  %v761_v49 = vrot.slane %v6531_v14, 1  ;;  %v399_v51 = vrot.slane %v6527_v13, 6  ;;  %v784_v52 = vrot.slane %v6531_v14, 6 }
  0x1e   : > { %5985 = vrot.lane.b32.xlu1 %v5984_v22, %s6407_s28  ;;  %v6039_v50 = vpack.i.bf16 %v397_v46, %v396_v45  ;;  %v395_v54 = vrot.slane %v6501_v0, 6  ;;  %v398_v55 = vrot.slane %v6520_v8, 6  ;;  %v419_v57 = vrot.slane %v6501_v0, 3 }
  0x1f   : > { %v6034_v53 = vpack.i.bf16 %v761_v49, %v375_v48  ;;  %v6049_v56 = vpack.i.bf16 %v784_v52, %v399_v51  ;;  %v422_v58 = vrot.slane %v6520_v8, 3  ;;  %v420_v60 = vrot.slane %v6513_v4, 3 }
  0x20   : > { %5990 = vrot.lane.b32.xlu0 %v5989_v25, %s6407_s28  ;;  %v6044_v59 = vpack.i.bf16 %v398_v55, %v395_v54  ;;  %v421_v61 = vrot.slane %v6504_v1, 3  ;;  %v423_v2 = vrot.slane %v6527_v13, 3  ;;  %v807_v5 = vrot.slane %v6531_v14, 3 }
  0x21   : > { %v6059_v62 = vpack.i.bf16 %v422_v58, %v419_v57  ;;  %v6069_v6 = vpack.i.bf16 %v6504_v1, %v6513_v4  ;;  %v6079_v10 = vpack.i.bf16 %v6531_v14, %v6527_v13  ;;  %v716_v11 = vrot.slane %v6509_v3, 7 }
  0x22   : > { %5995 = vrot.lane.b32.xlu1 %v5994_v28, %s6409_s30  ;;  %v6054_v63 = vpack.i.bf16 %v421_v61, %v420_v60  ;;  %v6064_v9 = vpack.i.bf16 %v807_v5, %v423_v2  ;;  %v718_v12 = vrot.slane %v6591_v7, 7  ;;  %v6074_v15 = vpack.i.bf16 %v6520_v8, %v6501_v0 }
  0x23   : > { %v693_v16 = vrot.slane %v6509_v3, 2  ;;  %v695_v17 = vrot.slane %v6591_v7, 2  ;;  %v6414_v18 = vmov 0.0   ;;  %v739_v19 = vcombine.low %v6509_v3, %v6509_v3 }
  0x24   : > { %6000 = vrot.lane.b32.xlu0 %v5999_v31, %s6409_s30  ;;  %574 = vmatprep.mubr.f32.mxu0 %v6414_v18  ;;  %v6089_v13 = vpack.i.bf16 %v716_v11, %v718_v12  ;;  %v740_v20 = vcombine.low %v6591_v7, %v6591_v7  ;;  %v670_v22 = vrot.slane %v6509_v3, 5  ;;  %v672_v23 = vrot.slane %v6591_v7, 5 }
  0x25   : > { %645 = vmatprep.mubr.f32.mxu1 %v6414_v18  ;;  %v6084_v21 = vpack.i.bf16 %v693_v16, %v695_v17  ;;  %v783_v25 = vrot.slane %v6509_v3, 6  ;;  %v785_v26 = vrot.slane %v6591_v7, 6  ;;  %v760_v28 = vrot.slane %v6509_v3, 1 }
  0x26   : > { %6010 = vrot.lane.b32.xlu1 %v6009_v34, %s6408_s29  ;;  %v6099_v24 = vpack.i.bf16 %v739_v19, %v740_v20  ;;  %v6094_v27 = vpack.i.bf16 %v670_v22, %v672_v23  ;;  %v762_v29 = vrot.slane %v6591_v7, 1  ;;  %v6623_v31 = vcombine.high %v6591_v7, %v6591_v7 }
  0x27   : > { %v6109_v30 = vpack.i.bf16 %v783_v25, %v785_v26  ;;  %v806_v34 = vrot.slane %v6509_v3, 3  ;;  %v808_v35 = vrot.slane %v6591_v7, 3  ;;  %v741_v43 = vcombine.low %v662_v32, %v662_v32 }
  0x28   : > { %6005 = vrot.lane.b32.xlu0 %v6004_v36, %s6408_s29  ;;  %v6104_v33 = vpack.i.bf16 %v760_v28, %v762_v29  ;;  %v6119_v36 = vpack.i.bf16 %v6509_v3, %v6591_v7  ;;  %v719_v37 = vrot.slane %v6623_v31, 7  ;;  %v696_v40 = vrot.slane %v6623_v31, 2 }
  0x29   : > { %v6114_v39 = vpack.i.bf16 %v806_v34, %v808_v35  ;;  %v673_v45 = vrot.slane %v6623_v31, 5  ;;  %v674_v46 = vrot.slane %v662_v32, 5  ;;  %v786_v48 = vrot.slane %v6623_v31, 6 }
  0x2a   : > { %6020 = vrot.lane.b32.xlu1 %v6019_v38, %s6406_s27  ;;  %v720_v38 = vrot.slane %v662_v32, 7  ;;  %v787_v49 = vrot.slane %v662_v32, 6  ;;  %v763_v52 = vrot.slane %v6623_v31, 1  ;;  %v809_v57 = vrot.slane %v6623_v31, 3 }
  0x2b   : > { %v6134_v51 = vpack.i.bf16 %v674_v46, %v673_v45  ;;  %v810_v58 = vrot.slane %v662_v32, 3  ;;  %v6415_v29 = vmov 0  }
  0x2c   : > { %6015 = vrot.lane.b32.xlu0 %v6014_v41, %s6406_s27  ;;  %v697_v41 = vrot.slane %v662_v32, 2  ;;  %v6129_v42 = vpack.i.bf16 %v720_v38, %v719_v37  ;;  %v6149_v54 = vpack.i.bf16 %v787_v49, %v786_v48  ;;  %6204 = vset.pattern.permute.xlu1 %v6415_v29 }
  0x2d   : > { %6385 = vset.pattern.permute.xlu0 %v6415_v29 }
  0x2e   : > { %6030 = vrot.lane.b32.xlu1 %v6029_v44, %s6410_s7  ;;  %v6124_v44 = vpack.i.bf16 %v697_v41, %v696_v40 }
  0x30   : > { %6025 = vrot.lane.b32.xlu0 %v6024_v47, %s6410_s7  ;;  %v6139_v47 = vpack.i.bf16 %v741_v43, %v6591_v7 }
  0x32   : > { %6040 = vrot.lane.b32.xlu1 %v6039_v50, %s6411_s8  ;;  %v6642_v50 = vld [vmem:[%s6498_s26 + $0x20] sm:$0x77] }
  0x33   : > { %v6649_v55 = vcombine.high %v6642_v50, %v6642_v50  ;;  %v1052_v60 = vrot.slane %v6642_v50, 7  ;;  %v1034_v11 = vrot.slane %v6642_v50, 5  ;;  %v1069_v19 = vrot.slane %v6642_v50, 1 }
  0x34   : > { %6035 = vrot.lane.b32.xlu0 %v6034_v53, %s6410_s7  ;;  %v764_v53 = vrot.slane %v662_v32, 1  ;;  %v1079_v26 = vrot.slane %v6642_v50, 6  ;;  %v1092_v28 = vrot.slane %v6642_v50, 3 }
  0x35   : > { %v1053_v61 = vrot.slane %v6649_v55, 7  ;;  %v1044_v2 = vrot.slane %v6649_v55, 2  ;;  %v1035_v12 = vrot.slane %v6649_v55, 5  ;;  %v1080_v16 = vrot.slane %v6649_v55, 6 }
  0x36   : > { %6050 = vrot.lane.b32.xlu1 %v6049_v56, %s6411_s8  ;;  %v6144_v56 = vpack.i.bf16 %v764_v53, %v763_v52  ;;  %v1070_v20 = vrot.slane %v6649_v55, 1  ;;  %v1093_v22 = vrot.slane %v6649_v55, 3 }
  0x37   : > { %v6169_v5 = vpack.i.bf16 %v1053_v61, %v1052_v60 }
  0x38   : > { %6045 = vrot.lane.b32.xlu0 %v6044_v59, %s6411_s8  ;;  %v6159_v59 = vpack.i.bf16 %v662_v32, %v6623_v31 }
  0x3a   : > { %6060 = vrot.lane.b32.xlu1 %v6059_v62, %s6412_s9  ;;  %v6154_v62 = vpack.i.bf16 %v810_v58, %v809_v57 }
  0x3c   : > { %6055 = vrot.lane.b32.xlu0 %v6054_v63, %s6412_s9  ;;  %v1043_v63 = vrot.slane %v6642_v50, 2 }
  0x3e   : > { %6070 = vrot.lane.b32.xlu1 %v6069_v6, %s6413_s10  ;;  %v1061_v6 = vcombine.low %v6642_v50, %v6642_v50 }
  0x40   : > { %6065 = vrot.lane.b32.xlu0 %v6064_v9, %s6412_s9  ;;  %v1030_v9 = vld [vmem:[%s6498_s26 + $0x28] sm:$0x7]  ;;  %s6421_s26 = smov 40  }
  0x41   : > { %v1081_v17 = vrot.slane %v1030_v9, 6  ;;  %v1094_v23 = vrot.slane %v1030_v9, 3 }
  0x42   : > { %6080 = vrot.lane.b32.xlu1 %v6079_v10, %s6413_s10  ;;  %v6164_v10 = vpack.i.bf16 %v1044_v2, %v1043_v63 }
  0x43   : > { %v6194_v25 = vpack.i.bf16 %v1094_v23, %v1093_v22 }
  0x44   : > { %6075 = vrot.lane.b32.xlu0 %v6074_v15, %s6413_s10  ;;  %v6179_v15 = vpack.i.bf16 %v6642_v50, %v1061_v6 }
  0x46   : > { %6090 = vrot.lane.b32.xlu1 %v6089_v13, %s6409_s30  ;;  %v6174_v13 = vpack.i.bf16 %v1035_v12, %v1034_v11 }
  0x48   : > { %6085 = vrot.lane.b32.xlu0 %v6084_v21, %s6407_s28  ;;  %v6189_v21 = vpack.i.bf16 %v1081_v17, %v1080_v16 }
  0x4a   : > { %6100 = vrot.lane.b32.xlu1 %v6099_v24, %s6406_s27  ;;  %v6184_v24 = vpack.i.bf16 %v1070_v20, %v1069_v19 }
  0x4c   : > { %6095 = vrot.lane.b32.xlu0 %v6094_v27, %s6408_s29  ;;  %v6199_v27 = vpack.i.bf16 %v1030_v9, %v6649_v55 }
  0x4e   : > { %6110 = vrot.lane.b32.xlu1 %v6109_v30, %s6411_s8  ;;  %v266_v30 = vld [vmem:[%s8043_s2] sm:$0xff] }
  0x50   : > { %6105 = vrot.lane.b32.xlu0 %v6104_v33, %s6410_s7 }
  0x52   : > { %6120 = vrot.lane.b32.xlu1 %v6119_v36, %s6413_s10 }
  0x54   : > { %6115 = vrot.lane.b32.xlu0 %v6114_v39, %s6412_s9 }
  0x56   : > { %6130 = vrot.lane.b32.xlu1 %v6129_v42, %s6409_s30 }
  0x58   : > { %6125 = vrot.lane.b32.xlu0 %v6124_v44, %s6407_s28 }
  0x5a   : > { %6140 = vrot.lane.b32.xlu1 %v6139_v47, %s6406_s27 }
  0x5c   : > { %6135 = vrot.lane.b32.xlu0 %v6134_v51, %s6408_s29 }
  0x5e   : > { %6150 = vrot.lane.b32.xlu1 %v6149_v54, %s6411_s8 }
  0x60   : > { %6145 = vrot.lane.b32.xlu0 %v6144_v56, %s6410_s7 }
  0x62   : > { %6160 = vrot.lane.b32.xlu1 %v6159_v59, %s6413_s10 }
  0x64   : > { %6155 = vrot.lane.b32.xlu0 %v6154_v62, %s6412_s9 }
  0x66   : > { %6170 = vrot.lane.b32.xlu1 %v6169_v5, %s6409_s30 }
  0x68   : > { %6165 = vrot.lane.b32.xlu0 %v6164_v10, %s6407_s28 }
  0x6a   : > { %6180 = vrot.lane.b32.xlu1 %v6179_v15, %s6406_s27 }
  0x6c   : > { %6175 = vrot.lane.b32.xlu0 %v6174_v13, %s6408_s29 }
  0x6e   : > { %6190 = vrot.lane.b32.xlu1 %v6189_v21, %s6411_s8 }
  0x70   : > { %6185 = vrot.lane.b32.xlu0 %v6184_v24, %s6410_s7 }
  0x72   : > { %6195 = vrot.lane.b32.xlu1 %v6194_v25, %s6412_s9 }
  0x74   : > { %1082 = vrot.lane.b32.xlu0 %v1079_v26, %s6411_s8 }
  0x76   : > { %6200 = vrot.lane.b32.xlu1 %v6199_v27, %s6413_s10 }
  0x78   : > { %1095 = vrot.lane.b32.xlu0 %v1092_v28, %s6412_s9 }
  0x7a   : > { %495 = vperm.xlu1 %6204, %v266_v30  }
  0x7c   : > { %1105 = vrot.lane.b32.xlu0 %v6642_v50, %s6413_s10 }
  0x88   : > { %v6690_v32 = vpop.permute.xlu1 %5965 }
  0x89   : > { %v5968_v49 = vunpack.i.h.bf16 %v6690_v32  ;;  %v5967_v51 = vunpack.i.l.bf16 %v6690_v32 }
  0x8a   : > { %v5971_v33 = vpop.permute.xlu0 %5970 }
  0x8b   : > { %v5973_v43 = vunpack.i.h.bf16 %v5971_v33  ;;  %v5972_v44 = vunpack.i.l.bf16 %v5971_v33  ;;  %v364_v63 = vsel %vm8051_vm5, %v5967_v51, %v5968_v49 }
  0x8c   : > { %v6692_v34 = vpop.permute.xlu1 %5980 }
  0x8d   : > { %v5983_v38 = vunpack.i.h.bf16 %v6692_v34  ;;  %v5982_v39 = vunpack.i.l.bf16 %v6692_v34  ;;  %v318_v53 = vsel %vm8053_vm2, %v5972_v44, %v5973_v43 }
  0x8e   : > { %v5976_v35 = vpop.permute.xlu0 %5975 }
  0x8f   : > { %v5978_v40 = vunpack.i.h.bf16 %v5976_v35  ;;  %v5977_v41 = vunpack.i.l.bf16 %v5976_v35  ;;  %v294_v47 = vsel %vm292_vm1, %v5982_v39, %v5983_v38 }
  0x90   : > { %v5986_v36 = vpop.permute.xlu1 %5985  ;;  %v460_v57 = vsel %vm8049_vm3, %v6513_v4, %v294_v47 }
  0x91   : > { %v342_v48 = vsel %vm340_vm0, %v5977_v41, %v5978_v40  ;;  %v5988_v60 = vunpack.i.h.bf16 %v5986_v36  ;;  %v5987_v61 = vunpack.i.l.bf16 %v5986_v36  ;;  %v465_v6 = vsel %vm463_vm6, %v460_v57, %v318_v53 }
  0x92   : > { %v6694_v37 = vpop.permute.xlu0 %5990  ;;  %v470_v58 = vsel %vm8052_vm4, %v318_v53, %v342_v48 }
  0x93   : > { %v5992_v2 = vunpack.i.l.bf16 %v6694_v37  ;;  %v475_v9 = vsel %vm8050_vm7, %v470_v58, %v364_v63  ;;  %v317_v22 = vsel %vm8053_vm2, %v5987_v61, %v5972_v44  ;;  %v319_v23 = vsel %vm8053_vm2, %v5973_v43, %v5988_v60 }
  0x94   : > { %v5996_v42 = vpop.permute.xlu1 %5995 }
  0x95   : > { %v5998_v54 = vunpack.i.h.bf16 %v5996_v42  ;;  %v5997_v56 = vunpack.i.l.bf16 %v5996_v42  ;;  %v320_v28 = vsel %vm8053_vm2, %v5988_v60, %v5992_v2 }
  0x96   : > { %v6698_v45 = vpop.permute.xlu0 %6000 }
  0x97   : > { %v343_v4 = vsel %vm340_vm0, %v5978_v40, %v5998_v54  ;;  %v341_v10 = vsel %vm340_vm0, %v5997_v56, %v5977_v41  ;;  %v6002_v11 = vunpack.i.l.bf16 %v6698_v45 }
  0x98   : > { %v6700_v46 = vpop.permute.xlu1 %6010  ;;  %v469_v27 = vsel %vm8052_vm4, %v317_v22, %v341_v10  ;;  %v471_v33 = vsel %vm8052_vm4, %v319_v23, %v343_v4 }
  0x99   : > { %v6012_v15 = vunpack.i.l.bf16 %v6700_v46  ;;  %v344_v32 = vsel %vm340_vm0, %v5998_v54, %v6002_v11 }
  0x9a   : > { %v6006_v52 = vpop.permute.xlu0 %6005  ;;  %v472_v34 = vsel %vm8052_vm4, %v320_v28, %v344_v32 }
  0x9b   : > { %v6007_v62 = vunpack.i.l.bf16 %v6006_v52  ;;  %v6008_v16 = vunpack.i.h.bf16 %v6006_v52 }
  0x9c   : > { %v6712_v59 = vpop.permute.xlu1 %6020 }
  0x9d   : > { %v6022_v17 = vunpack.i.l.bf16 %v6712_v59  ;;  %v293_v21 = vsel %vm292_vm1, %v6007_v62, %v5982_v39  ;;  %v296_v39 = vsel %vm292_vm1, %v6008_v16, %v6012_v15  ;;  %v295_v41 = vsel %vm292_vm1, %v5983_v38, %v6008_v16 }
  0x9e   : > { %v6016_v5 = vpop.permute.xlu0 %6015  ;;  %v459_v36 = vsel %vm8049_vm3, %v6501_v0, %v293_v21  ;;  %v462_v56 = vsel %vm8049_vm3, %v6520_v8, %v296_v39  ;;  %v461_v60 = vsel %vm8049_vm3, %v6504_v1, %v295_v41 }
  0x9f   : > { %v6017_v12 = vunpack.i.l.bf16 %v6016_v5  ;;  %v6018_v13 = vunpack.i.h.bf16 %v6016_v5  ;;  %v464_v54 = vsel %vm463_vm6, %v459_v36, %v317_v22  ;;  %v466_v1 = vsel %vm463_vm6, %v461_v60, %v319_v23 }
  0xa0   : > { %v6031_v19 = vpop.permute.xlu1 %6030 }
  0xa1   : > { %v6032_v20 = vunpack.i.l.bf16 %v6031_v19  ;;  %v6033_v24 = vunpack.i.h.bf16 %v6031_v19  ;;  %v363_v26 = vsel %vm8051_vm5, %v6017_v12, %v5967_v51  ;;  %v366_v40 = vsel %vm8051_vm5, %v6018_v13, %v6022_v17 }
  0xa2   : > { %v6026_v25 = vpop.permute.xlu0 %6025  ;;  %v474_v44 = vsel %vm8050_vm7, %v469_v27, %v363_v26  ;;  %v365_v47 = vsel %vm8051_vm5, %v5968_v49, %v6018_v13  ;;  %v477_v58 = vsel %vm8050_vm7, %v472_v34, %v366_v40 }
  0xa3   : > { %v6028_v29 = vunpack.i.h.bf16 %v6026_v25  ;;  %v6027_v30 = vunpack.i.l.bf16 %v6026_v25  ;;  %v476_v61 = vsel %vm8050_vm7, %v471_v33, %v365_v47 }
  0xa4   : > { %v6731_v35 = vpop.permute.xlu1 %6040 }
  0xa5   : > { %v388_v42 = vsel %vm386_vm8, %v6027_v30, %v6028_v29  ;;  %v6742_v43 = vsel %vm386_vm8, %v6032_v20, %v6027_v30  ;;  %v389_v38 = vsel %vm386_vm8, %v6028_v29, %v6033_v24  ;;  %v6043_v62 = vunpack.i.h.bf16 %v6731_v35 }
  0xa6   : > { %v6746_v48 = vpop.permute.xlu0 %6035  ;;  %v480_v0 = vsel %vm8048_vm9, %v475_v9, %v388_v42  ;;  %v479_v51 = vsel %vm8048_vm9, %v474_v44, %v6742_v43  ;;  %v6042_v63 = vunpack.i.l.bf16 %v6731_v35  ;;  %v481_v5 = vsel %vm8048_vm9, %v476_v61, %v389_v38 }
  0xa7   : > { %v6037_v52 = vunpack.i.l.bf16 %v6746_v48  ;;  %v5594_v53 = vpack.c.bf16 %v480_v0, %v465_v6  ;;  %v5596_v57 = vpack.c.bf16 %v479_v51, %v464_v54  ;;  %v467_v6 = vsel %vm463_vm6, %v462_v56, %v320_v28 }
  0xa8   : > { %v6757_v49 = vpop.permute.xlu1 %6050  ;;  %v5606_v11 = vpack.c.bf16 %v481_v5, %v466_v1  ;;  %v412_v12 = vsel %vm410_vm10, %v6042_v63, %v6043_v62 }
  0xa9   : > { %5595 = vmatprep.subr.bf16.mxu0 %v5594_v53  ;;  %v390_v2 = vsel %vm386_vm8, %v6033_v24, %v6037_v52  ;;  %v6052_v13 = vunpack.i.l.bf16 %v6757_v49  ;;  %v485_v19 = vsel %vm483_vm11, %v388_v42, %v412_v12 }
  0xaa   : > { %v6046_v8 = vpop.permute.xlu0 %6045  ;;  %5597 = vmatpush1.bf16.msra.mxu0 %v5596_v57  ;;  %v482_v9 = vsel %vm8048_vm9, %v477_v58, %v390_v2  ;;  %vm6785_vm9 = vmpackc.low %vm8049_vm3, %vm6416_vm15  ;;  %vm498_vm15 = vcmask 220160  }
  0xab   : > { %v5604_v4 = vpack.c.bf16 %v482_v9, %v467_v6  ;;  %v6048_v20 = vunpack.i.h.bf16 %v6046_v8  ;;  %v6047_v21 = vunpack.i.l.bf16 %v6046_v8  ;;  %v5993_v9 = vunpack.i.h.bf16 %v6694_v37  ;;  %v6824_v37 = vld [vmem:[%s8042_s1] sm:$0xff] }
  0xac   : > { %v6061_v10 = vpop.permute.xlu1 %6060 }
  0xad   : > { %5605 = vmatprep.subr.bf16.mxu1 %v5604_v4  ;;  %v6063_v23 = vunpack.i.h.bf16 %v6061_v10  ;;  %v6062_v24 = vunpack.i.l.bf16 %v6061_v10  ;;  %v411_v32 = vsel %vm410_vm10, %v6047_v21, %v6042_v63  ;;  %v413_v33 = vsel %vm410_vm10, %v6043_v62, %v6048_v20 }
  0xae   : > { %v6056_v15 = vpop.permute.xlu0 %6055  ;;  %5607 = vmatpush1.bf16.msra.mxu1 %v5606_v11  ;;  %v414_v35 = vsel %vm410_vm10, %v6048_v20, %v6052_v13  ;;  %v484_v34 = vsel %vm483_vm11, %v6742_v43, %v411_v32  ;;  %v486_v52 = vsel %vm483_vm11, %v389_v38, %v413_v33  ;;  %v6003_v11 = vunpack.i.h.bf16 %v6698_v45 }
  0xaf   : > { %v6058_v16 = vunpack.i.h.bf16 %v6056_v15  ;;  %v6057_v17 = vunpack.i.l.bf16 %v6056_v15  ;;  %v487_v56 = vsel %vm483_vm11, %v390_v2, %v414_v35  ;;  %v6013_v13 = vunpack.i.h.bf16 %v6700_v46 }
  0xb0   : > { %v6071_v22 = vpop.permute.xlu1 %6070  ;;  %v6038_v35 = vunpack.i.h.bf16 %v6746_v48 }
  0xb1   : > { %v436_v25 = vsel %vm434_vm12, %v6057_v17, %v6058_v16  ;;  %v6073_v26 = vunpack.i.h.bf16 %v6071_v22  ;;  %v6072_v27 = vunpack.i.l.bf16 %v6071_v22  ;;  %v435_v41 = vsel %vm434_vm12, %v6062_v24, %v6057_v17 }
  0xb2   : > { %v6774_v28 = vpop.permute.xlu0 %6065  ;;  %v490_v29 = vsel %vm488_vm14, %v485_v19, %v436_v25  ;;  %v437_v42 = vsel %vm434_vm12, %v6058_v16, %v6063_v23  ;;  %v489_v58 = vsel %vm488_vm14, %v484_v34, %v435_v41  ;;  %v6023_v19 = vunpack.i.h.bf16 %v6712_v59 }
  0xb3   : > { %v6067_v30 = vunpack.i.l.bf16 %v6774_v28  ;;  %v455_v36 = vsel %vm453_vm13, %v6072_v27, %v6073_v26  ;;  %v491_v60 = vsel %vm488_vm14, %v486_v52, %v437_v42  ;;  %v6068_v42 = vunpack.i.h.bf16 %v6774_v28 }
  0xb4   : > { %v6782_v39 = vpop.permute.xlu1 %6080  ;;  %v5598_v47 = vpack.c.bf16 %v455_v36, %v490_v29  ;;  %v6053_v36 = vunpack.i.h.bf16 %v6757_v49 }
  0xb5   : > { %v6082_v44 = vunpack.i.l.bf16 %v6782_v39  ;;  %v438_v0 = vsel %vm434_vm12, %v6063_v23, %v6067_v30 }
  0xb6   : > { %v6076_v51 = vpop.permute.xlu0 %6075  ;;  %5600 = vmatprep.subr.msk.bf16.mxu0 %vm6785_vm9, %v5598_v47  ;;  %v492_v38 = vsel %vm488_vm14, %v487_v56, %v438_v0 }
  0xb7   : > { %v6078_v53 = vunpack.i.h.bf16 %v6076_v51  ;;  %v6077_v54 = vunpack.i.l.bf16 %v6076_v51  ;;  %v6083_v51 = vunpack.i.h.bf16 %v6782_v39 }
  0xb8   : > { %v6799_v57 = vpop.permute.xlu1 %6090 }
  0xb9   : > { %v454_v61 = vsel %vm453_vm13, %v6077_v54, %v6072_v27  ;;  %v456_v62 = vsel %vm453_vm13, %v6073_v26, %v6078_v53  ;;  %v457_v43 = vsel %vm453_vm13, %v6078_v53, %v6082_v44  ;;  %v6093_v63 = vunpack.i.h.bf16 %v6799_v57 }
  0xba   : > { %v6808_v5 = vpop.permute.xlu0 %6085  ;;  %v5601_v8 = vpack.c.bf16 %v454_v61, %v489_v58  ;;  %v5608_v2 = vpack.c.bf16 %v457_v43, %v492_v38  ;;  %v5611_v6 = vpack.c.bf16 %v456_v62, %v491_v60  ;;  %v6092_v4 = vunpack.i.l.bf16 %v6799_v57 }
  0xbb   : > { %v6088_v1 = vunpack.i.h.bf16 %v6808_v5  ;;  %v6087_v10 = vunpack.i.l.bf16 %v6808_v5  ;;  %v731_v20 = vsel %vm340_vm0, %v6093_v63, %v6003_v11 }
  0xbc   : > { %v6815_v12 = vpop.permute.xlu1 %6100  ;;  %5603 = vmatpush1.bf16.msk.msra.mxu0 %vm6785_vm9, %v5601_v8  ;;  %5610 = vmatprep.subr.msk.bf16.mxu1 %vm6785_vm9, %v5608_v2  ;;  %v732_v22 = vsel %vm340_vm0, %v6003_v11, %v6092_v4 }
  0xbd   : > { %v708_v15 = vsel %vm8053_vm2, %v6088_v1, %v5993_v9  ;;  %v6103_v16 = vunpack.i.h.bf16 %v6815_v12  ;;  %v6102_v45 = vunpack.i.l.bf16 %v6815_v12  ;;  %5613 = vmatpush1.bf16.msk.msra.mxu1 %vm6785_vm9, %v5611_v6  ;;  %v709_v17 = vsel %vm8053_vm2, %v5993_v9, %v6087_v10 }
  0xbe   : > { %v6837_v21 = vpop.permute.xlu0 %6095  ;;  %v851_v23 = vsel %vm8052_vm4, %v708_v15, %v731_v20  ;;  %v852_v27 = vsel %vm8052_vm4, %v709_v17, %v732_v22 }
  0xbf   : > { %v6098_v24 = vunpack.i.h.bf16 %v6837_v21  ;;  %v6097_v25 = vunpack.i.l.bf16 %v6837_v21  ;;  %4861 = vmatmul.mubr.msk.f32.vlgmr.msra.gmra.mrb[0].mxu0 %vm498_vm15, %v6824_v37  ;;  %v752_v46 = vsel %vm8051_vm5, %v6103_v16, %v6023_v19  ;;  %v753_v59 = vsel %vm8051_vm5, %v6023_v19, %v6102_v45 }
  0xc0   : > { %v6851_v26 = vpop.permute.xlu1 %6110  ;;  %4864 = vmatmul.mubr.msk.f32.vlgmr.msra.gmra.mrb[0].mxu1 %vm498_vm15, %v6824_v37  ;;  %943 = vmatprep.mubr.f32.mxu0 %v6414_v18  ;;  %v855_v34 = vsel %vm8050_vm7, %v851_v23, %v752_v46  ;;  %v856_v49 = vsel %vm8050_vm7, %v852_v27, %v753_v59 }
  0xc1   : > { %v685_v29 = vsel %vm292_vm1, %v6098_v24, %v6013_v13  ;;  %v686_v30 = vsel %vm292_vm1, %v6013_v13, %v6097_v25  ;;  %v6113_v32 = vunpack.i.h.bf16 %v6851_v26  ;;  %v6112_v33 = vunpack.i.l.bf16 %v6851_v26  ;;  %1014 = vmatprep.mubr.f32.mxu1 %v6414_v18 }
  0xc2   : > { %v6866_v41 = vpop.permute.xlu0 %6105  ;;  %v844_v0 = vsel %vm8049_vm3, %v6531_v14, %v686_v30  ;;  %v843_v48 = vsel %vm8049_vm3, %v6509_v3, %v685_v29  ;;  %vm8056_vm3 = vcmask 1046528  }
  0xc3   : > { %v6108_v44 = vunpack.i.h.bf16 %v6866_v41  ;;  %v6107_v47 = vunpack.i.l.bf16 %v6866_v41  ;;  %v798_v28 = vsel %vm410_vm10, %v6113_v32, %v6053_v36  ;;  %v799_v53 = vsel %vm410_vm10, %v6053_v36, %v6112_v33  ;;  %vm8057_vm7 = vmmov %vm8056_vm3 }
  0xc4   : > { %v6877_v52 = vpop.permute.xlu1 %6120  ;;  %v848_v3 = vsel %vm463_vm6, %v844_v0, %v709_v17  ;;  %v847_v38 = vsel %vm463_vm6, %v843_v48, %v708_v15 }
  0xc5   : > { %v775_v54 = vsel %vm386_vm8, %v6108_v44, %v6038_v35  ;;  %v776_v14 = vsel %vm386_vm8, %v6038_v35, %v6107_v47  ;;  %v6123_v39 = vunpack.i.h.bf16 %v6877_v52  ;;  %v6122_v61 = vunpack.i.l.bf16 %v6877_v52 }
  0xc6   : > { %v6889_v56 = vpop.permute.xlu0 %6115  ;;  %v860_v58 = vsel %vm8056_vm3, %v856_v49, %v776_v14  ;;  %v859_v60 = vsel %vm8057_vm7, %v855_v34, %v775_v54  ;;  %v863_v63 = vsel %vm483_vm11, %v775_v54, %v798_v28  ;;  %v864_v8 = vsel %vm483_vm11, %v776_v14, %v799_v53 }
  0xc7   : > { %v6118_v62 = vunpack.i.h.bf16 %v6889_v56  ;;  %v6117_v43 = vunpack.i.l.bf16 %v6889_v56  ;;  %v5614_v2 = vpack.c.bf16 %v860_v58, %v848_v3  ;;  %v5616_v9 = vpack.c.bf16 %v859_v60, %v847_v38 }
  0xc8   : > { %v6131_v6 = vpop.permute.xlu1 %6130  ;;  %v839_v13 = vsel %vm453_vm13, %v6123_v39, %v6083_v51  ;;  %v840_v22 = vsel %vm453_vm13, %v6083_v51, %v6122_v61  ;;  %vm8058_vm3 = vcmask 1042432  }
  0xc9   : > { %v821_v1 = vsel %vm434_vm12, %v6118_v62, %v6068_v42  ;;  %v822_v11 = vsel %vm434_vm12, %v6068_v42, %v6117_v43  ;;  %v6133_v16 = vunpack.i.h.bf16 %v6131_v6  ;;  %v6132_v17 = vunpack.i.l.bf16 %v6131_v6  ;;  %5615 = vmatprep.subr.bf16.mxu0 %v5614_v2  ;;  %vm8059_vm7 = vmmov %vm8058_vm3 }
  0xca   : > { %v867_v19 = vsel %vm488_vm14, %v863_v63, %v821_v1  ;;  %v6126_v15 = vpop.permute.xlu0 %6125  ;;  %v868_v20 = vsel %vm488_vm14, %v864_v8, %v822_v11  ;;  %5617 = vmatpush1.bf16.msra.mxu0 %v5616_v9 }
  0xcb   : > { %v5621_v23 = vpack.c.bf16 %v839_v13, %v867_v19  ;;  %v6128_v24 = vunpack.i.h.bf16 %v6126_v15  ;;  %v6127_v46 = vunpack.i.l.bf16 %v6126_v15  ;;  %v733_v59 = vsel %vm340_vm0, %v6092_v4, %v6132_v17 }
  0xcc   : > { %v734_v27 = vsel %vm340_vm0, %v6132_v17, %v6133_v16  ;;  %v5618_v29 = vpack.c.bf16 %v840_v22, %v868_v20  ;;  %v6141_v30 = vpop.permute.xlu1 %6140 }
  0xcd   : > { %v710_v32 = vsel %vm8053_vm2, %v6087_v10, %v6127_v46  ;;  %v6143_v35 = vunpack.i.h.bf16 %v6141_v30  ;;  %v6142_v36 = vunpack.i.l.bf16 %v6141_v30  ;;  %v711_v42 = vsel %vm8053_vm2, %v6127_v46, %v6128_v24 }
  0xce   : > { %5620 = vmatprep.subr.msk.bf16.mxu0 %vm6785_vm9, %v5618_v29  ;;  %v6136_v44 = vpop.permute.xlu0 %6135  ;;  %v853_v4 = vsel %vm8052_vm4, %v710_v32, %v733_v59  ;;  %v854_v34 = vsel %vm8052_vm4, %v711_v42, %v734_v27 }
  0xcf   : > { %v6138_v0 = vunpack.i.h.bf16 %v6136_v44  ;;  %v6137_v57 = vunpack.i.l.bf16 %v6136_v44  ;;  %5623 = vmatpush1.bf16.msk.msra.mxu0 %vm6785_vm9, %v5621_v23  ;;  %v754_v5 = vsel %vm8051_vm5, %v6102_v45, %v6142_v36  ;;  %v755_v10 = vsel %vm8051_vm5, %v6142_v36, %v6143_v35 }
  0xd0   : > { %v6151_v51 = vpop.permute.xlu1 %6150  ;;  %vm8060_vm5 = vcmask 1043456  }
  0xd1   : > { %v687_v48 = vsel %vm292_vm1, %v6097_v25, %v6137_v57  ;;  %v688_v49 = vsel %vm292_vm1, %v6137_v57, %v6138_v0  ;;  %v6153_v28 = vunpack.i.h.bf16 %v6151_v51  ;;  %v6152_v53 = vunpack.i.l.bf16 %v6151_v51  ;;  %vm8061_vm4 = vmmov %vm8060_vm5 }
  0xd2   : > { %4867 = vmatmul.mubr.msk.f32.vlgmr.msra.gmra.mrb[2].mxu0 %vm498_vm15, %v6824_v37  ;;  %v6146_v54 = vpop.permute.xlu0 %6145  ;;  %v846_v12 = vsel %vm8058_vm3, %v6623_v31, %v688_v49  ;;  %v845_v45 = vsel %vm8059_vm7, %v6591_v7, %v687_v48  ;;  %v858_v21 = vsel %vm8060_vm5, %v854_v34, %v755_v10  ;;  %v857_v25 = vsel %vm8061_vm4, %v853_v4, %v754_v5 }
  0xd3   : > { %v6148_v14 = vunpack.i.h.bf16 %v6146_v54  ;;  %v6147_v39 = vunpack.i.l.bf16 %v6146_v54  ;;  %1195 = vmatprep.mubr.f32.mxu0 %v6414_v18  ;;  %v800_v3 = vsel %vm410_vm10, %v6112_v33, %v6152_v53  ;;  %v801_v58 = vsel %vm410_vm10, %v6152_v53, %v6153_v28 }
  0xd4   : > { %v6161_v60 = vpop.permute.xlu1 %6160  ;;  %v850_v31 = vsel %vm463_vm6, %v846_v12, %v711_v42  ;;  %vm8062_vm5 = vcmask 1046528   ;;  %v849_v26 = vsel %vm463_vm6, %v845_v45, %v710_v32  ;;  %vm8064_vm3 = vcmask 1040384  }
  0xd5   : > { %v777_v7 = vsel %vm386_vm8, %v6107_v47, %v6147_v39  ;;  %v6163_v62 = vunpack.i.h.bf16 %v6161_v60  ;;  %v6162_v38 = vunpack.i.l.bf16 %v6161_v60  ;;  %v778_v63 = vsel %vm386_vm8, %v6147_v39, %v6148_v14  ;;  %vm8063_vm4 = vmmov %vm8062_vm5 }
  0xd6   : > { %v6156_v8 = vpop.permute.xlu0 %6155  ;;  %v862_v2 = vsel %vm8062_vm5, %v858_v21, %v778_v63  ;;  %v861_v33 = vsel %vm8063_vm4, %v857_v25, %v777_v7  ;;  %v865_v6 = vsel %vm483_vm11, %v777_v7, %v800_v3  ;;  %v866_v11 = vsel %vm483_vm11, %v778_v63, %v801_v58  ;;  %vm8065_vm7 = vmmov %vm8064_vm3 }
  0xd7   : > { %v6158_v9 = vunpack.i.h.bf16 %v6156_v8  ;;  %v6157_v1 = vunpack.i.l.bf16 %v6156_v8  ;;  %v841_v41 = vsel %vm453_vm13, %v6122_v61, %v6162_v38  ;;  %v842_v47 = vsel %vm453_vm13, %v6162_v38, %v6163_v62 }
  0xd8   : > { %v5624_v16 = vpack.c.bf16 %v862_v2, %v850_v31  ;;  %v5626_v17 = vpack.c.bf16 %v861_v33, %v849_v26  ;;  %v6171_v13 = vpop.permute.xlu1 %6170  ;;  %vm8066_vm5 = vcmask 744448   ;;  %vm8067_vm4 = vcmask 1042432  }
  0xd9   : > { %v823_v19 = vsel %vm434_vm12, %v6117_v43, %v6157_v1  ;;  %v824_v15 = vsel %vm434_vm12, %v6157_v1, %v6158_v9  ;;  %v6173_v20 = vunpack.i.h.bf16 %v6171_v13  ;;  %v6172_v22 = vunpack.i.l.bf16 %v6171_v13 }
  0xda   : > { %v869_v23 = vsel %vm488_vm14, %v865_v6, %v823_v19  ;;  %5625 = vmatprep.subr.bf16.mxu1 %v5624_v16  ;;  %v6166_v24 = vpop.permute.xlu0 %6165  ;;  %v870_v52 = vsel %vm488_vm14, %v866_v11, %v824_v15 }
  0xdb   : > { %v5631_v61 = vpack.c.bf16 %v841_v41, %v869_v23  ;;  %v6168_v46 = vunpack.i.h.bf16 %v6166_v24  ;;  %v6167_v59 = vunpack.i.l.bf16 %v6166_v24  ;;  %5627 = vmatpush1.bf16.msra.mxu1 %v5626_v17  ;;  %v5628_v27 = vpack.c.bf16 %v842_v47, %v870_v52 }
  0xdc   : > { %v6181_v29 = vpop.permute.xlu1 %6180  ;;  %v1058_v43 = vsel %vm340_vm0, %v6172_v22, %v6173_v20 }
  0xdd   : > { %v1049_v56 = vsel %vm8053_vm2, %v6167_v59, %v6168_v46  ;;  %v6183_v30 = vunpack.i.h.bf16 %v6181_v29  ;;  %v6182_v32 = vunpack.i.l.bf16 %v6181_v29  ;;  %5630 = vmatprep.subr.msk.bf16.mxu1 %vm6785_vm9, %v5628_v27  ;;  %v1118_v36 = vsel %vm8064_vm3, %v6168_v46, %v6173_v20  ;;  %vm8068_vm2 = vmmov %vm8067_vm4 }
  0xde   : > { %v6176_v35 = vpop.permute.xlu0 %6175  ;;  %v1117_v0 = vsel %vm8065_vm7, %v1049_v56, %v1058_v43  ;;  %vm8069_vm3 = vcmask 1043456  }
  0xdf   : > { %v6178_v42 = vunpack.i.h.bf16 %v6176_v35  ;;  %v6177_v44 = vunpack.i.l.bf16 %v6176_v35  ;;  %5633 = vmatpush1.bf16.msk.msra.mxu1 %vm6785_vm9, %v5631_v61  ;;  %v1066_v57 = vsel %vm8066_vm5, %v6182_v32, %v6183_v30  ;;  %v1120_v28 = vsel %vm8069_vm3, %v1118_v36, %v6183_v30  ;;  %vm8070_vm7 = vmmov %vm8069_vm3 }
  0xe0   : > { %v6191_v4 = vpop.permute.xlu1 %6190  ;;  %v1119_v53 = vsel %vm8070_vm7, %v1117_v0, %v1066_v57 }
  0xe1   : > { %v1040_v5 = vsel %vm292_vm1, %v6177_v44, %v6178_v42  ;;  %v6193_v10 = vunpack.i.h.bf16 %v6191_v4  ;;  %v6192_v51 = vunpack.i.l.bf16 %v6191_v4  ;;  %v1114_v34 = vsel %vm8067_vm4, %v6649_v55, %v6178_v42 }
  0xe2   : > { %v1113_v48 = vsel %vm8068_vm2, %v6642_v50, %v1040_v5  ;;  %4870 = vmatmul.mubr.msk.f32.vlgmr.msra.gmra.mrb[2].mxu1 %vm498_vm15, %v6824_v37  ;;  %v6186_v49 = vpop.permute.xlu0 %6185  ;;  %v1116_v55 = vsel %vm463_vm6, %v1114_v34, %v6168_v46  ;;  %vm8071_vm2 = vcmask 1046528   ;;  %vm1368_vm4 = vcmask 588800  }
  0xe3   : > { %v6188_v54 = vunpack.i.h.bf16 %v6186_v49  ;;  %v6187_v12 = vunpack.i.l.bf16 %v6186_v49  ;;  %v1089_v45 = vsel %vm410_vm10, %v6192_v51, %v6193_v10  ;;  %1436 = vmatprep.mubr.f32.mxu1 %v6414_v18  ;;  %v1115_v39 = vsel %vm463_vm6, %v1113_v48, %v1049_v56  ;;  %vm8072_vm5 = vmmov %vm8071_vm2 }
  0xe4   : > { %v6196_v14 = vpop.permute.xlu1 %6195  ;;  %vm1205_vm6 = vcmask 572416  }
  0xe5   : > { %v1075_v50 = vsel %vm386_vm8, %v6187_v12, %v6188_v54  ;;  %v6198_v21 = vunpack.i.h.bf16 %v6196_v14  ;;  %v6197_v25 = vunpack.i.l.bf16 %v6196_v14  ;;  %v1124_v3 = vsel %vm483_vm11, %v6188_v54, %v1089_v45 }
  0xe6   : > { %v1083_v58 = vpop.permute.xlu0 %1082  ;;  %v1122_v60 = vsel %vm8071_vm2, %v1120_v28, %v6188_v54  ;;  %v1121_v31 = vsel %vm8072_vm5, %v1119_v53, %v1075_v50 }
  0xe7   : > { %v1088_v7 = vsel %vm410_vm10, %v1083_v58, %v6192_v51  ;;  %v1102_v62 = vsel %vm434_vm12, %v6197_v25, %v6198_v21  ;;  %v5634_v38 = vpack.c.bf16 %v1122_v60, %v1116_v55  ;;  %v5636_v63 = vpack.c.bf16 %v1121_v31, %v1115_v39  ;;  %v1208_v21 = vld [vmem:[%s8045_s4] sm:$0xff] }
  0xe8   : > { %v6201_v8 = vpop.permute.xlu1 %6200  ;;  %v1126_v33 = vsel %vm488_vm14, %v1124_v3, %v1102_v62  ;;  %v1123_v6 = vsel %vm483_vm11, %v1075_v50, %v1088_v7 }
  0xe9   : > { %v6203_v2 = vunpack.i.h.bf16 %v6201_v8  ;;  %v6202_v26 = vunpack.i.l.bf16 %v6201_v8  ;;  %5635 = vmatprep.subr.bf16.mxu0 %v5634_v38 }
  0xea   : > { %v1096_v9 = vpop.permute.xlu0 %1095  ;;  %5637 = vmatpush1.bf16.msra.mxu0 %v5636_v63 }
  0xeb   : > { %v1101_v1 = vsel %vm434_vm12, %v1096_v9, %v6197_v25  ;;  %v1112_v11 = vsel %vm453_vm13, %v6202_v26, %v6203_v2 }
  0xec   : > { %v5638_v41 = vpack.c.bf16 %v1112_v11, %v1126_v33  ;;  %v1125_v47 = vsel %vm488_vm14, %v1123_v6, %v1101_v1  ;;  %vm8075_vm14 = vcmask 744448  }
  0xed   : > { %vm8079_vm2 = vmmov %vm8075_vm14 }
  0xee   : > { %v1106_v16 = vpop.permute.xlu0 %1105  ;;  %5640 = vmatprep.subr.msk.bf16.mxu0 %vm6785_vm9, %v5638_v41  ;;  %vm8080_vm5 = vmmov %vm8079_vm2 }
  0xef   : > { %v1111_v17 = vsel %vm453_vm13, %v1106_v16, %v6202_v26 }
  0xf0   : > { %v5641_v13 = vpack.c.bf16 %v1111_v17, %v1125_v47 }
  0xf2   : > { %5643 = vmatpush1.bf16.msk.msra.mxu0 %vm6785_vm9, %v5641_v13  ;;  %vm8073_vm9 = vcmask 1031168  }
  0xf3   : > { %vm8074_vm11 = vmmov %vm8073_vm9 }
  0xf4   : > { %vm8077_vm3 = vmmov %vm8073_vm9 }
  0xf5   : > { %4873 = vmatmul.mubr.msk.f32.vlgmr.msra.gmra.mrb[4].mxu0 %vm498_vm15, %v6824_v37  ;;  %vm8076_vm15 = vmmov %vm8075_vm14 }
  0xf6   : > { %1507 = vmatprep.mubr.f32.mxu0 %v6414_v18  ;;  %vm8078_vm7 = vmmov %vm8077_vm3 }
  0xf9   : > { %v496_v19 = vpop.permute.xlu1 %495 }
 0x192   : > { %v576_v15 = vpop.f32.mrb[0].mxu0 }
 0x193   : > { %v577_v20 = vadd.f32 %v576_v15, %v496_v19  ;;  %v578_v22 = vpop.f32.mrb[1].mxu0  ;;  %v647_v23 = vpop.f32.mrb[0].mxu1 }
 0x194   : > { %v579_v24 = vadd.f32 %v578_v22, %v496_v19  ;;  %v648_v52 = vadd.f32 %v647_v23, %v496_v19  ;;  %v649_v61 = vpop.f32.mrb[1].mxu1 }
 0x195   : > { %v7006_v46 = vmax.f32 %v577_v20, 0.0  ;;  %v650_v59 = vadd.f32 %v649_v61, %v496_v19 }
 0x196   : > { %v7008_v27 = vmax.f32 %v579_v24, 0.0  ;;  %v7010_v40 = vmax.f32 %v648_v52, 0.0 }
 0x197   : > { %v7012_v29 = vmax.f32 %v650_v59, 0.0  ;;  %1345 = vrot.lane.b32.xlu1 %v7006_v46, %s6413_s10 }
 0x198   : > { %1349 = vrot.lane.b32.xlu0 %v7010_v40, %s6413_s10  ;;  %v6205_v56 = vpack.i.bf16 %v7010_v40, %v7008_v27 }
 0x199   : > { %v6210_v37 = vpack.i.bf16 %v7012_v29, %v7006_v46 }
 0x19b   : > { %6211 = vrot.lane.b32.xlu1 %v6210_v37, %s6408_s29 }
 0x19c   : > { %6206 = vrot.lane.b32.xlu0 %v6205_v56, %s6408_s29 }
 0x19f   : > { %6221 = vrot.lane.b32.xlu1 %v6205_v56, %s6409_s30 }
 0x1a0   : > { %6216 = vrot.lane.b32.xlu0 %v6205_v56, %s6407_s28 }
 0x1a3   : > { %6231 = vrot.lane.b32.xlu1 %v6210_v37, %s6409_s30 }
 0x1a4   : > { %6226 = vrot.lane.b32.xlu0 %v6210_v37, %s6407_s28 }
 0x1a5   : > { %v945_v43 = vpop.f32.mrb[2].mxu0 }
 0x1a6   : > { %v946_v30 = vadd.f32 %v945_v43, %v496_v19  ;;  %v947_v32 = vpop.f32.mrb[3].mxu0 }
 0x1a7   : > { %v948_v35 = vadd.f32 %v947_v32, %v496_v19  ;;  %6241 = vrot.lane.b32.xlu1 %v6205_v56, %s6410_s7 }
 0x1a8   : > { %v7029_v36 = vmax.f32 %v946_v30, 0.0  ;;  %6236 = vrot.lane.b32.xlu0 %v6205_v56, %s6406_s27 }
 0x1a9   : > { %v7032_v42 = vmax.f32 %v948_v35, 0.0 }
 0x1ab   : > { %6251 = vrot.lane.b32.xlu1 %v6210_v37, %s6410_s7  ;;  %v6275_v4 = vpack.i.bf16 %v7032_v42, %v7029_v36 }
 0x1ac   : > { %6246 = vrot.lane.b32.xlu0 %v6210_v37, %s6406_s27 }
 0x1af   : > { %6261 = vrot.lane.b32.xlu1 %v6205_v56, %s6412_s9 }
 0x1b0   : > { %6256 = vrot.lane.b32.xlu0 %v6205_v56, %s6411_s8 }
 0x1b3   : > { %6271 = vrot.lane.b32.xlu1 %v6210_v37, %s6412_s9 }
 0x1b4   : > { %6266 = vrot.lane.b32.xlu0 %v6210_v37, %s6411_s8 }
 0x1b5   : > { %v1016_v44 = vpop.f32.mrb[2].mxu1 }
 0x1b6   : > { %v1017_v0 = vadd.f32 %v1016_v44, %v496_v19  ;;  %v1018_v57 = vpop.f32.mrb[3].mxu1 }
 0x1b7   : > { %v1019_v5 = vadd.f32 %v1018_v57, %v496_v19  ;;  %1347 = vrot.lane.b32.xlu1 %v7008_v27, %s6413_s10 }
 0x1b8   : > { %v7044_v10 = vmax.f32 %v1017_v0, 0.0  ;;  %6276 = vrot.lane.b32.xlu0 %v6275_v4, %s6408_s29 }
 0x1b9   : > { %v7047_v51 = vmax.f32 %v1019_v5, 0.0 }
 0x1ba   : > { %v6295_v28 = vpack.i.bf16 %v7029_v36, %v7044_v10  ;;  %v6305_v45 = vpack.i.bf16 %v7044_v10, %v7032_v42 }
 0x1bb   : > { %6286 = vrot.lane.b32.xlu1 %v6275_v4, %s6409_s30 }
 0x1bc   : > { %6281 = vrot.lane.b32.xlu0 %v6275_v4, %s6407_s28 }
 0x1bf   : > { %1299 = vrot.lane.b32.xlu1 %v7029_v36, %s6410_s7 }
 0x1c0   : > { %1281 = vrot.lane.b32.xlu0 %v7029_v36, %s6406_s27 }
 0x1c3   : > { %1335 = vrot.lane.b32.xlu1 %v7029_v36, %s6412_s9 }
 0x1c4   : > { %1317 = vrot.lane.b32.xlu0 %v7029_v36, %s6411_s8 }
 0x1c7   : > { %1353 = vrot.lane.b32.xlu1 %v7029_v36, %s6413_s10 }
 0x1c8   : > { %v1197_v34 = vpop.f32.mrb[4].mxu0  ;;  %1351 = vrot.lane.b32.xlu0 %v7012_v29, %s6413_s10 }
 0x1c9   : > { %v1198_v48 = vadd.f32 %v1197_v34, %v496_v19  ;;  %v1199_v49 = vpop.f32.mrb[5].mxu0 }
 0x1ca   : > { %v1200_v53 = vadd.f32 %v1199_v49, %v496_v19 }
 0x1cb   : > { %v7065_v54 = vmax.f32 %v1198_v48, 0.0  ;;  %6296 = vrot.lane.b32.xlu1 %v6295_v28, %s6407_s28 }
 0x1cc   : > { %v1203_v12 = vmax.f32 %v1200_v53, 0.0  ;;  %6291 = vrot.lane.b32.xlu0 %v6295_v28, %s6408_s29 }
 0x1cd   : > { %v6330_v14 = vpack.i.bf16 %v7065_v54, %v7047_v51 }
 0x1ce   : > { %1206 = vst.msk [vmem:[#allocation2 + $0x48] sm:$0xff] %vm1205_vm6, %v1203_v12  ;;  %vm8081_vm6 = vmmov %vm8077_vm3 }
 0x1cf   : > { %1586 = vrot.lane.b32.xlu1 %v7029_v36, %s6406_s27 }
 0x1d0   : > { %6301 = vrot.lane.b32.xlu0 %v6295_v28, %s6409_s30 }
 0x1d3   : > { %1622 = vrot.lane.b32.xlu1 %v7029_v36, %s6411_s8 }
 0x1d4   : > { %1604 = vrot.lane.b32.xlu0 %v7029_v36, %s6410_s7 }
 0x1d5   : > { %v1827_v55 = vld [vmem:[#allocation2 + $0x48] sm:$0xff] }
 0x1d6   : > { %v6360_v39 = vpack.i.bf16 %v1827_v55, %v7065_v54 }
 0x1d7   : > { %6306 = vrot.lane.b32.xlu1 %v6305_v45, %s6406_s27 }
 0x1d8   : > { %6311 = vrot.lane.b32.xlu0 %v6305_v45, %s6410_s7 }
 0x1db   : > { %6316 = vrot.lane.b32.xlu1 %v6305_v45, %s6411_s8 }
 0x1dc   : > { %6321 = vrot.lane.b32.xlu0 %v6305_v45, %s6412_s9 }
 0x1df   : > { %1660 = vrot.lane.b32.xlu1 %v7032_v42, %s6413_s10 }
 0x1e0   : > { %1640 = vrot.lane.b32.xlu0 %v7029_v36, %s6412_s9 }
 0x1e3   : > { %1658 = vrot.lane.b32.xlu1 %v7029_v36, %s6413_s10 }
 0x1e4   : > { %1662 = vrot.lane.b32.xlu0 %v7044_v10, %s6413_s10 }
 0x1e7   : > { %6331 = vrot.lane.b32.xlu1 %v6330_v14, %s6407_s28 }
 0x1e8   : > { %6326 = vrot.lane.b32.xlu0 %v6330_v14, %s6408_s29 }
 0x1eb   : > { %6341 = vrot.lane.b32.xlu1 %v6330_v14, %s6406_s27 }
 0x1ec   : > { %6336 = vrot.lane.b32.xlu0 %v6330_v14, %s6409_s30 }
 0x1ef   : > { %6351 = vrot.lane.b32.xlu1 %v6330_v14, %s6411_s8 }
 0x1f0   : > { %6346 = vrot.lane.b32.xlu0 %v6330_v14, %s6410_s7 }
 0x1f3   : > { %1664 = vrot.lane.b32.xlu1 %v7047_v51, %s6413_s10 }
 0x1f4   : > { %6356 = vrot.lane.b32.xlu0 %v6330_v14, %s6412_s9 }
 0x1f7   : > { %1829 = vrot.lane.b32.xlu1 %v7065_v54, %s6408_s29  ;;  %s6424_s29 = smov 80  }
 0x1f8   : > { %1666 = vrot.lane.b32.xlu0 %v7065_v54, %s6413_s10 }
 0x1fb   : > { %1832 = vrot.lane.b32.xlu1 %v7065_v54, %s6407_s28  ;;  %s6423_s28 = smov 24  }
 0x1fc   : > { %6361 = vrot.lane.b32.xlu0 %v6360_v39, %s6409_s30 }
 0x1ff   : > { %6371 = vrot.lane.b32.xlu1 %v6360_v39, %s6410_s7  ;;  %s6425_s7 = smov 8  }
 0x200   : > { %6366 = vrot.lane.b32.xlu0 %v6360_v39, %s6406_s27  ;;  %s6422_s27 = smov 96  }
 0x203   : > { %6381 = vrot.lane.b32.xlu1 %v6360_v39, %s6412_s9  ;;  %s6426_s9 = smov 64  }
 0x204   : > { %6376 = vrot.lane.b32.xlu0 %v6360_v39, %s6411_s8 }
 0x207   : > { %1868 = vrot.lane.b32.xlu1 %v1827_v55, %s6413_s10 }
 0x208   : > { %1866 = vrot.lane.b32.xlu0 %v7065_v54, %s6413_s10  ;;  %s6427_s10 = smov 120  }
 0x209   : > { %v7116_v50 = vpop.permute.xlu1 %1345 }
 0x20a   : > { %v7121_v25 = vpop.permute.xlu0 %1349 }
 0x20c   : > { %1365 = vperm.xlu0 %6385, %v1208_v21  }
 0x20d   : > { %v7123_v3 = vpop.permute.xlu1 %6211 }
 0x20e   : > { %v6213_v58 = vunpack.i.l.bf16 %v7123_v3  ;;  %v7126_v60 = vpop.permute.xlu0 %6206 }
 0x20f   : > { %v6209_v31 = vunpack.i.h.bf16 %v7126_v60  ;;  %v6208_v7 = vunpack.i.l.bf16 %v7126_v60 }
 0x211   : > { %v1229_v62 = vsel %vm292_vm1, %v6213_v58, %v6208_v7  ;;  %v7131_v38 = vpop.permute.xlu1 %6221  ;;  %v1230_v63 = vsel %vm292_vm1, %v6208_v7, %v6209_v31  ;;  %v6214_v58 = vunpack.i.h.bf16 %v7123_v3 }
 0x212   : > { %v6224_v8 = vunpack.i.h.bf16 %v7131_v38  ;;  %v6223_v2 = vunpack.i.l.bf16 %v7131_v38  ;;  %v7138_v26 = vpop.permute.xlu0 %6216  ;;  %v5644_v33 = vpack.c.bf16 %v1230_v63, %v7008_v27  ;;  %v5646_v6 = vpack.c.bf16 %v1229_v62, %v7006_v46 }
 0x213   : > { %v6219_v9 = vunpack.i.h.bf16 %v7138_v26  ;;  %v6218_v1 = vunpack.i.l.bf16 %v7138_v26 }
 0x214   : > { %5645 = vmatprep.subr.bf16.mxu1 %v5644_v33  ;;  %v1266_v11 = vsel %vm340_vm0, %v6223_v2, %v6224_v8 }
 0x215   : > { %v7147_v41 = vpop.permute.xlu1 %6231  ;;  %5647 = vmatpush1.bf16.msra.mxu1 %v5646_v6  ;;  %v1248_v47 = vsel %vm8073_vm9, %v6218_v1, %v6219_v9  ;;  %vm8082_vm9 = vmmov %vm8077_vm3 }
 0x216   : > { %v6233_v16 = vunpack.i.l.bf16 %v7147_v41  ;;  %v7153_v17 = vpop.permute.xlu0 %6226  ;;  %v5648_v13 = vpack.c.bf16 %v1266_v11, %v1248_v47  ;;  %v6234_v11 = vunpack.i.h.bf16 %v7147_v41 }
 0x217   : > { %v6228_v19 = vunpack.i.l.bf16 %v7153_v17  ;;  %v6229_v47 = vunpack.i.h.bf16 %v7153_v17 }
 0x218   : > { %v1265_v15 = vsel %vm340_vm0, %v6233_v16, %v6223_v2  ;;  %5649 = vmatprep.subr.bf16.mxu1 %v5648_v13 }
 0x219   : > { %v1247_v20 = vsel %vm8074_vm11, %v6228_v19, %v6218_v1  ;;  %v7158_v22 = vpop.permute.xlu1 %6241  ;;  %v1231_v1 = vsel %vm292_vm1, %v6209_v31, %v6214_v58  ;;  %v7217_v31 = vld [vmem:[%s8044_s3] sm:$0xff]  ;;  %vm8083_vm11 = vmmov %vm8079_vm2 }
 0x21a   : > { %v6244_v23 = vunpack.i.h.bf16 %v7158_v22  ;;  %v6243_v24 = vunpack.i.l.bf16 %v7158_v22  ;;  %v7162_v52 = vpop.permute.xlu0 %6236  ;;  %v5650_v61 = vpack.c.bf16 %v1265_v15, %v1247_v20 }
 0x21b   : > { %v6239_v46 = vunpack.i.h.bf16 %v7162_v52  ;;  %v6238_v59 = vunpack.i.l.bf16 %v7162_v52 }
 0x21c   : > { %5651 = vmatpush1.bf16.msra.mxu1 %v5650_v61  ;;  %v1302_v27 = vsel %vm386_vm8, %v6243_v24, %v6244_v23  ;;  %v1267_v61 = vsel %vm340_vm0, %v6224_v8, %v6234_v11 }
 0x21d   : > { %v7169_v37 = vpop.permute.xlu1 %6251  ;;  %v1284_v56 = vsel %vm8075_vm14, %v6238_v59, %v6239_v46  ;;  %vm8084_vm14 = vmmov %vm8079_vm2 }
 0x21e   : > { %v6253_v43 = vunpack.i.l.bf16 %v7169_v37  ;;  %v7175_v30 = vpop.permute.xlu0 %6246  ;;  %v5652_v32 = vpack.c.bf16 %v1302_v27, %v1284_v56  ;;  %v6254_v41 = vunpack.i.h.bf16 %v7169_v37 }
 0x21f   : > { %v6248_v35 = vunpack.i.l.bf16 %v7175_v30 }
 0x220   : > { %v1301_v44 = vsel %vm386_vm8, %v6253_v43, %v6243_v24  ;;  %5653 = vmatprep.subr.bf16.mxu1 %v5652_v32  ;;  %v5662_v24 = vpack.c.bf16 %v1231_v1, %v7010_v40  ;;  %v1303_v26 = vsel %vm386_vm8, %v6244_v23, %v6254_v41 }
 0x221   : > { %v1283_v0 = vsel %vm8076_vm15, %v6248_v35, %v6238_v59  ;;  %v7180_v57 = vpop.permute.xlu1 %6261  ;;  %v6249_v59 = vunpack.i.h.bf16 %v7175_v30  ;;  %vm6418_vm15 = vmmov 0  }
 0x222   : > { %v6264_v4 = vunpack.i.h.bf16 %v7180_v57  ;;  %v6263_v5 = vunpack.i.l.bf16 %v7180_v57  ;;  %v7184_v34 = vpop.permute.xlu0 %6256  ;;  %v5654_v48 = vpack.c.bf16 %v1301_v44, %v1283_v0 }
 0x223   : > { %v6259_v49 = vunpack.i.h.bf16 %v7184_v34  ;;  %v6258_v28 = vunpack.i.l.bf16 %v7184_v34  ;;  %v1285_v43 = vsel %vm8080_vm5, %v6239_v46, %v6249_v59  ;;  %vm8087_vm5 = vmmov %vm8079_vm2 }
 0x224   : > { %5655 = vmatpush1.bf16.msra.mxu1 %v5654_v48  ;;  %v1338_v53 = vsel %vm434_vm12, %v6263_v5, %v6264_v4  ;;  %v5670_v23 = vpack.c.bf16 %v1303_v26, %v1285_v43 }
 0x225   : > { %v6272_v12 = vpop.permute.xlu1 %6271  ;;  %v1320_v45 = vsel %vm410_vm10, %v6258_v28, %v6259_v49 }
 0x226   : > { %v6273_v14 = vunpack.i.l.bf16 %v6272_v12  ;;  %v6267_v55 = vpop.permute.xlu0 %6266  ;;  %v5656_v39 = vpack.c.bf16 %v1338_v53, %v1320_v45  ;;  %v6274_v30 = vunpack.i.h.bf16 %v6272_v12 }
 0x227   : > { %v6268_v21 = vunpack.i.l.bf16 %v6267_v55  ;;  %v6269_v32 = vunpack.i.h.bf16 %v6267_v55 }
 0x228   : > { %v1337_v7 = vsel %vm434_vm12, %v6273_v14, %v6263_v5  ;;  %5657 = vmatprep.subr.bf16.mxu1 %v5656_v39  ;;  %v1339_v48 = vsel %vm434_vm12, %v6264_v4, %v6274_v30 }
 0x229   : > { %v1319_v62 = vsel %vm410_vm10, %v6268_v21, %v6258_v28  ;;  %v1348_v63 = vpop.permute.xlu1 %1347  ;;  %v1321_v52 = vsel %vm410_vm10, %v6259_v49, %v6269_v32 }
 0x22a   : > { %v7197_v2 = vpop.permute.xlu0 %6276  ;;  %v5658_v33 = vpack.c.bf16 %v1337_v7, %v1319_v62  ;;  %v1356_v3 = vsel %vm453_vm13, %v1348_v63, %v7121_v25  ;;  %v1355_v20 = vsel %vm453_vm13, %v7116_v50, %v1348_v63  ;;  %v5674_v12 = vpack.c.bf16 %v1339_v48, %v1321_v52 }
 0x22b   : > { %v6278_v6 = vunpack.i.l.bf16 %v7197_v2  ;;  %v6279_v57 = vunpack.i.h.bf16 %v7197_v2 }
 0x22c   : > { %5659 = vmatpush1.bf16.msra.mxu1 %v5658_v33 }
 0x22d   : > { %v7207_v16 = vpop.permute.xlu1 %6286  ;;  %1388 = vmatprep.subr.mxu1 %v1356_v3  ;;  %v1232_v13 = vsel %vm292_vm1, %v6214_v58, %v6278_v6 }
 0x22e   : > { %v6288_v19 = vunpack.i.l.bf16 %v7207_v16  ;;  %v7211_v15 = vpop.permute.xlu0 %6281  ;;  %v5660_v60 = vpack.c.bf16 %v1232_v13, %v7012_v29  ;;  %v1249_v29 = vsel %vm8077_vm3, %v6219_v9, %v6229_v47  ;;  %v6289_v33 = vunpack.i.h.bf16 %v7207_v16 }
 0x22f   : > { %v6283_v17 = vunpack.i.l.bf16 %v7211_v15  ;;  %v5666_v56 = vpack.c.bf16 %v1267_v61, %v1249_v29  ;;  %v6284_v6 = vunpack.i.h.bf16 %v7211_v15 }
 0x230   : > { %1389 = vmatpush1.msra.mxu1 %v1355_v20  ;;  %5661 = vmatprep.subr.bf16.mxu0 %v5660_v60  ;;  %v1268_v27 = vsel %vm340_vm0, %v6234_v11, %v6288_v19 }
 0x231   : > { %v1300_v37 = vpop.permute.xlu1 %1299  ;;  %4874 = vmatmul.mubr.msk.f32.vlgmr.msra.gmra.mrb[4].mxu1 %vm1368_vm4, %v7217_v31  ;;  %5663 = vmatpush1.bf16.msra.mxu0 %v5662_v24  ;;  %v1250_v40 = vsel %vm8078_vm7, %v6229_v47, %v6283_v17  ;;  %vm8086_vm7 = vmmov %vm8079_vm2 }
 0x232   : > { %v1304_v50 = vsel %vm386_vm8, %v6254_v41, %v1300_v37  ;;  %v1282_v38 = vpop.permute.xlu0 %1281  ;;  %v5664_v8 = vpack.c.bf16 %v1268_v27, %v1250_v40  ;;  %1740 = vmatprep.mubr.f32.mxu1 %v6414_v18 }
 0x233   : > { %v1286_v9 = vsel %vm8079_vm2, %v6249_v59, %v1282_v38 }
 0x234   : > { %v5668_v35 = vpack.c.bf16 %v1304_v50, %v1286_v9  ;;  %5665 = vmatprep.subr.bf16.mxu0 %v5664_v8 }
 0x235   : > { %v1336_v44 = vpop.permute.xlu1 %1335  ;;  %5667 = vmatpush1.bf16.msra.mxu0 %v5666_v56 }
 0x236   : > { %v1340_v0 = vsel %vm434_vm12, %v6274_v30, %v1336_v44  ;;  %v1318_v5 = vpop.permute.xlu0 %1317  ;;  %5669 = vmatprep.subr.bf16.mxu0 %v5668_v35 }
 0x237   : > { %v1322_v22 = vsel %vm410_vm10, %v6269_v32, %v1318_v5 }
 0x238   : > { %v5672_v46 = vpack.c.bf16 %v1340_v0, %v1322_v22 }
 0x239   : > { %v1354_v28 = vpop.permute.xlu1 %1353  ;;  %5671 = vmatpush1.bf16.msra.mxu0 %v5670_v23 }
 0x23a   : > { %v1352_v53 = vpop.permute.xlu0 %1351  ;;  %5673 = vmatprep.subr.bf16.mxu0 %v5672_v46 }
 0x23b   : > { %v1358_v14 = vsel %vm453_vm13, %v1352_v53, %v1354_v28  ;;  %v1357_v49 = vsel %vm453_vm13, %v7121_v25, %v1352_v53 }
 0x23d   : > { %v7252_v45 = vpop.permute.xlu1 %6296  ;;  %5675 = vmatpush1.bf16.msra.mxu0 %v5674_v12 }
 0x23e   : > { %v7255_v55 = vpop.permute.xlu0 %6291  ;;  %1459 = vmatprep.subr.mxu0 %v1358_v14  ;;  %v6299_v39 = vunpack.i.h.bf16 %v7252_v45  ;;  %v6298_v21 = vunpack.i.l.bf16 %v7252_v45 }
 0x23f   : > { %v6294_v4 = vunpack.i.h.bf16 %v7255_v55  ;;  %v6293_v34 = vunpack.i.l.bf16 %v7255_v55 }
 0x240   : > { %v1560_v47 = vsel %vm8081_vm6, %v6299_v39, %v6284_v6 }
 0x241   : > { %v1542_v58 = vsel %vm292_vm1, %v6294_v4, %v6279_v57  ;;  %v1587_v7 = vpop.permute.xlu1 %1586  ;;  %1460 = vmatpush1.msra.mxu0 %v1357_v49  ;;  %v1543_v62 = vsel %vm292_vm1, %v6279_v57, %v6293_v34  ;;  %v6417_v4 = vmov 0.0|0.0  }
 0x242   : > { %v7268_v63 = vpop.permute.xlu0 %6301  ;;  %4875 = vmatmul.mubr.msk.f32.vlgmr.msra.gmra.mrb[6].mxu0 %vm1368_vm4, %v7217_v31  ;;  %v5676_v2 = vpack.c.bf16 %v1543_v62, %v7032_v42  ;;  %v5678_v25 = vpack.c.bf16 %v1542_v58, %v7029_v36  ;;  %v1561_v36 = vsel %vm8082_vm9, %v6284_v6, %v6298_v21 }
 0x243   : > { %v6304_v1 = vunpack.i.h.bf16 %v7268_v63  ;;  %v6303_v11 = vunpack.i.l.bf16 %v7268_v63  ;;  %1811 = vmatprep.mubr.f32.mxu0 %v6414_v18 }
 0x244   : > { %5677 = vmatprep.subr.bf16.mxu1 %v5676_v2 }
 0x245   : > { %v1578_v3 = vsel %vm340_vm0, %v6304_v1, %v6289_v33  ;;  %v1623_v13 = vpop.permute.xlu1 %1622  ;;  %5679 = vmatpush1.bf16.msra.mxu1 %v5678_v25  ;;  %v1579_v42 = vsel %vm340_vm0, %v6289_v33, %v6303_v11 }
 0x246   : > { %v1605_v16 = vpop.permute.xlu0 %1604  ;;  %v5680_v19 = vpack.c.bf16 %v1579_v42, %v1561_v36  ;;  %v5682_v15 = vpack.c.bf16 %v1578_v3, %v1560_v47 }
 0x248   : > { %5681 = vmatprep.subr.bf16.mxu1 %v5680_v19 }
 0x249   : > { %v7287_v60 = vpop.permute.xlu1 %6306  ;;  %5683 = vmatpush1.bf16.msra.mxu1 %v5682_v15 }
 0x24a   : > { %v6309_v41 = vunpack.i.h.bf16 %v7287_v60  ;;  %v6308_v17 = vunpack.i.l.bf16 %v7287_v60  ;;  %v7291_v20 = vpop.permute.xlu0 %6311 }
 0x24b   : > { %v6314_v24 = vunpack.i.h.bf16 %v7291_v20  ;;  %v6313_v61 = vunpack.i.l.bf16 %v7291_v20 }
 0x24c   : > { %v1596_v29 = vsel %vm8083_vm11, %v1587_v7, %v6308_v17  ;;  %v1597_v59 = vsel %vm8084_vm14, %v6308_v17, %v6309_v41 }
 0x24d   : > { %v1614_v27 = vsel %vm386_vm8, %v1605_v16, %v6313_v61  ;;  %v7300_v37 = vpop.permute.xlu1 %6316  ;;  %v1615_v40 = vsel %vm386_vm8, %v6313_v61, %v6314_v24 }
 0x24e   : > { %v6319_v50 = vunpack.i.h.bf16 %v7300_v37  ;;  %v6318_v38 = vunpack.i.l.bf16 %v7300_v37  ;;  %v7307_v8 = vpop.permute.xlu0 %6321  ;;  %v5684_v26 = vpack.c.bf16 %v1615_v40, %v1597_v59  ;;  %v5686_v9 = vpack.c.bf16 %v1614_v27, %v1596_v29 }
 0x24f   : > { %v6324_v56 = vunpack.i.h.bf16 %v7307_v8  ;;  %v6323_v43 = vunpack.i.l.bf16 %v7307_v8 }
 0x250   : > { %5685 = vmatprep.subr.bf16.mxu1 %v5684_v26  ;;  %v1633_v30 = vsel %vm410_vm10, %v6318_v38, %v6319_v50  ;;  %v1632_v5 = vsel %vm410_vm10, %v1623_v13, %v6318_v38 }
 0x251   : > { %v1661_v32 = vpop.permute.xlu1 %1660  ;;  %5687 = vmatpush1.bf16.msra.mxu1 %v5686_v9  ;;  %v1651_v35 = vsel %vm434_vm12, %v6323_v43, %v6324_v56 }
 0x252   : > { %v1641_v44 = vpop.permute.xlu0 %1640  ;;  %v5688_v0 = vpack.c.bf16 %v1651_v35, %v1633_v30 }
 0x253   : > { %v1650_v22 = vsel %vm434_vm12, %v1641_v44, %v6323_v43 }
 0x254   : > { %v5690_v23 = vpack.c.bf16 %v1650_v22, %v1632_v5  ;;  %5689 = vmatprep.subr.bf16.mxu1 %v5688_v0 }
 0x255   : > { %v1659_v48 = vpop.permute.xlu1 %1658 }
 0x256   : > { %v7319_v52 = vpop.permute.xlu0 %1662  ;;  %5691 = vmatpush1.bf16.msra.mxu1 %v5690_v23  ;;  %v1668_v28 = vsel %vm453_vm13, %v1659_v48, %v1661_v32 }
 0x257   : > { %v1669_v46 = vsel %vm453_vm13, %v1661_v32, %v7319_v52 }
 0x258   : > { %1692 = vmatprep.subr.mxu1 %v1669_v46 }
 0x259   : > { %v6332_v53 = vpop.permute.xlu1 %6331 }
 0x25a   : > { %v6327_v12 = vpop.permute.xlu0 %6326  ;;  %1693 = vmatpush1.msra.mxu1 %v1668_v28  ;;  %v6334_v49 = vunpack.i.h.bf16 %v6332_v53  ;;  %v6333_v39 = vunpack.i.l.bf16 %v6332_v53 }
 0x25b   : > { %v6329_v14 = vunpack.i.h.bf16 %v6327_v12  ;;  %v6328_v57 = vunpack.i.l.bf16 %v6327_v12  ;;  %4876 = vmatmul.mubr.msk.f32.vlgmr.msra.gmra.mrb[6].mxu1 %vm1368_vm4, %v7217_v31  ;;  %5708 = vmatprep.subr.bf16.mxu1 %v6417_v4 }
 0x25c   : > { %5239 = vmatprep.mubr.msk.f32.mxu1 %vm6418_vm15, %v6414_v18  ;;  %v1562_v13 = vsel %vm8077_vm3, %v6298_v21, %v6333_v39 }
 0x25d   : > { %v1544_v58 = vsel %vm292_vm1, %v6293_v34, %v6328_v57  ;;  %v6342_v7 = vpop.permute.xlu1 %6341  ;;  %v1545_v62 = vsel %vm292_vm1, %v6328_v57, %v6329_v14  ;;  %vm8085_vm1 = vmmov %vm8077_vm3 }
 0x25e   : > { %v6337_v2 = vpop.permute.xlu0 %6336  ;;  %v5692_v25 = vpack.c.bf16 %v1545_v62, %v7047_v51  ;;  %v5694_v33 = vpack.c.bf16 %v1544_v58, %v7044_v10  ;;  %v6344_v47 = vunpack.i.h.bf16 %v6342_v7  ;;  %v6343_v3 = vunpack.i.l.bf16 %v6342_v7 }
 0x25f   : > { %v6339_v6 = vunpack.i.h.bf16 %v6337_v2  ;;  %v6338_v1 = vunpack.i.l.bf16 %v6337_v2  ;;  %v1563_v36 = vsel %vm8085_vm1, %v6333_v39, %v6334_v49 }
 0x260   : > { %5693 = vmatprep.subr.bf16.mxu0 %v5692_v25  ;;  %v1598_v45 = vsel %vm8086_vm7, %v6309_v41, %v6343_v3  ;;  %v1599_v21 = vsel %vm8079_vm2, %v6343_v3, %v6344_v47 }
 0x261   : > { %v1580_v55 = vsel %vm340_vm0, %v6303_v11, %v6338_v1  ;;  %v6352_v34 = vpop.permute.xlu1 %6351  ;;  %5695 = vmatpush1.bf16.msra.mxu0 %v5694_v33  ;;  %v1581_v51 = vsel %vm340_vm0, %v6338_v1, %v6339_v6 }
 0x262   : > { %v6347_v10 = vpop.permute.xlu0 %6346  ;;  %v5696_v42 = vpack.c.bf16 %v1581_v51, %v1563_v36  ;;  %v5698_v16 = vpack.c.bf16 %v1580_v55, %v1562_v13  ;;  %v6354_v63 = vunpack.i.h.bf16 %v6352_v34  ;;  %v6353_v11 = vunpack.i.l.bf16 %v6352_v34 }
 0x263   : > { %v6349_v19 = vunpack.i.h.bf16 %v6347_v10  ;;  %v6348_v15 = vunpack.i.l.bf16 %v6347_v10  ;;  %v2178_v10 = vlaneseq }
 0x264   : > { %5697 = vmatprep.subr.bf16.mxu0 %v5696_v42  ;;  %v1634_v41 = vsel %vm410_vm10, %v6319_v50, %v6353_v11 }
 0x265   : > { %v1616_v17 = vsel %vm386_vm8, %v6314_v24, %v6348_v15  ;;  %v1665_v61 = vpop.permute.xlu1 %1664  ;;  %5699 = vmatpush1.bf16.msra.mxu0 %v5698_v16  ;;  %v1617_v29 = vsel %vm386_vm8, %v6348_v15, %v6349_v19  ;;  %v1635_v24 = vsel %vm410_vm10, %v6353_v11, %v6354_v63  ;;  %v2179_v42 = vshrl.u32 %v2178_v10, 7 }
 0x266   : > { %v6357_v59 = vpop.permute.xlu0 %6356  ;;  %v5700_v27 = vpack.c.bf16 %v1617_v29, %v1599_v21  ;;  %v5702_v40 = vpack.c.bf16 %v1616_v17, %v1598_v45  ;;  %v1670_v0 = vsel %vm453_vm13, %v7319_v52, %v1665_v61  ;;  %v2184_v16 = vand.u32 127, %v2178_v10 }
 0x267   : > { %v6359_v38 = vunpack.i.h.bf16 %v6357_v59  ;;  %v6358_v60 = vunpack.i.l.bf16 %v6357_v59  ;;  %v2180_v19 = vadd.s32 8, %v2179_v42  ;;  %v2181_v21 = vadd.s32 16, %v2179_v42 }
 0x268   : > { %5701 = vmatprep.subr.bf16.mxu0 %v5700_v27  ;;  %v2185_v15 = vmul.u32 2, %v2184_v16  ;;  %v2182_v63 = vadd.s32 24, %v2179_v42  ;;  %v6419_v11 = vmov 1.0|1.0  }
 0x269   : > { %v1652_v20 = vsel %vm434_vm12, %v6324_v56, %v6358_v60  ;;  %v1830_v26 = vpop.permute.xlu1 %1829  ;;  %5703 = vmatpush1.bf16.msra.mxu0 %v5702_v40  ;;  %v1653_v9 = vsel %vm434_vm12, %v6358_v60, %v6359_v38 }
 0x26a   : > { %v5709_v43 = vpack.c.bf16 %v1830_v26, %v7065_v54  ;;  %v1667_v30 = vpop.permute.xlu0 %1666  ;;  %v5704_v32 = vpack.c.bf16 %v1653_v9, %v1635_v24  ;;  %v5706_v35 = vpack.c.bf16 %v1652_v20, %v1634_v41  ;;  %vm2188_vm6 = vcmp.eq.s32.totalorder %v2181_v21, %v2185_v15 }
 0x26b   : > { %v1671_v50 = vsel %vm453_vm13, %v1665_v61, %v1667_v30  ;;  %vm2189_vm9 = vcmp.eq.s32.totalorder %v2182_v63, %v2185_v15  ;;  %v2198_v27 = vadd.s32 1, %v2185_v15 }
 0x26c   : > { %5705 = vmatprep.subr.bf16.mxu0 %v5704_v32  ;;  %5710 = vmatpush3.bf16.msra.mxu1 %v5709_v43  ;;  %vm7420_vm11 = vmpackc.low %vm2189_vm9, %vm2188_vm6  ;;  %vm2156_vm6 = vcmask 130048   ;;  %vm1953_vm9 = vcmask 523520  }
 0x26d   : > { %v1833_v37 = vpop.permute.xlu1 %1832  ;;  %5707 = vmatpush1.bf16.msra.mxu0 %v5706_v35  ;;  %5711 = vmatprep.subr.bf16.mxu1 %v6417_v4  ;;  %vm2199_vm14 = vcmp.eq.s32.totalorder %v2179_v42, %v2198_v27  ;;  %vm2200_vm3 = vcmp.eq.s32.totalorder %v2180_v19, %v2198_v27  ;;  %vm2201_vm7 = vcmp.eq.s32.totalorder %v2181_v21, %v2198_v27 }
 0x26e   : > { %v6362_v8 = vpop.permute.xlu0 %6361  ;;  %1763 = vmatprep.subr.mxu0 %v1671_v50  ;;  %vm7438_vm1 = vmpackc.low %vm2200_vm3, %vm2199_vm14  ;;  %vm2202_vm2 = vcmp.eq.s32.totalorder %v2182_v63, %v2198_v27  ;;  %vm1960_vm14 = vcmask 785920   ;;  %vm1973_vm3 = vcmask 1048320  }
 0x26f   : > { %v6364_v56 = vunpack.i.h.bf16 %v6362_v8  ;;  %v6363_v44 = vunpack.i.l.bf16 %v6362_v8 }
 0x271   : > { %v1840_v54 = vsel %vm340_vm0, %v6363_v44, %v6364_v56  ;;  %v6372_v5 = vpop.permute.xlu1 %6371  ;;  %1764 = vmatpush1.msra.mxu0 %v1670_v0 }
 0x272   : > { %v5712_v22 = vpack.c.bf16 %v1840_v54, %v1833_v37  ;;  %v6374_v23 = vunpack.i.h.bf16 %v6372_v5  ;;  %v6373_v48 = vunpack.i.l.bf16 %v6372_v5  ;;  %v6367_v46 = vpop.permute.xlu0 %6366  ;;  %4877 = vmatmul.mubr.msk.f32.vlgmr.msra.gmra.mrb[8].mxu0 %vm1368_vm4, %v7217_v31  ;;  %5720 = vmatprep.subr.bf16.mxu0 %v6417_v4 }
 0x273   : > { %v6369_v28 = vunpack.i.h.bf16 %v6367_v46  ;;  %v6368_v53 = vunpack.i.l.bf16 %v6367_v46  ;;  %5250 = vmatprep.mubr.msk.f32.mxu0 %vm6418_vm15, %v6414_v18 }
 0x274   : > { %v1852_v52 = vsel %vm386_vm8, %v6373_v48, %v6374_v23  ;;  %5713 = vmatpush3.bf16.msra.mxu1 %v5712_v22  ;;  %vm1946_vm8 = vcmask 261120  }
 0x275   : > { %v1846_v12 = vsel %vm8087_vm5, %v6368_v53, %v6369_v28  ;;  %v6382_v14 = vpop.permute.xlu1 %6381  ;;  %5714 = vmatprep.subr.bf16.mxu1 %v6417_v4  ;;  %vm7446_vm5 = vmpackc.low %vm2202_vm2, %vm2201_vm7  ;;  %vm2681_vm7 = vcmask 392448   ;;  %vm2844_vm2 = vcmask 523648  }
 0x276   : > { %v5715_v57 = vpack.c.bf16 %v1852_v52, %v1846_v12  ;;  %v6384_v49 = vunpack.i.h.bf16 %v6382_v14  ;;  %v6383_v39 = vunpack.i.l.bf16 %v6382_v14  ;;  %v6377_v58 = vpop.permute.xlu0 %6376 }
 0x277   : > { %v6379_v7 = vunpack.i.h.bf16 %v6377_v58  ;;  %v6378_v62 = vunpack.i.l.bf16 %v6377_v58 }
 0x278   : > { %v1864_v2 = vsel %vm434_vm12, %v6383_v39, %v6384_v49  ;;  %5716 = vmatpush3.bf16.msra.mxu1 %v5715_v57  ;;  %vm2187_vm12 = vcmp.eq.s32.totalorder %v2180_v19, %v2185_v15 }
 0x279   : > { %v1858_v25 = vsel %vm410_vm10, %v6378_v62, %v6379_v7  ;;  %5717 = vmatprep.subr.bf16.mxu1 %v6417_v4  ;;  %v1869_v6 = vpop.permute.xlu1 %1868  ;;  %vm2186_vm10 = vcmp.eq.s32.totalorder %v2179_v42, %v2185_v15 }
 0x27a   : > { %v5718_v33 = vpack.c.bf16 %v1864_v2, %v1858_v25  ;;  %v1867_v1 = vpop.permute.xlu0 %1866 }
 0x27b   : > { %v1870_v47 = vsel %vm453_vm13, %v1867_v1, %v1869_v6  ;;  %vm7408_vm13 = vmpackc.low %vm2187_vm12, %vm2186_vm10  ;;  %vm1943_vm10 = vcmask 1014784   ;;  %vm3341_vm12 = vcmask 64512  }
 0x27c   : > { %5719 = vmatpush3.bf16.msra.mxu1 %v5718_v33  ;;  %5722 = vmatpush3.bf16.msk.msra.mxu0 %vm7408_vm13, %v6419_v11 }
 0x27d   : > { %5237 = vmatprep.subr.mxu1 %v6414_v18  ;;  %5723 = vmatprep.subr.bf16.mxu0 %v6417_v4 }
 0x280   : > { %5238 = vmatpush3.msra.mxu1 %v1870_v47  ;;  %5725 = vmatpush3.bf16.msk.msra.mxu0 %vm7420_vm11, %v6419_v11 }
 0x281   : > { %5240 = vmatmul.mubr.msk.f32.vlgmr.msra.gmra.mrb[8].mxu1 %vm1368_vm4, %v7217_v31  ;;  %5732 = vmatprep.subr.bf16.mxu1 %v6417_v4 }
 0x282   : > { %5272 = vmatprep.mubr.msk.f32.mxu1 %vm6418_vm15, %v6414_v18  ;;  %5734 = vmatpush3.bf16.msk.msra.mxu1 %vm7408_vm13, %v6419_v11 }
 0x283   : > { %5735 = vmatprep.subr.bf16.mxu1 %v6417_v4  ;;  %5726 = vmatprep.subr.bf16.mxu0 %v6417_v4 }
 0x286   : > { %5737 = vmatpush3.bf16.msk.msra.mxu1 %vm7420_vm11, %v6419_v11 }
 0x287   : > { %5744 = vmatprep.subr.bf16.mxu1 %v6417_v4 }
 0x28b   : > { %v7383_v3 = vpop.permute.xlu0 %1365 }
 0x304   : > { %v1438_v13 = vpop.f32.mrb[4].mxu1 }
 0x305   : > { %v1439_v55 = vadd.f32 %v1438_v13, %v7383_v3  ;;  %v1440_v34 = vpop.f32.mrb[5].mxu1 }
 0x306   : > { %v1441_v31 = vadd.f32 %v1440_v34, %v7383_v3 }
 0x307   : > { %v7393_v36 = vmax.f32 %v1439_v55, 0.0 }
 0x308   : > { %v7395_v51 = vmax.f32 %v1441_v31, 0.0 }
 0x309   : > { %2366 = vrot.lane.b32.xlu1 %v7393_v36, %s6409_s30  ;;  %1947 = vst.msk [vmem:[%s7390_s24] sm:$0xff] %vm1946_vm8, %v7393_v36 }
 0x30a   : > { %2527 = vrot.lane.b32.xlu0 %v7395_v51, %s6409_s30 }
 0x30d   : > { %2368 = vrot.lane.b32.xlu1 %v7395_v51, %s6409_s30 }
 0x311   : > { %2687 = vrot.lane.b32.xlu1 %v7395_v51, %s6409_s30 }
 0x315   : > { %v1509_v61 = vpop.f32.mrb[6].mxu0 }
 0x316   : > { %v1510_v29 = vadd.f32 %v1509_v61, %v7383_v3  ;;  %v1511_v59 = vpop.f32.mrb[7].mxu0 }
 0x317   : > { %v1512_v40 = vadd.f32 %v1511_v59, %v7383_v3 }
 0x318   : > { %v7434_v38 = vmax.f32 %v1510_v29, 0.0 }
 0x319   : > { %v7436_v60 = vmax.f32 %v1512_v40, 0.0 }
 0x31a   : > { %2689 = vrot.lane.b32.xlu0 %v7434_v38, %s6409_s30  ;;  %2848 = vrot.lane.b32.xlu1 %v7434_v38, %s6409_s30 }
 0x31e   : > { %3007 = vrot.lane.b32.xlu0 %v7436_v60, %s6409_s30  ;;  %3171 = vrot.lane.b32.xlu1 %v7436_v60, %s6409_s30 }
 0x322   : > { %2213 = vrot.lane.b32.xlu0 %v7393_v36, %s6409_s30 }
 0x32e   : > { %v1742_v26 = vpop.f32.mrb[6].mxu1 }
 0x32f   : > { %v1743_v24 = vadd.f32 %v1742_v26, %v7383_v3  ;;  %v1744_v9 = vpop.f32.mrb[7].mxu1 }
 0x330   : > { %v1745_v43 = vadd.f32 %v1744_v9, %v7383_v3 }
 0x331   : > { %v7458_v30 = vmax.f32 %v1743_v24, 0.0 }
 0x332   : > { %v7460_v32 = vmax.f32 %v1745_v43, 0.0 }
 0x333   : > { %3330 = vrot.lane.b32.xlu1 %v7458_v30, %s6409_s30  ;;  %3496 = vrot.lane.b32.xlu0 %v7458_v30, %s6409_s30 }
 0x337   : > { %3498 = vrot.lane.b32.xlu1 %v7460_v32, %s6409_s30 }
 0x33b   : > { %3652 = vrot.lane.b32.xlu1 %v7460_v32, %s6409_s30 }
 0x33f   : > { %3811 = vrot.lane.b32.xlu1 %v7460_v32, %s6409_s30 }
 0x345   : > { %v1813_v35 = vpop.f32.mrb[8].mxu0 }
 0x346   : > { %v1814_v37 = vadd.f32 %v1813_v35, %v7383_v3  ;;  %v1815_v50 = vpop.f32.mrb[9].mxu0 }
 0x347   : > { %v1816_v8 = vadd.f32 %v1815_v50, %v7383_v3 }
 0x348   : > { %v7474_v56 = vmax.f32 %v1814_v37, 0.0 }
 0x349   : > { %v7476_v44 = vmax.f32 %v1816_v8, 0.0 }
 0x354   : > { %v1938_v0 = vpop.f32.mrb[8].mxu1 }
 0x355   : > { %v1939_v54 = vadd.f32 %v1938_v0, %v7383_v3  ;;  %v5241_v5 = vpop.f32.mrb[9].mxu1 }
 0x357   : > { %v1942_v22 = vmax.f32 %v1939_v54, 0.0 }
 0x359   : > { %1944 = vst.msk [vmem:[#allocation3 + $0x40] sm:$0xff] %vm1943_vm10, %v1942_v22  ;;  %vm3167_vm10 = vcmask 786048  }
 0x360   : > { %v7516_v47 = vld [vmem:[#allocation3 + $0x40] sm:$0xff] }
 0x37b   : > { %v2367_v23 = vpop.permute.xlu1 %2366 }
 0x37c   : > { %v2528_v53 = vpop.permute.xlu0 %2527 }
 0x37d   : > { %v2530_v52 = vmax.f32 %v7395_v51, %v2528_v53 }
 0x37f   : > { %v2369_v48 = vpop.permute.xlu1 %2368 }
 0x380   : > { %v2370_v46 = vsel %vm340_vm0, %v2367_v23, %v2369_v48 }
 0x381   : > { %v2372_v28 = vmax.f32 %v7393_v36, %v2370_v46 }
 0x383   : > { %2374 = vrot.lane.b32.xlu0 %v2372_v28, %s6411_s8  ;;  %v2688_v12 = vpop.permute.xlu1 %2687 }
 0x387   : > { %2532 = vrot.lane.b32.xlu0 %v2530_v52, %s6420_s25 }
 0x38b   : > { %3813 = vrot.lane.b32.xlu0 %v7474_v56, %s6409_s30 }
 0x38c   : > { %v2690_v14 = vpop.permute.xlu0 %2689  ;;  %v2849_v39 = vpop.permute.xlu1 %2848 }
 0x38d   : > { %v2691_v57 = vsel %vm340_vm0, %v2688_v12, %v2690_v14  ;;  %v2851_v7 = vmax.f32 %v7434_v38, %v2849_v39 }
 0x38e   : > { %v2693_v49 = vmax.f32 %v7395_v51, %v2691_v57 }
 0x38f   : > { %3971 = vrot.lane.b32.xlu0 %v7474_v56, %s6409_s30 }
 0x390   : > { %v3008_v58 = vpop.permute.xlu0 %3007  ;;  %2695 = vrot.lane.b32.xlu1 %v2693_v49, %s6421_s26  ;;  %v3172_v6 = vpop.permute.xlu1 %3171 }
 0x391   : > { %v3011_v2 = vmax.f32 %v7436_v60, %v3008_v58  ;;  %v3010_v33 = vmax.f32 %v7434_v38, %v3008_v58  ;;  %v3174_v1 = vmax.f32 %v7436_v60, %v3172_v6 }
 0x393   : > { %4129 = vrot.lane.b32.xlu0 %v7476_v44, %s6409_s30 }
 0x394   : > { %2853 = vrot.lane.b32.xlu1 %v2851_v7, %s6422_s27  ;;  %v2214_v62 = vpop.permute.xlu0 %2213 }
 0x395   : > { %v2216_v25 = vmax.f32 %v7393_v36, %v2214_v62 }
 0x397   : > { %3016 = vrot.lane.b32.xlu0 %v3011_v2, %s6423_s28  ;;  %5251 = vmatmul.mubr.msk.f32.vlgmr.msra.gmra.mrb[10].mxu0 %vm1946_vm8, %v2216_v25 }
 0x398   : > { %5728 = vmatpush3.bf16.msk.msra.mxu0 %vm7438_vm1, %v6419_v11  ;;  %3014 = vrot.lane.b32.xlu1 %v3010_v33, %s6423_s28 }
 0x399   : > { %5729 = vmatprep.subr.bf16.mxu0 %v6417_v4  ;;  %5261 = vmatprep.mubr.msk.f32.mxu0 %vm6418_vm15, %v6414_v18 }
 0x39b   : > { %3176 = vrot.lane.b32.xlu0 %v3174_v1, %s6424_s29 }
 0x39c   : > { %5731 = vmatpush3.bf16.msk.msra.mxu0 %vm7446_vm5, %v6419_v11  ;;  %4286 = vrot.lane.b32.xlu1 %v7476_v44, %s6409_s30 }
 0x39d   : > { %5738 = vmatprep.subr.bf16.mxu0 %v6417_v4 }
 0x39f   : > { %5262 = vmatmul.mubr.msk.f32.vlgmr.msra.gmra.mrb[12].mxu0 %vm1946_vm8, %v2216_v25 }
 0x3a0   : > { %4444 = vrot.lane.b32.xlu1 %v7516_v47, %s6409_s30  ;;  %5740 = vmatpush3.bf16.msk.msra.mxu0 %vm7438_vm1, %v6419_v11 }
 0x3a1   : > { %5741 = vmatprep.subr.bf16.mxu0 %v6417_v4  ;;  %5283 = vmatprep.mubr.msk.f32.mxu0 %vm6418_vm15, %v6414_v18 }
 0x3a4   : > { %5743 = vmatpush3.bf16.msk.msra.mxu0 %vm7446_vm5, %v6419_v11 }
 0x3a5   : > { %v3331_v3 = vpop.permute.xlu1 %3330  ;;  %5750 = vmatprep.subr.bf16.mxu0 %v6417_v4  ;;  %v3497_v34 = vpop.permute.xlu0 %3496 }
 0x3a6   : > { %v3333_v13 = vmax.f32 %v7436_v60, %v3331_v3  ;;  %v3334_v55 = vmax.f32 %v7458_v30, %v3331_v3 }
 0x3a8   : > { %3339 = vrot.lane.b32.xlu1 %v3334_v55, %s6425_s7  ;;  %3337 = vrot.lane.b32.xlu0 %v3333_v13, %s6425_s7 }
 0x3a9   : > { %v3499_v31 = vpop.permute.xlu1 %3498 }
 0x3aa   : > { %v3500_v10 = vsel %vm340_vm0, %v3497_v34, %v3499_v31 }
 0x3ab   : > { %v3502_v42 = vmax.f32 %v7458_v30, %v3500_v10 }
 0x3ac   : > { %4606 = vrot.lane.b32.xlu0 %v7516_v47, %s6409_s30 }
 0x3ad   : > { %v3653_v16 = vpop.permute.xlu1 %3652  ;;  %3504 = vrot.lane.b32.xlu1 %v3502_v42, %s6426_s9 }
 0x3ae   : > { %v3655_v19 = vmax.f32 %v7460_v32, %v3653_v16 }
 0x3b0   : > { %3657 = vrot.lane.b32.xlu0 %v3655_v19, %s6427_s10 }
 0x3b1   : > { %v3812_v63 = vpop.permute.xlu1 %3811 }
 0x3f5   : > { %v2375_v15 = vpop.permute.xlu0 %2374 }
 0x3f6   : > { %5273 = vmatmul.mubr.msk.f32.vlgmr.msra.gmra.mrb[10].mxu1 %vm1946_vm8, %v2375_v15  ;;  %5284 = vmatmul.mubr.msk.f32.vlgmr.msra.gmra.mrb[14].mxu0 %vm1946_vm8, %v2375_v15 }
 0x3f7   : > { %5746 = vmatpush3.bf16.msk.msra.mxu1 %vm7408_vm13, %v6419_v11  ;;  %5752 = vmatpush3.bf16.msk.msra.mxu0 %vm7438_vm1, %v6419_v11 }
 0x3f8   : > { %5747 = vmatprep.subr.bf16.mxu1 %v6417_v4  ;;  %5753 = vmatprep.subr.bf16.mxu0 %v6417_v4 }
 0x3f9   : > { %v2533_v21 = vpop.permute.xlu0 %2532  ;;  %5294 = vmatprep.mubr.msk.f32.mxu1 %vm6418_vm15, %v6414_v18  ;;  %5305 = vmatprep.mubr.msk.f32.mxu0 %vm6418_vm15, %v6414_v18 }
 0x3fb   : > { %5749 = vmatpush3.bf16.msk.msra.mxu1 %vm7420_vm11, %v6419_v11  ;;  %5755 = vmatpush3.bf16.msk.msra.mxu0 %vm7446_vm5, %v6419_v11 }
 0x3fc   : > { %5756 = vmatprep.subr.bf16.mxu1 %v6417_v4  ;;  %5762 = vmatprep.subr.bf16.mxu0 %v6417_v4 }
 0x3fd   : > { %v3814_v61 = vpop.permute.xlu0 %3813 }
 0x3fe   : > { %5295 = vmatmul.mubr.msk.f32.vlgmr.msra.gmra.mrb[12].mxu1 %vm1946_vm8, %v2533_v21  ;;  %5306 = vmatmul.mubr.msk.f32.vlgmr.msra.gmra.mrb[16].mxu0 %vm1946_vm8, %v2533_v21  ;;  %v3815_v29 = vsel %vm340_vm0, %v3812_v63, %v3814_v61  ;;  %vm3018_vm0 = vcmask 195584  }
 0x3ff   : > { %v3817_v59 = vmax.f32 %v7460_v32, %v3815_v29  ;;  %5758 = vmatpush3.bf16.msk.msra.mxu1 %vm7408_vm13, %v6419_v11  ;;  %5764 = vmatpush3.bf16.msk.msra.mxu0 %vm7438_vm1, %v6419_v11 }
 0x400   : > { %5759 = vmatprep.subr.bf16.mxu1 %v6417_v4  ;;  %5765 = vmatprep.subr.bf16.mxu0 %v6417_v4 }
 0x401   : > { %3819 = vrot.lane.b32.xlu1 %v3817_v59, %s6428_s11  ;;  %v3972_v27 = vpop.permute.xlu0 %3971  ;;  %5316 = vmatprep.mubr.msk.f32.mxu1 %vm6418_vm15, %v6414_v18 }
 0x402   : > { %v3974_v40 = vmax.f32 %v7474_v56, %v3972_v27  ;;  %v2696_v26 = vpop.permute.xlu1 %2695  ;;  %5327 = vmatprep.mubr.msk.f32.mxu0 %vm6418_vm15, %v6414_v18 }
 0x403   : > { %5761 = vmatpush3.bf16.msk.msra.mxu1 %vm7420_vm11, %v6419_v11  ;;  %5767 = vmatpush3.bf16.msk.msra.mxu0 %vm7446_vm5, %v6419_v11 }
 0x404   : > { %3976 = vrot.lane.b32.xlu0 %v3974_v40, %s6429_s12  ;;  %5768 = vmatprep.subr.bf16.mxu1 %v6417_v4 }
 0x405   : > { %5774 = vmatprep.subr.bf16.mxu0 %v6417_v4  ;;  %v4130_v24 = vpop.permute.xlu0 %4129 }
 0x406   : > { %5317 = vmatmul.mubr.msk.f32.vlgmr.msra.gmra.mrb[14].mxu1 %vm1946_vm8, %v2696_v26  ;;  %5328 = vmatmul.mubr.msk.f32.vlgmr.msra.gmra.mrb[18].mxu0 %vm1946_vm8, %v2696_v26  ;;  %v4132_v9 = vmax.f32 %v7474_v56, %v4130_v24  ;;  %v2854_v43 = vpop.permute.xlu1 %2853 }
 0x407   : > { %5770 = vmatpush3.bf16.msk.msra.mxu1 %vm7408_vm13, %v6419_v11  ;;  %5776 = vmatpush3.bf16.msk.msra.mxu0 %vm7438_vm1, %v6419_v11 }
 0x408   : > { %4134 = vrot.lane.b32.xlu1 %v4132_v9, %s6430_s13  ;;  %5771 = vmatprep.subr.bf16.mxu1 %v6417_v4 }
 0x409   : > { %5777 = vmatprep.subr.bf16.mxu0 %v6417_v4  ;;  %5338 = vmatprep.mubr.msk.f32.mxu1 %vm6418_vm15, %v6414_v18  ;;  %v3017_v8 = vpop.permute.xlu0 %3016 }
 0x40a   : > { %v3015_v35 = vpop.permute.xlu1 %3014  ;;  %5349 = vmatprep.mubr.msk.f32.mxu0 %vm6418_vm15, %v6414_v18 }
 0x40b   : > { %5773 = vmatpush3.bf16.msk.msra.mxu1 %vm7420_vm11, %v6419_v11  ;;  %5779 = vmatpush3.bf16.msk.msra.mxu0 %vm7446_vm5, %v6419_v11  ;;  %v3019_v22 = vsel %vm3018_vm0, %v3015_v35, %v3017_v8  ;;  %vm3325_vm0 = vcmask 917248  }
 0x40c   : > { %5780 = vmatprep.subr.bf16.mxu1 %v6417_v4  ;;  %5786 = vmatprep.subr.bf16.mxu0 %v6417_v4 }
 0x40d   : > { %v3177_v23 = vpop.permute.xlu0 %3176 }
 0x40e   : > { %5339 = vmatmul.mubr.msk.f32.vlgmr.msra.gmra.mrb[16].mxu1 %vm1946_vm8, %v2854_v43  ;;  %5350 = vmatmul.mubr.msk.f32.vlgmr.msra.gmra.mrb[20].mxu0 %vm1946_vm8, %v2854_v43  ;;  %v4287_v37 = vpop.permute.xlu1 %4286 }
 0x40f   : > { %v4289_v50 = vmax.f32 %v7476_v44, %v4287_v37  ;;  %5782 = vmatpush3.bf16.msk.msra.mxu1 %vm7408_vm13, %v6419_v11  ;;  %5788 = vmatpush3.bf16.msk.msra.mxu0 %vm7438_vm1, %v6419_v11 }
 0x410   : > { %5783 = vmatprep.subr.bf16.mxu1 %v6417_v4  ;;  %5789 = vmatprep.subr.bf16.mxu0 %v6417_v4 }
 0x411   : > { %4291 = vrot.lane.b32.xlu0 %v4289_v50, %s6431_s14  ;;  %5360 = vmatprep.mubr.msk.f32.mxu1 %vm6418_vm15, %v6414_v18 }
 0x412   : > { %v4445_v0 = vpop.permute.xlu1 %4444  ;;  %5371 = vmatprep.mubr.msk.f32.mxu0 %vm6418_vm15, %v6414_v18 }
 0x413   : > { %v4447_v54 = vmax.f32 %v7476_v44, %v4445_v0  ;;  %v4448_v5 = vmax.f32 %v7516_v47, %v4445_v0  ;;  %5785 = vmatpush3.bf16.msk.msra.mxu1 %vm7420_vm11, %v6419_v11  ;;  %5791 = vmatpush3.bf16.msk.msra.mxu0 %vm7446_vm5, %v6419_v11 }
 0x414   : > { %5792 = vmatprep.subr.bf16.mxu1 %v6417_v4  ;;  %5798 = vmatprep.subr.bf16.mxu0 %v6417_v4 }
 0x415   : > { %4453 = vrot.lane.b32.xlu0 %v4448_v5, %s6432_s15  ;;  %4451 = vrot.lane.b32.xlu1 %v4447_v54, %s6432_s15 }
 0x416   : > { %5361 = vmatmul.mubr.msk.f32.vlgmr.msra.gmra.mrb[18].mxu1 %vm1946_vm8, %v3019_v22  ;;  %5372 = vmatmul.mubr.msk.f32.vlgmr.msra.gmra.mrb[22].mxu0 %vm1946_vm8, %v3019_v22 }
 0x417   : > { %5794 = vmatpush3.bf16.msk.msra.mxu1 %vm7408_vm13, %v6419_v11  ;;  %5800 = vmatpush3.bf16.msk.msra.mxu0 %vm7438_vm1, %v6419_v11 }
 0x418   : > { %5795 = vmatprep.subr.bf16.mxu1 %v6417_v4  ;;  %5801 = vmatprep.subr.bf16.mxu0 %v6417_v4 }
 0x419   : > { %1950 = vrot.lane.b32.xlu0 %v7393_v36, %s6433_s16  ;;  %5382 = vmatprep.mubr.msk.f32.mxu1 %vm6418_vm15, %v6414_v18  ;;  %s6443_s16 = smov 28  }
 0x41a   : > { %v3338_v48 = vpop.permute.xlu0 %3337  ;;  %5393 = vmatprep.mubr.msk.f32.mxu0 %vm6418_vm15, %v6414_v18  ;;  %v3340_v53 = vpop.permute.xlu1 %3339 }
 0x41b   : > { %5797 = vmatpush3.bf16.msk.msra.mxu1 %vm7420_vm11, %v6419_v11  ;;  %5803 = vmatpush3.bf16.msk.msra.mxu0 %vm7446_vm5, %v6419_v11  ;;  %v3342_v52 = vsel %vm3341_vm12, %v3338_v48, %v3340_v53  ;;  %vm3490_vm12 = vcmask 1048448  }
 0x41c   : > { %5804 = vmatprep.subr.bf16.mxu1 %v6417_v4  ;;  %5810 = vmatprep.subr.bf16.mxu0 %v6417_v4 }
 0x41d   : > { %1966 = vrot.lane.b32.xlu0 %v7393_v36, %s6434_s17 }
 0x41e   : > { %5383 = vmatmul.mubr.msk.f32.vlgmr.msra.gmra.mrb[20].mxu1 %vm1946_vm8, %v3177_v23  ;;  %5394 = vmatmul.mubr.msk.f32.vlgmr.msra.gmra.mrb[24].mxu0 %vm1946_vm8, %v3177_v23  ;;  %v4607_v46 = vpop.permute.xlu0 %4606 }
 0x41f   : > { %5806 = vmatpush3.bf16.msk.msra.mxu1 %vm7408_vm13, %v6419_v11  ;;  %5812 = vmatpush3.bf16.msk.msra.mxu0 %vm7438_vm1, %v6419_v11  ;;  %v4609_v28 = vmax.f32 %v7516_v47, %v4607_v46 }
 0x420   : > { %5807 = vmatprep.subr.bf16.mxu1 %v6417_v4  ;;  %5813 = vmatprep.subr.bf16.mxu0 %v6417_v4 }
 0x421   : > { %4611 = vrot.lane.b32.xlu1 %v4609_v28, %s6435_s18  ;;  %1977 = vrot.lane.b32.xlu0 %v7395_v51, %s6420_s25 }
 0x422   : > { %5404 = vmatprep.mubr.msk.f32.mxu1 %vm6418_vm15, %v6414_v18  ;;  %5415 = vmatprep.mubr.msk.f32.mxu0 %vm6418_vm15, %v6414_v18 }
 0x423   : > { %5809 = vmatpush3.bf16.msk.msra.mxu1 %vm7420_vm11, %v6419_v11  ;;  %5815 = vmatpush3.bf16.msk.msra.mxu0 %vm7446_vm5, %v6419_v11 }
 0x424   : > { %5816 = vmatprep.subr.bf16.mxu1 %v6417_v4  ;;  %5822 = vmatprep.subr.bf16.mxu0 %v6417_v4 }
 0x425   : > { %1957 = vrot.lane.b32.xlu1 %v7393_v36, %s6427_s10  ;;  %1989 = vrot.lane.b32.xlu0 %v7395_v51, %s6429_s12  ;;  %v3505_v36 = vpop.permute.xlu1 %3504  ;;  %s6440_s10 = smov 76   ;;  %s6441_s12 = smov 60  }
 0x426   : > { %5405 = vmatmul.mubr.msk.f32.vlgmr.msra.gmra.mrb[22].mxu1 %vm1946_vm8, %v3342_v52  ;;  %5416 = vmatmul.mubr.msk.f32.vlgmr.msra.gmra.mrb[26].mxu0 %vm1946_vm8, %v3342_v52 }
 0x427   : > { %5818 = vmatpush3.bf16.msk.msra.mxu1 %vm7408_vm13, %v6419_v11  ;;  %5824 = vmatpush3.bf16.msk.msra.mxu0 %vm7438_vm1, %v6419_v11 }
 0x428   : > { %5819 = vmatprep.subr.bf16.mxu1 %v6417_v4  ;;  %5825 = vmatprep.subr.bf16.mxu0 %v6417_v4 }
 0x429   : > { %1968 = vrot.lane.b32.xlu1 %v7395_v51, %s6434_s17  ;;  %1999 = vrot.lane.b32.xlu0 %v7434_v38, %s6436_s19  ;;  %s6444_s17 = smov 12  }
 0x42a   : > { %5426 = vmatprep.mubr.msk.f32.mxu1 %vm6418_vm15, %v6414_v18  ;;  %5437 = vmatprep.mubr.msk.f32.mxu0 %vm6418_vm15, %v6414_v18 }
 0x42b   : > { %5821 = vmatpush3.bf16.msk.msra.mxu1 %vm7420_vm11, %v6419_v11  ;;  %5827 = vmatpush3.bf16.msk.msra.mxu0 %vm7446_vm5, %v6419_v11 }
 0x42c   : > { %5828 = vmatprep.subr.bf16.mxu1 %v6417_v4  ;;  %5834 = vmatprep.subr.bf16.mxu0 %v6417_v4 }
 0x42d   : > { %1983 = vrot.lane.b32.xlu1 %v7395_v51, %s6437_s20  ;;  %2013 = vrot.lane.b32.xlu0 %v7434_v38, %s6409_s30  ;;  %s6438_s30 = smov 84   ;;  %s5050_s20 = sshll.u32 %s8097_s22, 4 }
 0x42e   : > { %5427 = vmatmul.mubr.msk.f32.vlgmr.msra.gmra.mrb[24].mxu1 %vm1946_vm8, %v3505_v36  ;;  %5438 = vmatmul.mubr.msk.f32.vlgmr.msra.gmra.mrb[28].mxu0 %vm1946_vm8, %v3505_v36 }
 0x42f   : > { %5830 = vmatpush3.bf16.msk.msra.mxu1 %vm7408_vm13, %v6419_v11  ;;  %5836 = vmatpush3.bf16.msk.msra.mxu0 %vm7438_vm1, %v6419_v11 }
 0x430   : > { %5831 = vmatprep.subr.bf16.mxu1 %v6417_v4  ;;  %5837 = vmatprep.subr.bf16.mxu0 %v6417_v4 }
 0x431   : > { %1997 = vrot.lane.b32.xlu1 %v7395_v51, %s6436_s19  ;;  %2023 = vrot.lane.b32.xlu0 %v7436_v60, %s6431_s14  ;;  %v3658_v51 = vpop.permute.xlu0 %3657  ;;  %s6446_s19 = smov 20  }
 0x432   : > { %5448 = vmatprep.mubr.msk.f32.mxu1 %vm6418_vm15, %v6414_v18  ;;  %5459 = vmatprep.mubr.msk.f32.mxu0 %vm6418_vm15, %v6414_v18 }
 0x433   : > { %5833 = vmatpush3.bf16.msk.msra.mxu1 %vm7420_vm11, %v6419_v11  ;;  %5839 = vmatpush3.bf16.msk.msra.mxu0 %vm7446_vm5, %v6419_v11 }
 0x434   : > { %5840 = vmatprep.subr.bf16.mxu1 %v6417_v4  ;;  %5846 = vmatprep.subr.bf16.mxu0 %v6417_v4 }
 0x435   : > { %2007 = vrot.lane.b32.xlu1 %v7434_v38, %s6422_s27  ;;  %2037 = vrot.lane.b32.xlu0 %v7436_v60, %s6424_s29 }
 0x436   : > { %5449 = vmatmul.mubr.msk.f32.vlgmr.msra.gmra.mrb[26].mxu1 %vm1946_vm8, %v3658_v51  ;;  %5460 = vmatmul.mubr.msk.f32.vlgmr.msra.gmra.mrb[30].mxu0 %vm1946_vm8, %v3658_v51 }
 0x437   : > { %5842 = vmatpush3.bf16.msk.msra.mxu1 %vm7408_vm13, %v6419_v11  ;;  %5848 = vmatpush3.bf16.msk.msra.mxu0 %vm7438_vm1, %v6419_v11 }
 0x438   : > { %5843 = vmatprep.subr.bf16.mxu1 %v6417_v4  ;;  %5849 = vmatprep.subr.bf16.mxu0 %v6417_v4 }
 0x439   : > { %2021 = vrot.lane.b32.xlu1 %v7434_v38, %s6431_s14  ;;  %2051 = vrot.lane.b32.xlu0 %v7436_v60, %s6435_s18  ;;  %s6442_s14 = smov 44  }
 0x43a   : > { %5470 = vmatprep.mubr.msk.f32.mxu1 %vm6418_vm15, %v6414_v18  ;;  %5481 = vmatprep.mubr.msk.f32.mxu0 %vm6418_vm15, %v6414_v18 }
 0x43b   : > { %5845 = vmatpush3.bf16.msk.msra.mxu1 %vm7420_vm11, %v6419_v11  ;;  %5851 = vmatpush3.bf16.msk.msra.mxu0 %vm7446_vm5, %v6419_v11 }
 0x43c   : > { %5852 = vmatprep.subr.bf16.mxu1 %v6417_v4  ;;  %5858 = vmatprep.subr.bf16.mxu0 %v6417_v4 }
 0x43d   : > { %2031 = vrot.lane.b32.xlu1 %v7436_v60, %s6438_s30  ;;  %2060 = vrot.lane.b32.xlu0 %v7458_v30, %s6439_s23 }
 0x441   : > { %2043 = vrot.lane.b32.xlu1 %v7436_v60, %s6440_s10  ;;  %2152 = vrot.lane.b32.xlu0 %v7476_v44, %s6432_s15  ;;  %s7815_s10 = scalar_lea.vmem %s8047_s6, %s5050_s20 }
 0x445   : > { %2053 = vrot.lane.b32.xlu1 %v7458_v30, %s6435_s18  ;;  %2074 = vrot.lane.b32.xlu0 %v7458_v30, %s6441_s12  ;;  %s6445_s18 = smov 52  }
 0x449   : > { %2066 = vrot.lane.b32.xlu1 %v7458_v30, %s6426_s9  ;;  %2096 = vrot.lane.b32.xlu0 %v7460_v32, %s6428_s11 }
 0x44d   : > { %2154 = vrot.lane.b32.xlu1 %v7516_v47, %s6432_s15  ;;  %2106 = vrot.lane.b32.xlu0 %v7474_v56, %s6442_s14 }
 0x451   : > { %2076 = vrot.lane.b32.xlu1 %v7460_v32, %s6441_s12  ;;  %2132 = vrot.lane.b32.xlu0 %v7476_v44, %s6443_s16 }
 0x455   : > { %2104 = vrot.lane.b32.xlu1 %v7460_v32, %s6442_s14  ;;  %2084 = vrot.lane.b32.xlu0 %v7460_v32, %s6411_s8  ;;  %s6447_s8 = smov 36  }
 0x459   : > { %2126 = vrot.lane.b32.xlu1 %v7474_v56, %s6430_s13  ;;  %2138 = vrot.lane.b32.xlu0 %v7476_v44, %s6423_s28  ;;  %s6448_s28 = smov 4  }
 0x45d   : > { %2162 = vrot.lane.b32.xlu1 %v7516_v47, %s6444_s17  ;;  %2090 = vrot.lane.b32.xlu0 %v7460_v32, %s6445_s18 }
 0x461   : > { %2114 = vrot.lane.b32.xlu1 %v7474_v56, %s6421_s26  ;;  %2144 = vrot.lane.b32.xlu0 %v7476_v44, %s6446_s19 }
 0x465   : > { %2168 = vrot.lane.b32.xlu1 %v7516_v47, %s6425_s7 }
 0x469   : > { %2120 = vrot.lane.b32.xlu1 %v7474_v56, %s6447_s8 }
 0x46a   : > { %v2286_v38 = vpop.f32.mrb[10].mxu0 }
 0x46b   : > { %v5252_v60 = vpop.f32.mrb[11].mxu0 }
 0x46d   : > { %2174 = vrot.lane.b32.xlu1 %v7516_v47, %s6448_s28 }
 0x472   : > { %v2356_v30 = vpop.f32.mrb[12].mxu0 }
 0x473   : > { %v2360_v32 = vmax.f32 %v2286_v38, %v2356_v30  ;;  %v5263_v44 = vpop.f32.mrb[13].mxu0  ;;  %v3820_v12 = vpop.permute.xlu1 %3819 }
 0x474   : > { %5471 = vmatmul.mubr.msk.f32.vlgmr.msra.gmra.mrb[28].mxu1 %vm1946_vm8, %v3820_v12  ;;  %5482 = vmatmul.mubr.msk.f32.vlgmr.msra.gmra.mrb[32].mxu0 %vm1946_vm8, %v3820_v12 }
 0x475   : > { %2361 = vst.msk [vmem:[%s7815_s10] sm:$0xff] %vm2156_vm6, %v2360_v32  ;;  %5854 = vmatpush3.bf16.msk.msra.mxu1 %vm7408_vm13, %v6419_v11  ;;  %5860 = vmatpush3.bf16.msk.msra.mxu0 %vm7438_vm1, %v6419_v11 }
 0x476   : > { %5855 = vmatprep.subr.bf16.mxu1 %v6417_v4  ;;  %5861 = vmatprep.subr.bf16.mxu0 %v6417_v4  ;;  %v3977_v56 = vpop.permute.xlu0 %3976 }
 0x477   : > { %5492 = vmatprep.mubr.msk.f32.mxu1 %vm6418_vm15, %v6414_v18  ;;  %5503 = vmatprep.mubr.msk.f32.mxu0 %vm6418_vm15, %v6414_v18 }
 0x479   : > { %5857 = vmatpush3.bf16.msk.msra.mxu1 %vm7420_vm11, %v6419_v11  ;;  %5863 = vmatpush3.bf16.msk.msra.mxu0 %vm7446_vm5, %v6419_v11 }
 0x47a   : > { %5864 = vmatprep.subr.bf16.mxu1 %v6417_v4  ;;  %5870 = vmatprep.subr.bf16.mxu0 %v6417_v4  ;;  %v4135_v14 = vpop.permute.xlu1 %4134 }
 0x47c   : > { %5493 = vmatmul.mubr.msk.f32.vlgmr.msra.gmra.mrb[30].mxu1 %vm1946_vm8, %v3977_v56  ;;  %5504 = vmatmul.mubr.msk.f32.vlgmr.msra.gmra.mrb[34].mxu0 %vm1946_vm8, %v3977_v56 }
 0x47d   : > { %5866 = vmatpush3.bf16.msk.msra.mxu1 %vm7408_vm13, %v6419_v11  ;;  %5872 = vmatpush3.bf16.msk.msra.mxu0 %vm7438_vm1, %v6419_v11 }
 0x47e   : > { %5867 = vmatprep.subr.bf16.mxu1 %v6417_v4  ;;  %5873 = vmatprep.subr.bf16.mxu0 %v6417_v4 }
 0x47f   : > { %5514 = vmatprep.mubr.msk.f32.mxu1 %vm6418_vm15, %v6414_v18  ;;  %5525 = vmatprep.mubr.msk.f32.mxu0 %vm6418_vm15, %v6414_v18 }
 0x481   : > { %5869 = vmatpush3.bf16.msk.msra.mxu1 %vm7420_vm11, %v6419_v11  ;;  %5875 = vmatpush3.bf16.msk.msra.mxu0 %vm7446_vm5, %v6419_v11 }
 0x482   : > { %5876 = vmatprep.subr.bf16.mxu1 %v6417_v4  ;;  %5882 = vmatprep.subr.bf16.mxu0 %v6417_v4 }
 0x483   : > { %v4292_v57 = vpop.permute.xlu0 %4291 }
 0x484   : > { %5515 = vmatmul.mubr.msk.f32.vlgmr.msra.gmra.mrb[32].mxu1 %vm1946_vm8, %v4135_v14  ;;  %5526 = vmatmul.mubr.msk.f32.vlgmr.msra.gmra.mrb[36].mxu0 %vm1946_vm8, %v4135_v14 }
 0x485   : > { %5878 = vmatpush3.bf16.msk.msra.mxu1 %vm7408_vm13, %v6419_v11  ;;  %5884 = vmatpush3.bf16.msk.msra.mxu0 %vm7438_vm1, %v6419_v11 }
 0x486   : > { %5879 = vmatprep.subr.bf16.mxu1 %v6417_v4  ;;  %5885 = vmatprep.subr.bf16.mxu0 %v6417_v4 }
 0x487   : > { %v4454_v49 = vpop.permute.xlu0 %4453  ;;  %5536 = vmatprep.mubr.msk.f32.mxu1 %vm6418_vm15, %v6414_v18  ;;  %5547 = vmatprep.mubr.msk.f32.mxu0 %vm6418_vm15, %v6414_v18  ;;  %v4452_v58 = vpop.permute.xlu1 %4451 }
 0x488   : > { %v4455_v62 = vsel %vm2156_vm6, %v4452_v58, %v4454_v49 }
 0x489   : > { %5881 = vmatpush3.bf16.msk.msra.mxu1 %vm7420_vm11, %v6419_v11  ;;  %5887 = vmatpush3.bf16.msk.msra.mxu0 %vm7446_vm5, %v6419_v11 }
 0x48a   : > { %5888 = vmatprep.subr.bf16.mxu1 %v6417_v4  ;;  %5894 = vmatprep.subr.bf16.mxu0 %v6417_v4 }
 0x48b   : > { %v1951_v39 = vpop.permute.xlu0 %1950 }
 0x48c   : > { %5537 = vmatmul.mubr.msk.f32.vlgmr.msra.gmra.mrb[34].mxu1 %vm1946_vm8, %v4292_v57  ;;  %5548 = vmatmul.mubr.msk.f32.vlgmr.msra.gmra.mrb[38].mxu0 %vm1946_vm8, %v4292_v57  ;;  %1954 = vst.msk [vmem:[%s7390_s24] sm:$0xff] %vm1953_vm9, %v1951_v39 }
 0x48d   : > { %5890 = vmatpush3.bf16.msk.msra.mxu1 %vm7408_vm13, %v6419_v11  ;;  %5896 = vmatpush3.bf16.msk.msra.mxu0 %vm7438_vm1, %v6419_v11 }
 0x48e   : > { %5891 = vmatprep.subr.bf16.mxu1 %v6417_v4  ;;  %5897 = vmatprep.subr.bf16.mxu0 %v6417_v4 }
 0x48f   : > { %v1967_v7 = vpop.permute.xlu0 %1966  ;;  %5558 = vmatprep.mubr.msk.f32.mxu1 %vm6418_vm15, %v6414_v18  ;;  %5569 = vmatprep.mubr.msk.f32.mxu0 %vm6418_vm15, %v6414_v18 }
 0x491   : > { %5893 = vmatpush3.bf16.msk.msra.mxu1 %vm7420_vm11, %v6419_v11  ;;  %5899 = vmatpush3.bf16.msk.msra.mxu0 %vm7446_vm5, %v6419_v11 }
 0x492   : > { %5900 = vmatprep.subr.bf16.mxu1 %v6417_v4  ;;  %5906 = vmatprep.subr.bf16.mxu0 %v6417_v4 }
 0x493   : > { %v4612_v2 = vpop.permute.xlu1 %4611  ;;  %v1978_v25 = vpop.permute.xlu0 %1977 }
 0x494   : > { %5559 = vmatmul.mubr.msk.f32.vlgmr.msra.gmra.mrb[36].mxu1 %vm1946_vm8, %v4455_v62  ;;  %5570 = vmatmul.mubr.msk.f32.vlgmr.msra.gmra.mrb[40].mxu0 %vm1946_vm8, %v4455_v62  ;;  %1980 = vst.msk [vmem:[%s7390_s24 + $0x8] sm:$0xff] %vm1946_vm8, %v1978_v25 }
 0x495   : > { %5902 = vmatpush3.bf16.msk.msra.mxu1 %vm7408_vm13, %v6419_v11  ;;  %5908 = vmatpush3.bf16.msk.msra.mxu0 %vm7438_vm1, %v6419_v11  ;;  %vm1970_vm13 = vcmask 949248   ;;  %vm2078_vm1 = vcmask 490496  }
 0x496   : > { %5903 = vmatprep.subr.bf16.mxu1 %v6417_v4  ;;  %5909 = vmatprep.subr.bf16.mxu0 %v6417_v4 }
 0x497   : > { %v1958_v33 = vpop.permute.xlu1 %1957  ;;  %v1990_v6 = vpop.permute.xlu0 %1989  ;;  %5580 = vmatprep.mubr.msk.f32.mxu1 %vm6418_vm15, %v6414_v18  ;;  %5591 = vmatprep.mubr.msk.f32.mxu0 %vm6418_vm15, %v6414_v18  ;;  %vm2001_vm15 = vcmask 818176  }
 0x498   : > { %1961 = vst.msk [vmem:[%s7390_s24] sm:$0xff] %vm1960_vm14, %v1958_v33 }
 0x499   : > { %5905 = vmatpush3.bf16.msk.msra.mxu1 %vm7420_vm11, %v6419_v11  ;;  %5911 = vmatpush3.bf16.msk.msra.mxu0 %vm7446_vm5, %v6419_v11  ;;  %vm2025_vm11 = vcmask 719872   ;;  %vm3002_vm5 = vcmask 654848  }
 0x49b   : > { %v1969_v4 = vpop.permute.xlu1 %1968  ;;  %v2000_v45 = vpop.permute.xlu0 %1999 }
 0x49c   : > { %5581 = vmatmul.mubr.msk.f32.vlgmr.msra.gmra.mrb[38].mxu1 %vm1946_vm8, %v4612_v2  ;;  %5592 = vmatmul.mubr.msk.f32.vlgmr.msra.gmra.mrb[42].mxu0 %vm1946_vm8, %v4612_v2  ;;  %v1971_v18 = vsel %vm1970_vm13, %v1967_v7, %v1969_v4 }
 0x49d   : > { %1974 = vst.msk [vmem:[%s7390_s24] sm:$0xff] %vm1973_vm3, %v1971_v18 }
 0x49f   : > { %v1984_v17 = vpop.permute.xlu1 %1983  ;;  %v2014_v41 = vpop.permute.xlu0 %2013 }
 0x4a0   : > { %1986 = vst.msk [vmem:[%s7390_s24 + $0x8] sm:$0xff] %vm1953_vm9, %v1984_v17 }
 0x4a1   : > { %1992 = vst.msk [vmem:[%s7390_s24 + $0x8] sm:$0xff] %vm1960_vm14, %v1990_v6 }
 0x4a3   : > { %v1998_v11 = vpop.permute.xlu1 %1997  ;;  %v2024_v20 = vpop.permute.xlu0 %2023 }
 0x4a4   : > { %v2002_v1 = vsel %vm2001_vm15, %v1998_v11, %v2000_v45 }
 0x4a5   : > { %2004 = vst.msk [vmem:[%s7390_s24 + $0x8] sm:$0xff] %vm1973_vm3, %v2002_v1 }
 0x4a7   : > { %v2008_v47 = vpop.permute.xlu1 %2007  ;;  %v2038_v3 = vpop.permute.xlu0 %2037 }
 0x4a8   : > { %2010 = vst.msk [vmem:[%s7390_s24 + $0x10] sm:$0xff] %vm1946_vm8, %v2008_v47  ;;  %2040 = vst.msk [vmem:[%s7390_s24 + $0x18] sm:$0xff] %vm1946_vm8, %v2038_v3 }
 0x4a9   : > { %2016 = vst.msk [vmem:[%s7390_s24 + $0x10] sm:$0xff] %vm1953_vm9, %v2014_v41 }
 0x4ab   : > { %v2022_v13 = vpop.permute.xlu1 %2021  ;;  %v2052_v55 = vpop.permute.xlu0 %2051 }
 0x4ac   : > { %v2026_v34 = vsel %vm2025_vm11, %v2022_v13, %v2024_v20 }
 0x4ad   : > { %2028 = vst.msk [vmem:[%s7390_s24 + $0x10] sm:$0xff] %vm1960_vm14, %v2026_v34 }
 0x4af   : > { %v2032_v31 = vpop.permute.xlu1 %2031  ;;  %v2061_v10 = vpop.permute.xlu0 %2060 }
 0x4b0   : > { %2034 = vst.msk [vmem:[%s7390_s24 + $0x10] sm:$0xff] %vm1973_vm3, %v2032_v31 }
 0x4b3   : > { %v2044_v42 = vpop.permute.xlu1 %2043  ;;  %v2153_v16 = vpop.permute.xlu0 %2152 }
 0x4b4   : > { %2046 = vst.msk [vmem:[%s7390_s24 + $0x18] sm:$0xff] %vm1953_vm9, %v2044_v42 }
 0x4b7   : > { %v2054_v19 = vpop.permute.xlu1 %2053  ;;  %v2075_v15 = vpop.permute.xlu0 %2074 }
 0x4b8   : > { %v2055_v21 = vsel %vm1368_vm4, %v2052_v55, %v2054_v19  ;;  %vm2108_vm4 = vcmask 359424  }
 0x4b9   : > { %2057 = vst.msk [vmem:[%s7390_s24 + $0x18] sm:$0xff] %vm1960_vm14, %v2055_v21 }
 0x4ba   : > { %2063 = vst.msk [vmem:[%s7390_s24 + $0x18] sm:$0xff] %vm1973_vm3, %v2061_v10 }
 0x4bb   : > { %v2067_v63 = vpop.permute.xlu1 %2066  ;;  %v2097_v61 = vpop.permute.xlu0 %2096 }
 0x4bc   : > { %2069 = vst.msk [vmem:[%s7390_s24 + $0x20] sm:$0xff] %vm1946_vm8, %v2067_v63  ;;  %2099 = vst.msk [vmem:[%s7390_s24 + $0x28] sm:$0xff] %vm1946_vm8, %v2097_v61 }
 0x4bf   : > { %v2155_v29 = vpop.permute.xlu1 %2154  ;;  %v2107_v59 = vpop.permute.xlu0 %2106 }
 0x4c0   : > { %v2157_v27 = vsel %vm2156_vm6, %v2153_v16, %v2155_v29 }
 0x4c1   : > { %2159 = vst.msk [vmem:[%s7390_s24 + $0x38] sm:$0xff] %vm1946_vm8, %v2157_v27 }
 0x4c3   : > { %v2077_v40 = vpop.permute.xlu1 %2076  ;;  %v2133_v26 = vpop.permute.xlu0 %2132 }
 0x4c4   : > { %v2079_v24 = vsel %vm2078_vm1, %v2075_v15, %v2077_v40 }
 0x4c5   : > { %2081 = vst.msk [vmem:[%s7390_s24 + $0x20] sm:$0xff] %vm1953_vm9, %v2079_v24 }
 0x4c7   : > { %v2105_v9 = vpop.permute.xlu1 %2104  ;;  %v2085_v43 = vpop.permute.xlu0 %2084 }
 0x4c8   : > { %v2109_v35 = vsel %vm2108_vm4, %v2105_v9, %v2107_v59  ;;  %2087 = vst.msk [vmem:[%s7390_s24 + $0x20] sm:$0xff] %vm1960_vm14, %v2085_v43 }
 0x4c9   : > { %2111 = vst.msk [vmem:[%s7390_s24 + $0x28] sm:$0xff] %vm1953_vm9, %v2109_v35  ;;  %v2444_v37 = vpop.f32.mrb[10].mxu1  ;;  %v2514_v50 = vpop.f32.mrb[14].mxu0 }
 0x4ca   : > { %v2518_v8 = vmax.f32 %v2444_v37, %v2514_v50  ;;  %v5274_v0 = vpop.f32.mrb[11].mxu1  ;;  %v5285_v54 = vpop.f32.mrb[15].mxu0 }
 0x4cb   : > { %v2127_v5 = vpop.permute.xlu1 %2126  ;;  %v2139_v22 = vpop.permute.xlu0 %2138 }
 0x4cc   : > { %2129 = vst.msk [vmem:[%s7390_s24 + $0x30] sm:$0xff] %vm1946_vm8, %v2127_v5  ;;  %2520 = vrot.lane.b32.xlu0 %v2518_v8, %s6432_s15  ;;  %vm2523_vm8 = vcmask 261248  }
 0x4cd   : > { %2135 = vst.msk [vmem:[%s7390_s24 + $0x30] sm:$0xff] %vm1953_vm9, %v2133_v26 }
 0x4ce   : > { %2141 = vst.msk [vmem:[%s7390_s24 + $0x30] sm:$0xff] %vm1960_vm14, %v2139_v22 }
 0x4cf   : > { %v2163_v23 = vpop.permute.xlu1 %2162  ;;  %v2091_v48 = vpop.permute.xlu0 %2090 }
 0x4d0   : > { %2165 = vst.msk [vmem:[%s7390_s24 + $0x38] sm:$0xff] %vm1953_vm9, %v2163_v23 }
 0x4d1   : > { %2093 = vst.msk [vmem:[%s7390_s24 + $0x20] sm:$0xff] %vm1973_vm3, %v2091_v48  ;;  %v2602_v46 = vpop.f32.mrb[12].mxu1  ;;  %v2672_v28 = vpop.f32.mrb[16].mxu0 }
 0x4d2   : > { %v2676_v53 = vmax.f32 %v2602_v46, %v2672_v28  ;;  %v5296_v52 = vpop.f32.mrb[13].mxu1  ;;  %v5307_v36 = vpop.f32.mrb[17].mxu0 }
 0x4d3   : > { %v2115_v51 = vpop.permute.xlu1 %2114  ;;  %v2145_v38 = vpop.permute.xlu0 %2144 }
 0x4d4   : > { %2117 = vst.msk [vmem:[%s7390_s24 + $0x28] sm:$0xff] %vm1960_vm14, %v2115_v51  ;;  %2678 = vrot.lane.b32.xlu0 %v2676_v53, %s6430_s13 }
 0x4d5   : > { %2147 = vst.msk [vmem:[%s7390_s24 + $0x30] sm:$0xff] %vm1973_vm3, %v2145_v38 }
 0x4d7   : > { %v2169_v60 = vpop.permute.xlu1 %2168 }
 0x4d8   : > { %2171 = vst.msk [vmem:[%s7390_s24 + $0x38] sm:$0xff] %vm1960_vm14, %v2169_v60 }
 0x4d9   : > { %v2765_v30 = vpop.f32.mrb[14].mxu1  ;;  %v2835_v32 = vpop.f32.mrb[18].mxu0 }
 0x4da   : > { %v2839_v44 = vmax.f32 %v2765_v30, %v2835_v32  ;;  %v5318_v12 = vpop.f32.mrb[15].mxu1  ;;  %v5329_v56 = vpop.f32.mrb[19].mxu0 }
 0x4db   : > { %v2121_v14 = vpop.permute.xlu1 %2120 }
 0x4dc   : > { %2123 = vst.msk [vmem:[%s7390_s24 + $0x28] sm:$0xff] %vm1973_vm3, %v2121_v14  ;;  %2841 = vrot.lane.b32.xlu0 %v2839_v44, %s6428_s11 }
 0x4df   : > { %v2175_v57 = vpop.permute.xlu1 %2174 }
 0x4e0   : > { %2177 = vst.msk [vmem:[%s7390_s24 + $0x38] sm:$0xff] %vm1973_vm3, %v2175_v57 }
 0x4e1   : > { %v2923_v49 = vpop.f32.mrb[16].mxu1  ;;  %v2993_v39 = vpop.f32.mrb[20].mxu0 }
 0x4e2   : > { %v2997_v58 = vmax.f32 %v2923_v49, %v2993_v39  ;;  %v5340_v7 = vpop.f32.mrb[17].mxu1  ;;  %v5351_v62 = vpop.f32.mrb[21].mxu0 }
 0x4e4   : > { %2999 = vrot.lane.b32.xlu0 %v2997_v58, %s6426_s9 }
 0x4e9   : > { %v3088_v2 = vpop.f32.mrb[18].mxu1  ;;  %v3158_v25 = vpop.f32.mrb[22].mxu0 }
 0x4ea   : > { %v3162_v33 = vmax.f32 %v3088_v2, %v3158_v25  ;;  %v5362_v6 = vpop.f32.mrb[19].mxu1  ;;  %v5373_v4 = vpop.f32.mrb[23].mxu0 }
 0x4ec   : > { %3164 = vrot.lane.b32.xlu0 %v3162_v33, %s6424_s29 }
 0x4f1   : > { %v3246_v45 = vpop.f32.mrb[20].mxu1  ;;  %v3316_v18 = vpop.f32.mrb[24].mxu0 }
 0x4f2   : > { %v3320_v17 = vmax.f32 %v3246_v45, %v3316_v18  ;;  %v5384_v41 = vpop.f32.mrb[21].mxu1  ;;  %v5395_v11 = vpop.f32.mrb[25].mxu0 }
 0x4f4   : > { %3322 = vrot.lane.b32.xlu0 %v3320_v17, %s6422_s27 }
 0x4f9   : > { %v3411_v20 = vpop.f32.mrb[22].mxu1  ;;  %v3481_v1 = vpop.f32.mrb[26].mxu0 }
 0x4fa   : > { %v3485_v47 = vmax.f32 %v3411_v20, %v3481_v1  ;;  %v5406_v3 = vpop.f32.mrb[23].mxu1  ;;  %v5417_v13 = vpop.f32.mrb[27].mxu0 }
 0x4fc   : > { %3487 = vrot.lane.b32.xlu0 %v3485_v47, %s6420_s25 }
 0x501   : > { %v3574_v55 = vpop.f32.mrb[24].mxu1  ;;  %v3644_v34 = vpop.f32.mrb[28].mxu0 }
 0x502   : > { %v3648_v31 = vmax.f32 %v3574_v55, %v3644_v34  ;;  %v5428_v10 = vpop.f32.mrb[25].mxu1  ;;  %v5439_v42 = vpop.f32.mrb[29].mxu0 }
 0x504   : > { %3649 = vst.msk [vmem:[%s7815_s10 + $0x8] sm:$0xff] %vm2156_vm6, %v3648_v31 }
 0x509   : > { %v3727_v16 = vpop.f32.mrb[26].mxu1  ;;  %v3797_v19 = vpop.f32.mrb[30].mxu0 }
 0x50a   : > { %v3801_v15 = vmax.f32 %v3727_v16, %v3797_v19  ;;  %v5450_v21 = vpop.f32.mrb[27].mxu1  ;;  %v5461_v63 = vpop.f32.mrb[31].mxu0 }
 0x50c   : > { %3803 = vrot.lane.b32.xlu1 %v3801_v15, %s6432_s15 }
 0x53e   : > { %v2521_v61 = vpop.permute.xlu0 %2520 }
 0x53f   : > { %2524 = vst.msk [vmem:[%s7815_s10] sm:$0xff] %vm2523_vm8, %v2521_v61 }
 0x546   : > { %v2679_v29 = vpop.permute.xlu0 %2678 }
 0x547   : > { %2682 = vst.msk [vmem:[%s7815_s10] sm:$0xff] %vm2681_vm7, %v2679_v29  ;;  %v3889_v59 = vpop.f32.mrb[28].mxu1  ;;  %v3959_v27 = vpop.f32.mrb[32].mxu0 }
 0x548   : > { %v3963_v40 = vmax.f32 %v3889_v59, %v3959_v27  ;;  %v5472_v26 = vpop.f32.mrb[29].mxu1  ;;  %v5483_v24 = vpop.f32.mrb[33].mxu0 }
 0x54a   : > { %3965 = vrot.lane.b32.xlu1 %v3963_v40, %s6430_s13 }
 0x54e   : > { %v2842_v9 = vpop.permute.xlu0 %2841 }
 0x54f   : > { %2845 = vst.msk [vmem:[%s7815_s10] sm:$0xff] %vm2844_vm2, %v2842_v9  ;;  %v4046_v43 = vpop.f32.mrb[30].mxu1  ;;  %v4116_v35 = vpop.f32.mrb[34].mxu0 }
 0x550   : > { %v4120_v37 = vmax.f32 %v4046_v43, %v4116_v35  ;;  %v5494_v50 = vpop.f32.mrb[31].mxu1  ;;  %v5505_v8 = vpop.f32.mrb[35].mxu0 }
 0x552   : > { %4122 = vrot.lane.b32.xlu1 %v4120_v37, %s6428_s11 }
 0x556   : > { %v3000_v0 = vpop.permute.xlu0 %2999 }
 0x557   : > { %3003 = vst.msk [vmem:[%s7815_s10] sm:$0xff] %vm3002_vm5, %v3000_v0  ;;  %v4204_v54 = vpop.f32.mrb[32].mxu1  ;;  %v4274_v5 = vpop.f32.mrb[36].mxu0 }
 0x558   : > { %v4278_v22 = vmax.f32 %v4204_v54, %v4274_v5  ;;  %v5516_v23 = vpop.f32.mrb[33].mxu1  ;;  %v5527_v48 = vpop.f32.mrb[37].mxu0 }
 0x55a   : > { %4280 = vrot.lane.b32.xlu1 %v4278_v22, %s6426_s9 }
 0x55e   : > { %v3165_v46 = vpop.permute.xlu0 %3164 }
 0x55f   : > { %3168 = vst.msk [vmem:[%s7815_s10] sm:$0xff] %vm3167_vm10, %v3165_v46  ;;  %v4361_v28 = vpop.f32.mrb[34].mxu1  ;;  %v4431_v53 = vpop.f32.mrb[38].mxu0 }
 0x560   : > { %v4435_v52 = vmax.f32 %v4361_v28, %v4431_v53  ;;  %v5538_v36 = vpop.f32.mrb[35].mxu1  ;;  %v5549_v51 = vpop.f32.mrb[39].mxu0 }
 0x562   : > { %4437 = vrot.lane.b32.xlu1 %v4435_v52, %s6424_s29 }
 0x566   : > { %v3323_v38 = vpop.permute.xlu0 %3322 }
 0x567   : > { %3326 = vst.msk [vmem:[%s7815_s10] sm:$0xff] %vm3325_vm0, %v3323_v38  ;;  %v4524_v60 = vpop.f32.mrb[36].mxu1  ;;  %v4594_v30 = vpop.f32.mrb[40].mxu0 }
 0x568   : > { %v4598_v32 = vmax.f32 %v4524_v60, %v4594_v30  ;;  %v5560_v44 = vpop.f32.mrb[37].mxu1  ;;  %v5571_v12 = vpop.f32.mrb[41].mxu0 }
 0x56a   : > { %4600 = vrot.lane.b32.xlu1 %v4598_v32, %s6422_s27 }
 0x56e   : > { %v3488_v56 = vpop.permute.xlu0 %3487 }
 0x56f   : > { %3491 = vst.msk [vmem:[%s7815_s10] sm:$0xff] %vm3490_vm12, %v3488_v56  ;;  %v4681_v14 = vpop.f32.mrb[38].mxu1  ;;  %v4751_v57 = vpop.f32.mrb[42].mxu0 }
 0x570   : > { %v4755_v49 = vmax.f32 %v4681_v14, %v4751_v57  ;;  %v5582_v39 = vpop.f32.mrb[39].mxu1  ;;  %v5593_v58 = vpop.f32.mrb[43].mxu0 }
 0x572   : > { %4757 = vrot.lane.b32.xlu1 %v4755_v49, %s6420_s25 }
 0x57e   : > { %v3804_v7 = vpop.permute.xlu1 %3803 }
 0x57f   : > { %3806 = vst.msk [vmem:[%s7815_s10 + $0x8] sm:$0xff] %vm2523_vm8, %v3804_v7 }
 0x5bc   : > { %v3966_v62 = vpop.permute.xlu1 %3965 }
 0x5bd   : > { %3968 = vst.msk [vmem:[%s7815_s10 + $0x8] sm:$0xff] %vm2681_vm7, %v3966_v62 }
 0x5c4   : > { %v4123_v2 = vpop.permute.xlu1 %4122 }
 0x5c5   : > { %4125 = vst.msk [vmem:[%s7815_s10 + $0x8] sm:$0xff] %vm2844_vm2, %v4123_v2 }
 0x5cc   : > { %v4281_v25 = vpop.permute.xlu1 %4280 }
 0x5cd   : > { %4283 = vst.msk [vmem:[%s7815_s10 + $0x8] sm:$0xff] %vm3002_vm5, %v4281_v25 }
 0x5d4   : > { %v4438_v33 = vpop.permute.xlu1 %4437 }
 0x5d5   : > { %4440 = vst.msk [vmem:[%s7815_s10 + $0x8] sm:$0xff] %vm3167_vm10, %v4438_v33 }
 0x5dc   : > { %v4601_v6 = vpop.permute.xlu1 %4600 }
 0x5dd   : > { %4603 = vst.msk [vmem:[%s7815_s10 + $0x8] sm:$0xff] %vm3325_vm0, %v4601_v6 }
 0x5e4   : > { %v4758_v4 = vpop.permute.xlu1 %4757 }
 0x5e5   : > { %4760 = vst.msk [vmem:[%s7815_s10 + $0x8] sm:$0xff] %vm3490_vm12, %v4758_v4 }
 0x5e6 PF: > { %s17_s21 = sadd.s32 1, %s6404_s21  }
 0x5e7   : > { %p14_p4 = scmp.ge.s32.totalorder %s17_s21, 4  }
 0x5e9   :  { %16 = sbr.rel (!%p14_p4) target bundleno = 1 (0x1), region = 82 }

</bundles_post_ra>
